<compile_context>
chip_gen: v7x
topology: tpu7x:2x2x1
jax: 0.10.0
libtpu: 0.0.40
codegen_flags: <defaults>
</compile_context>

<pallas_src>
import functools

import jax
import jax.numpy as jnp
from jax.experimental import pallas as pl
from jax.experimental.pallas import tpu as pltpu


# ----------------------------- hardware-aware budgets ---------------------------

def _vmem_and_tiles():
    """(vmem_limit_bytes, tm/tn target, tk target) per TPU generation, safe fallback."""
    cap = 0
    try:
        info = pltpu.get_tpu_info()
        cap = int(getattr(info, "vmem_capacity_bytes", 0))
    except Exception:
        cap = 0
    if cap >= 100 * 1024 * 1024:            # v5e / v6e: 128 MiB physical VMEM
        return 80 * 1024 * 1024, 512, 512
    return 40 * 1024 * 1024, 256, 512       # v7x (64 MiB per TC) or unknown: conservative


_VMEM_LIMIT, _TMN_TARGET, _TK_TARGET = _vmem_and_tiles()


def _pick_tile(dim, target, align):
    """Aligned divisor of `dim`, preferring <= target (bounded overshoot otherwise)."""
    if dim <= target:
        return dim
    t = (target // align) * align
    while t >= align:
        if dim % t == 0:
            return t
        t -= align
    t = (target // align + 1) * align
    while t < dim:
        if dim % t == 0:
            return t
        t += align
    return dim


# ------------------ tiled matmul (+bias / GELU / residual / LN epilogue) --------

def _matmul_kernel(*refs, activation, has_bias, has_residual, has_ln, ln_eps):
    a_ref, b_ref = refs[0], refs[1]
    idx = 2
    bias_ref = refs[idx] if has_bias else None
    idx += int(has_bias)
    res_ref = refs[idx] if has_residual else None
    idx += int(has_residual)
    if has_ln:
        g_ref, be_ref = refs[idx], refs[idx + 1]
        idx += 2
    o_ref, acc_ref = refs[idx], refs[idx + 1]

    @pl.when(pl.program_id(2) == 0)
    def _():
        acc_ref[...] = jnp.zeros_like(acc_ref)

    acc_ref[...] += jnp.dot(a_ref[...].astype(jnp.bfloat16),
                            b_ref[...].astype(jnp.bfloat16),
                            preferred_element_type=jnp.float32)

    @pl.when(pl.program_id(2) == pl.num_programs(2) - 1)
    def _():
        out = acc_ref[...]
        if has_bias:
            out = out + bias_ref[...]
        if activation == "gelu":
            # TODO(synk): PyTorch nn.GELU default is the exact erf form; tanh approx used here.
            out = jax.nn.gelu(out, approximate=True)
        if has_residual:
            out = out + res_ref[...].astype(jnp.float32)
        if has_ln:
            mu = jnp.mean(out, axis=-1, keepdims=True)
            var = jnp.mean(jnp.square(out - mu), axis=-1, keepdims=True)
            out = (out - mu) * jax.lax.rsqrt(var + ln_eps)
            out = out * g_ref[...] + be_ref[...]
        o_ref[...] = out.astype(o_ref.dtype)


def matmul_bias(a, w, bias=None, residual=None, activation=None, ln=None, ln_eps=1e-6,
                out_dtype=jnp.bfloat16, tm_target=None, tn_target=None, tk_target=None):
    # a: (M, K) activations (bf16 or f32), w: (K, N) weights (cast to bf16),
    # bias: (N,) f32 or None, residual: (M, N) or periodic (Tr, N) with M % Tr == 0
    # (added in the epilogue), ln: (gamma, beta) fused LayerNorm over the full N axis.
    M, K = a.shape
    K2, N = w.shape
    assert K == K2
    tm_target = tm_target or _TMN_TARGET
    tn_target = tn_target or _TMN_TARGET
    tk_target = tk_target or _TK_TARGET

    periodic = residual is not None and residual.shape[0] != M
    if periodic:
        Tr = residual.shape[0]
        assert M % Tr == 0
        tm = _pick_tile(Tr, tm_target, 8)
    else:
        tm = _pick_tile(M, tm_target, 8)
    tn = N if ln is not None else _pick_tile(N, tn_target, 128)   # LN needs full N in-tile
    tk = _pick_tile(K, tk_target, 128)
    grid = (M // tm, N // tn, K // tk)

    in_specs = [pl.BlockSpec((tm, tk), lambda i, j, k: (i, k)),
                pl.BlockSpec((tk, tn), lambda i, j, k: (k, j))]
    args = [a, w.astype(jnp.bfloat16)]
    if bias is not None:
        in_specs.append(pl.BlockSpec((1, tn), lambda i, j, k: (0, j)))
        args.append(bias.reshape(1, N).astype(jnp.float32))
    if residual is not None:
        if periodic:
            bp = residual.shape[0] // tm
            if bp == 1:
                res_map = lambda i, j, k: (0, j)
            else:
                res_map = lambda i, j, k, bp=bp: (jax.lax.rem(i, bp), j)
        else:
            res_map = lambda i, j, k: (i, j)
        in_specs.append(pl.BlockSpec((tm, tn), res_map))
        args.append(residual)
    if ln is not None:
        gamma, beta = ln
        in_specs.append(pl.BlockSpec((1, tn), lambda i, j, k: (0, j)))
        in_specs.append(pl.BlockSpec((1, tn), lambda i, j, k: (0, j)))
        args.append(gamma.reshape(1, N).astype(jnp.float32))
        args.append(beta.reshape(1, N).astype(jnp.float32))

    kernel = functools.partial(_matmul_kernel, activation=activation,
                               has_bias=bias is not None,
                               has_residual=residual is not None,
                               has_ln=ln is not None, ln_eps=ln_eps)
    return pl.pallas_call(
        kernel,
        out_shape=jax.ShapeDtypeStruct((M, N), out_dtype),
        grid=grid,
        in_specs=in_specs,
        out_specs=pl.BlockSpec((tm, tn), lambda i, j, k: (i, j)),
        scratch_shapes=[pltpu.VMEM((tm, tn), jnp.float32)],
        compiler_params=pltpu.CompilerParams(
            dimension_semantics=("parallel", "parallel", "arbitrary"),
            vmem_limit_bytes=_VMEM_LIMIT),
    )(*args)


# ------------------ LayerNorm-fused matmul (LN prologue, cached per row-tile) ----

def _ln_matmul_kernel(a_ref, g_ref, be_ref, w_ref, bias_ref, o_ref, xn_ref, *,
                      eps, activation):
    # Normalize the row tile once (j == 0) and cache the bf16 result; reuse it for all
    # output-column tiles of the same row tile (j is the inner "arbitrary" axis).
    @pl.when(pl.program_id(1) == 0)
    def _():
        x = a_ref[...].astype(jnp.float32)
        mu = jnp.mean(x, axis=-1, keepdims=True)
        var = jnp.mean(jnp.square(x - mu), axis=-1, keepdims=True)
        xn = (x - mu) * jax.lax.rsqrt(var + eps)
        xn_ref[...] = (xn * g_ref[...] + be_ref[...]).astype(jnp.bfloat16)

    acc = jnp.dot(xn_ref[...], w_ref[...], preferred_element_type=jnp.float32) + bias_ref[...]
    if activation == "gelu":
        # TODO(synk): PyTorch nn.GELU default is the exact erf form; tanh approx used here.
        acc = jax.nn.gelu(acc, approximate=True)
    o_ref[...] = acc.astype(o_ref.dtype)


def ln_matmul_bias(a, gamma, beta, w, bias, activation=None, eps=1e-6,
                   out_dtype=jnp.bfloat16, tm_target=None, tn_target=None):
    # LayerNorm(a) @ w + bias with the K (= channel) axis kept whole in VMEM; no extra
    # HBM round trip for the normalized activations.
    M, K = a.shape
    _, N = w.shape
    tm = _pick_tile(M, tm_target or _TMN_TARGET, 8)
    tn = _pick_tile(N, tn_target or _TMN_TARGET, 128)
    grid = (M // tm, N // tn)
    return pl.pallas_call(
        functools.partial(_ln_matmul_kernel, eps=eps, activation=activation),
        out_shape=jax.ShapeDtypeStruct((M, N), out_dtype),
        grid=grid,
        in_specs=[pl.BlockSpec((tm, K), lambda i, j: (i, 0)),
                  pl.BlockSpec((1, K), lambda i, j: (0, 0)),
                  pl.BlockSpec((1, K), lambda i, j: (0, 0)),
                  pl.BlockSpec((K, tn), lambda i, j: (0, j)),
                  pl.BlockSpec((1, tn), lambda i, j: (0, j))],
        out_specs=pl.BlockSpec((tm, tn), lambda i, j: (i, j)),
        scratch_shapes=[pltpu.VMEM((tm, K), jnp.bfloat16)],
        compiler_params=pltpu.CompilerParams(
            dimension_semantics=("parallel", "arbitrary"),
            vmem_limit_bytes=_VMEM_LIMIT),
    )(a, gamma.reshape(1, K).astype(jnp.float32),
      beta.reshape(1, K).astype(jnp.float32),
      w.astype(jnp.bfloat16),
      bias.reshape(1, N).astype(jnp.float32))


# ------------------------- attention: grid over (image, head) -------------------

def _attention_kernel(qkv_ref, o_ref, *, scale):
    # qkv_ref: (1, T, 3*Dh) with [q | k | v] contiguous for this head; o_ref: (1, T, Dh).
    Dh = o_ref.shape[-1]
    qkv = qkv_ref[0]
    q = qkv[:, 0:Dh]
    k = qkv[:, Dh:2 * Dh]
    v = qkv[:, 2 * Dh:3 * Dh]
    s = jax.lax.dot_general(q, k, (((1,), (1,)), ((), ())),
                            preferred_element_type=jnp.float32) * scale
    s = s - jnp.max(s, axis=-1, keepdims=True)
    p = jnp.exp(s)
    p = p * pl.reciprocal(jnp.sum(p, axis=-1, keepdims=True), approx=True)
    o = jnp.dot(p.astype(jnp.bfloat16), v, preferred_element_type=jnp.float32)
    o_ref[0] = o.astype(o_ref.dtype)


def attention(qkv, heads):
    # qkv: (N, T, 3E) bf16 with per-head-contiguous [q|k|v] channel layout -> (N, T, E).
    # TODO(synk): holds one full (T, T) score matrix per head in VMEM; real 64x64-token SAM
    # needs a flash-style KV-tiled online-softmax variant of this kernel.
    N, T, E3 = qkv.shape
    E = E3 // 3
    Dh = E // heads
    scale = Dh ** -0.5
    return pl.pallas_call(
        functools.partial(_attention_kernel, scale=scale),
        out_shape=jax.ShapeDtypeStruct((N, T, E), jnp.bfloat16),
        grid=(N, heads),
        in_specs=[pl.BlockSpec((1, T, 3 * Dh), lambda n, h: (n, 0, h))],
        out_specs=pl.BlockSpec((1, T, Dh), lambda n, h: (n, 0, h)),
        compiler_params=pltpu.CompilerParams(
            dimension_semantics=("parallel", "parallel"),
            vmem_limit_bytes=_VMEM_LIMIT),
    )(qkv)


# ---------------- SAM neck 3x3 conv (row-blocked) + fused LayerNorm2d ------------

def _conv3x3_ln_kernel(win_ref, w_ref, g_ref, b_ref, o_ref, acc_ref, *, eps, rows):
    R = rows
    Wp = o_ref.shape[2]
    OC = o_ref.shape[3]
    acc_ref[...] = jnp.zeros_like(acc_ref)
    win = win_ref[0, 0]                                  # (R+2, Wp+2, OC) bf16
    for dy in range(3):
        for dx in range(3):
            a = win[dy:dy + R, dx:dx + Wp, :].reshape(R * Wp, OC)
            acc_ref[...] += jnp.dot(a.astype(jnp.bfloat16), w_ref[dy, dx],
                                    preferred_element_type=jnp.float32)
    x = acc_ref[...]
    mu = jnp.mean(x, axis=-1, keepdims=True)
    var = jnp.mean(jnp.square(x - mu), axis=-1, keepdims=True)
    xn = (x - mu) * jax.lax.rsqrt(var + eps)
    out = xn * g_ref[...] + b_ref[...]
    o_ref[0] = out.reshape(R, Wp, OC).astype(o_ref.dtype)


def conv3x3_ln(xs, w, gamma, beta, eps=1e-6, rows_target=8):
    # xs: (N, Hp, Wp, OC) bf16, w: (3, 3, OC, OC); padding='same', no bias; the trailing
    # LayerNorm2d is fused into the same kernel. R output rows are produced per grid step
    # (tap matmuls have M = R*Wp; halo rows re-read (R+2)/R times instead of 3x).
    N, Hp, Wp, OC = xs.shape
    R = 1
    for r in range(min(rows_target, Hp), 0, -1):
        if Hp % r == 0:
            R = r
            break
    nblk = Hp // R
    xpad = jnp.pad(xs, ((0, 0), (1, 1), (1, 1), (0, 0)))
    # overlapping row windows (small (R+2)/R duplication, built once outside the kernel)
    row_idx = jnp.arange(nblk)[:, None] * R + jnp.arange(R + 2)[None, :]
    xwin = xpad[:, row_idx]                              # (N, nblk, R+2, Wp+2, OC)

    return pl.pallas_call(
        functools.partial(_conv3x3_ln_kernel, eps=eps, rows=R),
        out_shape=jax.ShapeDtypeStruct((N, Hp, Wp, OC), jnp.float32),
        grid=(N, nblk),
        in_specs=[pl.BlockSpec((1, 1, R + 2, Wp + 2, OC), lambda n, b: (n, b, 0, 0, 0)),
                  pl.BlockSpec((3, 3, OC, OC), lambda n, b: (0, 0, 0, 0)),
                  pl.BlockSpec((1, OC), lambda n, b: (0, 0)),
                  pl.BlockSpec((1, OC), lambda n, b: (0, 0))],
        out_specs=pl.BlockSpec((1, R, Wp, OC), lambda n, b: (n, b, 0, 0)),
        scratch_shapes=[pltpu.VMEM((R * Wp, OC), jnp.float32)],
        compiler_params=pltpu.CompilerParams(
            dimension_semantics=("parallel", "parallel"),
            vmem_limit_bytes=_VMEM_LIMIT),
    )(xwin, w.astype(jnp.bfloat16),
      gamma.reshape(1, OC).astype(jnp.float32),
      beta.reshape(1, OC).astype(jnp.float32))


# ----------------------------- parameters (synthetic, deterministic) -------------

PIXEL_MEAN = jnp.array([123.675, 116.28, 103.53], jnp.float32)
PIXEL_STD = jnp.array([58.395, 57.12, 57.375], jnp.float32)


def init_params(key, cfg):
    E, P, C = cfg["embed"], cfg["patch"], cfg["in_chans"]
    OC, MH = cfg["out_chans"], cfg["embed"] * cfg["mlp_ratio"]
    Hp = Wp = cfg["img_size"] // P
    keys = iter(jax.random.split(key, 8 + 8 * cfg["depth"]))

    def w(shape, scale=0.02):
        # weight matrices stored in bf16 (MXU-native); LN params / biases stay f32
        return (scale * jax.random.normal(next(keys), shape)).astype(jnp.bfloat16)

    params = {
        "patch_w": w((P * P * C, E)),
        "patch_b": jnp.zeros((E,), jnp.float32),
        "pos_embed": (0.02 * jax.random.normal(next(keys), (Hp * Wp, E))).astype(jnp.float32),
        "neck_w1": w((E, OC)),                  # 1x1 conv, no bias
        "neck_ln1_g": jnp.ones((OC,), jnp.float32),
        "neck_ln1_b": jnp.zeros((OC,), jnp.float32),
        "neck_w2": w((3, 3, OC, OC)),           # 3x3 conv, no bias
        "neck_ln2_g": jnp.ones((OC,), jnp.float32),
        "neck_ln2_b": jnp.zeros((OC,), jnp.float32),
        "blocks": [],
    }
    for _ in range(cfg["depth"]):
        # qkv weight columns are stored head-major with [q | k | v] contiguous per head;
        # converting a real PyTorch qkv weight is a static (host-side) column permutation.
        params["blocks"].append({
            "ln1_g": jnp.ones((E,), jnp.float32), "ln1_b": jnp.zeros((E,), jnp.float32),
            "qkv_w": w((E, 3 * E)), "qkv_b": jnp.zeros((3 * E,), jnp.float32),
            "proj_w": w((E, E)), "proj_b": jnp.zeros((E,), jnp.float32),
            "ln2_g": jnp.ones((E,), jnp.float32), "ln2_b": jnp.zeros((E,), jnp.float32),
            "fc1_w": w((E, MH)), "fc1_b": jnp.zeros((MH,), jnp.float32),
            "fc2_w": w((MH, E)), "fc2_b": jnp.zeros((E,), jnp.float32),
        })
    return params


# -------- forward (SamPredictor.set_torch_image + get_image_embedding) -----------

def sam_image_embedding(params, x_nchw, cfg):
    # TODO(synk): SamPredictor also bilinearly resizes the longest side to image_size
    # (ResizeLongestSide); here the input is assumed to already match the encoder resolution.
    N, C, H, W = x_nchw.shape
    S = cfg["img_size"]
    x = jnp.transpose(x_nchw, (0, 2, 3, 1)).astype(jnp.float32)      # NHWC raw pixels

    # SAM preprocess = (x - mean)/std then zero-pad to square. The normalization is folded
    # into the patch-embed weights below, so the pad region must hold the per-channel mean
    # (mean normalizes to 0, matching the reference zero padding of normalized pixels).
    if (H, W) != (S, S):
        canvas = jnp.broadcast_to(PIXEL_MEAN.reshape(1, 1, 1, C), (N, S, S, C)).astype(jnp.float32)
        x = jax.lax.dynamic_update_slice(canvas, x, (0, 0, 0, 0))

    # patch embed: conv(k=stride=patch) as im2col + tiled Pallas matmul, with pixel
    # normalization folded into the weights/bias; activations are carried as bf16.
    P, E = cfg["patch"], cfg["embed"]
    Hp = Wp = S // P
    T = Hp * Wp
    x = x.astype(jnp.bfloat16)
    xp = x.reshape(N, Hp, P, Wp, P, C).transpose(0, 1, 3, 2, 4, 5).reshape(N * T, P * P * C)

    inv_std_k = jnp.tile(1.0 / PIXEL_STD, P * P)                      # (P*P*C,), channel-minor
    mean_k = jnp.tile(PIXEL_MEAN, P * P)
    patch_w_f32 = params["patch_w"].astype(jnp.float32)
    w_patch = patch_w_f32 * inv_std_k[:, None]
    b_patch = params["patch_b"] - (mean_k * inv_std_k) @ patch_w_f32

    # positional embedding fused as a periodic residual in the matmul epilogue
    tokens = matmul_bias(xp, w_patch, b_patch, residual=params["pos_embed"])   # (N*T, E) bf16

    heads = cfg["heads"]
    for blk in params["blocks"]:
        x2d = tokens                                                  # (N*T, E) bf16
        # --- attention: LN fused into qkv matmul; residual fused into proj matmul ---
        qkv = ln_matmul_bias(x2d, blk["ln1_g"], blk["ln1_b"], blk["qkv_w"], blk["qkv_b"])
        a = attention(qkv.reshape(N, T, 3 * E), heads).reshape(N * T, E)
        x2d = matmul_bias(a, blk["proj_w"], blk["proj_b"], residual=x2d)
        # --- mlp: LN + GELU fused into fc1 matmul; residual fused into fc2 matmul ---
        h = ln_matmul_bias(x2d, blk["ln2_g"], blk["ln2_b"], blk["fc1_w"], blk["fc1_b"],
                           activation="gelu")
        x2d = matmul_bias(h, blk["fc2_w"], blk["fc2_b"], residual=x2d)
        tokens = x2d

    # --- SAM neck: 1x1 conv with fused LayerNorm2d -> 3x3 conv with fused LayerNorm2d ---
    OC = cfg["out_chans"]
    x2d = matmul_bias(tokens, params["neck_w1"],
                      ln=(params["neck_ln1_g"], params["neck_ln1_b"]))
    xs = x2d.reshape(N, Hp, Wp, OC)
    xs = conv3x3_ln(xs, params["neck_w2"], params["neck_ln2_g"], params["neck_ln2_b"])

    # image embedding, NCHW like get_image_embedding(): (N, out_chans, Hp, Wp), float32
    return jnp.transpose(xs, (0, 3, 1, 2))


# ----------------------------- main ----------------------------------------------

if __name__ == "__main__":
    cfg = dict(img_size=128, patch=16, in_chans=3, embed=256, depth=2,
               heads=2, mlp_ratio=2, out_chans=256)

    key = jax.random.PRNGKey(0)
    k_param, k_x = jax.random.split(key)
    params = init_params(k_param, cfg)

    # pixel image, NCHW, values in [0, 255] (what SamPredictor.set_torch_image expects)
    x = jax.random.uniform(k_x, (2, cfg["in_chans"], cfg["img_size"], cfg["img_size"]),
                           jnp.float32) * 255.0

    fwd = jax.jit(functools.partial(sam_image_embedding, cfg=cfg))
    emb = fwd(params, x)
    emb = jax.block_until_ready(emb)

    Hp = cfg["img_size"] // cfg["patch"]
    assert emb.shape == (2, cfg["out_chans"], Hp, Hp), emb.shape
    assert jnp.all(jnp.isfinite(emb))
    print("KERNEL_OK")
</pallas_src>

<mosaic_0001>
module attributes {stable_mosaic.version = 11 : i64} {
  func.func @_matmul_kernel(%arg0: i32, %arg1: i32, %arg2: i32, %arg3: memref<64x384xbf16, #tpu.memory_space<vmem>>, %arg4: memref<384x256xbf16, #tpu.memory_space<vmem>>, %arg5: memref<1x256xf32, #tpu.memory_space<vmem>>, %arg6: memref<64x256xf32, #tpu.memory_space<vmem>>, %arg7: memref<64x256xbf16, #tpu.memory_space<vmem>>, %arg8: memref<64x256xf32, #tpu.memory_space<vmem>>) attributes {dimension_semantics = [#tpu.dimension_semantics<parallel>, #tpu.dimension_semantics<parallel>, #tpu.dimension_semantics<arbitrary>], iteration_bounds = array<i64: 2, 1, 2>, scalar_prefetch = 0 : i64, scratch_operands = 1 : i64, tpu.core_type = #tpu.core_type<tc>, window_params = [{transform_indices = @transform_0, window_bounds = array<i64: 64, 384>}, {transform_indices = @transform_1, window_bounds = array<i64: 384, 256>}, {transform_indices = @transform_2, window_bounds = array<i64: 1, 256>}, {transform_indices = @transform_3, window_bounds = array<i64: 64, 256>}, {transform_indices = @transform_4, window_bounds = array<i64: 64, 256>}]} {
    %c0_i32 = arith.constant 0 : i32
    %0 = arith.cmpi eq, %arg2, %c0_i32 : i32
    %1 = arith.extui %0 : i1 to i32
    %c0_i32_0 = arith.constant 0 : i32
    %2 = arith.cmpi ne, %1, %c0_i32_0 : i32
    scf.if %2 {
      %cst_9 = arith.constant 0.000000e+00 : f32
      %12 = vector.broadcast %cst_9 : f32 to vector<64x256xf32>
      %c0_10 = arith.constant 0 : index
      %c0_11 = arith.constant 0 : index
      %13 = vector.load %arg8[%c0_10, %c0_11] : memref<64x256xf32, #tpu.memory_space<vmem>>, vector<64x256xf32>
      tpu.vector_store %arg8[%c0_10, %c0_11], %12 {strides = array<i32>} : memref<64x256xf32, #tpu.memory_space<vmem>>, vector<64x256xf32>,
    } else {
    }
    %c0 = arith.constant 0 : index
    %c0_1 = arith.constant 0 : index
    %3 = vector.load %arg8[%c0, %c0_1] : memref<64x256xf32, #tpu.memory_space<vmem>>, vector<64x256xf32>
    %c0_2 = arith.constant 0 : index
    %c0_3 = arith.constant 0 : index
    %4 = vector.load %arg3[%c0_2, %c0_3] : memref<64x384xbf16, #tpu.memory_space<vmem>>, vector<64x384xbf16>
    %c0_4 = arith.constant 0 : index
    %c0_5 = arith.constant 0 : index
    %5 = vector.load %arg4[%c0_4, %c0_5] : memref<384x256xbf16, #tpu.memory_space<vmem>>, vector<384x256xbf16>
    %cst = arith.constant dense<0.000000e+00> : vector<64x256xf32>
    %6 = tpu.matmul %4, %5, %cst {dimension_numbers = #tpu.dot_dimension_numbers<[1], [0], [0], [1], [0, 0, 1, 1], [], []>} : vector<64x384xbf16>, vector<384x256xbf16>, vector<64x256xf32> -> vector<64x256xf32>
    %7 = arith.addf %3, %6 : vector<64x256xf32>
    %c0_6 = arith.constant 0 : index
    %c0_7 = arith.constant 0 : index
    %8 = vector.load %arg8[%c0_6, %c0_7] : memref<64x256xf32, #tpu.memory_space<vmem>>, vector<64x256xf32>
    tpu.vector_store %arg8[%c0_6, %c0_7], %7 {strides = array<i32>} : memref<64x256xf32, #tpu.memory_space<vmem>>, vector<64x256xf32>,
    %c1_i32 = arith.constant 1 : i32
    %9 = arith.cmpi eq, %arg2, %c1_i32 : i32
    %10 = arith.extui %9 : i1 to i32
    %c0_i32_8 = arith.constant 0 : i32
    %11 = arith.cmpi ne, %10, %c0_i32_8 : i32
    scf.if %11 {
      %c0_9 = arith.constant 0 : index
      %c0_10 = arith.constant 0 : index
      %12 = vector.load %arg8[%c0_9, %c0_10] : memref<64x256xf32, #tpu.memory_space<vmem>>, vector<64x256xf32>
      %c0_11 = arith.constant 0 : index
      %c0_12 = arith.constant 0 : index
      %13 = vector.load %arg5[%c0_11, %c0_12] : memref<1x256xf32, #tpu.memory_space<vmem>>, vector<1x256xf32>
      %14 = vector.broadcast %13 : vector<1x256xf32> to vector<64x256xf32>
      %15 = arith.addf %12, %14 : vector<64x256xf32>
      %c0_13 = arith.constant 0 : index
      %c0_14 = arith.constant 0 : index
      %16 = vector.load %arg6[%c0_13, %c0_14] : memref<64x256xf32, #tpu.memory_space<vmem>>, vector<64x256xf32>
      %17 = arith.addf %15, %16 : vector<64x256xf32>
      %18 = arith.truncf %17 : vector<64x256xf32> to vector<64x256xbf16>
      %c0_15 = arith.constant 0 : index
      %c0_16 = arith.constant 0 : index
      %19 = vector.load %arg7[%c0_15, %c0_16] : memref<64x256xbf16, #tpu.memory_space<vmem>>, vector<64x256xbf16>
      tpu.vector_store %arg7[%c0_15, %c0_16], %18 {strides = array<i32>} : memref<64x256xbf16, #tpu.memory_space<vmem>>, vector<64x256xbf16>,
    } else {
    }
    return
  }
  func.func @transform_0(%arg0: i32, %arg1: i32, %arg2: i32) -> (i32, i32) {
    %c0_i32 = arith.constant 0 : i32
    return %arg0, %arg2 : i32, i32
  }
  func.func @transform_1(%arg0: i32, %arg1: i32, %arg2: i32) -> (i32, i32) {
    %c0_i32 = arith.constant 0 : i32
    return %arg2, %arg1 : i32, i32
  }
  func.func @transform_2(%arg0: i32, %arg1: i32, %arg2: i32) -> (i32, i32) {
    %c0_i32 = arith.constant 0 : i32
    %c0_i32_0 = arith.constant 0 : i32
    return %c0_i32, %arg1 : i32, i32
  }
  func.func @transform_3(%arg0: i32, %arg1: i32, %arg2: i32) -> (i32, i32) {
    %c0_i32 = arith.constant 0 : i32
    %c0_i32_0 = arith.constant 0 : i32
    return %c0_i32, %arg1 : i32, i32
  }
  func.func @transform_4(%arg0: i32, %arg1: i32, %arg2: i32) -> (i32, i32) {
    %c0_i32 = arith.constant 0 : i32
    return %arg0, %arg1 : i32, i32
  }
}

module attributes {stable_mosaic.version = 11 : i64} {
  func.func @_ln_matmul_kernel(%arg0: i32, %arg1: i32, %arg2: memref<128x256xbf16, #tpu.memory_space<vmem>>, %arg3: memref<1x256xf32, #tpu.memory_space<vmem>>, %arg4: memref<1x256xf32, #tpu.memory_space<vmem>>, %arg5: memref<256x256xbf16, #tpu.memory_space<vmem>>, %arg6: memref<1x256xf32, #tpu.memory_space<vmem>>, %arg7: memref<128x256xbf16, #tpu.memory_space<vmem>>, %arg8: memref<128x256xbf16, #tpu.memory_space<vmem>>) attributes {dimension_semantics = [#tpu.dimension_semantics<parallel>, #tpu.dimension_semantics<arbitrary>], iteration_bounds = array<i64: 1, 3>, scalar_prefetch = 0 : i64, scratch_operands = 1 : i64, tpu.core_type = #tpu.core_type<tc>, window_params = [{transform_indices = @transform_0, window_bounds = array<i64: 128, 256>}, {pipeline_mode = #tpu.pipeline_mode<synchronous>, transform_indices = @transform_1, window_bounds = array<i64: 1, 256>}, {pipeline_mode = #tpu.pipeline_mode<synchronous>, transform_indices = @transform_2, window_bounds = array<i64: 1, 256>}, {transform_indices = @transform_3, window_bounds = array<i64: 256, 256>}, {transform_indices = @transform_4, window_bounds = array<i64: 1, 256>}, {transform_indices = @transform_5, window_bounds = array<i64: 128, 256>}]} {
    %c0_i32 = arith.constant 0 : i32
    %0 = arith.cmpi eq, %arg1, %c0_i32 : i32
    %1 = arith.extui %0 : i1 to i32
    %c0_i32_0 = arith.constant 0 : i32
    %2 = arith.cmpi ne, %1, %c0_i32_0 : i32
    scf.if %2 {
      %c0_8 = arith.constant 0 : index
      %c0_9 = arith.constant 0 : index
      %11 = vector.load %arg2[%c0_8, %c0_9] : memref<128x256xbf16, #tpu.memory_space<vmem>>, vector<128x256xbf16>
      %12 = arith.extf %11 : vector<128x256xbf16> to vector<128x256xf32>
      %cst_10 = arith.constant dense<0.000000e+00> : vector<128xf32>
      %13 = vector.multi_reduction <add>, %12, %cst_10 [1] : vector<128x256xf32> to vector<128xf32>
      %14 = vector.shape_cast %13 : vector<128xf32> to vector<128x1xf32>
      %cst_11 = arith.constant 2.560000e+02 : f32
      %15 = vector.broadcast %cst_11 : f32 to vector<128x1xf32>
      %16 = arith.divf %14, %15 : vector<128x1xf32>
      %17 = vector.broadcast %16 : vector<128x1xf32> to vector<128x256xf32>
      %18 = arith.subf %12, %17 : vector<128x256xf32>
      %19 = arith.mulf %18, %18 : vector<128x256xf32>
      %cst_12 = arith.constant dense<0.000000e+00> : vector<128xf32>
      %20 = vector.multi_reduction <add>, %19, %cst_12 [1] : vector<128x256xf32> to vector<128xf32>
      %21 = vector.shape_cast %20 : vector<128xf32> to vector<128x1xf32>
      %cst_13 = arith.constant 2.560000e+02 : f32
      %22 = vector.broadcast %cst_13 : f32 to vector<128x1xf32>
      %23 = arith.divf %21, %22 : vector<128x1xf32>
      %24 = vector.broadcast %16 : vector<128x1xf32> to vector<128x256xf32>
      %25 = arith.subf %12, %24 : vector<128x256xf32>
      %cst_14 = arith.constant 9.99999997E-7 : f32
      %26 = vector.broadcast %cst_14 : f32 to vector<128x1xf32>
      %27 = arith.addf %23, %26 : vector<128x1xf32>
      %28 = math.rsqrt %27 : vector<128x1xf32>
      %29 = vector.broadcast %28 : vector<128x1xf32> to vector<128x256xf32>
      %30 = arith.mulf %25, %29 : vector<128x256xf32>
      %c0_15 = arith.constant 0 : index
      %c0_16 = arith.constant 0 : index
      %31 = vector.load %arg3[%c0_15, %c0_16] : memref<1x256xf32, #tpu.memory_space<vmem>>, vector<1x256xf32>
      %32 = vector.broadcast %31 : vector<1x256xf32> to vector<128x256xf32>
      %33 = arith.mulf %30, %32 : vector<128x256xf32>
      %c0_17 = arith.constant 0 : index
      %c0_18 = arith.constant 0 : index
      %34 = vector.load %arg4[%c0_17, %c0_18] : memref<1x256xf32, #tpu.memory_space<vmem>>, vector<1x256xf32>
      %35 = vector.broadcast %34 : vector<1x256xf32> to vector<128x256xf32>
      %36 = arith.addf %33, %35 : vector<128x256xf32>
      %37 = arith.truncf %36 : vector<128x256xf32> to vector<128x256xbf16>
      %c0_19 = arith.constant 0 : index
      %c0_20 = arith.constant 0 : index
      %38 = vector.load %arg8[%c0_19, %c0_20] : memref<128x256xbf16, #tpu.memory_space<vmem>>, vector<128x256xbf16>
      tpu.vector_store %arg8[%c0_19, %c0_20], %37 {strides = array<i32>} : memref<128x256xbf16, #tpu.memory_space<vmem>>, vector<128x256xbf16>,
    } else {
    }
    %c0 = arith.constant 0 : index
    %c0_1 = arith.constant 0 : index
    %3 = vector.load %arg8[%c0, %c0_1] : memref<128x256xbf16, #tpu.memory_space<vmem>>, vector<128x256xbf16>
    %c0_2 = arith.constant 0 : index
    %c0_3 = arith.constant 0 : index
    %4 = vector.load %arg5[%c0_2, %c0_3] : memref<256x256xbf16, #tpu.memory_space<vmem>>, vector<256x256xbf16>
    %cst = arith.constant dense<0.000000e+00> : vector<128x256xf32>
    %5 = tpu.matmul %3, %4, %cst {dimension_numbers = #tpu.dot_dimension_numbers<[1], [0], [0], [1], [0, 0, 1, 1], [], []>} : vector<128x256xbf16>, vector<256x256xbf16>, vector<128x256xf32> -> vector<128x256xf32>
    %c0_4 = arith.constant 0 : index
    %c0_5 = arith.constant 0 : index
    %6 = vector.load %arg6[%c0_4, %c0_5] : memref<1x256xf32, #tpu.memory_space<vmem>>, vector<1x256xf32>
    %7 = vector.broadcast %6 : vector<1x256xf32> to vector<128x256xf32>
    %8 = arith.addf %5, %7 : vector<128x256xf32>
    %9 = arith.truncf %8 : vector<128x256xf32> to vector<128x256xbf16>
    %c0_6 = arith.constant 0 : index
    %c0_7 = arith.constant 0 : index
    %10 = vector.load %arg7[%c0_6, %c0_7] : memref<128x256xbf16, #tpu.memory_space<vmem>>, vector<128x256xbf16>
    tpu.vector_store %arg7[%c0_6, %c0_7], %9 {strides = array<i32>} : memref<128x256xbf16, #tpu.memory_space<vmem>>, vector<128x256xbf16>,
    return
  }
  func.func @transform_0(%arg0: i32, %arg1: i32) -> (i32, i32) {
    %c0_i32 = arith.constant 0 : i32
    %c0_i32_0 = arith.constant 0 : i32
    return %arg0, %c0_i32 : i32, i32
  }
  func.func @transform_1(%arg0: i32, %arg1: i32) -> (i32, i32) {
    %c0_i32 = arith.constant 0 : i32
    %c0_i32_0 = arith.constant 0 : i32
    %c0_i32_1 = arith.constant 0 : i32
    return %c0_i32, %c0_i32_0 : i32, i32
  }
  func.func @transform_2(%arg0: i32, %arg1: i32) -> (i32, i32) {
    %c0_i32 = arith.constant 0 : i32
    %c0_i32_0 = arith.constant 0 : i32
    %c0_i32_1 = arith.constant 0 : i32
    return %c0_i32, %c0_i32_0 : i32, i32
  }
  func.func @transform_3(%arg0: i32, %arg1: i32) -> (i32, i32) {
    %c0_i32 = arith.constant 0 : i32
    %c0_i32_0 = arith.constant 0 : i32
    return %c0_i32, %arg1 : i32, i32
  }
  func.func @transform_4(%arg0: i32, %arg1: i32) -> (i32, i32) {
    %c0_i32 = arith.constant 0 : i32
    %c0_i32_0 = arith.constant 0 : i32
    return %c0_i32, %arg1 : i32, i32
  }
  func.func @transform_5(%arg0: i32, %arg1: i32) -> (i32, i32) {
    %c0_i32 = arith.constant 0 : i32
    return %arg0, %arg1 : i32, i32
  }
}

module attributes {stable_mosaic.version = 11 : i64} {
  func.func @_attention_kernel(%arg0: i32, %arg1: i32, %arg2: memref<1x64x384xbf16, #tpu.memory_space<vmem>>, %arg3: memref<1x64x128xbf16, #tpu.memory_space<vmem>>) attributes {dimension_semantics = [#tpu.dimension_semantics<parallel>, #tpu.dimension_semantics<parallel>], iteration_bounds = array<i64: 2, 2>, scalar_prefetch = 0 : i64, scratch_operands = 0 : i64, tpu.core_type = #tpu.core_type<tc>, window_params = [{transform_indices = @transform_0, window_bounds = array<i64: 1, 64, 384>}, {transform_indices = @transform_1, window_bounds = array<i64: 1, 64, 128>}]} {
    %c0 = arith.constant 0 : index
    %c0_0 = arith.constant 0 : index
    %c0_1 = arith.constant 0 : index
    %0 = vector.load %arg2[%c0, %c0_0, %c0_1] : memref<1x64x384xbf16, #tpu.memory_space<vmem>>, vector<1x64x384xbf16>
    %1 = vector.shape_cast %0 : vector<1x64x384xbf16> to vector<64x384xbf16>
    %2 = vector.extract_strided_slice %1 {offsets = [0, 0], sizes = [64, 128], strides = [1, 1]} : vector<64x384xbf16> to vector<64x128xbf16>
    %3 = vector.extract_strided_slice %1 {offsets = [0, 128], sizes = [64, 128], strides = [1, 1]} : vector<64x384xbf16> to vector<64x128xbf16>
    %4 = vector.extract_strided_slice %1 {offsets = [0, 256], sizes = [64, 128], strides = [1, 1]} : vector<64x384xbf16> to vector<64x128xbf16>
    %cst = arith.constant dense<0.000000e+00> : vector<64x64xf32>
    %5 = tpu.matmul %2, %3, %cst {dimension_numbers = #tpu.dot_dimension_numbers<[1], [1], [0], [0], [0, 0, 1, 0], [], []>} : vector<64x128xbf16>, vector<64x128xbf16>, vector<64x64xf32> -> vector<64x64xf32>
    %cst_2 = arith.constant 0.0883883461 : f32
    %6 = vector.broadcast %cst_2 : f32 to vector<64x64xf32>
    %7 = arith.mulf %5, %6 : vector<64x64xf32>
    %cst_3 = arith.constant dense<0xFF800000> : vector<64xf32>
    %8 = vector.multi_reduction <maximumf>, %7, %cst_3 [1] : vector<64x64xf32> to vector<64xf32>
    %9 = vector.shape_cast %8 : vector<64xf32> to vector<64x1xf32>
    %10 = vector.broadcast %9 : vector<64x1xf32> to vector<64x64xf32>
    %11 = arith.subf %7, %10 : vector<64x64xf32>
    %12 = math.exp %11 : vector<64x64xf32>
    %cst_4 = arith.constant dense<0.000000e+00> : vector<64xf32>
    %13 = vector.multi_reduction <add>, %12, %cst_4 [1] : vector<64x64xf32> to vector<64xf32>
    %14 = vector.shape_cast %13 : vector<64xf32> to vector<64x1xf32>
    %15 = tpu.reciprocal %14 {approx = true} : vector<64x1xf32> -> vector<64x1xf32>
    %16 = vector.broadcast %15 : vector<64x1xf32> to vector<64x64xf32>
    %17 = arith.mulf %12, %16 : vector<64x64xf32>
    %18 = arith.truncf %17 : vector<64x64xf32> to vector<64x64xbf16>
    %cst_5 = arith.constant dense<0.000000e+00> : vector<64x128xf32>
    %19 = tpu.matmul %18, %4, %cst_5 {dimension_numbers = #tpu.dot_dimension_numbers<[1], [0], [0], [1], [0, 0, 1, 1], [], []>} : vector<64x64xbf16>, vector<64x128xbf16>, vector<64x128xf32> -> vector<64x128xf32>
    %20 = arith.truncf %19 : vector<64x128xf32> to vector<64x128xbf16>
    %c0_6 = arith.constant 0 : index
    %c0_7 = arith.constant 0 : index
    %c0_8 = arith.constant 0 : index
    %21 = vector.load %arg3[%c0_6, %c0_7, %c0_8] : memref<1x64x128xbf16, #tpu.memory_space<vmem>>, vector<1x64x128xbf16>
    %22 = vector.shape_cast %21 : vector<1x64x128xbf16> to vector<64x128xbf16>
    %23 = vector.shape_cast %20 : vector<64x128xbf16> to vector<1x64x128xbf16>
    tpu.vector_store %arg3[%c0_6, %c0_7, %c0_8], %23 {strides = array<i32>} : memref<1x64x128xbf16, #tpu.memory_space<vmem>>, vector<1x64x128xbf16>,
    return
  }
  func.func @transform_0(%arg0: i32, %arg1: i32) -> (i32, i32, i32) {
    %c0_i32 = arith.constant 0 : i32
    %c0_i32_0 = arith.constant 0 : i32
    return %arg0, %c0_i32, %arg1 : i32, i32, i32
  }
  func.func @transform_1(%arg0: i32, %arg1: i32) -> (i32, i32, i32) {
    %c0_i32 = arith.constant 0 : i32
    %c0_i32_0 = arith.constant 0 : i32
    return %arg0, %c0_i32, %arg1 : i32, i32, i32
  }
}

module attributes {stable_mosaic.version = 11 : i64} {
  func.func @_matmul_kernel(%arg0: i32, %arg1: i32, %arg2: i32, %arg3: memref<128x256xbf16, #tpu.memory_space<vmem>>, %arg4: memref<256x256xbf16, #tpu.memory_space<vmem>>, %arg5: memref<1x256xf32, #tpu.memory_space<vmem>>, %arg6: memref<128x256xbf16, #tpu.memory_space<vmem>>, %arg7: memref<128x256xbf16, #tpu.memory_space<vmem>>, %arg8: memref<128x256xf32, #tpu.memory_space<vmem>>) attributes {dimension_semantics = [#tpu.dimension_semantics<parallel>, #tpu.dimension_semantics<parallel>, #tpu.dimension_semantics<arbitrary>], iteration_bounds = array<i64: 1, 1, 1>, scalar_prefetch = 0 : i64, scratch_operands = 1 : i64, tpu.core_type = #tpu.core_type<tc>, window_params = [{transform_indices = @transform_0, window_bounds = array<i64: 128, 256>}, {transform_indices = @transform_1, window_bounds = array<i64: 256, 256>}, {transform_indices = @transform_2, window_bounds = array<i64: 1, 256>}, {transform_indices = @transform_3, window_bounds = array<i64: 128, 256>}, {transform_indices = @transform_4, window_bounds = array<i64: 128, 256>}]} {
    %c0_i32 = arith.constant 0 : i32
    %0 = arith.cmpi eq, %arg2, %c0_i32 : i32
    %1 = arith.extui %0 : i1 to i32
    %c0_i32_0 = arith.constant 0 : i32
    %2 = arith.cmpi ne, %1, %c0_i32_0 : i32
    scf.if %2 {
      %cst_10 = arith.constant 0.000000e+00 : f32
      %12 = vector.broadcast %cst_10 : f32 to vector<128x256xf32>
      %c0_11 = arith.constant 0 : index
      %c0_12 = arith.constant 0 : index
      %13 = vector.load %arg8[%c0_11, %c0_12] : memref<128x256xf32, #tpu.memory_space<vmem>>, vector<128x256xf32>
      tpu.vector_store %arg8[%c0_11, %c0_12], %12 {strides = array<i32>} : memref<128x256xf32, #tpu.memory_space<vmem>>, vector<128x256xf32>,
    } else {
    }
    %c0 = arith.constant 0 : index
    %c0_1 = arith.constant 0 : index
    %3 = vector.load %arg8[%c0, %c0_1] : memref<128x256xf32, #tpu.memory_space<vmem>>, vector<128x256xf32>
    %c0_2 = arith.constant 0 : index
    %c0_3 = arith.constant 0 : index
    %4 = vector.load %arg3[%c0_2, %c0_3] : memref<128x256xbf16, #tpu.memory_space<vmem>>, vector<128x256xbf16>
    %c0_4 = arith.constant 0 : index
    %c0_5 = arith.constant 0 : index
    %5 = vector.load %arg4[%c0_4, %c0_5] : memref<256x256xbf16, #tpu.memory_space<vmem>>, vector<256x256xbf16>
    %cst = arith.constant dense<0.000000e+00> : vector<128x256xf32>
    %6 = tpu.matmul %4, %5, %cst {dimension_numbers = #tpu.dot_dimension_numbers<[1], [0], [0], [1], [0, 0, 1, 1], [], []>} : vector<128x256xbf16>, vector<256x256xbf16>, vector<128x256xf32> -> vector<128x256xf32>
    %7 = arith.addf %3, %6 : vector<128x256xf32>
    %c0_6 = arith.constant 0 : index
    %c0_7 = arith.constant 0 : index
    %8 = vector.load %arg8[%c0_6, %c0_7] : memref<128x256xf32, #tpu.memory_space<vmem>>, vector<128x256xf32>
    tpu.vector_store %arg8[%c0_6, %c0_7], %7 {strides = array<i32>} : memref<128x256xf32, #tpu.memory_space<vmem>>, vector<128x256xf32>,
    %c0_i32_8 = arith.constant 0 : i32
    %9 = arith.cmpi eq, %arg2, %c0_i32_8 : i32
    %10 = arith.extui %9 : i1 to i32
    %c0_i32_9 = arith.constant 0 : i32
    %11 = arith.cmpi ne, %10, %c0_i32_9 : i32
    scf.if %11 {
      %c0_10 = arith.constant 0 : index
      %c0_11 = arith.constant 0 : index
      %12 = vector.load %arg8[%c0_10, %c0_11] : memref<128x256xf32, #tpu.memory_space<vmem>>, vector<128x256xf32>
      %c0_12 = arith.constant 0 : index
      %c0_13 = arith.constant 0 : index
      %13 = vector.load %arg5[%c0_12, %c0_13] : memref<1x256xf32, #tpu.memory_space<vmem>>, vector<1x256xf32>
      %14 = vector.broadcast %13 : vector<1x256xf32> to vector<128x256xf32>
      %15 = arith.addf %12, %14 : vector<128x256xf32>
      %c0_14 = arith.constant 0 : index
      %c0_15 = arith.constant 0 : index
      %16 = vector.load %arg6[%c0_14, %c0_15] : memref<128x256xbf16, #tpu.memory_space<vmem>>, vector<128x256xbf16>
      %17 = arith.extf %16 : vector<128x256xbf16> to vector<128x256xf32>
      %18 = arith.addf %15, %17 : vector<128x256xf32>
      %19 = arith.truncf %18 : vector<128x256xf32> to vector<128x256xbf16>
      %c0_16 = arith.constant 0 : index
      %c0_17 = arith.constant 0 : index
      %20 = vector.load %arg7[%c0_16, %c0_17] : memref<128x256xbf16, #tpu.memory_space<vmem>>, vector<128x256xbf16>
      tpu.vector_store %arg7[%c0_16, %c0_17], %19 {strides = array<i32>} : memref<128x256xbf16, #tpu.memory_space<vmem>>, vector<128x256xbf16>,
    } else {
    }
    return
  }
  func.func @transform_0(%arg0: i32, %arg1: i32, %arg2: i32) -> (i32, i32) {
    %c0_i32 = arith.constant 0 : i32
    return %arg0, %arg2 : i32, i32
  }
  func.func @transform_1(%arg0: i32, %arg1: i32, %arg2: i32) -> (i32, i32) {
    %c0_i32 = arith.constant 0 : i32
    return %arg2, %arg1 : i32, i32
  }
  func.func @transform_2(%arg0: i32, %arg1: i32, %arg2: i32) -> (i32, i32) {
    %c0_i32 = arith.constant 0 : i32
    %c0_i32_0 = arith.constant 0 : i32
    return %c0_i32, %arg1 : i32, i32
  }
  func.func @transform_3(%arg0: i32, %arg1: i32, %arg2: i32) -> (i32, i32) {
    %c0_i32 = arith.constant 0 : i32
    return %arg0, %arg1 : i32, i32
  }
  func.func @transform_4(%arg0: i32, %arg1: i32, %arg2: i32) -> (i32, i32) {
    %c0_i32 = arith.constant 0 : i32
    return %arg0, %arg1 : i32, i32
  }
}

module attributes {stable_mosaic.version = 11 : i64} {
  func.func @_ln_matmul_kernel(%arg0: i32, %arg1: i32, %arg2: memref<128x256xbf16, #tpu.memory_space<vmem>>, %arg3: memref<1x256xf32, #tpu.memory_space<vmem>>, %arg4: memref<1x256xf32, #tpu.memory_space<vmem>>, %arg5: memref<256x256xbf16, #tpu.memory_space<vmem>>, %arg6: memref<1x256xf32, #tpu.memory_space<vmem>>, %arg7: memref<128x256xbf16, #tpu.memory_space<vmem>>, %arg8: memref<128x256xbf16, #tpu.memory_space<vmem>>) attributes {dimension_semantics = [#tpu.dimension_semantics<parallel>, #tpu.dimension_semantics<arbitrary>], iteration_bounds = array<i64: 1, 2>, scalar_prefetch = 0 : i64, scratch_operands = 1 : i64, tpu.core_type = #tpu.core_type<tc>, window_params = [{transform_indices = @transform_0, window_bounds = array<i64: 128, 256>}, {pipeline_mode = #tpu.pipeline_mode<synchronous>, transform_indices = @transform_1, window_bounds = array<i64: 1, 256>}, {pipeline_mode = #tpu.pipeline_mode<synchronous>, transform_indices = @transform_2, window_bounds = array<i64: 1, 256>}, {transform_indices = @transform_3, window_bounds = array<i64: 256, 256>}, {transform_indices = @transform_4, window_bounds = array<i64: 1, 256>}, {transform_indices = @transform_5, window_bounds = array<i64: 128, 256>}]} {
    %c0_i32 = arith.constant 0 : i32
    %0 = arith.cmpi eq, %arg1, %c0_i32 : i32
    %1 = arith.extui %0 : i1 to i32
    %c0_i32_0 = arith.constant 0 : i32
    %2 = arith.cmpi ne, %1, %c0_i32_0 : i32
    scf.if %2 {
      %c0_12 = arith.constant 0 : index
      %c0_13 = arith.constant 0 : index
      %24 = vector.load %arg2[%c0_12, %c0_13] : memref<128x256xbf16, #tpu.memory_space<vmem>>, vector<128x256xbf16>
      %25 = arith.extf %24 : vector<128x256xbf16> to vector<128x256xf32>
      %cst_14 = arith.constant dense<0.000000e+00> : vector<128xf32>
      %26 = vector.multi_reduction <add>, %25, %cst_14 [1] : vector<128x256xf32> to vector<128xf32>
      %27 = vector.shape_cast %26 : vector<128xf32> to vector<128x1xf32>
      %cst_15 = arith.constant 2.560000e+02 : f32
      %28 = vector.broadcast %cst_15 : f32 to vector<128x1xf32>
      %29 = arith.divf %27, %28 : vector<128x1xf32>
      %30 = vector.broadcast %29 : vector<128x1xf32> to vector<128x256xf32>
      %31 = arith.subf %25, %30 : vector<128x256xf32>
      %32 = arith.mulf %31, %31 : vector<128x256xf32>
      %cst_16 = arith.constant dense<0.000000e+00> : vector<128xf32>
      %33 = vector.multi_reduction <add>, %32, %cst_16 [1] : vector<128x256xf32> to vector<128xf32>
      %34 = vector.shape_cast %33 : vector<128xf32> to vector<128x1xf32>
      %cst_17 = arith.constant 2.560000e+02 : f32
      %35 = vector.broadcast %cst_17 : f32 to vector<128x1xf32>
      %36 = arith.divf %34, %35 : vector<128x1xf32>
      %37 = vector.broadcast %29 : vector<128x1xf32> to vector<128x256xf32>
      %38 = arith.subf %25, %37 : vector<128x256xf32>
      %cst_18 = arith.constant 9.99999997E-7 : f32
      %39 = vector.broadcast %cst_18 : f32 to vector<128x1xf32>
      %40 = arith.addf %36, %39 : vector<128x1xf32>
      %41 = math.rsqrt %40 : vector<128x1xf32>
      %42 = vector.broadcast %41 : vector<128x1xf32> to vector<128x256xf32>
      %43 = arith.mulf %38, %42 : vector<128x256xf32>
      %c0_19 = arith.constant 0 : index
      %c0_20 = arith.constant 0 : index
      %44 = vector.load %arg3[%c0_19, %c0_20] : memref<1x256xf32, #tpu.memory_space<vmem>>, vector<1x256xf32>
      %45 = vector.broadcast %44 : vector<1x256xf32> to vector<128x256xf32>
      %46 = arith.mulf %43, %45 : vector<128x256xf32>
      %c0_21 = arith.constant 0 : index
      %c0_22 = arith.constant 0 : index
      %47 = vector.load %arg4[%c0_21, %c0_22] : memref<1x256xf32, #tpu.memory_space<vmem>>, vector<1x256xf32>
      %48 = vector.broadcast %47 : vector<1x256xf32> to vector<128x256xf32>
      %49 = arith.addf %46, %48 : vector<128x256xf32>
      %50 = arith.truncf %49 : vector<128x256xf32> to vector<128x256xbf16>
      %c0_23 = arith.constant 0 : index
      %c0_24 = arith.constant 0 : index
      %51 = vector.load %arg8[%c0_23, %c0_24] : memref<128x256xbf16, #tpu.memory_space<vmem>>, vector<128x256xbf16>
      tpu.vector_store %arg8[%c0_23, %c0_24], %50 {strides = array<i32>} : memref<128x256xbf16, #tpu.memory_space<vmem>>, vector<128x256xbf16>,
    } else {
    }
    %c0 = arith.constant 0 : index
    %c0_1 = arith.constant 0 : index
    %3 = vector.load %arg8[%c0, %c0_1] : memref<128x256xbf16, #tpu.memory_space<vmem>>, vector<128x256xbf16>
    %c0_2 = arith.constant 0 : index
    %c0_3 = arith.constant 0 : index
    %4 = vector.load %arg5[%c0_2, %c0_3] : memref<256x256xbf16, #tpu.memory_space<vmem>>, vector<256x256xbf16>
    %cst = arith.constant dense<0.000000e+00> : vector<128x256xf32>
    %5 = tpu.matmul %3, %4, %cst {dimension_numbers = #tpu.dot_dimension_numbers<[1], [0], [0], [1], [0, 0, 1, 1], [], []>} : vector<128x256xbf16>, vector<256x256xbf16>, vector<128x256xf32> -> vector<128x256xf32>
    %c0_4 = arith.constant 0 : index
    %c0_5 = arith.constant 0 : index
    %6 = vector.load %arg6[%c0_4, %c0_5] : memref<1x256xf32, #tpu.memory_space<vmem>>, vector<1x256xf32>
    %7 = vector.broadcast %6 : vector<1x256xf32> to vector<128x256xf32>
    %8 = arith.addf %5, %7 : vector<128x256xf32>
    %9 = arith.mulf %8, %8 : vector<128x256xf32>
    %10 = arith.mulf %8, %9 : vector<128x256xf32>
    %cst_6 = arith.constant 4.471500e-02 : f32
    %11 = vector.broadcast %cst_6 : f32 to vector<128x256xf32>
    %12 = arith.mulf %11, %10 : vector<128x256xf32>
    %13 = arith.addf %8, %12 : vector<128x256xf32>
    %cst_7 = arith.constant 0.797884583 : f32
    %14 = vector.broadcast %cst_7 : f32 to vector<128x256xf32>
    %15 = arith.mulf %14, %13 : vector<128x256xf32>
    %16 = math.tanh %15 : vector<128x256xf32>
    %cst_8 = arith.constant 1.000000e+00 : f32
    %17 = vector.broadcast %cst_8 : f32 to vector<128x256xf32>
    %18 = arith.addf %17, %16 : vector<128x256xf32>
    %cst_9 = arith.constant 5.000000e-01 : f32
    %19 = vector.broadcast %cst_9 : f32 to vector<128x256xf32>
    %20 = arith.mulf %19, %18 : vector<128x256xf32>
    %21 = arith.mulf %8, %20 : vector<128x256xf32>
    %22 = arith.truncf %21 : vector<128x256xf32> to vector<128x256xbf16>
    %c0_10 = arith.constant 0 : index
    %c0_11 = arith.constant 0 : index
    %23 = vector.load %arg7[%c0_10, %c0_11] : memref<128x256xbf16, #tpu.memory_space<vmem>>, vector<128x256xbf16>
    tpu.vector_store %arg7[%c0_10, %c0_11], %22 {strides = array<i32>} : memref<128x256xbf16, #tpu.memory_space<vmem>>, vector<128x256xbf16>,
    return
  }
  func.func @transform_0(%arg0: i32, %arg1: i32) -> (i32, i32) {
    %c0_i32 = arith.constant 0 : i32
    %c0_i32_0 = arith.constant 0 : i32
    return %arg0, %c0_i32 : i32, i32
  }
  func.func @transform_1(%arg0: i32, %arg1: i32) -> (i32, i32) {
    %c0_i32 = arith.constant 0 : i32
    %c0_i32_0 = arith.constant 0 : i32
    %c0_i32_1 = arith.constant 0 : i32
    return %c0_i32, %c0_i32_0 : i32, i32
  }
  func.func @transform_2(%arg0: i32, %arg1: i32) -> (i32, i32) {
    %c0_i32 = arith.constant 0 : i32
    %c0_i32_0 = arith.constant 0 : i32
    %c0_i32_1 = arith.constant 0 : i32
    return %c0_i32, %c0_i32_0 : i32, i32
  }
  func.func @transform_3(%arg0: i32, %arg1: i32) -> (i32, i32) {
    %c0_i32 = arith.constant 0 : i32
    %c0_i32_0 = arith.constant 0 : i32
    return %c0_i32, %arg1 : i32, i32
  }
  func.func @transform_4(%arg0: i32, %arg1: i32) -> (i32, i32) {
    %c0_i32 = arith.constant 0 : i32
    %c0_i32_0 = arith.constant 0 : i32
    return %c0_i32, %arg1 : i32, i32
  }
  func.func @transform_5(%arg0: i32, %arg1: i32) -> (i32, i32) {
    %c0_i32 = arith.constant 0 : i32
    return %arg0, %arg1 : i32, i32
  }
}

module attributes {stable_mosaic.version = 11 : i64} {
  func.func @_matmul_kernel(%arg0: i32, %arg1: i32, %arg2: i32, %arg3: memref<128x512xbf16, #tpu.memory_space<vmem>>, %arg4: memref<512x256xbf16, #tpu.memory_space<vmem>>, %arg5: memref<1x256xf32, #tpu.memory_space<vmem>>, %arg6: memref<128x256xbf16, #tpu.memory_space<vmem>>, %arg7: memref<128x256xbf16, #tpu.memory_space<vmem>>, %arg8: memref<128x256xf32, #tpu.memory_space<vmem>>) attributes {dimension_semantics = [#tpu.dimension_semantics<parallel>, #tpu.dimension_semantics<parallel>, #tpu.dimension_semantics<arbitrary>], iteration_bounds = array<i64: 1, 1, 1>, scalar_prefetch = 0 : i64, scratch_operands = 1 : i64, tpu.core_type = #tpu.core_type<tc>, window_params = [{transform_indices = @transform_0, window_bounds = array<i64: 128, 512>}, {transform_indices = @transform_1, window_bounds = array<i64: 512, 256>}, {transform_indices = @transform_2, window_bounds = array<i64: 1, 256>}, {transform_indices = @transform_3, window_bounds = array<i64: 128, 256>}, {transform_indices = @transform_4, window_bounds = array<i64: 128, 256>}]} {
    %c0_i32 = arith.constant 0 : i32
    %0 = arith.cmpi eq, %arg2, %c0_i32 : i32
    %1 = arith.extui %0 : i1 to i32
    %c0_i32_0 = arith.constant 0 : i32
    %2 = arith.cmpi ne, %1, %c0_i32_0 : i32
    scf.if %2 {
      %cst_10 = arith.constant 0.000000e+00 : f32
      %12 = vector.broadcast %cst_10 : f32 to vector<128x256xf32>
      %c0_11 = arith.constant 0 : index
      %c0_12 = arith.constant 0 : index
      %13 = vector.load %arg8[%c0_11, %c0_12] : memref<128x256xf32, #tpu.memory_space<vmem>>, vector<128x256xf32>
      tpu.vector_store %arg8[%c0_11, %c0_12], %12 {strides = array<i32>} : memref<128x256xf32, #tpu.memory_space<vmem>>, vector<128x256xf32>,
    } else {
    }
    %c0 = arith.constant 0 : index
    %c0_1 = arith.constant 0 : index
    %3 = vector.load %arg8[%c0, %c0_1] : memref<128x256xf32, #tpu.memory_space<vmem>>, vector<128x256xf32>
    %c0_2 = arith.constant 0 : index
    %c0_3 = arith.constant 0 : index
    %4 = vector.load %arg3[%c0_2, %c0_3] : memref<128x512xbf16, #tpu.memory_space<vmem>>, vector<128x512xbf16>
    %c0_4 = arith.constant 0 : index
    %c0_5 = arith.constant 0 : index
    %5 = vector.load %arg4[%c0_4, %c0_5] : memref<512x256xbf16, #tpu.memory_space<vmem>>, vector<512x256xbf16>
    %cst = arith.constant dense<0.000000e+00> : vector<128x256xf32>
    %6 = tpu.matmul %4, %5, %cst {dimension_numbers = #tpu.dot_dimension_numbers<[1], [0], [0], [1], [0, 0, 1, 1], [], []>} : vector<128x512xbf16>, vector<512x256xbf16>, vector<128x256xf32> -> vector<128x256xf32>
    %7 = arith.addf %3, %6 : vector<128x256xf32>
    %c0_6 = arith.constant 0 : index
    %c0_7 = arith.constant 0 : index
    %8 = vector.load %arg8[%c0_6, %c0_7] : memref<128x256xf32, #tpu.memory_space<vmem>>, vector<128x256xf32>
    tpu.vector_store %arg8[%c0_6, %c0_7], %7 {strides = array<i32>} : memref<128x256xf32, #tpu.memory_space<vmem>>, vector<128x256xf32>,
    %c0_i32_8 = arith.constant 0 : i32
    %9 = arith.cmpi eq, %arg2, %c0_i32_8 : i32
    %10 = arith.extui %9 : i1 to i32
    %c0_i32_9 = arith.constant 0 : i32
    %11 = arith.cmpi ne, %10, %c0_i32_9 : i32
    scf.if %11 {
      %c0_10 = arith.constant 0 : index
      %c0_11 = arith.constant 0 : index
      %12 = vector.load %arg8[%c0_10, %c0_11] : memref<128x256xf32, #tpu.memory_space<vmem>>, vector<128x256xf32>
      %c0_12 = arith.constant 0 : index
      %c0_13 = arith.constant 0 : index
      %13 = vector.load %arg5[%c0_12, %c0_13] : memref<1x256xf32, #tpu.memory_space<vmem>>, vector<1x256xf32>
      %14 = vector.broadcast %13 : vector<1x256xf32> to vector<128x256xf32>
      %15 = arith.addf %12, %14 : vector<128x256xf32>
      %c0_14 = arith.constant 0 : index
      %c0_15 = arith.constant 0 : index
      %16 = vector.load %arg6[%c0_14, %c0_15] : memref<128x256xbf16, #tpu.memory_space<vmem>>, vector<128x256xbf16>
      %17 = arith.extf %16 : vector<128x256xbf16> to vector<128x256xf32>
      %18 = arith.addf %15, %17 : vector<128x256xf32>
      %19 = arith.truncf %18 : vector<128x256xf32> to vector<128x256xbf16>
      %c0_16 = arith.constant 0 : index
      %c0_17 = arith.constant 0 : index
      %20 = vector.load %arg7[%c0_16, %c0_17] : memref<128x256xbf16, #tpu.memory_space<vmem>>, vector<128x256xbf16>
      tpu.vector_store %arg7[%c0_16, %c0_17], %19 {strides = array<i32>} : memref<128x256xbf16, #tpu.memory_space<vmem>>, vector<128x256xbf16>,
    } else {
    }
    return
  }
  func.func @transform_0(%arg0: i32, %arg1: i32, %arg2: i32) -> (i32, i32) {
    %c0_i32 = arith.constant 0 : i32
    return %arg0, %arg2 : i32, i32
  }
  func.func @transform_1(%arg0: i32, %arg1: i32, %arg2: i32) -> (i32, i32) {
    %c0_i32 = arith.constant 0 : i32
    return %arg2, %arg1 : i32, i32
  }
  func.func @transform_2(%arg0: i32, %arg1: i32, %arg2: i32) -> (i32, i32) {
    %c0_i32 = arith.constant 0 : i32
    %c0_i32_0 = arith.constant 0 : i32
    return %c0_i32, %arg1 : i32, i32
  }
  func.func @transform_3(%arg0: i32, %arg1: i32, %arg2: i32) -> (i32, i32) {
    %c0_i32 = arith.constant 0 : i32
    return %arg0, %arg1 : i32, i32
  }
  func.func @transform_4(%arg0: i32, %arg1: i32, %arg2: i32) -> (i32, i32) {
    %c0_i32 = arith.constant 0 : i32
    return %arg0, %arg1 : i32, i32
  }
}

module attributes {stable_mosaic.version = 11 : i64} {
  func.func @_matmul_kernel(%arg0: i32, %arg1: i32, %arg2: i32, %arg3: memref<128x256xbf16, #tpu.memory_space<vmem>>, %arg4: memref<256x256xbf16, #tpu.memory_space<vmem>>, %arg5: memref<1x256xf32, #tpu.memory_space<vmem>>, %arg6: memref<1x256xf32, #tpu.memory_space<vmem>>, %arg7: memref<128x256xbf16, #tpu.memory_space<vmem>>, %arg8: memref<128x256xf32, #tpu.memory_space<vmem>>) attributes {dimension_semantics = [#tpu.dimension_semantics<parallel>, #tpu.dimension_semantics<parallel>, #tpu.dimension_semantics<arbitrary>], iteration_bounds = array<i64: 1, 1, 1>, scalar_prefetch = 0 : i64, scratch_operands = 1 : i64, tpu.core_type = #tpu.core_type<tc>, window_params = [{transform_indices = @transform_0, window_bounds = array<i64: 128, 256>}, {transform_indices = @transform_1, window_bounds = array<i64: 256, 256>}, {transform_indices = @transform_2, window_bounds = array<i64: 1, 256>}, {transform_indices = @transform_3, window_bounds = array<i64: 1, 256>}, {transform_indices = @transform_4, window_bounds = array<i64: 128, 256>}]} {
    %c0_i32 = arith.constant 0 : i32
    %0 = arith.cmpi eq, %arg2, %c0_i32 : i32
    %1 = arith.extui %0 : i1 to i32
    %c0_i32_0 = arith.constant 0 : i32
    %2 = arith.cmpi ne, %1, %c0_i32_0 : i32
    scf.if %2 {
      %cst_10 = arith.constant 0.000000e+00 : f32
      %12 = vector.broadcast %cst_10 : f32 to vector<128x256xf32>
      %c0_11 = arith.constant 0 : index
      %c0_12 = arith.constant 0 : index
      %13 = vector.load %arg8[%c0_11, %c0_12] : memref<128x256xf32, #tpu.memory_space<vmem>>, vector<128x256xf32>
      tpu.vector_store %arg8[%c0_11, %c0_12], %12 {strides = array<i32>} : memref<128x256xf32, #tpu.memory_space<vmem>>, vector<128x256xf32>,
    } else {
    }
    %c0 = arith.constant 0 : index
    %c0_1 = arith.constant 0 : index
    %3 = vector.load %arg8[%c0, %c0_1] : memref<128x256xf32, #tpu.memory_space<vmem>>, vector<128x256xf32>
    %c0_2 = arith.constant 0 : index
    %c0_3 = arith.constant 0 : index
    %4 = vector.load %arg3[%c0_2, %c0_3] : memref<128x256xbf16, #tpu.memory_space<vmem>>, vector<128x256xbf16>
    %c0_4 = arith.constant 0 : index
    %c0_5 = arith.constant 0 : index
    %5 = vector.load %arg4[%c0_4, %c0_5] : memref<256x256xbf16, #tpu.memory_space<vmem>>, vector<256x256xbf16>
    %cst = arith.constant dense<0.000000e+00> : vector<128x256xf32>
    %6 = tpu.matmul %4, %5, %cst {dimension_numbers = #tpu.dot_dimension_numbers<[1], [0], [0], [1], [0, 0, 1, 1], [], []>} : vector<128x256xbf16>, vector<256x256xbf16>, vector<128x256xf32> -> vector<128x256xf32>
    %7 = arith.addf %3, %6 : vector<128x256xf32>
    %c0_6 = arith.constant 0 : index
    %c0_7 = arith.constant 0 : index
    %8 = vector.load %arg8[%c0_6, %c0_7] : memref<128x256xf32, #tpu.memory_space<vmem>>, vector<128x256xf32>
    tpu.vector_store %arg8[%c0_6, %c0_7], %7 {strides = array<i32>} : memref<128x256xf32, #tpu.memory_space<vmem>>, vector<128x256xf32>,
    %c0_i32_8 = arith.constant 0 : i32
    %9 = arith.cmpi eq, %arg2, %c0_i32_8 : i32
    %10 = arith.extui %9 : i1 to i32
    %c0_i32_9 = arith.constant 0 : i32
    %11 = arith.cmpi ne, %10, %c0_i32_9 : i32
    scf.if %11 {
      %c0_10 = arith.constant 0 : index
      %c0_11 = arith.constant 0 : index
      %12 = vector.load %arg8[%c0_10, %c0_11] : memref<128x256xf32, #tpu.memory_space<vmem>>, vector<128x256xf32>
      %cst_12 = arith.constant dense<0.000000e+00> : vector<128xf32>
      %13 = vector.multi_reduction <add>, %12, %cst_12 [1] : vector<128x256xf32> to vector<128xf32>
      %14 = vector.shape_cast %13 : vector<128xf32> to vector<128x1xf32>
      %cst_13 = arith.constant 2.560000e+02 : f32
      %15 = vector.broadcast %cst_13 : f32 to vector<128x1xf32>
      %16 = arith.divf %14, %15 : vector<128x1xf32>
      %17 = vector.broadcast %16 : vector<128x1xf32> to vector<128x256xf32>
      %18 = arith.subf %12, %17 : vector<128x256xf32>
      %19 = arith.mulf %18, %18 : vector<128x256xf32>
      %cst_14 = arith.constant dense<0.000000e+00> : vector<128xf32>
      %20 = vector.multi_reduction <add>, %19, %cst_14 [1] : vector<128x256xf32> to vector<128xf32>
      %21 = vector.shape_cast %20 : vector<128xf32> to vector<128x1xf32>
      %cst_15 = arith.constant 2.560000e+02 : f32
      %22 = vector.broadcast %cst_15 : f32 to vector<128x1xf32>
      %23 = arith.divf %21, %22 : vector<128x1xf32>
      %24 = vector.broadcast %16 : vector<128x1xf32> to vector<128x256xf32>
      %25 = arith.subf %12, %24 : vector<128x256xf32>
      %cst_16 = arith.constant 9.99999997E-7 : f32
      %26 = vector.broadcast %cst_16 : f32 to vector<128x1xf32>
      %27 = arith.addf %23, %26 : vector<128x1xf32>
      %28 = math.rsqrt %27 : vector<128x1xf32>
      %29 = vector.broadcast %28 : vector<128x1xf32> to vector<128x256xf32>
      %30 = arith.mulf %25, %29 : vector<128x256xf32>
      %c0_17 = arith.constant 0 : index
      %c0_18 = arith.constant 0 : index
      %31 = vector.load %arg5[%c0_17, %c0_18] : memref<1x256xf32, #tpu.memory_space<vmem>>, vector<1x256xf32>
      %32 = vector.broadcast %31 : vector<1x256xf32> to vector<128x256xf32>
      %33 = arith.mulf %30, %32 : vector<128x256xf32>
      %c0_19 = arith.constant 0 : index
      %c0_20 = arith.constant 0 : index
      %34 = vector.load %arg6[%c0_19, %c0_20] : memref<1x256xf32, #tpu.memory_space<vmem>>, vector<1x256xf32>
      %35 = vector.broadcast %34 : vector<1x256xf32> to vector<128x256xf32>
      %36 = arith.addf %33, %35 : vector<128x256xf32>
      %37 = arith.truncf %36 : vector<128x256xf32> to vector<128x256xbf16>
      %c0_21 = arith.constant 0 : index
      %c0_22 = arith.constant 0 : index
      %38 = vector.load %arg7[%c0_21, %c0_22] : memref<128x256xbf16, #tpu.memory_space<vmem>>, vector<128x256xbf16>
      tpu.vector_store %arg7[%c0_21, %c0_22], %37 {strides = array<i32>} : memref<128x256xbf16, #tpu.memory_space<vmem>>, vector<128x256xbf16>,
    } else {
    }
    return
  }
  func.func @transform_0(%arg0: i32, %arg1: i32, %arg2: i32) -> (i32, i32) {
    %c0_i32 = arith.constant 0 : i32
    return %arg0, %arg2 : i32, i32
  }
  func.func @transform_1(%arg0: i32, %arg1: i32, %arg2: i32) -> (i32, i32) {
    %c0_i32 = arith.constant 0 : i32
    return %arg2, %arg1 : i32, i32
  }
  func.func @transform_2(%arg0: i32, %arg1: i32, %arg2: i32) -> (i32, i32) {
    %c0_i32 = arith.constant 0 : i32
    %c0_i32_0 = arith.constant 0 : i32
    return %c0_i32, %arg1 : i32, i32
  }
  func.func @transform_3(%arg0: i32, %arg1: i32, %arg2: i32) -> (i32, i32) {
    %c0_i32 = arith.constant 0 : i32
    %c0_i32_0 = arith.constant 0 : i32
    return %c0_i32, %arg1 : i32, i32
  }
  func.func @transform_4(%arg0: i32, %arg1: i32, %arg2: i32) -> (i32, i32) {
    %c0_i32 = arith.constant 0 : i32
    return %arg0, %arg1 : i32, i32
  }
}

module attributes {stable_mosaic.version = 11 : i64} {
  func.func @_conv3x3_ln_kernel(%arg0: i32, %arg1: i32, %arg2: memref<1x1x10x10x256xbf16, #tpu.memory_space<vmem>>, %arg3: memref<3x3x256x256xbf16, #tpu.memory_space<vmem>>, %arg4: memref<1x256xf32, #tpu.memory_space<vmem>>, %arg5: memref<1x256xf32, #tpu.memory_space<vmem>>, %arg6: memref<1x8x8x256xf32, #tpu.memory_space<vmem>>, %arg7: memref<64x256xf32, #tpu.memory_space<vmem>>) attributes {dimension_semantics = [#tpu.dimension_semantics<parallel>, #tpu.dimension_semantics<parallel>], iteration_bounds = array<i64: 2, 1>, scalar_prefetch = 0 : i64, scratch_operands = 1 : i64, tpu.core_type = #tpu.core_type<tc>, window_params = [{transform_indices = @transform_0, window_bounds = array<i64: 1, 1, 10, 10, 256>}, {pipeline_mode = #tpu.pipeline_mode<synchronous>, transform_indices = @transform_1, window_bounds = array<i64: 3, 3, 256, 256>}, {pipeline_mode = #tpu.pipeline_mode<synchronous>, transform_indices = @transform_2, window_bounds = array<i64: 1, 256>}, {pipeline_mode = #tpu.pipeline_mode<synchronous>, transform_indices = @transform_3, window_bounds = array<i64: 1, 256>}, {transform_indices = @transform_4, window_bounds = array<i64: 1, 8, 8, 256>}]} {
    %cst = arith.constant 0.000000e+00 : f32
    %0 = vector.broadcast %cst : f32 to vector<64x256xf32>
    %c0 = arith.constant 0 : index
    %c0_0 = arith.constant 0 : index
    %1 = vector.load %arg7[%c0, %c0_0] : memref<64x256xf32, #tpu.memory_space<vmem>>, vector<64x256xf32>
    tpu.vector_store %arg7[%c0, %c0_0], %0 {strides = array<i32>} : memref<64x256xf32, #tpu.memory_space<vmem>>, vector<64x256xf32>,
    %c0_1 = arith.constant 0 : index
    %c0_2 = arith.constant 0 : index
    %c0_3 = arith.constant 0 : index
    %c0_4 = arith.constant 0 : index
    %c0_5 = arith.constant 0 : index
    %2 = vector.load %arg2[%c0_1, %c0_2, %c0_3, %c0_4, %c0_5] : memref<1x1x10x10x256xbf16, #tpu.memory_space<vmem>>, vector<1x1x10x10x256xbf16>
    %3 = vector.shape_cast %2 : vector<1x1x10x10x256xbf16> to vector<10x10x256xbf16>
    %4 = vector.extract_strided_slice %3 {offsets = [0, 0, 0], sizes = [8, 8, 256], strides = [1, 1, 1]} : vector<10x10x256xbf16> to vector<8x8x256xbf16>
    %5 = vector.shape_cast %4 : vector<8x8x256xbf16> to vector<64x256xbf16>
    %c0_6 = arith.constant 0 : index
    %c0_7 = arith.constant 0 : index
    %6 = vector.load %arg7[%c0_6, %c0_7] : memref<64x256xf32, #tpu.memory_space<vmem>>, vector<64x256xf32>
    %c0_8 = arith.constant 0 : index
    %c0_9 = arith.constant 0 : index
    %c0_10 = arith.constant 0 : index
    %c0_11 = arith.constant 0 : index
    %7 = vector.load %arg3[%c0_8, %c0_9, %c0_10, %c0_11] : memref<3x3x256x256xbf16, #tpu.memory_space<vmem>>, vector<1x1x256x256xbf16>
    %8 = vector.shape_cast %7 : vector<1x1x256x256xbf16> to vector<256x256xbf16>
    %cst_12 = arith.constant dense<0.000000e+00> : vector<64x256xf32>
    %9 = tpu.matmul %5, %8, %cst_12 {dimension_numbers = #tpu.dot_dimension_numbers<[1], [0], [0], [1], [0, 0, 1, 1], [], []>} : vector<64x256xbf16>, vector<256x256xbf16>, vector<64x256xf32> -> vector<64x256xf32>
    %10 = arith.addf %6, %9 : vector<64x256xf32>
    %c0_13 = arith.constant 0 : index
    %c0_14 = arith.constant 0 : index
    %11 = vector.load %arg7[%c0_13, %c0_14] : memref<64x256xf32, #tpu.memory_space<vmem>>, vector<64x256xf32>
    tpu.vector_store %arg7[%c0_13, %c0_14], %10 {strides = array<i32>} : memref<64x256xf32, #tpu.memory_space<vmem>>, vector<64x256xf32>,
    %12 = vector.extract_strided_slice %3 {offsets = [0, 1, 0], sizes = [8, 8, 256], strides = [1, 1, 1]} : vector<10x10x256xbf16> to vector<8x8x256xbf16>
    %13 = vector.shape_cast %12 : vector<8x8x256xbf16> to vector<64x256xbf16>
    %c0_15 = arith.constant 0 : index
    %c0_16 = arith.constant 0 : index
    %14 = vector.load %arg7[%c0_15, %c0_16] : memref<64x256xf32, #tpu.memory_space<vmem>>, vector<64x256xf32>
    %c0_17 = arith.constant 0 : index
    %c1 = arith.constant 1 : index
    %c0_18 = arith.constant 0 : index
    %c0_19 = arith.constant 0 : index
    %15 = vector.load %arg3[%c0_17, %c1, %c0_18, %c0_19] : memref<3x3x256x256xbf16, #tpu.memory_space<vmem>>, vector<1x1x256x256xbf16>
    %16 = vector.shape_cast %15 : vector<1x1x256x256xbf16> to vector<256x256xbf16>
    %cst_20 = arith.constant dense<0.000000e+00> : vector<64x256xf32>
    %17 = tpu.matmul %13, %16, %cst_20 {dimension_numbers = #tpu.dot_dimension_numbers<[1], [0], [0], [1], [0, 0, 1, 1], [], []>} : vector<64x256xbf16>, vector<256x256xbf16>, vector<64x256xf32> -> vector<64x256xf32>
    %18 = arith.addf %14, %17 : vector<64x256xf32>
    %c0_21 = arith.constant 0 : index
    %c0_22 = arith.constant 0 : index
    %19 = vector.load %arg7[%c0_21, %c0_22] : memref<64x256xf32, #tpu.memory_space<vmem>>, vector<64x256xf32>
    tpu.vector_store %arg7[%c0_21, %c0_22], %18 {strides = array<i32>} : memref<64x256xf32, #tpu.memory_space<vmem>>, vector<64x256xf32>,
    %20 = vector.extract_strided_slice %3 {offsets = [0, 2, 0], sizes = [8, 8, 256], strides = [1, 1, 1]} : vector<10x10x256xbf16> to vector<8x8x256xbf16>
    %21 = vector.shape_cast %20 : vector<8x8x256xbf16> to vector<64x256xbf16>
    %c0_23 = arith.constant 0 : index
    %c0_24 = arith.constant 0 : index
    %22 = vector.load %arg7[%c0_23, %c0_24] : memref<64x256xf32, #tpu.memory_space<vmem>>, vector<64x256xf32>
    %c0_25 = arith.constant 0 : index
    %c2 = arith.constant 2 : index
    %c0_26 = arith.constant 0 : index
    %c0_27 = arith.constant 0 : index
    %23 = vector.load %arg3[%c0_25, %c2, %c0_26, %c0_27] : memref<3x3x256x256xbf16, #tpu.memory_space<vmem>>, vector<1x1x256x256xbf16>
    %24 = vector.shape_cast %23 : vector<1x1x256x256xbf16> to vector<256x256xbf16>
    %cst_28 = arith.constant dense<0.000000e+00> : vector<64x256xf32>
    %25 = tpu.matmul %21, %24, %cst_28 {dimension_numbers = #tpu.dot_dimension_numbers<[1], [0], [0], [1], [0, 0, 1, 1], [], []>} : vector<64x256xbf16>, vector<256x256xbf16>, vector<64x256xf32> -> vector<64x256xf32>
    %26 = arith.addf %22, %25 : vector<64x256xf32>
    %c0_29 = arith.constant 0 : index
    %c0_30 = arith.constant 0 : index
    %27 = vector.load %arg7[%c0_29, %c0_30] : memref<64x256xf32, #tpu.memory_space<vmem>>, vector<64x256xf32>
    tpu.vector_store %arg7[%c0_29, %c0_30], %26 {strides = array<i32>} : memref<64x256xf32, #tpu.memory_space<vmem>>, vector<64x256xf32>,
    %28 = vector.extract_strided_slice %3 {offsets = [1, 0, 0], sizes = [8, 8, 256], strides = [1, 1, 1]} : vector<10x10x256xbf16> to vector<8x8x256xbf16>
    %29 = vector.shape_cast %28 : vector<8x8x256xbf16> to vector<64x256xbf16>
    %c0_31 = arith.constant 0 : index
    %c0_32 = arith.constant 0 : index
    %30 = vector.load %arg7[%c0_31, %c0_32] : memref<64x256xf32, #tpu.memory_space<vmem>>, vector<64x256xf32>
    %c1_33 = arith.constant 1 : index
    %c0_34 = arith.constant 0 : index
    %c0_35 = arith.constant 0 : index
    %c0_36 = arith.constant 0 : index
    %31 = vector.load %arg3[%c1_33, %c0_34, %c0_35, %c0_36] : memref<3x3x256x256xbf16, #tpu.memory_space<vmem>>, vector<1x1x256x256xbf16>
    %32 = vector.shape_cast %31 : vector<1x1x256x256xbf16> to vector<256x256xbf16>
    %cst_37 = arith.constant dense<0.000000e+00> : vector<64x256xf32>
    %33 = tpu.matmul %29, %32, %cst_37 {dimension_numbers = #tpu.dot_dimension_numbers<[1], [0], [0], [1], [0, 0, 1, 1], [], []>} : vector<64x256xbf16>, vector<256x256xbf16>, vector<64x256xf32> -> vector<64x256xf32>
    %34 = arith.addf %30, %33 : vector<64x256xf32>
    %c0_38 = arith.constant 0 : index
    %c0_39 = arith.constant 0 : index
    %35 = vector.load %arg7[%c0_38, %c0_39] : memref<64x256xf32, #tpu.memory_space<vmem>>, vector<64x256xf32>
    tpu.vector_store %arg7[%c0_38, %c0_39], %34 {strides = array<i32>} : memref<64x256xf32, #tpu.memory_space<vmem>>, vector<64x256xf32>,
    %36 = vector.extract_strided_slice %3 {offsets = [1, 1, 0], sizes = [8, 8, 256], strides = [1, 1, 1]} : vector<10x10x256xbf16> to vector<8x8x256xbf16>
    %37 = vector.shape_cast %36 : vector<8x8x256xbf16> to vector<64x256xbf16>
    %c0_40 = arith.constant 0 : index
    %c0_41 = arith.constant 0 : index
    %38 = vector.load %arg7[%c0_40, %c0_41] : memref<64x256xf32, #tpu.memory_space<vmem>>, vector<64x256xf32>
    %c1_42 = arith.constant 1 : index
    %c1_43 = arith.constant 1 : index
    %c0_44 = arith.constant 0 : index
    %c0_45 = arith.constant 0 : index
    %39 = vector.load %arg3[%c1_42, %c1_43, %c0_44, %c0_45] : memref<3x3x256x256xbf16, #tpu.memory_space<vmem>>, vector<1x1x256x256xbf16>
    %40 = vector.shape_cast %39 : vector<1x1x256x256xbf16> to vector<256x256xbf16>
    %cst_46 = arith.constant dense<0.000000e+00> : vector<64x256xf32>
    %41 = tpu.matmul %37, %40, %cst_46 {dimension_numbers = #tpu.dot_dimension_numbers<[1], [0], [0], [1], [0, 0, 1, 1], [], []>} : vector<64x256xbf16>, vector<256x256xbf16>, vector<64x256xf32> -> vector<64x256xf32>
    %42 = arith.addf %38, %41 : vector<64x256xf32>
    %c0_47 = arith.constant 0 : index
    %c0_48 = arith.constant 0 : index
    %43 = vector.load %arg7[%c0_47, %c0_48] : memref<64x256xf32, #tpu.memory_space<vmem>>, vector<64x256xf32>
    tpu.vector_store %arg7[%c0_47, %c0_48], %42 {strides = array<i32>} : memref<64x256xf32, #tpu.memory_space<vmem>>, vector<64x256xf32>,
    %44 = vector.extract_strided_slice %3 {offsets = [1, 2, 0], sizes = [8, 8, 256], strides = [1, 1, 1]} : vector<10x10x256xbf16> to vector<8x8x256xbf16>
    %45 = vector.shape_cast %44 : vector<8x8x256xbf16> to vector<64x256xbf16>
    %c0_49 = arith.constant 0 : index
    %c0_50 = arith.constant 0 : index
    %46 = vector.load %arg7[%c0_49, %c0_50] : memref<64x256xf32, #tpu.memory_space<vmem>>, vector<64x256xf32>
    %c1_51 = arith.constant 1 : index
    %c2_52 = arith.constant 2 : index
    %c0_53 = arith.constant 0 : index
    %c0_54 = arith.constant 0 : index
    %47 = vector.load %arg3[%c1_51, %c2_52, %c0_53, %c0_54] : memref<3x3x256x256xbf16, #tpu.memory_space<vmem>>, vector<1x1x256x256xbf16>
    %48 = vector.shape_cast %47 : vector<1x1x256x256xbf16> to vector<256x256xbf16>
    %cst_55 = arith.constant dense<0.000000e+00> : vector<64x256xf32>
    %49 = tpu.matmul %45, %48, %cst_55 {dimension_numbers = #tpu.dot_dimension_numbers<[1], [0], [0], [1], [0, 0, 1, 1], [], []>} : vector<64x256xbf16>, vector<256x256xbf16>, vector<64x256xf32> -> vector<64x256xf32>
    %50 = arith.addf %46, %49 : vector<64x256xf32>
    %c0_56 = arith.constant 0 : index
    %c0_57 = arith.constant 0 : index
    %51 = vector.load %arg7[%c0_56, %c0_57] : memref<64x256xf32, #tpu.memory_space<vmem>>, vector<64x256xf32>
    tpu.vector_store %arg7[%c0_56, %c0_57], %50 {strides = array<i32>} : memref<64x256xf32, #tpu.memory_space<vmem>>, vector<64x256xf32>,
    %52 = vector.extract_strided_slice %3 {offsets = [2, 0, 0], sizes = [8, 8, 256], strides = [1, 1, 1]} : vector<10x10x256xbf16> to vector<8x8x256xbf16>
    %53 = vector.shape_cast %52 : vector<8x8x256xbf16> to vector<64x256xbf16>
    %c0_58 = arith.constant 0 : index
    %c0_59 = arith.constant 0 : index
    %54 = vector.load %arg7[%c0_58, %c0_59] : memref<64x256xf32, #tpu.memory_space<vmem>>, vector<64x256xf32>
    %c2_60 = arith.constant 2 : index
    %c0_61 = arith.constant 0 : index
    %c0_62 = arith.constant 0 : index
    %c0_63 = arith.constant 0 : index
    %55 = vector.load %arg3[%c2_60, %c0_61, %c0_62, %c0_63] : memref<3x3x256x256xbf16, #tpu.memory_space<vmem>>, vector<1x1x256x256xbf16>
    %56 = vector.shape_cast %55 : vector<1x1x256x256xbf16> to vector<256x256xbf16>
    %cst_64 = arith.constant dense<0.000000e+00> : vector<64x256xf32>
    %57 = tpu.matmul %53, %56, %cst_64 {dimension_numbers = #tpu.dot_dimension_numbers<[1], [0], [0], [1], [0, 0, 1, 1], [], []>} : vector<64x256xbf16>, vector<256x256xbf16>, vector<64x256xf32> -> vector<64x256xf32>
    %58 = arith.addf %54, %57 : vector<64x256xf32>
    %c0_65 = arith.constant 0 : index
    %c0_66 = arith.constant 0 : index
    %59 = vector.load %arg7[%c0_65, %c0_66] : memref<64x256xf32, #tpu.memory_space<vmem>>, vector<64x256xf32>
    tpu.vector_store %arg7[%c0_65, %c0_66], %58 {strides = array<i32>} : memref<64x256xf32, #tpu.memory_space<vmem>>, vector<64x256xf32>,
    %60 = vector.extract_strided_slice %3 {offsets = [2, 1, 0], sizes = [8, 8, 256], strides = [1, 1, 1]} : vector<10x10x256xbf16> to vector<8x8x256xbf16>
    %61 = vector.shape_cast %60 : vector<8x8x256xbf16> to vector<64x256xbf16>
    %c0_67 = arith.constant 0 : index
    %c0_68 = arith.constant 0 : index
    %62 = vector.load %arg7[%c0_67, %c0_68] : memref<64x256xf32, #tpu.memory_space<vmem>>, vector<64x256xf32>
    %c2_69 = arith.constant 2 : index
    %c1_70 = arith.constant 1 : index
    %c0_71 = arith.constant 0 : index
    %c0_72 = arith.constant 0 : index
    %63 = vector.load %arg3[%c2_69, %c1_70, %c0_71, %c0_72] : memref<3x3x256x256xbf16, #tpu.memory_space<vmem>>, vector<1x1x256x256xbf16>
    %64 = vector.shape_cast %63 : vector<1x1x256x256xbf16> to vector<256x256xbf16>
    %cst_73 = arith.constant dense<0.000000e+00> : vector<64x256xf32>
    %65 = tpu.matmul %61, %64, %cst_73 {dimension_numbers = #tpu.dot_dimension_numbers<[1], [0], [0], [1], [0, 0, 1, 1], [], []>} : vector<64x256xbf16>, vector<256x256xbf16>, vector<64x256xf32> -> vector<64x256xf32>
    %66 = arith.addf %62, %65 : vector<64x256xf32>
    %c0_74 = arith.constant 0 : index
    %c0_75 = arith.constant 0 : index
    %67 = vector.load %arg7[%c0_74, %c0_75] : memref<64x256xf32, #tpu.memory_space<vmem>>, vector<64x256xf32>
    tpu.vector_store %arg7[%c0_74, %c0_75], %66 {strides = array<i32>} : memref<64x256xf32, #tpu.memory_space<vmem>>, vector<64x256xf32>,
    %68 = vector.extract_strided_slice %3 {offsets = [2, 2, 0], sizes = [8, 8, 256], strides = [1, 1, 1]} : vector<10x10x256xbf16> to vector<8x8x256xbf16>
    %69 = vector.shape_cast %68 : vector<8x8x256xbf16> to vector<64x256xbf16>
    %c0_76 = arith.constant 0 : index
    %c0_77 = arith.constant 0 : index
    %70 = vector.load %arg7[%c0_76, %c0_77] : memref<64x256xf32, #tpu.memory_space<vmem>>, vector<64x256xf32>
    %c2_78 = arith.constant 2 : index
    %c2_79 = arith.constant 2 : index
    %c0_80 = arith.constant 0 : index
    %c0_81 = arith.constant 0 : index
    %71 = vector.load %arg3[%c2_78, %c2_79, %c0_80, %c0_81] : memref<3x3x256x256xbf16, #tpu.memory_space<vmem>>, vector<1x1x256x256xbf16>
    %72 = vector.shape_cast %71 : vector<1x1x256x256xbf16> to vector<256x256xbf16>
    %cst_82 = arith.constant dense<0.000000e+00> : vector<64x256xf32>
    %73 = tpu.matmul %69, %72, %cst_82 {dimension_numbers = #tpu.dot_dimension_numbers<[1], [0], [0], [1], [0, 0, 1, 1], [], []>} : vector<64x256xbf16>, vector<256x256xbf16>, vector<64x256xf32> -> vector<64x256xf32>
    %74 = arith.addf %70, %73 : vector<64x256xf32>
    %c0_83 = arith.constant 0 : index
    %c0_84 = arith.constant 0 : index
    %75 = vector.load %arg7[%c0_83, %c0_84] : memref<64x256xf32, #tpu.memory_space<vmem>>, vector<64x256xf32>
    tpu.vector_store %arg7[%c0_83, %c0_84], %74 {strides = array<i32>} : memref<64x256xf32, #tpu.memory_space<vmem>>, vector<64x256xf32>,
    %c0_85 = arith.constant 0 : index
    %c0_86 = arith.constant 0 : index
    %76 = vector.load %arg7[%c0_85, %c0_86] : memref<64x256xf32, #tpu.memory_space<vmem>>, vector<64x256xf32>
    %cst_87 = arith.constant dense<0.000000e+00> : vector<64xf32>
    %77 = vector.multi_reduction <add>, %76, %cst_87 [1] : vector<64x256xf32> to vector<64xf32>
    %78 = vector.shape_cast %77 : vector<64xf32> to vector<64x1xf32>
    %cst_88 = arith.constant 2.560000e+02 : f32
    %79 = vector.broadcast %cst_88 : f32 to vector<64x1xf32>
    %80 = arith.divf %78, %79 : vector<64x1xf32>
    %81 = vector.broadcast %80 : vector<64x1xf32> to vector<64x256xf32>
    %82 = arith.subf %76, %81 : vector<64x256xf32>
    %83 = arith.mulf %82, %82 : vector<64x256xf32>
    %cst_89 = arith.constant dense<0.000000e+00> : vector<64xf32>
    %84 = vector.multi_reduction <add>, %83, %cst_89 [1] : vector<64x256xf32> to vector<64xf32>
    %85 = vector.shape_cast %84 : vector<64xf32> to vector<64x1xf32>
    %cst_90 = arith.constant 2.560000e+02 : f32
    %86 = vector.broadcast %cst_90 : f32 to vector<64x1xf32>
    %87 = arith.divf %85, %86 : vector<64x1xf32>
    %88 = vector.broadcast %80 : vector<64x1xf32> to vector<64x256xf32>
    %89 = arith.subf %76, %88 : vector<64x256xf32>
    %cst_91 = arith.constant 9.99999997E-7 : f32
    %90 = vector.broadcast %cst_91 : f32 to vector<64x1xf32>
    %91 = arith.addf %87, %90 : vector<64x1xf32>
    %92 = math.rsqrt %91 : vector<64x1xf32>
    %93 = vector.broadcast %92 : vector<64x1xf32> to vector<64x256xf32>
    %94 = arith.mulf %89, %93 : vector<64x256xf32>
    %c0_92 = arith.constant 0 : index
    %c0_93 = arith.constant 0 : index
    %95 = vector.load %arg4[%c0_92, %c0_93] : memref<1x256xf32, #tpu.memory_space<vmem>>, vector<1x256xf32>
    %96 = vector.broadcast %95 : vector<1x256xf32> to vector<64x256xf32>
    %97 = arith.mulf %94, %96 : vector<64x256xf32>
    %c0_94 = arith.constant 0 : index
    %c0_95 = arith.constant 0 : index
    %98 = vector.load %arg5[%c0_94, %c0_95] : memref<1x256xf32, #tpu.memory_space<vmem>>, vector<1x256xf32>
    %99 = vector.broadcast %98 : vector<1x256xf32> to vector<64x256xf32>
    %100 = arith.addf %97, %99 : vector<64x256xf32>
    %101 = vector.shape_cast %100 : vector<64x256xf32> to vector<8x8x256xf32>
    %c0_96 = arith.constant 0 : index
    %c0_97 = arith.constant 0 : index
    %c0_98 = arith.constant 0 : index
    %c0_99 = arith.constant 0 : index
    %102 = vector.load %arg6[%c0_96, %c0_97, %c0_98, %c0_99] : memref<1x8x8x256xf32, #tpu.memory_space<vmem>>, vector<1x8x8x256xf32>
    %103 = vector.shape_cast %102 : vector<1x8x8x256xf32> to vector<8x8x256xf32>
    %104 = vector.shape_cast %101 : vector<8x8x256xf32> to vector<1x8x8x256xf32>
    tpu.vector_store %arg6[%c0_96, %c0_97, %c0_98, %c0_99], %104 {strides = array<i32>} : memref<1x8x8x256xf32, #tpu.memory_space<vmem>>, vector<1x8x8x256xf32>,
    return
  }
  func.func @transform_0(%arg0: i32, %arg1: i32) -> (i32, i32, i32, i32, i32) {
    %c0_i32 = arith.constant 0 : i32
    %c0_i32_0 = arith.constant 0 : i32
    %c0_i32_1 = arith.constant 0 : i32
    %c0_i32_2 = arith.constant 0 : i32
    return %arg0, %arg1, %c0_i32, %c0_i32_0, %c0_i32_1 : i32, i32, i32, i32, i32
  }
  func.func @transform_1(%arg0: i32, %arg1: i32) -> (i32, i32, i32, i32) {
    %c0_i32 = arith.constant 0 : i32
    %c0_i32_0 = arith.constant 0 : i32
    %c0_i32_1 = arith.constant 0 : i32
    %c0_i32_2 = arith.constant 0 : i32
    %c0_i32_3 = arith.constant 0 : i32
    return %c0_i32, %c0_i32_0, %c0_i32_1, %c0_i32_2 : i32, i32, i32, i32
  }
  func.func @transform_2(%arg0: i32, %arg1: i32) -> (i32, i32) {
    %c0_i32 = arith.constant 0 : i32
    %c0_i32_0 = arith.constant 0 : i32
    %c0_i32_1 = arith.constant 0 : i32
    return %c0_i32, %c0_i32_0 : i32, i32
  }
  func.func @transform_3(%arg0: i32, %arg1: i32) -> (i32, i32) {
    %c0_i32 = arith.constant 0 : i32
    %c0_i32_0 = arith.constant 0 : i32
    %c0_i32_1 = arith.constant 0 : i32
    return %c0_i32, %c0_i32_0 : i32, i32
  }
  func.func @transform_4(%arg0: i32, %arg1: i32) -> (i32, i32, i32, i32) {
    %c0_i32 = arith.constant 0 : i32
    %c0_i32_0 = arith.constant 0 : i32
    %c0_i32_1 = arith.constant 0 : i32
    return %arg0, %arg1, %c0_i32, %c0_i32_0 : i32, i32, i32, i32
  }
}

</mosaic_0001>

<bundles_post_ra>
// kernel: tile.15
= control target key start
LH: loop header
LB: loop body
LE: loop exit
PB: predicated region body
PF: predicated region fallthrough
CT: control target
= control target key end

     0   :  { %s208_s0 = inlined_call_operand.vmem [shape: f32[3], index: 0, kind: input, shape index: {}]   ;;  %s209_s1 = inlined_call_operand.vmem [shape: f32[256,3], index: 1, kind: output, shape index: {}]  }
   0x1   :  { %v4_v0 = vld [vmem:[%s208_s0] ss:$0 sm:$0xff] }
   0x2   :  { %5 = vst [vmem:[%s209_s1] sm:$0xff] %v4_v0  ;;  %68 = vst [vmem:[%s209_s1 + $0x8] sm:$0xff] %v4_v0 }
   0x3   :  { %69 = vst [vmem:[%s209_s1 + $0x10] sm:$0xff] %v4_v0  ;;  %70 = vst [vmem:[%s209_s1 + $0x18] sm:$0xff] %v4_v0 }
   0x4   :  { %71 = vst [vmem:[%s209_s1 + $0x20] sm:$0xff] %v4_v0  ;;  %72 = vst [vmem:[%s209_s1 + $0x28] sm:$0xff] %v4_v0 }
   0x5   :  { %73 = vst [vmem:[%s209_s1 + $0x30] sm:$0xff] %v4_v0  ;;  %74 = vst [vmem:[%s209_s1 + $0x38] sm:$0xff] %v4_v0 }
   0x6   :  { %75 = vst [vmem:[%s209_s1 + $0x40] sm:$0xff] %v4_v0  ;;  %76 = vst [vmem:[%s209_s1 + $0x48] sm:$0xff] %v4_v0 }
   0x7   :  { %77 = vst [vmem:[%s209_s1 + $0x50] sm:$0xff] %v4_v0  ;;  %78 = vst [vmem:[%s209_s1 + $0x58] sm:$0xff] %v4_v0 }
   0x8   :  { %79 = vst [vmem:[%s209_s1 + $0x60] sm:$0xff] %v4_v0  ;;  %80 = vst [vmem:[%s209_s1 + $0x68] sm:$0xff] %v4_v0 }
   0x9   :  { %81 = vst [vmem:[%s209_s1 + $0x70] sm:$0xff] %v4_v0  ;;  %82 = vst [vmem:[%s209_s1 + $0x78] sm:$0xff] %v4_v0 }
   0xa   :  { %83 = vst [vmem:[%s209_s1 + $0x80] sm:$0xff] %v4_v0  ;;  %84 = vst [vmem:[%s209_s1 + $0x88] sm:$0xff] %v4_v0 }
   0xb   :  { %85 = vst [vmem:[%s209_s1 + $0x90] sm:$0xff] %v4_v0  ;;  %86 = vst [vmem:[%s209_s1 + $0x98] sm:$0xff] %v4_v0 }
   0xc   :  { %87 = vst [vmem:[%s209_s1 + $0xa0] sm:$0xff] %v4_v0  ;;  %88 = vst [vmem:[%s209_s1 + $0xa8] sm:$0xff] %v4_v0 }
   0xd   :  { %89 = vst [vmem:[%s209_s1 + $0xb0] sm:$0xff] %v4_v0  ;;  %90 = vst [vmem:[%s209_s1 + $0xb8] sm:$0xff] %v4_v0 }
   0xe   :  { %91 = vst [vmem:[%s209_s1 + $0xc0] sm:$0xff] %v4_v0  ;;  %92 = vst [vmem:[%s209_s1 + $0xc8] sm:$0xff] %v4_v0 }
   0xf   :  { %93 = vst [vmem:[%s209_s1 + $0xd0] sm:$0xff] %v4_v0  ;;  %94 = vst [vmem:[%s209_s1 + $0xd8] sm:$0xff] %v4_v0 }
  0x10   :  { %95 = vst [vmem:[%s209_s1 + $0xe0] sm:$0xff] %v4_v0  ;;  %96 = vst [vmem:[%s209_s1 + $0xe8] sm:$0xff] %v4_v0 }
  0x11   :  { %97 = vst [vmem:[%s209_s1 + $0xf0] sm:$0xff] %v4_v0  ;;  %98 = vst [vmem:[%s209_s1 + $0xf8] sm:$0xff] %v4_v0 }

// kernel: tile.16
= control target key start
LH: loop header
LB: loop body
LE: loop exit
PB: predicated region body
PF: predicated region fallthrough
CT: control target
= control target key end

     0   :  { %vm5_vm0 = vcmask 1041409   ;;  %vm21_vm1 = vcmask 7168   ;;  %vm25_vm2 = vcmask 15360   ;;  %s1859_s24 = smov 125   ;;  %s1860_s29 = smov 127   ;;  %vm7_vm3 = vcmask 23552   ;;  %s3300_s0 = inlined_call_operand.vmem [shape: f32[256,3], index: 0, kind: input, shape index: {}]   ;;  %s3301_s1 = inlined_call_operand.vmem [shape: f32[768], index: 1, kind: output, shape index: {}]  }
   0x1   :  { %v1387_v0 = vld [vmem:[%s3300_s0 + $0x55] sm:$0x1]   ;;  %v1398_v5 = vld [vmem:[%s3300_s0 + $0x7f] sm:$0x1]   ;;  %v1393_v9 = vld [vmem:[%s3300_s0 + $0x2a] sm:$0x1]  }
   0x2   :  { %v1388_v1 = vld [vmem:[%s3300_s0 + $0xd4] sm:$0x2]   ;;  %v1399_v6 = vld [vmem:[%s3300_s0 + $0xfe] sm:$0x2]   ;;  %v1394_v10 = vld [vmem:[%s3300_s0 + $0xa9] sm:$0x2]  }
   0x3   :  { %v1389_v2 = vld [vmem:[%s3300_s0 + $0x55] sm:$0x1]   ;;  %v14_v3 = vsel %vm5_vm0, %v1388_v1, %v1387_v0  ;;  %v57_v8 = vsel %vm5_vm0, %v1399_v6, %v1398_v5  ;;  %v1395_v11 = vld [vmem:[%s3300_s0 + $0x2a] sm:$0x1]   ;;  %v36_v13 = vsel %vm5_vm0, %v1394_v10, %v1393_v9  ;;  %v1401_v15 = vld [vmem:[%s3300_s0 + $0x54] sm:$0x1]  }
   0x4   :  { %v1390_v4 = vld [vmem:[%s3300_s0 + $0xd4] sm:$0x2]   ;;  %58 = vrot.lane.b32.xlu1 %v57_v8, %s1859_s24  ;;  %v1396_v14 = vld [vmem:[%s3300_s0 + $0xa9] sm:$0x2]   ;;  %v1402_v17 = vld [vmem:[%s3300_s0 + $0xd3] sm:$0x2]  }
   0x5   :  { %v20_v7 = vsel %vm5_vm0, %v1390_v4, %v1389_v2  ;;  %v42_v16 = vsel %vm5_vm0, %v1396_v14, %v1395_v11  ;;  %v68_v19 = vsel %vm5_vm0, %v1402_v17, %v1401_v15  ;;  %v1406_v20 = vld [vmem:[%s3300_s0 + $0x7e] sm:$0x1]   ;;  %v1404_v22 = vld [vmem:[%s3300_s0 + $0x29] sm:$0x1]   ;;  %s1861_s11 = smov 124   ;;  %s1862_s12 = smov 126  }
   0x6   :  { %v22_v12 = vsel %vm21_vm1, %v20_v7, %v14_v3  ;;  %v44_v18 = vsel %vm25_vm2, %v42_v16, %v36_v13  ;;  %v1407_v21 = vld [vmem:[%s3300_s0 + $0xfd] sm:$0x2]   ;;  %v1405_v23 = vld [vmem:[%s3300_s0 + $0xa8] sm:$0x2]   ;;  %v1412_v26 = vld [vmem:[%s3300_s0 + $0x28] sm:$0x1]  }
   0x7   :  { %23 = vrot.lane.b32.xlu0 %v22_v12, %s1860_s29  ;;  %v89_v24 = vsel %vm5_vm0, %v1407_v21, %v1406_v20  ;;  %v79_v25 = vsel %vm5_vm0, %v1405_v23, %v1404_v22  ;;  %v1413_v27 = vld [vmem:[%s3300_s0 + $0xa7] sm:$0x2]   ;;  %v1409_v28 = vld [vmem:[%s3300_s0 + $0x53] sm:$0x1]   ;;  %s1863_s21 = smov 122   ;;  %s1864_s22 = smov 123  }
   0x8   :  { %69 = vrot.lane.b32.xlu1 %v68_v19, %s1861_s11  ;;  %v1410_v29 = vld [vmem:[%s3300_s0 + $0xd2] sm:$0x2]   ;;  %v111_v30 = vsel %vm5_vm0, %v1413_v27, %v1412_v26  ;;  %v1417_v32 = vld [vmem:[%s3300_s0 + $0x52] sm:$0x1]   ;;  %v1414_v34 = vld [vmem:[%s3300_s0 + $0x7d] sm:$0x1]  }
   0x9   :  { %v100_v31 = vsel %vm5_vm0, %v1410_v29, %v1409_v28  ;;  %v1418_v33 = vld [vmem:[%s3300_s0 + $0xd1] sm:$0x2]   ;;  %v1415_v35 = vld [vmem:[%s3300_s0 + $0xfc] sm:$0x2]   ;;  %s1865_s2 = smov 120   ;;  %s1866_s3 = smov 121  }
   0xa   :  { %v132_v36 = vsel %vm5_vm0, %v1418_v33, %v1417_v32  ;;  %v121_v37 = vsel %vm5_vm0, %v1415_v35, %v1414_v34  ;;  %v1422_v38 = vld [vmem:[%s3300_s0 + $0x7c] sm:$0x1]   ;;  %v1420_v40 = vld [vmem:[%s3300_s0 + $0x27] sm:$0x1]   ;;  %s1868_s13 = smov 119   ;;  %s1870_s23 = smov 117  }
   0xb   :  { %45 = vrot.lane.b32.xlu0 %v44_v18, %s1862_s12  ;;  %v1423_v39 = vld [vmem:[%s3300_s0 + $0xfb] sm:$0x2]   ;;  %v1421_v41 = vld [vmem:[%s3300_s0 + $0xa6] sm:$0x2]   ;;  %s1867_s12 = smov 118   ;;  %s1872_s4 = smov 115  }
   0xc   :  { %90 = vrot.lane.b32.xlu1 %v89_v24, %s1863_s21  ;;  %v153_v42 = vsel %vm5_vm0, %v1423_v39, %v1422_v38  ;;  %v143_v43 = vsel %vm5_vm0, %v1421_v41, %v1420_v40  ;;  %v1428_v44 = vld [vmem:[%s3300_s0 + $0x26] sm:$0x1]   ;;  %v1425_v46 = vld [vmem:[%s3300_s0 + $0x51] sm:$0x1]   ;;  %v1433_v50 = vld [vmem:[%s3300_s0 + $0x50] sm:$0x1]  }
   0xd   :  { %v1429_v45 = vld [vmem:[%s3300_s0 + $0xa5] sm:$0x2]   ;;  %v1426_v47 = vld [vmem:[%s3300_s0 + $0xd0] sm:$0x2]   ;;  %v1434_v51 = vld [vmem:[%s3300_s0 + $0xcf] sm:$0x2]  }
   0xe   :  { %v175_v48 = vsel %vm5_vm0, %v1429_v45, %v1428_v44  ;;  %v164_v49 = vsel %vm5_vm0, %v1426_v47, %v1425_v46  ;;  %v1430_v52 = vld [vmem:[%s3300_s0 + $0x7b] sm:$0x1]   ;;  %v196_v54 = vsel %vm5_vm0, %v1434_v51, %v1433_v50  ;;  %v1438_v56 = vld [vmem:[%s3300_s0 + $0x7a] sm:$0x1]   ;;  %v1436_v58 = vld [vmem:[%s3300_s0 + $0x25] sm:$0x1]  }
   0xf   :  { %80 = vrot.lane.b32.xlu0 %v79_v25, %s1864_s22  ;;  %s1869_s22 = smov 116   ;;  %v1431_v53 = vld [vmem:[%s3300_s0 + $0xfa] sm:$0x2]   ;;  %v1439_v57 = vld [vmem:[%s3300_s0 + $0xf9] sm:$0x2]   ;;  %s1874_s14 = smov 113  }
  0x10   :  { %112 = vrot.lane.b32.xlu1 %v111_v30, %s1865_s2  ;;  %v185_v55 = vsel %vm5_vm0, %v1431_v53, %v1430_v52  ;;  %v1437_v59 = vld [vmem:[%s3300_s0 + $0xa4] sm:$0x2]   ;;  %v217_v60 = vsel %vm5_vm0, %v1439_v57, %v1438_v56  ;;  %v1444_v62 = vld [vmem:[%s3300_s0 + $0x24] sm:$0x1]   ;;  %v1441_v0 = vld [vmem:[%s3300_s0 + $0x4f] sm:$0x1]  }
  0x11   :  { %v207_v61 = vsel %vm5_vm0, %v1437_v59, %v1436_v58  ;;  %v1445_v63 = vld [vmem:[%s3300_s0 + $0xa3] sm:$0x2]   ;;  %v1442_v1 = vld [vmem:[%s3300_s0 + $0xce] sm:$0x2]   ;;  %s1876_s24 = smov 111   ;;  %s1878_s5 = smov 109  }
  0x12   :  { %v239_v2 = vsel %vm5_vm0, %v1445_v63, %v1444_v62  ;;  %v228_v3 = vsel %vm5_vm0, %v1442_v1, %v1441_v0  ;;  %v1449_v4 = vld [vmem:[%s3300_s0 + $0x4e] sm:$0x1]   ;;  %v1446_v6 = vld [vmem:[%s3300_s0 + $0x79] sm:$0x1]   ;;  %v1454_v10 = vld [vmem:[%s3300_s0 + $0x78] sm:$0x1]  }
  0x13   :  { %101 = vrot.lane.b32.xlu0 %v100_v31, %s1866_s3  ;;  %s1871_s3 = smov 114   ;;  %v1450_v5 = vld [vmem:[%s3300_s0 + $0xcd] sm:$0x2]   ;;  %v1447_v7 = vld [vmem:[%s3300_s0 + $0xf8] sm:$0x2]   ;;  %s1880_s15 = smov 107  }
  0x14   :  { %133 = vrot.lane.b32.xlu1 %v132_v36, %s1867_s12  ;;  %v260_v8 = vsel %vm5_vm0, %v1450_v5, %v1449_v4  ;;  %v249_v9 = vsel %vm5_vm0, %v1447_v7, %v1446_v6  ;;  %v1455_v11 = vld [vmem:[%s3300_s0 + $0xf7] sm:$0x2]   ;;  %v1452_v12 = vld [vmem:[%s3300_s0 + $0x23] sm:$0x1]   ;;  %v1460_v16 = vld [vmem:[%s3300_s0 + $0x22] sm:$0x1]  }
  0x15   :  { %v1453_v13 = vld [vmem:[%s3300_s0 + $0xa2] sm:$0x2]   ;;  %v281_v14 = vsel %vm5_vm0, %v1455_v11, %v1454_v10  ;;  %v1461_v17 = vld [vmem:[%s3300_s0 + $0xa1] sm:$0x2]   ;;  %v1457_v18 = vld [vmem:[%s3300_s0 + $0x4d] sm:$0x1]  }
  0x16   :  { %v271_v15 = vsel %vm5_vm0, %v1453_v13, %v1452_v12  ;;  %v1458_v19 = vld [vmem:[%s3300_s0 + $0xcc] sm:$0x2]   ;;  %s1882_s25 = smov 105   ;;  %v303_v20 = vsel %vm5_vm0, %v1461_v17, %v1460_v16  ;;  %v1462_v22 = vld [vmem:[%s3300_s0 + $0x77] sm:$0x1]   ;;  %s1883_s7 = smov 102  }
  0x17   :  { %122 = vrot.lane.b32.xlu0 %v121_v37, %s1868_s13  ;;  %s1873_s13 = smov 112   ;;  %v292_v21 = vsel %vm5_vm0, %v1458_v19, %v1457_v18  ;;  %v1465_v23 = vld [vmem:[%s3300_s0 + $0x4c] sm:$0x1]   ;;  %v1463_v25 = vld [vmem:[%s3300_s0 + $0xf6] sm:$0x2]   ;;  %s1884_s10 = smov 103  }
  0x18   :  { %154 = vrot.lane.b32.xlu1 %v153_v42, %s1869_s22  ;;  %v1466_v24 = vld [vmem:[%s3300_s0 + $0xcb] sm:$0x2]   ;;  %v2_v26 = vld [vmem:[%s3300_s0] sm:$0x1]   ;;  %v313_v30 = vsel %vm5_vm0, %v1463_v25, %v1462_v22  ;;  %v1470_v31 = vld [vmem:[%s3300_s0 + $0x76] sm:$0x1]  }
  0x19   :  { %v1386_v27 = vld [vmem:[%s3300_s0 + $0x7f] sm:$0x2]   ;;  %v324_v28 = vsel %vm5_vm0, %v1466_v24, %v1465_v23  ;;  %v1471_v32 = vld [vmem:[%s3300_s0 + $0xf5] sm:$0x2]   ;;  %v1468_v33 = vld [vmem:[%s3300_s0 + $0x21] sm:$0x1]  }
  0x1a   :  { %v6_v29 = vsel %vm5_vm0, %v1386_v27, %v2_v26  ;;  %v1469_v34 = vld [vmem:[%s3300_s0 + $0xa0] sm:$0x2]   ;;  %s1885_s21 = smov 100   ;;  %s1886_s22 = smov 101   ;;  %v345_v35 = vsel %vm5_vm0, %v1471_v32, %v1470_v31  ;;  %v1476_v37 = vld [vmem:[%s3300_s0 + $0x20] sm:$0x1]  }
  0x1b   :  { %144 = vrot.lane.b32.xlu0 %v143_v43, %s1870_s23  ;;  %s1875_s23 = smov 110   ;;  %8 = vst.msk [vmem:[%s3301_s1] ss:$3 sm:$0x3] %vm7_vm3, %v6_v29   ;;  %v335_v36 = vsel %vm5_vm0, %v1469_v34, %v1468_v33  ;;  %v1477_v38 = vld [vmem:[%s3300_s0 + $0x9f] sm:$0x2]  }
  0x1c   :  { %176 = vrot.lane.b32.xlu1 %v175_v48, %s1871_s3  ;;  %v1473_v39 = vld [vmem:[%s3300_s0 + $0x4b] sm:$0x1]   ;;  %s1887_s2 = smov 98   ;;  %s1888_s3 = smov 99   ;;  %v367_v41 = vsel %vm5_vm0, %v1477_v38, %v1476_v37  ;;  %v1481_v43 = vld [vmem:[%s3300_s0 + $0x4a] sm:$0x1]  }
  0x1d   :  { %v1474_v40 = vld [vmem:[%s3300_s0 + $0xca] sm:$0x2]   ;;  %v1482_v44 = vld [vmem:[%s3300_s0 + $0xc9] sm:$0x2]   ;;  %v1478_v45 = vld [vmem:[%s3300_s0 + $0x75] sm:$0x1]  }
  0x1e   :  { %v356_v42 = vsel %vm5_vm0, %v1474_v40, %v1473_v39  ;;  %v1479_v46 = vld [vmem:[%s3300_s0 + $0xf4] sm:$0x2]   ;;  %s1889_s12 = smov 96   ;;  %v388_v47 = vsel %vm5_vm0, %v1482_v44, %v1481_v43  ;;  %v1487_v50 = vld [vmem:[%s3300_s0 + $0xf3] sm:$0x2]   ;;  %s1906_s6 = smov 81  }
  0x1f   :  { %165 = vrot.lane.b32.xlu0 %v164_v49, %s1872_s4  ;;  %s1877_s4 = smov 108   ;;  %v377_v48 = vsel %vm5_vm0, %v1479_v46, %v1478_v45  ;;  %v1486_v49 = vld [vmem:[%s3300_s0 + $0x74] sm:$0x1]   ;;  %v1484_v51 = vld [vmem:[%s3300_s0 + $0x1f] sm:$0x1]   ;;  %s1908_s16 = smov 79  }
  0x20   :  { %197 = vrot.lane.b32.xlu1 %v196_v54, %s1873_s13  ;;  %s1890_s13 = smov 97   ;;  %v1485_v52 = vld [vmem:[%s3300_s0 + $0x9e] sm:$0x2]   ;;  %v409_v53 = vsel %vm5_vm0, %v1487_v50, %v1486_v49  ;;  %v1493_v56 = vld [vmem:[%s3300_s0 + $0x9d] sm:$0x2]   ;;  %s1910_s26 = smov 77  }
  0x21   :  { %v399_v54 = vsel %vm5_vm0, %v1485_v52, %v1484_v51  ;;  %v1489_v57 = vld [vmem:[%s3300_s0 + $0x49] sm:$0x1]   ;;  %v1498_v62 = vld [vmem:[%s3300_s0 + $0xc7] sm:$0x2]   ;;  %v1494_v63 = vld [vmem:[%s3300_s0 + $0x73] sm:$0x1]  }
  0x22   :  { %v1490_v58 = vld [vmem:[%s3300_s0 + $0xc8] sm:$0x2]   ;;  %v1495_v0 = vld [vmem:[%s3300_s0 + $0xf2] sm:$0x2]   ;;  %v1503_v4 = vld [vmem:[%s3300_s0 + $0xf1] sm:$0x2]  }
  0x23   :  { %186 = vrot.lane.b32.xlu0 %v185_v55, %s1874_s14  ;;  %s1879_s14 = smov 106   ;;  %v1492_v55 = vld [vmem:[%s3300_s0 + $0x1e] sm:$0x1]   ;;  %v1500_v5 = vld [vmem:[%s3300_s0 + $0x1d] sm:$0x1]   ;;  %s1914_s17 = smov 73  }
  0x24   :  { %218 = vrot.lane.b32.xlu1 %v217_v60, %s1875_s23  ;;  %s1892_s23 = smov 95   ;;  %v431_v59 = vsel %vm5_vm0, %v1493_v56, %v1492_v55  ;;  %v420_v60 = vsel %vm5_vm0, %v1490_v58, %v1489_v57  ;;  %v1501_v6 = vld [vmem:[%s3300_s0 + $0x9c] sm:$0x2]   ;;  %v1509_v10 = vld [vmem:[%s3300_s0 + $0x9b] sm:$0x2]   ;;  %s1916_s27 = smov 71  }
  0x25   :  { %v1505_v11 = vld [vmem:[%s3300_s0 + $0x47] sm:$0x1]   ;;  %v1514_v16 = vld [vmem:[%s3300_s0 + $0xc5] sm:$0x2]   ;;  %v1510_v17 = vld [vmem:[%s3300_s0 + $0x71] sm:$0x1]  }
  0x26   :  { %v1506_v12 = vld [vmem:[%s3300_s0 + $0xc6] sm:$0x2]   ;;  %v1511_v18 = vld [vmem:[%s3300_s0 + $0xf0] sm:$0x2]   ;;  %v1519_v22 = vld [vmem:[%s3300_s0 + $0xef] sm:$0x2]  }
  0x27   :  { %208 = vrot.lane.b32.xlu0 %v207_v61, %s1876_s24  ;;  %s1881_s24 = smov 104   ;;  %v1497_v61 = vld [vmem:[%s3300_s0 + $0x48] sm:$0x1]   ;;  %v1516_v23 = vld [vmem:[%s3300_s0 + $0x1b] sm:$0x1]   ;;  %vm28_vm4 = vcmask 1048568  }
  0x28   :  { %240 = vrot.lane.b32.xlu1 %v239_v2, %s1877_s4  ;;  %s1894_s4 = smov 93   ;;  %v452_v1 = vsel %vm5_vm0, %v1498_v62, %v1497_v61  ;;  %v441_v2 = vsel %vm5_vm0, %v1495_v0, %v1494_v63  ;;  %v1517_v24 = vld [vmem:[%s3300_s0 + $0x9a] sm:$0x2]   ;;  %v1524_v27 = vld [vmem:[%s3300_s0 + $0x1a] sm:$0x1]   ;;  %vm60_vm5 = vcmask 1048552  }
  0x29   :  { %v527_v26 = vsel %vm5_vm0, %v1517_v24, %v1516_v23  ;;  %v1521_v29 = vld [vmem:[%s3300_s0 + $0x45] sm:$0x1]   ;;  %v1529_v33 = vld [vmem:[%s3300_s0 + $0x44] sm:$0x1]   ;;  %v1534_v39 = vld [vmem:[%s3300_s0 + $0x6e] sm:$0x1]  }
  0x2a   :  { %v1530_v34 = vld [vmem:[%s3300_s0 + $0xc3] sm:$0x2]   ;;  %v1535_v40 = vld [vmem:[%s3300_s0 + $0xed] sm:$0x2]   ;;  %v1540_v45 = vld [vmem:[%s3300_s0 + $0x18] sm:$0x1]  }
  0x2b   :  { %229 = vrot.lane.b32.xlu0 %v228_v3, %s1878_s5  ;;  %v1502_v3 = vld [vmem:[%s3300_s0 + $0x72] sm:$0x1]   ;;  %s1900_s5 = smov 87   ;;  %v580_v37 = vsel %vm5_vm0, %v1530_v34, %v1529_v33  ;;  %v601_v43 = vsel %vm5_vm0, %v1535_v40, %v1534_v39  ;;  %v1541_v46 = vld [vmem:[%s3300_s0 + $0x97] sm:$0x2]   ;;  %s1917_s11 = smov 68  }
  0x2c   :  { %261 = vrot.lane.b32.xlu1 %v260_v8, %s1879_s14  ;;  %s1896_s14 = smov 91   ;;  %v473_v7 = vsel %vm5_vm0, %v1503_v4, %v1502_v3  ;;  %v463_v8 = vsel %vm5_vm0, %v1501_v6, %v1500_v5  ;;  %v623_v49 = vsel %vm5_vm0, %v1541_v46, %v1540_v45  ;;  %v1545_v51 = vld [vmem:[%s3300_s0 + $0x42] sm:$0x1]   ;;  %v1550_v57 = vld [vmem:[%s3300_s0 + $0x6c] sm:$0x1]   ;;  %vm50_vm6 = vcmask 1048560  }
  0x2d   :  { %v1546_v52 = vld [vmem:[%s3300_s0 + $0xc1] sm:$0x2]   ;;  %v1551_v58 = vld [vmem:[%s3300_s0 + $0xeb] sm:$0x2]   ;;  %v1556_v0 = vld [vmem:[%s3300_s0 + $0x16] sm:$0x1]  }
  0x2e   :  { %v644_v55 = vsel %vm5_vm0, %v1546_v52, %v1545_v51  ;;  %v665_v61 = vsel %vm5_vm0, %v1551_v58, %v1550_v57  ;;  %v1553_v3 = vld [vmem:[%s3300_s0 + $0x41] sm:$0x1]   ;;  %vm71_vm7 = vcmask 1040352   ;;  %vm92_vm8 = vcmask 1023952   ;;  %s1920_s28 = smov 67   ;;  %s1924_s29 = smov 63  }
  0x2f   :  { %250 = vrot.lane.b32.xlu0 %v249_v9, %s1880_s15  ;;  %v1508_v9 = vld [vmem:[%s3300_s0 + $0x1c] sm:$0x1]   ;;  %s1902_s15 = smov 85   ;;  %v1554_v4 = vld [vmem:[%s3300_s0 + $0xc0] sm:$0x2]   ;;  %vm82_vm9 = vcmask 1032152  }
  0x30   :  { %282 = vrot.lane.b32.xlu1 %v281_v14, %s1881_s24  ;;  %s1898_s24 = smov 89   ;;  %v495_v13 = vsel %vm5_vm0, %v1509_v10, %v1508_v9  ;;  %v484_v14 = vsel %vm5_vm0, %v1506_v12, %v1505_v11  ;;  %v676_v6 = vsel %vm5_vm0, %v1554_v4, %v1553_v3  ;;  %v1562_v9 = vld [vmem:[%s3300_s0 + $0xbf] sm:$0x2]   ;;  %v1558_v11 = vld [vmem:[%s3300_s0 + $0x6b] sm:$0x1]   ;;  %vm114_vm10 = vcmask 1007552  }
  0x31   :  { %v1559_v12 = vld [vmem:[%s3300_s0 + $0xea] sm:$0x2]   ;;  %vm103_vm11 = vcmask 1015752   ;;  %v1572_v24 = vld [vmem:[%s3300_s0 + $0x14] sm:$0x1]   ;;  %vm135_vm12 = vcmask 991152  }
  0x32   :  { %vm124_vm13 = vcmask 999352   ;;  %v1578_v33 = vld [vmem:[%s3300_s0 + $0xbd] sm:$0x2]   ;;  %vm156_vm14 = vcmask 974752   ;;  %vm146_vm15 = vcmask 982952   ;;  %vm199_vm3 = vcmask 941952  }
  0x33   :  { %272 = vrot.lane.b32.xlu0 %v271_v15, %s1882_s25  ;;  %v1513_v15 = vld [vmem:[%s3300_s0 + $0x46] sm:$0x1]   ;;  %s1904_s25 = smov 83   ;;  %v1582_v40 = vld [vmem:[%s3300_s0 + $0x68] sm:$0x1]   ;;  %s1941_s9 = smov 44  }
  0x34   :  { %304 = vrot.lane.b32.xlu1 %v303_v20, %s1883_s7  ;;  %v516_v19 = vsel %vm5_vm0, %v1514_v16, %v1513_v15  ;;  %v505_v20 = vsel %vm5_vm0, %v1511_v18, %v1510_v17  ;;  %s1912_s7 = smov 75   ;;  %v1566_v16 = vld [vmem:[%s3300_s0 + $0x6a] sm:$0x1]   ;;  %v1585_v51 = vld [vmem:[%s3300_s0 + $0x3d] sm:$0x1]   ;;  %s1945_s8 = smov 40  }
  0x35   :  { %v1567_v17 = vld [vmem:[%s3300_s0 + $0xe9] sm:$0x2]   ;;  %v1586_v52 = vld [vmem:[%s3300_s0 + $0xbc] sm:$0x2]   ;;  %v1594_v57 = vld [vmem:[%s3300_s0 + $0xbb] sm:$0x2]  }
  0x36   :  { %v1596_v3 = vld [vmem:[%s3300_s0 + $0x11] sm:$0x1]   ;;  %s1955_s20 = smov 30   ;;  %s1959_s19 = smov 26  }
  0x37   :  { %293 = vrot.lane.b32.xlu0 %v292_v21, %s1884_s10  ;;  %v1518_v21 = vld [vmem:[%s3300_s0 + $0x70] sm:$0x1]   ;;  %v1597_v4 = vld [vmem:[%s3300_s0 + $0x90] sm:$0x2]   ;;  %s1937_s10 = smov 48   ;;  %s1963_s18 = smov 22  }
  0x38   :  { %325 = vrot.lane.b32.xlu1 %v324_v28, %s1885_s21  ;;  %v537_v25 = vsel %vm5_vm0, %v1519_v22, %v1518_v21  ;;  %v1525_v28 = vld [vmem:[%s3300_s0 + $0x99] sm:$0x2]   ;;  %v729_v21 = vsel %vm5_vm0, %v1567_v17, %v1566_v16  ;;  %s1951_s21 = smov 34   ;;  %s1973_s30 = smov 12  }
  0x39   :  { %v559_v31 = vsel %vm5_vm0, %v1525_v28, %v1524_v27  ;;  %v1569_v27 = vld [vmem:[%s3300_s0 + $0x3f] sm:$0x1]   ;;  %v1609_v16 = vld [vmem:[%s3300_s0 + $0x3a] sm:$0x1]  }
  0x3a   :  { %v1570_v28 = vld [vmem:[%s3300_s0 + $0xbe] sm:$0x2]   ;;  %v1610_v17 = vld [vmem:[%s3300_s0 + $0xb9] sm:$0x2]  }
  0x3b   :  { %314 = vrot.lane.b32.xlu0 %v313_v30, %s1886_s22  ;;  %s1891_s22 = smov 94   ;;  %v1522_v30 = vld [vmem:[%s3300_s0 + $0xc4] sm:$0x2]  }
  0x3c   :  { %346 = vrot.lane.b32.xlu1 %v345_v35, %s1887_s2  ;;  %v548_v32 = vsel %vm5_vm0, %v1522_v30, %v1521_v29  ;;  %v1526_v35 = vld [vmem:[%s3300_s0 + $0x6f] sm:$0x1]   ;;  %v740_v30 = vsel %vm5_vm0, %v1570_v28, %v1569_v27  ;;  %s1969_s2 = smov 16  }
  0x3d   :  { %v1612_v27 = vld [vmem:[%s3300_s0 + $0xf] sm:$0x1]  }
  0x3e   :  { %v1613_v28 = vld [vmem:[%s3300_s0 + $0x8e] sm:$0x2]  }
  0x3f   :  { %336 = vrot.lane.b32.xlu0 %v335_v36, %s1888_s3  ;;  %s1893_s3 = smov 92   ;;  %v1527_v36 = vld [vmem:[%s3300_s0 + $0xee] sm:$0x2]  }
  0x40   :  { %368 = vrot.lane.b32.xlu1 %v367_v41, %s1889_s12  ;;  %v569_v38 = vsel %vm5_vm0, %v1527_v36, %v1526_v35  ;;  %v1532_v41 = vld [vmem:[%s3300_s0 + $0x19] sm:$0x1]   ;;  %s1918_s12 = smov 69   ;;  %v1574_v35 = vld [vmem:[%s3300_s0 + $0x69] sm:$0x1]  }
  0x41   :  { %v1575_v36 = vld [vmem:[%s3300_s0 + $0xe8] sm:$0x2]  }
  0x43   :  { %357 = vrot.lane.b32.xlu0 %v356_v42, %s1890_s13  ;;  %s1895_s13 = smov 90   ;;  %v1533_v42 = vld [vmem:[%s3300_s0 + $0x98] sm:$0x2]  }
  0x44   :  { %389 = vrot.lane.b32.xlu1 %v388_v47, %s1891_s22  ;;  %v591_v44 = vsel %vm5_vm0, %v1533_v42, %v1532_v41  ;;  %v1537_v47 = vld [vmem:[%s3300_s0 + $0x43] sm:$0x1]   ;;  %v1583_v41 = vld [vmem:[%s3300_s0 + $0xe7] sm:$0x2]   ;;  %s1947_s22 = smov 38  }
  0x45   :  { %v793_v45 = vsel %vm5_vm0, %v1583_v41, %v1582_v40  ;;  %v1625_v40 = vld [vmem:[%s3300_s0 + $0x38] sm:$0x1]  }
  0x46   :  { %v1626_v41 = vld [vmem:[%s3300_s0 + $0xb7] sm:$0x2]  }
  0x47   :  { %378 = vrot.lane.b32.xlu0 %v377_v48, %s1892_s23  ;;  %s1897_s23 = smov 88   ;;  %v1538_v48 = vld [vmem:[%s3300_s0 + $0xc2] sm:$0x2]  }
  0x48   :  { %410 = vrot.lane.b32.xlu1 %v409_v53, %s1893_s3  ;;  %v612_v50 = vsel %vm5_vm0, %v1538_v48, %v1537_v47  ;;  %v1542_v53 = vld [vmem:[%s3300_s0 + $0x6d] sm:$0x1]   ;;  %v1588_v48 = vld [vmem:[%s3300_s0 + $0x12] sm:$0x1]   ;;  %s1965_s3 = smov 20  }
  0x4b   :  { %400 = vrot.lane.b32.xlu0 %v399_v54, %s1894_s4  ;;  %s1899_s4 = smov 86   ;;  %v1543_v54 = vld [vmem:[%s3300_s0 + $0xec] sm:$0x2]  }
  0x4c   :  { %432 = vrot.lane.b32.xlu1 %v431_v59, %s1895_s13  ;;  %v633_v56 = vsel %vm5_vm0, %v1543_v54, %v1542_v53  ;;  %v1548_v59 = vld [vmem:[%s3300_s0 + $0x17] sm:$0x1]   ;;  %s1925_s13 = smov 60   ;;  %v804_v54 = vsel %vm5_vm0, %v1586_v52, %v1585_v51  ;;  %v1628_v51 = vld [vmem:[%s3300_s0 + $0xd] sm:$0x1]  }
  0x4d   :  { %v1629_v52 = vld [vmem:[%s3300_s0 + $0x8c] sm:$0x2]  }
  0x4f   :  { %421 = vrot.lane.b32.xlu0 %v420_v60, %s1896_s14  ;;  %s1901_s14 = smov 84   ;;  %v1549_v60 = vld [vmem:[%s3300_s0 + $0x96] sm:$0x2]  }
  0x50   :  { %453 = vrot.lane.b32.xlu1 %v452_v1, %s1897_s23  ;;  %v655_v62 = vsel %vm5_vm0, %v1549_v60, %v1548_v59  ;;  %v1557_v1 = vld [vmem:[%s3300_s0 + $0x95] sm:$0x2]   ;;  %v1590_v59 = vld [vmem:[%s3300_s0 + $0x67] sm:$0x1]   ;;  %s1943_s23 = smov 42  }
  0x51   :  { %v687_v5 = vsel %vm5_vm0, %v1557_v1, %v1556_v0  ;;  %v1591_v60 = vld [vmem:[%s3300_s0 + $0xe6] sm:$0x2]   ;;  %v1598_v0 = vld [vmem:[%s3300_s0 + $0x66] sm:$0x1]  }
  0x52   :  { %v1599_v1 = vld [vmem:[%s3300_s0 + $0xe5] sm:$0x2]  }
  0x53   :  { %442 = vrot.lane.b32.xlu0 %v441_v2, %s1898_s24  ;;  %s1903_s24 = smov 82  }
  0x54   :  { %474 = vrot.lane.b32.xlu1 %v473_v7, %s1899_s4  ;;  %s1961_s4 = smov 24  }
  0x57   :  { %464 = vrot.lane.b32.xlu0 %v463_v8, %s1900_s5  ;;  %s1905_s5 = smov 80   ;;  %v1561_v8 = vld [vmem:[%s3300_s0 + $0x40] sm:$0x1]  }
  0x58   :  { %496 = vrot.lane.b32.xlu1 %v495_v13, %s1901_s14  ;;  %v708_v13 = vsel %vm5_vm0, %v1562_v9, %v1561_v8  ;;  %s1921_s14 = smov 64   ;;  %v1604_v8 = vld [vmem:[%s3300_s0 + $0x10] sm:$0x1]  }
  0x59   :  { %v1605_v9 = vld [vmem:[%s3300_s0 + $0x8f] sm:$0x2]  }
  0x5b   :  { %485 = vrot.lane.b32.xlu0 %v484_v14, %s1902_s15  ;;  %s1907_s15 = smov 78   ;;  %v697_v14 = vsel %vm5_vm0, %v1559_v12, %v1558_v11  ;;  %v1601_v11 = vld [vmem:[%s3300_s0 + $0x3b] sm:$0x1]  }
  0x5c   :  { %517 = vrot.lane.b32.xlu1 %v516_v19, %s1903_s24  ;;  %v1564_v19 = vld [vmem:[%s3300_s0 + $0x15] sm:$0x1]   ;;  %v1602_v12 = vld [vmem:[%s3300_s0 + $0xba] sm:$0x2]   ;;  %s1939_s24 = smov 46  }
  0x5f   :  { %506 = vrot.lane.b32.xlu0 %v505_v20, %s1904_s25  ;;  %s1909_s25 = smov 76   ;;  %v1565_v20 = vld [vmem:[%s3300_s0 + $0x94] sm:$0x2]  }
  0x60   :  { %538 = vrot.lane.b32.xlu1 %v537_v25, %s1905_s5  ;;  %v719_v22 = vsel %vm5_vm0, %v1565_v20, %v1564_v19  ;;  %v1573_v25 = vld [vmem:[%s3300_s0 + $0x93] sm:$0x2]   ;;  %v1606_v19 = vld [vmem:[%s3300_s0 + $0x65] sm:$0x1]   ;;  %s1957_s5 = smov 28  }
  0x61   :  { %v751_v29 = vsel %vm5_vm0, %v1573_v25, %v1572_v24  ;;  %v1607_v20 = vld [vmem:[%s3300_s0 + $0xe4] sm:$0x2]   ;;  %v1614_v24 = vld [vmem:[%s3300_s0 + $0x64] sm:$0x1]  }
  0x62   :  { %v1615_v25 = vld [vmem:[%s3300_s0 + $0xe3] sm:$0x2]  }
  0x63   :  { %528 = vrot.lane.b32.xlu0 %v527_v26, %s1906_s6  ;;  %s1911_s6 = smov 74  }
  0x64   :  { %560 = vrot.lane.b32.xlu1 %v559_v31, %s1907_s15  ;;  %s1922_s15 = smov 65  }
  0x67   :  { %549 = vrot.lane.b32.xlu0 %v548_v32, %s1908_s16  ;;  %s1913_s16 = smov 72   ;;  %v1577_v32 = vld [vmem:[%s3300_s0 + $0x3e] sm:$0x1]  }
  0x68   :  { %581 = vrot.lane.b32.xlu1 %v580_v37, %s1909_s25  ;;  %v772_v37 = vsel %vm5_vm0, %v1578_v33, %v1577_v32  ;;  %s1935_s25 = smov 50   ;;  %v1620_v32 = vld [vmem:[%s3300_s0 + $0xe] sm:$0x1]  }
  0x69   :  { %v1621_v33 = vld [vmem:[%s3300_s0 + $0x8d] sm:$0x2]  }
  0x6b   :  { %570 = vrot.lane.b32.xlu0 %v569_v38, %s1910_s26  ;;  %s1915_s26 = smov 70   ;;  %v761_v38 = vsel %vm5_vm0, %v1575_v36, %v1574_v35  ;;  %v1617_v35 = vld [vmem:[%s3300_s0 + $0x39] sm:$0x1]  }
  0x6c   :  { %602 = vrot.lane.b32.xlu1 %v601_v43, %s1911_s6  ;;  %v1580_v43 = vld [vmem:[%s3300_s0 + $0x13] sm:$0x1]   ;;  %v1618_v36 = vld [vmem:[%s3300_s0 + $0xb8] sm:$0x2]   ;;  %s1953_s6 = smov 32  }
  0x6f   :  { %592 = vrot.lane.b32.xlu0 %v591_v44, %s1912_s7  ;;  %v1581_v44 = vld [vmem:[%s3300_s0 + $0x92] sm:$0x2]   ;;  %s1949_s7 = smov 36  }
  0x70   :  { %624 = vrot.lane.b32.xlu1 %v623_v49, %s1913_s16  ;;  %v783_v46 = vsel %vm5_vm0, %v1581_v44, %v1580_v43  ;;  %v1589_v49 = vld [vmem:[%s3300_s0 + $0x91] sm:$0x2]   ;;  %v1622_v43 = vld [vmem:[%s3300_s0 + $0x63] sm:$0x1]   ;;  %s1971_s16 = smov 14  }
  0x71   :  { %v815_v53 = vsel %vm5_vm0, %v1589_v49, %v1588_v48  ;;  %v1623_v44 = vld [vmem:[%s3300_s0 + $0xe2] sm:$0x2]   ;;  %v1630_v48 = vld [vmem:[%s3300_s0 + $0x62] sm:$0x1]  }
  0x72   :  { %v1631_v49 = vld [vmem:[%s3300_s0 + $0xe1] sm:$0x2]  }
  0x73   :  { %613 = vrot.lane.b32.xlu0 %v612_v50, %s1914_s17  ;;  %s1967_s17 = smov 18  }
  0x74   :  { %645 = vrot.lane.b32.xlu1 %v644_v55, %s1915_s26  ;;  %s1931_s26 = smov 54  }
  0x76   :  { %v59_v63 = vpop.permute.xlu1 %58  }
  0x77   :  { %634 = vrot.lane.b32.xlu0 %v633_v56, %s1916_s27  ;;  %s1919_s27 = smov 66   ;;  %v1593_v56 = vld [vmem:[%s3300_s0 + $0x3c] sm:$0x1]  }
  0x78   :  { %666 = vrot.lane.b32.xlu1 %v665_v61, %s1917_s11  ;;  %v836_v61 = vsel %vm5_vm0, %v1594_v57, %v1593_v56  ;;  %s1933_s11 = smov 52   ;;  %v1636_v56 = vld [vmem:[%s3300_s0 + $0xc] sm:$0x1]  }
  0x79   :  { %v24_v2 = vpop.permute.xlu0 %23   ;;  %v1637_v57 = vld [vmem:[%s3300_s0 + $0x8b] sm:$0x2]  }
  0x7a   :  { %1391 = vst.msk [vmem:[%s3301_s1 + $0x2] ss:$3 sm:$0x3] %vm25_vm2, %v24_v2   ;;  %v70_v7 = vpop.permute.xlu1 %69   ;;  %vm167_vm2 = vcmask 966552  }
  0x7b   :  { %1392 = vst.msk [vmem:[%s3301_s1 + $0x1] ss:$3 sm:$0x3] %vm28_vm4, %v24_v2   ;;  %656 = vrot.lane.b32.xlu0 %v655_v62, %s1918_s12  ;;  %s1929_s12 = smov 56   ;;  %vm188_vm4 = vcmask 950152   ;;  %v825_v62 = vsel %vm5_vm0, %v1591_v60, %v1590_v59 }
  0x7c   :  { %1400 = vst.msk [vmem:[%s3301_s1 + $0x2] ss:$3 sm:$0x3] %vm60_vm5, %v59_v63   ;;  %688 = vrot.lane.b32.xlu1 %v687_v5, %s1919_s27  ;;  %s1927_s27 = smov 58   ;;  %vm220_vm5 = vcmask 925552   ;;  %v857_v5 = vsel %vm5_vm0, %v1599_v1, %v1598_v0 }
  0x7d   :  { %v46_v10 = vpop.permute.xlu0 %45   ;;  %v1633_v59 = vld [vmem:[%s3300_s0 + $0x37] sm:$0x1]   ;;  %v1641_v0 = vld [vmem:[%s3300_s0 + $0x36] sm:$0x1]  }
  0x7e   :  { %1397 = vst.msk [vmem:[%s3301_s1 + $0x1] ss:$3 sm:$0x3] %vm21_vm1, %v46_v10   ;;  %v91_v15 = vpop.permute.xlu1 %90   ;;  %vm178_vm1 = vcmask 958352   ;;  %v1634_v60 = vld [vmem:[%s3300_s0 + $0xb6] sm:$0x2]  }
  0x7f   :  { %51 = vst.msk [vmem:[%s3301_s1] ss:$3 sm:$0x3] %vm50_vm6, %v46_v10   ;;  %677 = vrot.lane.b32.xlu0 %v676_v6, %s1920_s28  ;;  %s1923_s28 = smov 62   ;;  %vm210_vm6 = vcmask 933752   ;;  %v847_v6 = vsel %vm5_vm0, %v1597_v4, %v1596_v3 }
  0x80   :  { %1403 = vst.msk [vmem:[%s3301_s1 + $0x1] ss:$3 sm:$0x3] %vm71_vm7, %v70_v7   ;;  %709 = vrot.lane.b32.xlu1 %v708_v13, %s1921_s14  ;;  %s1926_s14 = smov 61   ;;  %vm242_vm7 = vcmask 909152   ;;  %v879_v13 = vsel %vm5_vm0, %v1605_v9, %v1604_v8 }
  0x81   :  { %v81_v18 = vpop.permute.xlu0 %80   ;;  %1408 = vst.msk [vmem:[%s3301_s1 + $0x2] ss:$3 sm:$0x3] %vm92_vm8, %v91_v15   ;;  %vm231_vm8 = vcmask 917352   ;;  %v1642_v1 = vld [vmem:[%s3300_s0 + $0xb5] sm:$0x2]  }
  0x82   :  { %83 = vst.msk [vmem:[%s3301_s1] ss:$3 sm:$0x3] %vm82_vm9, %v81_v18   ;;  %v113_v23 = vpop.permute.xlu1 %112   ;;  %vm263_vm9 = vcmask 892752   ;;  %v1638_v3 = vld [vmem:[%s3300_s0 + $0x61] sm:$0x1]  }
  0x83   :  { %698 = vrot.lane.b32.xlu0 %v697_v14, %s1922_s15  ;;  %115 = vst.msk [vmem:[%s3301_s1] ss:$3 sm:$0x3] %vm114_vm10, %v113_v23   ;;  %vm252_vm10 = vcmask 900952   ;;  %v868_v14 = vsel %vm5_vm0, %v1602_v12, %v1601_v11  ;;  %v1639_v4 = vld [vmem:[%s3300_s0 + $0xe0] sm:$0x2]  }
  0x84   :  { %730 = vrot.lane.b32.xlu1 %v729_v21, %s1923_s28  ;;  %s1928_s28 = smov 59   ;;  %v900_v21 = vsel %vm5_vm0, %v1610_v17, %v1609_v16  ;;  %v1646_v8 = vld [vmem:[%s3300_s0 + $0x60] sm:$0x1]   ;;  %v1644_v11 = vld [vmem:[%s3300_s0 + $0xb] sm:$0x1]   ;;  %s1975_s15 = smov 10  }
  0x85   :  { %v102_v26 = vpop.permute.xlu0 %101   ;;  %v1647_v9 = vld [vmem:[%s3300_s0 + $0xdf] sm:$0x2]   ;;  %v1645_v12 = vld [vmem:[%s3300_s0 + $0x8a] sm:$0x2]   ;;  %v1652_v16 = vld [vmem:[%s3300_s0 + $0xa] sm:$0x1]  }
  0x86   :  { %1411 = vst.msk [vmem:[%s3301_s1 + $0x1] ss:$3 sm:$0x3] %vm103_vm11, %v102_v26   ;;  %v134_v31 = vpop.permute.xlu1 %133   ;;  %vm284_vm11 = vcmask 876352   ;;  %v1653_v17 = vld [vmem:[%s3300_s0 + $0x89] sm:$0x2]  }
  0x87   :  { %720 = vrot.lane.b32.xlu0 %v719_v22, %s1924_s29  ;;  %1419 = vst.msk [vmem:[%s3301_s1 + $0x1] ss:$3 sm:$0x3] %vm135_vm12, %v134_v31   ;;  %vm274_vm12 = vcmask 884552   ;;  %v889_v22 = vsel %vm5_vm0, %v1607_v20, %v1606_v19  ;;  %v1649_v19 = vld [vmem:[%s3300_s0 + $0x35] sm:$0x1]  }
  0x88   :  { %752 = vrot.lane.b32.xlu1 %v751_v29, %s1925_s13  ;;  %s1930_s13 = smov 57   ;;  %v921_v29 = vsel %vm5_vm0, %v1615_v25, %v1614_v24  ;;  %v1650_v20 = vld [vmem:[%s3300_s0 + $0xb4] sm:$0x2]   ;;  %v1657_v24 = vld [vmem:[%s3300_s0 + $0x34] sm:$0x1]   ;;  %s1977_s29 = smov 8  }
  0x89   :  { %v123_v34 = vpop.permute.xlu0 %122   ;;  %v1658_v25 = vld [vmem:[%s3300_s0 + $0xb3] sm:$0x2]  }
  0x8a   :  { %1416 = vst.msk [vmem:[%s3301_s1 + $0x2] ss:$3 sm:$0x3] %vm124_vm13, %v123_v34   ;;  %v155_v39 = vpop.permute.xlu1 %154   ;;  %vm306_vm13 = vcmask 859952  }
  0x8b   :  { %741 = vrot.lane.b32.xlu0 %v740_v30, %s1926_s14  ;;  %1424 = vst.msk [vmem:[%s3301_s1 + $0x2] ss:$3 sm:$0x3] %vm156_vm14, %v155_v39   ;;  %vm295_vm14 = vcmask 868152   ;;  %v911_v30 = vsel %vm5_vm0, %v1613_v28, %v1612_v27  ;;  %v1654_v27 = vld [vmem:[%s3300_s0 + $0x5f] sm:$0x1]  }
  0x8c   :  { %773 = vrot.lane.b32.xlu1 %v772_v37, %s1927_s27  ;;  %s1932_s27 = smov 55   ;;  %v943_v37 = vsel %vm5_vm0, %v1621_v33, %v1620_v32  ;;  %v1655_v28 = vld [vmem:[%s3300_s0 + $0xde] sm:$0x2]   ;;  %v1662_v32 = vld [vmem:[%s3300_s0 + $0x5e] sm:$0x1]   ;;  %s1979_s14 = smov 6  }
  0x8d   :  { %v145_v42 = vpop.permute.xlu0 %144   ;;  %v1663_v33 = vld [vmem:[%s3300_s0 + $0xdd] sm:$0x2]  }
  0x8e   :  { %147 = vst.msk [vmem:[%s3301_s1] ss:$3 sm:$0x3] %vm146_vm15, %v145_v42   ;;  %v177_v47 = vpop.permute.xlu1 %176   ;;  %vm327_vm15 = vcmask 843552  }
  0x8f   :  { %762 = vrot.lane.b32.xlu0 %v761_v38, %s1928_s28  ;;  %179 = vst.msk [vmem:[%s3301_s1] ss:$3 sm:$0x3] %vm178_vm1, %v177_v47   ;;  %vm316_vm1 = vcmask 851752   ;;  %v932_v38 = vsel %vm5_vm0, %v1618_v36, %v1617_v35  ;;  %v1660_v35 = vld [vmem:[%s3300_s0 + $0x9] sm:$0x1]  }
  0x90   :  { %794 = vrot.lane.b32.xlu1 %v793_v45, %s1929_s12  ;;  %s1934_s12 = smov 53   ;;  %v964_v45 = vsel %vm5_vm0, %v1626_v41, %v1625_v40  ;;  %v1661_v36 = vld [vmem:[%s3300_s0 + $0x88] sm:$0x2]   ;;  %v1668_v40 = vld [vmem:[%s3300_s0 + $0x8] sm:$0x1]   ;;  %s1981_s28 = smov 4  }
  0x91   :  { %v166_v50 = vpop.permute.xlu0 %165   ;;  %v1669_v41 = vld [vmem:[%s3300_s0 + $0x87] sm:$0x2]  }
  0x92   :  { %1427 = vst.msk [vmem:[%s3301_s1 + $0x1] ss:$3 sm:$0x3] %vm167_vm2, %v166_v50   ;;  %v198_v55 = vpop.permute.xlu1 %197   ;;  %vm348_vm2 = vcmask 827152  }
  0x93   :  { %784 = vrot.lane.b32.xlu0 %v783_v46, %s1930_s13  ;;  %1435 = vst.msk [vmem:[%s3301_s1 + $0x1] ss:$3 sm:$0x3] %vm199_vm3, %v198_v55   ;;  %vm338_vm3 = vcmask 835352   ;;  %v953_v46 = vsel %vm5_vm0, %v1623_v44, %v1622_v43  ;;  %v1665_v43 = vld [vmem:[%s3300_s0 + $0x33] sm:$0x1]  }
  0x94   :  { %816 = vrot.lane.b32.xlu1 %v815_v53, %s1931_s26  ;;  %s1936_s26 = smov 51   ;;  %v985_v53 = vsel %vm5_vm0, %v1631_v49, %v1630_v48  ;;  %v1666_v44 = vld [vmem:[%s3300_s0 + $0xb2] sm:$0x2]   ;;  %v1673_v48 = vld [vmem:[%s3300_s0 + $0x32] sm:$0x1]  }
  0x95   :  { %v187_v58 = vpop.permute.xlu0 %186   ;;  %v1674_v49 = vld [vmem:[%s3300_s0 + $0xb1] sm:$0x2]  }
  0x96   :  { %1432 = vst.msk [vmem:[%s3301_s1 + $0x2] ss:$3 sm:$0x3] %vm188_vm4, %v187_v58   ;;  %v219_v63 = vpop.permute.xlu1 %218   ;;  %vm370_vm4 = vcmask 810752  }
  0x97   :  { %805 = vrot.lane.b32.xlu0 %v804_v54, %s1932_s27  ;;  %1440 = vst.msk [vmem:[%s3301_s1 + $0x2] ss:$3 sm:$0x3] %vm220_vm5, %v219_v63   ;;  %vm359_vm5 = vcmask 818952   ;;  %v975_v54 = vsel %vm5_vm0, %v1629_v52, %v1628_v51  ;;  %v1670_v51 = vld [vmem:[%s3300_s0 + $0x5d] sm:$0x1]  }
  0x98   :  { %837 = vrot.lane.b32.xlu1 %v836_v61, %s1933_s11  ;;  %s1938_s11 = smov 49   ;;  %v1007_v61 = vsel %vm5_vm0, %v1637_v57, %v1636_v56  ;;  %v1671_v52 = vld [vmem:[%s3300_s0 + $0xdc] sm:$0x2]   ;;  %v1678_v56 = vld [vmem:[%s3300_s0 + $0x5c] sm:$0x1]  }
  0x99   :  { %v209_v2 = vpop.permute.xlu0 %208   ;;  %v1679_v57 = vld [vmem:[%s3300_s0 + $0xdb] sm:$0x2]  }
  0x9a   :  { %211 = vst.msk [vmem:[%s3301_s1] ss:$3 sm:$0x3] %vm210_vm6, %v209_v2   ;;  %v241_v7 = vpop.permute.xlu1 %240   ;;  %vm391_vm6 = vcmask 794352  }
  0x9b   :  { %826 = vrot.lane.b32.xlu0 %v825_v62, %s1934_s12  ;;  %243 = vst.msk [vmem:[%s3301_s1] ss:$3 sm:$0x3] %vm242_vm7, %v241_v7   ;;  %vm380_vm7 = vcmask 802552   ;;  %v996_v62 = vsel %vm5_vm0, %v1634_v60, %v1633_v59  ;;  %v1676_v59 = vld [vmem:[%s3300_s0 + $0x7] sm:$0x1]  }
  0x9c   :  { %858 = vrot.lane.b32.xlu1 %v857_v5, %s1935_s25  ;;  %s1940_s25 = smov 47   ;;  %v1028_v5 = vsel %vm5_vm0, %v1642_v1, %v1641_v0  ;;  %v1677_v60 = vld [vmem:[%s3300_s0 + $0x86] sm:$0x2]   ;;  %v1684_v0 = vld [vmem:[%s3300_s0 + $0x6] sm:$0x1]  }
  0x9d   :  { %v230_v10 = vpop.permute.xlu0 %229   ;;  %v1685_v1 = vld [vmem:[%s3300_s0 + $0x85] sm:$0x2]  }
  0x9e   :  { %1443 = vst.msk [vmem:[%s3301_s1 + $0x1] ss:$3 sm:$0x3] %vm231_vm8, %v230_v10   ;;  %v262_v15 = vpop.permute.xlu1 %261   ;;  %vm412_vm8 = vcmask 777952  }
  0x9f   :  { %848 = vrot.lane.b32.xlu0 %v847_v6, %s1936_s26  ;;  %1451 = vst.msk [vmem:[%s3301_s1 + $0x1] ss:$3 sm:$0x3] %vm263_vm9, %v262_v15   ;;  %vm402_vm9 = vcmask 786152   ;;  %v1017_v6 = vsel %vm5_vm0, %v1639_v4, %v1638_v3  ;;  %v1681_v3 = vld [vmem:[%s3300_s0 + $0x31] sm:$0x1]  }
  0xa0   :  { %880 = vrot.lane.b32.xlu1 %v879_v13, %s1937_s10  ;;  %s1942_s10 = smov 45   ;;  %v1049_v13 = vsel %vm5_vm0, %v1647_v9, %v1646_v8  ;;  %v1682_v4 = vld [vmem:[%s3300_s0 + $0xb0] sm:$0x2]   ;;  %v1689_v8 = vld [vmem:[%s3300_s0 + $0x30] sm:$0x1]  }
  0xa1   :  { %v251_v18 = vpop.permute.xlu0 %250   ;;  %v1690_v9 = vld [vmem:[%s3300_s0 + $0xaf] sm:$0x2]  }
  0xa2   :  { %1448 = vst.msk [vmem:[%s3301_s1 + $0x2] ss:$3 sm:$0x3] %vm252_vm10, %v251_v18   ;;  %v283_v23 = vpop.permute.xlu1 %282   ;;  %vm434_vm10 = vcmask 761552  }
  0xa3   :  { %869 = vrot.lane.b32.xlu0 %v868_v14, %s1938_s11  ;;  %1456 = vst.msk [vmem:[%s3301_s1 + $0x2] ss:$3 sm:$0x3] %vm284_vm11, %v283_v23   ;;  %vm423_vm11 = vcmask 769752   ;;  %v1039_v14 = vsel %vm5_vm0, %v1645_v12, %v1644_v11  ;;  %v1686_v11 = vld [vmem:[%s3300_s0 + $0x5b] sm:$0x1]  }
  0xa4   :  { %901 = vrot.lane.b32.xlu1 %v900_v21, %s1939_s24  ;;  %s1944_s24 = smov 43   ;;  %v1071_v21 = vsel %vm5_vm0, %v1653_v17, %v1652_v16  ;;  %v1687_v12 = vld [vmem:[%s3300_s0 + $0xda] sm:$0x2]   ;;  %v1694_v16 = vld [vmem:[%s3300_s0 + $0x5a] sm:$0x1]  }
  0xa5   :  { %v273_v26 = vpop.permute.xlu0 %272   ;;  %v1695_v17 = vld [vmem:[%s3300_s0 + $0xd9] sm:$0x2]  }
  0xa6   :  { %275 = vst.msk [vmem:[%s3301_s1] ss:$3 sm:$0x3] %vm274_vm12, %v273_v26   ;;  %v305_v31 = vpop.permute.xlu1 %304   ;;  %vm455_vm12 = vcmask 745152  }
  0xa7   :  { %890 = vrot.lane.b32.xlu0 %v889_v22, %s1940_s25  ;;  %307 = vst.msk [vmem:[%s3301_s1] ss:$3 sm:$0x3] %vm306_vm13, %v305_v31   ;;  %vm444_vm13 = vcmask 753352   ;;  %v1060_v22 = vsel %vm5_vm0, %v1650_v20, %v1649_v19  ;;  %v1692_v19 = vld [vmem:[%s3300_s0 + $0x5] sm:$0x1]  }
  0xa8   :  { %922 = vrot.lane.b32.xlu1 %v921_v29, %s1941_s9  ;;  %s1946_s9 = smov 41   ;;  %v1092_v29 = vsel %vm5_vm0, %v1658_v25, %v1657_v24  ;;  %v1693_v20 = vld [vmem:[%s3300_s0 + $0x84] sm:$0x2]   ;;  %v1700_v24 = vld [vmem:[%s3300_s0 + $0x4] sm:$0x1]  }
  0xa9   :  { %v294_v34 = vpop.permute.xlu0 %293   ;;  %v1701_v25 = vld [vmem:[%s3300_s0 + $0x83] sm:$0x2]  }
  0xaa   :  { %1459 = vst.msk [vmem:[%s3301_s1 + $0x1] ss:$3 sm:$0x3] %vm295_vm14, %v294_v34   ;;  %v326_v39 = vpop.permute.xlu1 %325   ;;  %vm476_vm14 = vcmask 728752  }
  0xab   :  { %912 = vrot.lane.b32.xlu0 %v911_v30, %s1942_s10  ;;  %1467 = vst.msk [vmem:[%s3301_s1 + $0x1] ss:$3 sm:$0x3] %vm327_vm15, %v326_v39   ;;  %vm466_vm15 = vcmask 736952   ;;  %v1081_v30 = vsel %vm5_vm0, %v1655_v28, %v1654_v27  ;;  %v1697_v27 = vld [vmem:[%s3300_s0 + $0x2f] sm:$0x1]  }
  0xac   :  { %944 = vrot.lane.b32.xlu1 %v943_v37, %s1943_s23  ;;  %s1948_s23 = smov 39   ;;  %v1113_v37 = vsel %vm5_vm0, %v1663_v33, %v1662_v32  ;;  %v1698_v28 = vld [vmem:[%s3300_s0 + $0xae] sm:$0x2]   ;;  %v1705_v32 = vld [vmem:[%s3300_s0 + $0x2e] sm:$0x1]  }
  0xad   :  { %v315_v42 = vpop.permute.xlu0 %314   ;;  %v1706_v33 = vld [vmem:[%s3300_s0 + $0xad] sm:$0x2]  }
  0xae   :  { %1464 = vst.msk [vmem:[%s3301_s1 + $0x2] ss:$3 sm:$0x3] %vm316_vm1, %v315_v42   ;;  %v347_v47 = vpop.permute.xlu1 %346   ;;  %vm498_vm1 = vcmask 712352  }
  0xaf   :  { %933 = vrot.lane.b32.xlu0 %v932_v38, %s1944_s24  ;;  %1472 = vst.msk [vmem:[%s3301_s1 + $0x2] ss:$3 sm:$0x3] %vm348_vm2, %v347_v47   ;;  %vm487_vm2 = vcmask 720552   ;;  %v1103_v38 = vsel %vm5_vm0, %v1661_v36, %v1660_v35  ;;  %v1702_v35 = vld [vmem:[%s3300_s0 + $0x59] sm:$0x1]  }
  0xb0   :  { %965 = vrot.lane.b32.xlu1 %v964_v45, %s1945_s8  ;;  %s1950_s8 = smov 37   ;;  %v1135_v45 = vsel %vm5_vm0, %v1669_v41, %v1668_v40  ;;  %v1703_v36 = vld [vmem:[%s3300_s0 + $0xd8] sm:$0x2]   ;;  %v1710_v40 = vld [vmem:[%s3300_s0 + $0x58] sm:$0x1]  }
  0xb1   :  { %v337_v50 = vpop.permute.xlu0 %336   ;;  %v1711_v41 = vld [vmem:[%s3300_s0 + $0xd7] sm:$0x2]  }
  0xb2   :  { %339 = vst.msk [vmem:[%s3301_s1] ss:$3 sm:$0x3] %vm338_vm3, %v337_v50   ;;  %v369_v55 = vpop.permute.xlu1 %368   ;;  %vm519_vm3 = vcmask 695952  }
  0xb3   :  { %954 = vrot.lane.b32.xlu0 %v953_v46, %s1946_s9  ;;  %371 = vst.msk [vmem:[%s3301_s1] ss:$3 sm:$0x3] %vm370_vm4, %v369_v55   ;;  %vm508_vm4 = vcmask 704152   ;;  %v1124_v46 = vsel %vm5_vm0, %v1666_v44, %v1665_v43  ;;  %v1708_v43 = vld [vmem:[%s3300_s0 + $0x3] sm:$0x1]  }
  0xb4   :  { %986 = vrot.lane.b32.xlu1 %v985_v53, %s1947_s22  ;;  %s1952_s22 = smov 35   ;;  %v1156_v53 = vsel %vm5_vm0, %v1674_v49, %v1673_v48  ;;  %v1709_v44 = vld [vmem:[%s3300_s0 + $0x82] sm:$0x2]   ;;  %v1716_v48 = vld [vmem:[%s3300_s0 + $0x2] sm:$0x1]   ;;  %s1984_s9 = smov 3  }
  0xb5   :  { %v358_v58 = vpop.permute.xlu0 %357   ;;  %v1717_v49 = vld [vmem:[%s3300_s0 + $0x81] sm:$0x2]  }
  0xb6   :  { %1475 = vst.msk [vmem:[%s3301_s1 + $0x1] ss:$3 sm:$0x3] %vm359_vm5, %v358_v58   ;;  %v390_v63 = vpop.permute.xlu1 %389   ;;  %vm540_vm5 = vcmask 679552  }
  0xb7   :  { %976 = vrot.lane.b32.xlu0 %v975_v54, %s1948_s23  ;;  %1483 = vst.msk [vmem:[%s3301_s1 + $0x1] ss:$3 sm:$0x3] %vm391_vm6, %v390_v63   ;;  %vm530_vm6 = vcmask 687752   ;;  %v1145_v54 = vsel %vm5_vm0, %v1671_v52, %v1670_v51  ;;  %v1713_v51 = vld [vmem:[%s3300_s0 + $0x2d] sm:$0x1]  }
  0xb8   :  { %1008 = vrot.lane.b32.xlu1 %v1007_v61, %s1949_s7  ;;  %s1954_s7 = smov 33   ;;  %v1177_v61 = vsel %vm5_vm0, %v1679_v57, %v1678_v56  ;;  %v1714_v52 = vld [vmem:[%s3300_s0 + $0xac] sm:$0x2]   ;;  %v1721_v56 = vld [vmem:[%s3300_s0 + $0x2c] sm:$0x1]  }
  0xb9   :  { %v379_v2 = vpop.permute.xlu0 %378   ;;  %v1722_v57 = vld [vmem:[%s3300_s0 + $0xab] sm:$0x2]  }
  0xba   :  { %1480 = vst.msk [vmem:[%s3301_s1 + $0x2] ss:$3 sm:$0x3] %vm380_vm7, %v379_v2   ;;  %v411_v7 = vpop.permute.xlu1 %410   ;;  %vm562_vm7 = vcmask 663152  }
  0xbb   :  { %997 = vrot.lane.b32.xlu0 %v996_v62, %s1950_s8  ;;  %1488 = vst.msk [vmem:[%s3301_s1 + $0x2] ss:$3 sm:$0x3] %vm412_vm8, %v411_v7   ;;  %vm551_vm8 = vcmask 671352   ;;  %v1167_v62 = vsel %vm5_vm0, %v1677_v60, %v1676_v59  ;;  %v1718_v59 = vld [vmem:[%s3300_s0 + $0x57] sm:$0x1]  }
  0xbc   :  { %1029 = vrot.lane.b32.xlu1 %v1028_v5, %s1951_s21  ;;  %s1956_s21 = smov 31   ;;  %v1199_v5 = vsel %vm5_vm0, %v1685_v1, %v1684_v0  ;;  %v1719_v60 = vld [vmem:[%s3300_s0 + $0xd6] sm:$0x2]   ;;  %v1726_v0 = vld [vmem:[%s3300_s0 + $0x56] sm:$0x1]   ;;  %s1983_s8 = smov 2  }
  0xbd   :  { %v401_v10 = vpop.permute.xlu0 %400   ;;  %v1727_v1 = vld [vmem:[%s3300_s0 + $0xd5] sm:$0x2]  }
  0xbe   :  { %403 = vst.msk [vmem:[%s3301_s1] ss:$3 sm:$0x3] %vm402_vm9, %v401_v10   ;;  %v433_v15 = vpop.permute.xlu1 %432   ;;  %vm583_vm9 = vcmask 646752  }
  0xbf   :  { %1018 = vrot.lane.b32.xlu0 %v1017_v6, %s1952_s22  ;;  %435 = vst.msk [vmem:[%s3301_s1] ss:$3 sm:$0x3] %vm434_vm10, %v433_v15   ;;  %vm572_vm10 = vcmask 654952   ;;  %v1188_v6 = vsel %vm5_vm0, %v1682_v4, %v1681_v3  ;;  %v1724_v3 = vld [vmem:[%s3300_s0 + $0x1] sm:$0x1]  }
  0xc0   :  { %1050 = vrot.lane.b32.xlu1 %v1049_v13, %s1953_s6  ;;  %s1958_s6 = smov 29   ;;  %v1220_v13 = vsel %vm5_vm0, %v1690_v9, %v1689_v8  ;;  %v1725_v4 = vld [vmem:[%s3300_s0 + $0x80] sm:$0x2]   ;;  %v1729_v9 = vld [vmem:[%s3300_s0 + $0x2b] sm:$0x1]  }
  0xc1   :  { %v422_v18 = vpop.permute.xlu0 %421  }
  0xc2   :  { %1491 = vst.msk [vmem:[%s3301_s1 + $0x1] ss:$3 sm:$0x3] %vm423_vm11, %v422_v18   ;;  %v454_v23 = vpop.permute.xlu1 %453   ;;  %vm604_vm11 = vcmask 630352  }
  0xc3   :  { %1040 = vrot.lane.b32.xlu0 %v1039_v14, %s1954_s7  ;;  %1499 = vst.msk [vmem:[%s3301_s1 + $0x1] ss:$3 sm:$0x3] %vm455_vm12, %v454_v23   ;;  %vm594_vm12 = vcmask 638552   ;;  %v1209_v14 = vsel %vm5_vm0, %v1687_v12, %v1686_v11 }
  0xc4   :  { %1072 = vrot.lane.b32.xlu1 %v1071_v21, %s1955_s20  ;;  %s1960_s20 = smov 27   ;;  %v1241_v21 = vsel %vm5_vm0, %v1695_v17, %v1694_v16 }
  0xc5   :  { %v443_v26 = vpop.permute.xlu0 %442  }
  0xc6   :  { %1496 = vst.msk [vmem:[%s3301_s1 + $0x2] ss:$3 sm:$0x3] %vm444_vm13, %v443_v26   ;;  %v475_v31 = vpop.permute.xlu1 %474   ;;  %vm626_vm13 = vcmask 613952  }
  0xc7   :  { %1061 = vrot.lane.b32.xlu0 %v1060_v22, %s1956_s21  ;;  %1504 = vst.msk [vmem:[%s3301_s1 + $0x2] ss:$3 sm:$0x3] %vm476_vm14, %v475_v31   ;;  %vm615_vm14 = vcmask 622152   ;;  %v1231_v22 = vsel %vm5_vm0, %v1693_v20, %v1692_v19 }
  0xc8   :  { %1093 = vrot.lane.b32.xlu1 %v1092_v29, %s1957_s5  ;;  %s1962_s5 = smov 25   ;;  %v1263_v29 = vsel %vm5_vm0, %v1701_v25, %v1700_v24 }
  0xc9   :  { %v465_v34 = vpop.permute.xlu0 %464  }
  0xca   :  { %467 = vst.msk [vmem:[%s3301_s1] ss:$3 sm:$0x3] %vm466_vm15, %v465_v34   ;;  %v497_v39 = vpop.permute.xlu1 %496   ;;  %vm647_vm15 = vcmask 597552  }
  0xcb   :  { %1082 = vrot.lane.b32.xlu0 %v1081_v30, %s1958_s6  ;;  %499 = vst.msk [vmem:[%s3301_s1] ss:$3 sm:$0x3] %vm498_vm1, %v497_v39   ;;  %vm636_vm1 = vcmask 605752   ;;  %v1252_v30 = vsel %vm5_vm0, %v1698_v28, %v1697_v27 }
  0xcc   :  { %1114 = vrot.lane.b32.xlu1 %v1113_v37, %s1959_s19  ;;  %s1964_s19 = smov 23   ;;  %v1284_v37 = vsel %vm5_vm0, %v1706_v33, %v1705_v32 }
  0xcd   :  { %v486_v42 = vpop.permute.xlu0 %485  }
  0xce   :  { %1507 = vst.msk [vmem:[%s3301_s1 + $0x1] ss:$3 sm:$0x3] %vm487_vm2, %v486_v42   ;;  %v518_v47 = vpop.permute.xlu1 %517   ;;  %vm668_vm2 = vcmask 581152  }
  0xcf   :  { %1104 = vrot.lane.b32.xlu0 %v1103_v38, %s1960_s20  ;;  %1515 = vst.msk [vmem:[%s3301_s1 + $0x1] ss:$3 sm:$0x3] %vm519_vm3, %v518_v47   ;;  %vm658_vm3 = vcmask 589352   ;;  %v1273_v38 = vsel %vm5_vm0, %v1703_v36, %v1702_v35 }
  0xd0   :  { %1136 = vrot.lane.b32.xlu1 %v1135_v45, %s1961_s4  ;;  %s1966_s4 = smov 21   ;;  %v1305_v45 = vsel %vm5_vm0, %v1711_v41, %v1710_v40 }
  0xd1   :  { %v507_v50 = vpop.permute.xlu0 %506  }
  0xd2   :  { %1512 = vst.msk [vmem:[%s3301_s1 + $0x2] ss:$3 sm:$0x3] %vm508_vm4, %v507_v50   ;;  %v539_v55 = vpop.permute.xlu1 %538   ;;  %vm690_vm4 = vcmask 564752  }
  0xd3   :  { %1125 = vrot.lane.b32.xlu0 %v1124_v46, %s1962_s5  ;;  %1520 = vst.msk [vmem:[%s3301_s1 + $0x2] ss:$3 sm:$0x3] %vm540_vm5, %v539_v55   ;;  %vm679_vm5 = vcmask 572952   ;;  %v1295_v46 = vsel %vm5_vm0, %v1709_v44, %v1708_v43 }
  0xd4   :  { %1157 = vrot.lane.b32.xlu1 %v1156_v53, %s1963_s18  ;;  %s1968_s18 = smov 19   ;;  %v1327_v53 = vsel %vm5_vm0, %v1717_v49, %v1716_v48 }
  0xd5   :  { %v529_v58 = vpop.permute.xlu0 %528  }
  0xd6   :  { %531 = vst.msk [vmem:[%s3301_s1] ss:$3 sm:$0x3] %vm530_vm6, %v529_v58   ;;  %v561_v63 = vpop.permute.xlu1 %560   ;;  %vm711_vm6 = vcmask 548352  }
  0xd7   :  { %1146 = vrot.lane.b32.xlu0 %v1145_v54, %s1964_s19  ;;  %563 = vst.msk [vmem:[%s3301_s1] ss:$3 sm:$0x3] %vm562_vm7, %v561_v63   ;;  %vm700_vm7 = vcmask 556552   ;;  %v1316_v54 = vsel %vm5_vm0, %v1714_v52, %v1713_v51 }
  0xd8   :  { %1178 = vrot.lane.b32.xlu1 %v1177_v61, %s1965_s3  ;;  %s1970_s3 = smov 17   ;;  %v1348_v61 = vsel %vm5_vm0, %v1722_v57, %v1721_v56 }
  0xd9   :  { %v550_v2 = vpop.permute.xlu0 %549  }
  0xda   :  { %1523 = vst.msk [vmem:[%s3301_s1 + $0x1] ss:$3 sm:$0x3] %vm551_vm8, %v550_v2   ;;  %v582_v7 = vpop.permute.xlu1 %581   ;;  %vm732_vm8 = vcmask 531952  }
  0xdb   :  { %1168 = vrot.lane.b32.xlu0 %v1167_v62, %s1966_s4  ;;  %1531 = vst.msk [vmem:[%s3301_s1 + $0x1] ss:$3 sm:$0x3] %vm583_vm9, %v582_v7   ;;  %vm722_vm9 = vcmask 540152   ;;  %v1337_v62 = vsel %vm5_vm0, %v1719_v60, %v1718_v59 }
  0xdc   :  { %1200 = vrot.lane.b32.xlu1 %v1199_v5, %s1967_s17  ;;  %s1972_s17 = smov 15   ;;  %v1369_v5 = vsel %vm5_vm0, %v1727_v1, %v1726_v0 }
  0xdd   :  { %v571_v10 = vpop.permute.xlu0 %570  }
  0xde   :  { %1528 = vst.msk [vmem:[%s3301_s1 + $0x2] ss:$3 sm:$0x3] %vm572_vm10, %v571_v10   ;;  %v603_v15 = vpop.permute.xlu1 %602   ;;  %vm754_vm10 = vcmask 515552   ;;  %v1730_v10 = vld [vmem:[%s3300_s0 + $0xaa] sm:$0x2]  }
  0xdf   :  { %1189 = vrot.lane.b32.xlu0 %v1188_v6, %s1968_s18  ;;  %1536 = vst.msk [vmem:[%s3301_s1 + $0x2] ss:$3 sm:$0x3] %vm604_vm11, %v603_v15   ;;  %vm743_vm11 = vcmask 523752   ;;  %v1359_v6 = vsel %vm5_vm0, %v1725_v4, %v1724_v3  ;;  %v1380_v11 = vsel %vm5_vm0, %v1730_v10, %v1729_v9  ;;  %vm796_vm0 = vcmask 482752  }
  0xe0   :  { %1221 = vrot.lane.b32.xlu1 %v1220_v13, %s1969_s2  ;;  %s1974_s2 = smov 13  }
  0xe1   :  { %v593_v18 = vpop.permute.xlu0 %592  }
  0xe2   :  { %595 = vst.msk [vmem:[%s3301_s1] ss:$3 sm:$0x3] %vm594_vm12, %v593_v18   ;;  %v625_v23 = vpop.permute.xlu1 %624   ;;  %vm775_vm12 = vcmask 499152  }
  0xe3   :  { %1210 = vrot.lane.b32.xlu0 %v1209_v14, %s1970_s3  ;;  %627 = vst.msk [vmem:[%s3301_s1] ss:$3 sm:$0x3] %vm626_vm13, %v625_v23   ;;  %vm764_vm13 = vcmask 507352  }
  0xe4   :  { %1242 = vrot.lane.b32.xlu1 %v1241_v21, %s1971_s16  ;;  %s1976_s16 = smov 11  }
  0xe5   :  { %v614_v26 = vpop.permute.xlu0 %613  }
  0xe6   :  { %1539 = vst.msk [vmem:[%s3301_s1 + $0x1] ss:$3 sm:$0x3] %vm615_vm14, %v614_v26   ;;  %v646_v31 = vpop.permute.xlu1 %645   ;;  %vm786_vm14 = vcmask 490952  }
  0xe7   :  { %1232 = vrot.lane.b32.xlu0 %v1231_v22, %s1972_s17  ;;  %1547 = vst.msk [vmem:[%s3301_s1 + $0x1] ss:$3 sm:$0x3] %vm647_vm15, %v646_v31   ;;  %vm818_vm15 = vcmask 466352  }
  0xe8   :  { %1264 = vrot.lane.b32.xlu1 %v1263_v29, %s1973_s30  ;;  %s1978_s30 = smov 9  }
  0xe9   :  { %v635_v34 = vpop.permute.xlu0 %634  }
  0xea   :  { %1544 = vst.msk [vmem:[%s3301_s1 + $0x2] ss:$3 sm:$0x3] %vm636_vm1, %v635_v34   ;;  %v667_v39 = vpop.permute.xlu1 %666   ;;  %vm807_vm1 = vcmask 474552  }
  0xeb   :  { %1253 = vrot.lane.b32.xlu0 %v1252_v30, %s1974_s2  ;;  %1552 = vst.msk [vmem:[%s3301_s1 + $0x2] ss:$3 sm:$0x3] %vm668_vm2, %v667_v39   ;;  %vm839_vm2 = vcmask 449952  }
  0xec   :  { %1285 = vrot.lane.b32.xlu1 %v1284_v37, %s1975_s15  ;;  %s1980_s15 = smov 7  }
  0xed   :  { %v657_v42 = vpop.permute.xlu0 %656  }
  0xee   :  { %659 = vst.msk [vmem:[%s3301_s1] ss:$3 sm:$0x3] %vm658_vm3, %v657_v42   ;;  %v689_v47 = vpop.permute.xlu1 %688   ;;  %vm828_vm3 = vcmask 458152  }
  0xef   :  { %1274 = vrot.lane.b32.xlu0 %v1273_v38, %s1976_s16  ;;  %691 = vst.msk [vmem:[%s3301_s1] ss:$3 sm:$0x3] %vm690_vm4, %v689_v47   ;;  %vm860_vm4 = vcmask 433552  }
  0xf0   :  { %1306 = vrot.lane.b32.xlu1 %v1305_v45, %s1977_s29  ;;  %s1982_s29 = smov 5  }
  0xf1   :  { %v678_v50 = vpop.permute.xlu0 %677  }
  0xf2   :  { %1555 = vst.msk [vmem:[%s3301_s1 + $0x1] ss:$3 sm:$0x3] %vm679_vm5, %v678_v50   ;;  %v710_v55 = vpop.permute.xlu1 %709   ;;  %vm850_vm5 = vcmask 441752  }
  0xf3   :  { %1296 = vrot.lane.b32.xlu0 %v1295_v46, %s1978_s30  ;;  %1563 = vst.msk [vmem:[%s3301_s1 + $0x1] ss:$3 sm:$0x3] %vm711_vm6, %v710_v55   ;;  %vm882_vm6 = vcmask 417152  }
  0xf4   :  { %1328 = vrot.lane.b32.xlu1 %v1327_v53, %s1979_s14  ;;  %s1985_s14 = smov 1  }
  0xf5   :  { %v699_v58 = vpop.permute.xlu0 %698  }
  0xf6   :  { %1560 = vst.msk [vmem:[%s3301_s1 + $0x2] ss:$3 sm:$0x3] %vm700_vm7, %v699_v58   ;;  %v731_v63 = vpop.permute.xlu1 %730   ;;  %vm871_vm7 = vcmask 425352  }
  0xf7   :  { %1317 = vrot.lane.b32.xlu0 %v1316_v54, %s1980_s15  ;;  %1568 = vst.msk [vmem:[%s3301_s1 + $0x2] ss:$3 sm:$0x3] %vm732_vm8, %v731_v63   ;;  %vm903_vm8 = vcmask 400752  }
  0xf8   :  { %1349 = vrot.lane.b32.xlu1 %v1348_v61, %s1981_s28 }
  0xf9   :  { %v721_v2 = vpop.permute.xlu0 %720  }
  0xfa   :  { %723 = vst.msk [vmem:[%s3301_s1] ss:$3 sm:$0x3] %vm722_vm9, %v721_v2   ;;  %v753_v7 = vpop.permute.xlu1 %752   ;;  %vm892_vm9 = vcmask 408952  }
  0xfb   :  { %1338 = vrot.lane.b32.xlu0 %v1337_v62, %s1982_s29  ;;  %755 = vst.msk [vmem:[%s3301_s1] ss:$3 sm:$0x3] %vm754_vm10, %v753_v7   ;;  %vm924_vm10 = vcmask 384352  }
  0xfc   :  { %1370 = vrot.lane.b32.xlu1 %v1369_v5, %s1983_s8 }
  0xfd   :  { %v742_v8 = vpop.permute.xlu0 %741  }
  0xfe   :  { %1571 = vst.msk [vmem:[%s3301_s1 + $0x1] ss:$3 sm:$0x3] %vm743_vm11, %v742_v8   ;;  %v774_v12 = vpop.permute.xlu1 %773   ;;  %vm914_vm11 = vcmask 392552  }
  0xff   :  { %1360 = vrot.lane.b32.xlu0 %v1359_v6, %s1984_s9  ;;  %1579 = vst.msk [vmem:[%s3301_s1 + $0x1] ss:$3 sm:$0x3] %vm775_vm12, %v774_v12   ;;  %vm946_vm12 = vcmask 367952  }
 0x101   :  { %v763_v13 = vpop.permute.xlu0 %762  }
 0x102   :  { %1576 = vst.msk [vmem:[%s3301_s1 + $0x2] ss:$3 sm:$0x3] %vm764_vm13, %v763_v13   ;;  %v795_v14 = vpop.permute.xlu1 %794   ;;  %vm935_vm13 = vcmask 376152  }
 0x103   :  { %1381 = vrot.lane.b32.xlu0 %v1380_v11, %s1985_s14  ;;  %1584 = vst.msk [vmem:[%s3301_s1 + $0x2] ss:$3 sm:$0x3] %vm796_vm0, %v795_v14   ;;  %vm967_vm0 = vcmask 351552  }
 0x105   :  { %v785_v15 = vpop.permute.xlu0 %784  }
 0x106   :  { %787 = vst.msk [vmem:[%s3301_s1] ss:$3 sm:$0x3] %vm786_vm14, %v785_v15   ;;  %v817_v16 = vpop.permute.xlu1 %816   ;;  %vm956_vm14 = vcmask 359752  }
 0x107   :  { %819 = vst.msk [vmem:[%s3301_s1] ss:$3 sm:$0x3] %vm818_vm15, %v817_v16   ;;  %vm988_vm15 = vcmask 335152  }
 0x109   :  { %v806_v17 = vpop.permute.xlu0 %805  }
 0x10a   :  { %1587 = vst.msk [vmem:[%s3301_s1 + $0x1] ss:$3 sm:$0x3] %vm807_vm1, %v806_v17   ;;  %v838_v18 = vpop.permute.xlu1 %837   ;;  %vm978_vm1 = vcmask 343352  }
 0x10b   :  { %1595 = vst.msk [vmem:[%s3301_s1 + $0x1] ss:$3 sm:$0x3] %vm839_vm2, %v838_v18   ;;  %vm1010_vm2 = vcmask 318752  }
 0x10d   :  { %v827_v19 = vpop.permute.xlu0 %826  }
 0x10e   :  { %1592 = vst.msk [vmem:[%s3301_s1 + $0x2] ss:$3 sm:$0x3] %vm828_vm3, %v827_v19   ;;  %v859_v20 = vpop.permute.xlu1 %858   ;;  %vm999_vm3 = vcmask 326952  }
 0x10f   :  { %1600 = vst.msk [vmem:[%s3301_s1 + $0x2] ss:$3 sm:$0x3] %vm860_vm4, %v859_v20   ;;  %vm1031_vm4 = vcmask 302352  }
 0x111   :  { %v849_v21 = vpop.permute.xlu0 %848  }
 0x112   :  { %851 = vst.msk [vmem:[%s3301_s1] ss:$3 sm:$0x3] %vm850_vm5, %v849_v21   ;;  %v881_v22 = vpop.permute.xlu1 %880   ;;  %vm1020_vm5 = vcmask 310552  }
 0x113   :  { %883 = vst.msk [vmem:[%s3301_s1] ss:$3 sm:$0x3] %vm882_vm6, %v881_v22   ;;  %vm1052_vm6 = vcmask 285952  }
 0x115   :  { %v870_v23 = vpop.permute.xlu0 %869  }
 0x116   :  { %1603 = vst.msk [vmem:[%s3301_s1 + $0x1] ss:$3 sm:$0x3] %vm871_vm7, %v870_v23   ;;  %v902_v24 = vpop.permute.xlu1 %901   ;;  %vm1042_vm7 = vcmask 294152  }
 0x117   :  { %1611 = vst.msk [vmem:[%s3301_s1 + $0x1] ss:$3 sm:$0x3] %vm903_vm8, %v902_v24   ;;  %vm1074_vm8 = vcmask 269552  }
 0x119   :  { %v891_v25 = vpop.permute.xlu0 %890  }
 0x11a   :  { %1608 = vst.msk [vmem:[%s3301_s1 + $0x2] ss:$3 sm:$0x3] %vm892_vm9, %v891_v25   ;;  %v923_v26 = vpop.permute.xlu1 %922   ;;  %vm1063_vm9 = vcmask 277752  }
 0x11b   :  { %1616 = vst.msk [vmem:[%s3301_s1 + $0x2] ss:$3 sm:$0x3] %vm924_vm10, %v923_v26   ;;  %vm1095_vm10 = vcmask 253152  }
 0x11d   :  { %v913_v27 = vpop.permute.xlu0 %912  }
 0x11e   :  { %915 = vst.msk [vmem:[%s3301_s1] ss:$3 sm:$0x3] %vm914_vm11, %v913_v27   ;;  %v945_v28 = vpop.permute.xlu1 %944   ;;  %vm1084_vm11 = vcmask 261352  }
 0x11f   :  { %947 = vst.msk [vmem:[%s3301_s1] ss:$3 sm:$0x3] %vm946_vm12, %v945_v28   ;;  %vm1116_vm12 = vcmask 236752  }
 0x121   :  { %v934_v29 = vpop.permute.xlu0 %933  }
 0x122   :  { %1619 = vst.msk [vmem:[%s3301_s1 + $0x1] ss:$3 sm:$0x3] %vm935_vm13, %v934_v29   ;;  %v966_v30 = vpop.permute.xlu1 %965   ;;  %vm1106_vm13 = vcmask 244952  }
 0x123   :  { %1627 = vst.msk [vmem:[%s3301_s1 + $0x1] ss:$3 sm:$0x3] %vm967_vm0, %v966_v30   ;;  %vm1138_vm0 = vcmask 220352  }
 0x125   :  { %v955_v31 = vpop.permute.xlu0 %954  }
 0x126   :  { %1624 = vst.msk [vmem:[%s3301_s1 + $0x2] ss:$3 sm:$0x3] %vm956_vm14, %v955_v31   ;;  %v987_v32 = vpop.permute.xlu1 %986   ;;  %vm1127_vm14 = vcmask 228552  }
 0x127   :  { %1632 = vst.msk [vmem:[%s3301_s1 + $0x2] ss:$3 sm:$0x3] %vm988_vm15, %v987_v32   ;;  %vm1159_vm15 = vcmask 203952  }
 0x129   :  { %v977_v33 = vpop.permute.xlu0 %976  }
 0x12a   :  { %979 = vst.msk [vmem:[%s3301_s1] ss:$3 sm:$0x3] %vm978_vm1, %v977_v33   ;;  %v1009_v34 = vpop.permute.xlu1 %1008   ;;  %vm1148_vm1 = vcmask 212152  }
 0x12b   :  { %1011 = vst.msk [vmem:[%s3301_s1] ss:$3 sm:$0x3] %vm1010_vm2, %v1009_v34   ;;  %vm1180_vm2 = vcmask 187552  }
 0x12d   :  { %v998_v35 = vpop.permute.xlu0 %997  }
 0x12e   :  { %1635 = vst.msk [vmem:[%s3301_s1 + $0x1] ss:$3 sm:$0x3] %vm999_vm3, %v998_v35   ;;  %v1030_v36 = vpop.permute.xlu1 %1029   ;;  %vm1170_vm3 = vcmask 195752  }
 0x12f   :  { %1643 = vst.msk [vmem:[%s3301_s1 + $0x1] ss:$3 sm:$0x3] %vm1031_vm4, %v1030_v36   ;;  %vm1202_vm4 = vcmask 171152  }
 0x131   :  { %v1019_v37 = vpop.permute.xlu0 %1018  }
 0x132   :  { %1640 = vst.msk [vmem:[%s3301_s1 + $0x2] ss:$3 sm:$0x3] %vm1020_vm5, %v1019_v37   ;;  %v1051_v38 = vpop.permute.xlu1 %1050   ;;  %vm1191_vm5 = vcmask 179352  }
 0x133   :  { %1648 = vst.msk [vmem:[%s3301_s1 + $0x2] ss:$3 sm:$0x3] %vm1052_vm6, %v1051_v38   ;;  %vm1223_vm6 = vcmask 154752  }
 0x135   :  { %v1041_v39 = vpop.permute.xlu0 %1040  }
 0x136   :  { %1043 = vst.msk [vmem:[%s3301_s1] ss:$3 sm:$0x3] %vm1042_vm7, %v1041_v39   ;;  %v1073_v40 = vpop.permute.xlu1 %1072   ;;  %vm1212_vm7 = vcmask 162952  }
 0x137   :  { %1075 = vst.msk [vmem:[%s3301_s1] ss:$3 sm:$0x3] %vm1074_vm8, %v1073_v40   ;;  %vm1244_vm8 = vcmask 138352  }
 0x139   :  { %v1062_v41 = vpop.permute.xlu0 %1061  }
 0x13a   :  { %1651 = vst.msk [vmem:[%s3301_s1 + $0x1] ss:$3 sm:$0x3] %vm1063_vm9, %v1062_v41   ;;  %v1094_v42 = vpop.permute.xlu1 %1093   ;;  %vm1234_vm9 = vcmask 146552  }
 0x13b   :  { %1659 = vst.msk [vmem:[%s3301_s1 + $0x1] ss:$3 sm:$0x3] %vm1095_vm10, %v1094_v42   ;;  %vm1266_vm10 = vcmask 121952  }
 0x13d   :  { %v1083_v43 = vpop.permute.xlu0 %1082  }
 0x13e   :  { %1656 = vst.msk [vmem:[%s3301_s1 + $0x2] ss:$3 sm:$0x3] %vm1084_vm11, %v1083_v43   ;;  %v1115_v44 = vpop.permute.xlu1 %1114   ;;  %vm1255_vm11 = vcmask 130152  }
 0x13f   :  { %1664 = vst.msk [vmem:[%s3301_s1 + $0x2] ss:$3 sm:$0x3] %vm1116_vm12, %v1115_v44   ;;  %vm1287_vm12 = vcmask 105552  }
 0x141   :  { %v1105_v45 = vpop.permute.xlu0 %1104  }
 0x142   :  { %1107 = vst.msk [vmem:[%s3301_s1] ss:$3 sm:$0x3] %vm1106_vm13, %v1105_v45   ;;  %v1137_v46 = vpop.permute.xlu1 %1136   ;;  %vm1276_vm13 = vcmask 113752  }
 0x143   :  { %1139 = vst.msk [vmem:[%s3301_s1] ss:$3 sm:$0x3] %vm1138_vm0, %v1137_v46   ;;  %vm1308_vm0 = vcmask 89152  }
 0x145   :  { %v1126_v47 = vpop.permute.xlu0 %1125  }
 0x146   :  { %1667 = vst.msk [vmem:[%s3301_s1 + $0x1] ss:$3 sm:$0x3] %vm1127_vm14, %v1126_v47   ;;  %v1158_v48 = vpop.permute.xlu1 %1157   ;;  %vm1298_vm14 = vcmask 97352  }
 0x147   :  { %1675 = vst.msk [vmem:[%s3301_s1 + $0x1] ss:$3 sm:$0x3] %vm1159_vm15, %v1158_v48   ;;  %vm1330_vm15 = vcmask 72752  }
 0x149   :  { %v1147_v49 = vpop.permute.xlu0 %1146  }
 0x14a   :  { %1672 = vst.msk [vmem:[%s3301_s1 + $0x2] ss:$3 sm:$0x3] %vm1148_vm1, %v1147_v49   ;;  %v1179_v50 = vpop.permute.xlu1 %1178   ;;  %vm1319_vm1 = vcmask 80952  }
 0x14b   :  { %1680 = vst.msk [vmem:[%s3301_s1 + $0x2] ss:$3 sm:$0x3] %vm1180_vm2, %v1179_v50   ;;  %vm1351_vm2 = vcmask 56352  }
 0x14d   :  { %v1169_v51 = vpop.permute.xlu0 %1168  }
 0x14e   :  { %1171 = vst.msk [vmem:[%s3301_s1] ss:$3 sm:$0x3] %vm1170_vm3, %v1169_v51   ;;  %v1201_v52 = vpop.permute.xlu1 %1200   ;;  %vm1340_vm3 = vcmask 64552  }
 0x14f   :  { %1203 = vst.msk [vmem:[%s3301_s1] ss:$3 sm:$0x3] %vm1202_vm4, %v1201_v52   ;;  %vm1372_vm4 = vcmask 39952  }
 0x151   :  { %v1190_v53 = vpop.permute.xlu0 %1189  }
 0x152   :  { %1683 = vst.msk [vmem:[%s3301_s1 + $0x1] ss:$3 sm:$0x3] %vm1191_vm5, %v1190_v53   ;;  %v1222_v54 = vpop.permute.xlu1 %1221   ;;  %vm1362_vm5 = vcmask 48152  }
 0x153   :  { %1691 = vst.msk [vmem:[%s3301_s1 + $0x1] ss:$3 sm:$0x3] %vm1223_vm6, %v1222_v54   ;;  %vm1383_vm6 = vcmask 31752  }
 0x155   :  { %v1211_v55 = vpop.permute.xlu0 %1210  }
 0x156   :  { %1688 = vst.msk [vmem:[%s3301_s1 + $0x2] ss:$3 sm:$0x3] %vm1212_vm7, %v1211_v55   ;;  %v1243_v56 = vpop.permute.xlu1 %1242  }
 0x157   :  { %1696 = vst.msk [vmem:[%s3301_s1 + $0x2] ss:$3 sm:$0x3] %vm1244_vm8, %v1243_v56  }
 0x159   :  { %v1233_v57 = vpop.permute.xlu0 %1232  }
 0x15a   :  { %1235 = vst.msk [vmem:[%s3301_s1] ss:$3 sm:$0x3] %vm1234_vm9, %v1233_v57   ;;  %v1265_v58 = vpop.permute.xlu1 %1264  }
 0x15b   :  { %1267 = vst.msk [vmem:[%s3301_s1] ss:$3 sm:$0x3] %vm1266_vm10, %v1265_v58  }
 0x15d   :  { %v1254_v59 = vpop.permute.xlu0 %1253  }
 0x15e   :  { %1699 = vst.msk [vmem:[%s3301_s1 + $0x1] ss:$3 sm:$0x3] %vm1255_vm11, %v1254_v59   ;;  %v1286_v60 = vpop.permute.xlu1 %1285  }
 0x15f   :  { %1707 = vst.msk [vmem:[%s3301_s1 + $0x1] ss:$3 sm:$0x3] %vm1287_vm12, %v1286_v60  }
 0x161   :  { %v1275_v61 = vpop.permute.xlu0 %1274  }
 0x162   :  { %1704 = vst.msk [vmem:[%s3301_s1 + $0x2] ss:$3 sm:$0x3] %vm1276_vm13, %v1275_v61   ;;  %v1307_v62 = vpop.permute.xlu1 %1306  }
 0x163   :  { %1712 = vst.msk [vmem:[%s3301_s1 + $0x2] ss:$3 sm:$0x3] %vm1308_vm0, %v1307_v62  }
 0x165   :  { %v1297_v63 = vpop.permute.xlu0 %1296  }
 0x166   :  { %1299 = vst.msk [vmem:[%s3301_s1] ss:$3 sm:$0x3] %vm1298_vm14, %v1297_v63   ;;  %v1329_v0 = vpop.permute.xlu1 %1328  }
 0x167   :  { %1331 = vst.msk [vmem:[%s3301_s1] ss:$3 sm:$0x3] %vm1330_vm15, %v1329_v0  }
 0x169   :  { %v1318_v1 = vpop.permute.xlu0 %1317  }
 0x16a   :  { %1715 = vst.msk [vmem:[%s3301_s1 + $0x1] ss:$3 sm:$0x3] %vm1319_vm1, %v1318_v1   ;;  %v1350_v2 = vpop.permute.xlu1 %1349  }
 0x16b   :  { %1723 = vst.msk [vmem:[%s3301_s1 + $0x1] ss:$3 sm:$0x3] %vm1351_vm2, %v1350_v2  }
 0x16d   :  { %v1339_v3 = vpop.permute.xlu0 %1338  }
 0x16e   :  { %1720 = vst.msk [vmem:[%s3301_s1 + $0x2] ss:$3 sm:$0x3] %vm1340_vm3, %v1339_v3   ;;  %v1371_v4 = vpop.permute.xlu1 %1370  }
 0x16f   :  { %1728 = vst.msk [vmem:[%s3301_s1 + $0x2] ss:$3 sm:$0x3] %vm1372_vm4, %v1371_v4  }
 0x171   :  { %v1361_v5 = vpop.permute.xlu0 %1360  }
 0x172   :  { %1363 = vst.msk [vmem:[%s3301_s1] ss:$3 sm:$0x3] %vm1362_vm5, %v1361_v5  }
 0x175   :  { %v1382_v6 = vpop.permute.xlu0 %1381  }
 0x176   :  { %1731 = vst.msk [vmem:[%s3301_s1 + $0x1] ss:$3 sm:$0x3] %vm1383_vm6, %v1382_v6  }

// kernel: mul.9
= control target key start
LH: loop header
LB: loop body
LE: loop exit
PB: predicated region body
PF: predicated region fallthrough
CT: control target
= control target key end

     0   :  { %s34_s0 = inlined_call_operand.vmem [shape: f32[768], index: 0, kind: input, shape index: {}]   ;;  %s35_s1 = inlined_call_operand.vmem [shape: f32[768], index: 1, kind: input, shape index: {}]   ;;  %s36_s2 = inlined_call_operand.vmem [shape: f32[768], index: 2, kind: output, shape index: {}]  }
   0x1   :  { %v3_v0 = vld [vmem:[%s34_s0] sm:$0x3f] }
   0x2   :  { %v4_v1 = vld [vmem:[%s35_s1] sm:$0x3f] }
   0x3   :  { %v7_v2 = vmul.f32 %v4_v1, %v3_v0 }
   0x5   :  { %9 = vst [vmem:[%s36_s2] sm:$0xff] %v7_v2 }

// kernel: sub.1
= control target key start
LH: loop header
LB: loop body
LE: loop exit
PB: predicated region body
PF: predicated region fallthrough
CT: control target
= control target key end

     0   :  { %s34_s0 = inlined_call_operand.vmem [shape: f32[256], index: 0, kind: input, shape index: {}]   ;;  %s35_s1 = inlined_call_operand.vmem [shape: f32[256], index: 1, kind: input, shape index: {}]   ;;  %s36_s2 = inlined_call_operand.vmem [shape: f32[256], index: 2, kind: output, shape index: {}]  }
   0x1   :  { %v3_v0 = vld [vmem:[%s34_s0] sm:$0x3] }
   0x2   :  { %v4_v1 = vld [vmem:[%s35_s1] sm:$0x3] }
   0x3   :  { %v7_v2 = vsub.f32 %v3_v0, %v4_v1 }
   0x5   :  { %9 = vst [vmem:[%s36_s2] sm:$0x3] %v7_v2 }

// kernel: sam_image_embedding.13
= control target key start
LH: loop header
LB: loop body
LE: loop exit
PB: predicated region body
PF: predicated region fallthrough
CT: control target
= control target key end

     0   :  { %s1607_s15 = smov 0   ;;  %s1609_s16 = smov 0   ;;  %s1848_s0 = inlined_call_operand.vmem [shape: bf16[128,768], index: 0, kind: input, shape index: {}]   ;;  %s1849_s1 = inlined_call_operand.vmem [shape: bf16[768,256], index: 1, kind: input, shape index: {}]   ;;  %s1850_s2 = inlined_call_operand.vmem [shape: f32[1,256], index: 2, kind: input, shape index: {}]   ;;  %s1851_s3 = inlined_call_operand.vmem [shape: f32[64,256], index: 3, kind: input, shape index: {}]   ;;  %s1852_s4 = inlined_call_operand.vmem [shape: bf16[128,256], index: 4, kind: output, shape index: {}]  }
   0x1   :  { %s1611_s17 = smov 0   ;;  %s1613_s18 = smov 0  }
   0x2   :  { %s1615_s19 = smov 0   ;;  %s1617_s20 = smov 0  }
   0x3   :  { %s1619_s21 = smov 0  }
   0x4 LB: > { %s26_s22 = sadd.s32 1, %s1570_s19  ;;  %s33_s23 = sadd.s32 1, %s1574_s20  ;;  %s1578_s21 = sphi %s1619_s21, %s14_s21   ;;  %s1574_s20 = sphi %s1617_s20, %s1858_s20   ;;  %s1570_s19 = sphi %s1615_s19, %s1857_s19   ;;  %s1566_s18 = sphi %s1613_s18, %s1856_s18   ;;  %s1562_s17 = sphi %s1611_s17, %s1855_s17   ;;  %s1558_s16 = sphi %s1609_s16, %s1854_s16   ;;  %s1554_s15 = sphi %s1607_s15, %s1853_s15  }
   0x5   : > { %p27_p0 = scmp.ge.s32.totalorder %s26_s22, 2  ;;  %p49_p1 = scmp.ne.s32.totalorder %s1558_s16, %s1554_s15 }
   0x6   : > { %p50_p2 = scmp.eq.s32.totalorder %s1578_s21, 0  ;;  %s42_s27 = sadd.s32 1, %s1558_s16 }
   0x7   : > { %s1860_s22 = smov (%p27_p0, %s26_s22), 0  ;;  %s1862_s23 = smov (!%p27_p0, %s33_s23), %s1574_s20 }
   0x8   : > { %p51_p3 = por %p50_p2, %p49_p1  ;;  %p35_p4 = scmp.ge.s32.totalorder %s1862_s23, 2 }
   0x9   : > { %s38_s24 = ssub.s32 %s1570_s19, %s1860_s22  ;;  %p1251_p6 = scmp.ge.s32.totalorder %s1578_s21, 4 }
   0xa   : > { %s1864_s23 = smov (%p35_p4, %s1862_s23), 0 }
   0xb   : > { %s37_s25 = ssub.s32 %s1574_s20, %s1864_s23  ;;  %200 = sbr.rel (%p1251_p6) target bundleno = 36 (0x24), region = 24 }
   0xc   : > { %s39_s26 = sor.u32 %s38_s24, %s37_s25 }
   0xd   : > { %p40_p5 = scmp.eq.s32.totalorder %s39_s26, 0 }
   0xf   : > { %s1658_s28 = scalar_select %p40_p5, %s1558_s16, %s42_s27  }
  0x12   : > { %203 = sbr.rel (!%p51_p3) target bundleno = 36 (0x24), region = 28  ;;  %s205_s29 = sand.u32 (%p51_p3), 1, %s1558_s16  }
  0x13   : > { %s209_s30 = smul.u32 (%p51_p3), 3, %s1570_s19 }
  0x14   : > { %s1375_s5 = smul.u32 (%p51_p3), 96, %s205_s29 }
  0x15   : > { %s1376_s6 = smul.u32 (%p51_p3), 48, %s1574_s20 }
  0x16   : > { %s207_s12 = scalar_lea.vmem (%p51_p3), [#allocation3], %s1375_s5 }
  0x17   : > { %s211_s7 = sadd.s32 (%p51_p3), %s1376_s6, %s209_s30 }
  0x18   : > { %s1254_s8 = sshll.u32 (%p51_p3), %s211_s7, 2 }
  0x19   : > { %s1667_s11 = scalar_lea.vmem %s1848_s0, %s1254_s8 }
  0x1a   : > { %v228_v0 = vld [vmem:[%s1667_s11] sm:$0xff]  ;;  %v230_v1 = vld [vmem:[%s1667_s11 + $0x18] sm:$0xff]  ;;  %v232_v2 = vld [vmem:[%s1667_s11 + $0x30] sm:$0xff] }
  0x1b   : > { %229 = vst [vmem:[%s207_s12] sm:$0xff] %v228_v0  ;;  %231 = vst [vmem:[%s207_s12 + $0xc] sm:$0xff] %v230_v1  ;;  %v234_v3 = vld [vmem:[%s1667_s11 + $0x48] sm:$0xff]  ;;  %v236_v4 = vld [vmem:[%s1667_s11 + $0x60] sm:$0xff] }
  0x1c   : > { %233 = vst [vmem:[%s207_s12 + $0x18] sm:$0xff] %v232_v2  ;;  %v238_v5 = vld [vmem:[%s1667_s11 + $0x78] sm:$0xff]  ;;  %235 = vst [vmem:[%s207_s12 + $0x24] sm:$0xff] %v234_v3  ;;  %v240_v6 = vld [vmem:[%s1667_s11 + $0x90] sm:$0xff] }
  0x1d   : > { %237 = vst [vmem:[%s207_s12 + $0x30] sm:$0xff] %v236_v4  ;;  %239 = vst [vmem:[%s207_s12 + $0x3c] sm:$0xff] %v238_v5  ;;  %v242_v7 = vld [vmem:[%s1667_s11 + $0xa8] sm:$0xff]  ;;  %v1257_v9 = vld [vmem:[%s1667_s11 + $0x20] sm:$0xf] }
  0x1e   : > { %v1255_v8 = vld [vmem:[%s1667_s11 + $0x8] sm:$0xf]  ;;  %241 = vst [vmem:[%s207_s12 + $0x48] sm:$0xff] %v240_v6  ;;  %243 = vst [vmem:[%s207_s12 + $0x54] sm:$0xff] %v242_v7  ;;  %v1259_v10 = vld [vmem:[%s1667_s11 + $0x38] sm:$0xf] }
  0x1f   : > { %1256 = vst [vmem:[%s207_s12 + $0x8] sm:$0xf] %v1255_v8  ;;  %v1261_v11 = vld [vmem:[%s1667_s11 + $0x50] sm:$0xf]  ;;  %1258 = vst [vmem:[%s207_s12 + $0x14] sm:$0xf] %v1257_v9 }
  0x20   : > { %1260 = vst [vmem:[%s207_s12 + $0x20] sm:$0xf] %v1259_v10  ;;  %1262 = vst [vmem:[%s207_s12 + $0x2c] sm:$0xf] %v1261_v11  ;;  %v1263_v12 = vld [vmem:[%s1667_s11 + $0x68] sm:$0xf] }
  0x21   : > { %v1265_v13 = vld [vmem:[%s1667_s11 + $0x80] sm:$0xf]  ;;  %v1267_v14 = vld [vmem:[%s1667_s11 + $0x98] sm:$0xf]  ;;  %1264 = vst [vmem:[%s207_s12 + $0x38] sm:$0xf] %v1263_v12 }
  0x22   : > { %1266 = vst [vmem:[%s207_s12 + $0x44] sm:$0xf] %v1265_v13  ;;  %1268 = vst [vmem:[%s207_s12 + $0x50] sm:$0xf] %v1267_v14  ;;  %v1269_v15 = vld [vmem:[%s1667_s11 + $0xb0] sm:$0xf] }
  0x23   : > { %1270 = vst [vmem:[%s207_s12 + $0x5c] sm:$0xf] %v1269_v15 }
  0x24 PF: > { %p1271_p7 = scmp.ge.s32.totalorder %s1578_s21, 1  ;;  %p286_p8 = scmp.lt.s32.totalorder %s1578_s21, 5 }
  0x26   : > { %p287_p9 = pnand %p1271_p7, %p286_p8 }
  0x27   : > { %s293_s13 = sand.u32 (!%p287_p9), 1, %s1554_s15   ;;  %s344_s14 = smul.u32 (!%p287_p9), 48, %s1562_s17 }
  0x28   : > { %290 = sbr.rel (%p287_p9) target bundleno = 380 (0x17c), region = 58  ;;  %s1274_s25 = sshll.u32 (!%p287_p9), %s1566_s18, 3 }
  0x29   : > { %s1377_s24 = smul.u32 (!%p287_p9), 96, %s293_s13  ;;  %p346_p10 = scmp.lt.s32.totalorder (!%p287_p9), %s344_s14, 95 }
  0x2a   : > { %p369_p11 = scmp.lt.s32.totalorder (!%p287_p9), %s1274_s25, 15  ;;  %p1277_p12 = scmp.ne.s32.totalorder (!%p287_p9), %s1562_s17, 0 }
  0x2b   : > { %s1700_s15 = scalar_lea.vmem (!%p287_p9), [#allocation3], %s1377_s24 }
  0x2f   : > { %s1866_s14 = smov (!%p346_p10, %s344_s14), 95  ;;  %s1868_s25 = smov (!%p369_p11, %s1274_s25), 15 }
  0x30   : > { %s1349_s26 = sshll.u32 %s1866_s14, 3  ;;  %s1350_s5 = sshll.u32 %s1868_s25, 3  ;;  %v1580_v16 = vmov (!%p1277_p12), 0.0  }
  0x31   : > { %s1693_s30 = scalar_lea.vmem %s1849_s1, %s1349_s26  ;;  %s1698_s8 = scalar_lea.vmem %s1852_s4, %s1350_s5  ;;  %384 = vst [vmem:[#allocation2] sm:$0xff] (!%p1277_p12), %v1580_v16  ;;  %385 = vst [vmem:[#allocation2 + $0x8] sm:$0xff] (!%p1277_p12), %v1580_v16 }
  0x32   : > { %383 = sbr.rel (%p1277_p12) target bundleno = 57 (0x39), region = 66  ;;  %386 = vst [vmem:[#allocation2 + $0x10] sm:$0xff] (!%p1277_p12), %v1580_v16  ;;  %387 = vst [vmem:[#allocation2 + $0x18] sm:$0xff] (!%p1277_p12), %v1580_v16 }
  0x33   : > { %388 = vst [vmem:[#allocation2 + $0x20] sm:$0xff] (!%p1277_p12), %v1580_v16  ;;  %389 = vst [vmem:[#allocation2 + $0x28] sm:$0xff] (!%p1277_p12), %v1580_v16 }
  0x34   : > { %390 = vst [vmem:[#allocation2 + $0x30] sm:$0xff] (!%p1277_p12), %v1580_v16  ;;  %391 = vst [vmem:[#allocation2 + $0x38] sm:$0xff] (!%p1277_p12), %v1580_v16 }
  0x35   : > { %392 = vst [vmem:[#allocation2 + $0x40] sm:$0xff] (!%p1277_p12), %v1580_v16  ;;  %393 = vst [vmem:[#allocation2 + $0x48] sm:$0xff] (!%p1277_p12), %v1580_v16 }
  0x36   : > { %394 = vst [vmem:[#allocation2 + $0x50] sm:$0xff] (!%p1277_p12), %v1580_v16  ;;  %395 = vst [vmem:[#allocation2 + $0x58] sm:$0xff] (!%p1277_p12), %v1580_v16 }
  0x37   : > { %396 = vst [vmem:[#allocation2 + $0x60] sm:$0xff] (!%p1277_p12), %v1580_v16  ;;  %397 = vst [vmem:[#allocation2 + $0x68] sm:$0xff] (!%p1277_p12), %v1580_v16 }
  0x38   : > { %398 = vst [vmem:[#allocation2 + $0x70] sm:$0xff] (!%p1277_p12), %v1580_v16  ;;  %399 = vst [vmem:[#allocation2 + $0x78] sm:$0xff] (!%p1277_p12), %v1580_v16 }
  0x39 PF: > { %v1436_v17 = vld [vmem:[%s1693_s30 + $0x4] ss:$8 sps:$4 sm:$0xff]   ;;  %v1438_v18 = vld [vmem:[%s1693_s30] ss:$8 sps:$4 sm:$0xff]   ;;  %v1581_v19 = vmov 0   ;;  %p1338_p13 = scmp.ne.s32.totalorder %s1562_s17, 1 }
  0x3a   : > { %889 = vmatprep.mubr.bf16.mxu0 %v1581_v19  ;;  %784 = vmatprep.subr.bf16.mxu1 %v1436_v17  ;;  %v1439_v20 = vld [vmem:[%s1693_s30 + $0x14] ss:$8 sps:$4 sm:$0xff]   ;;  %v1441_v21 = vld [vmem:[%s1693_s30 + $0x10] ss:$8 sps:$4 sm:$0xff]   ;;  %v1442_v22 = vld [vmem:[%s1693_s30 + $0x24] ss:$8 sps:$4 sm:$0xff]  }
  0x3b   : > { %785 = vmatpush1.bf16.msra.mxu1 %v1438_v18  ;;  %v1444_v23 = vld [vmem:[%s1693_s30 + $0x20] ss:$8 sps:$4 sm:$0xff]   ;;  %v1445_v24 = vld [vmem:[%s1693_s30 + $0x34] ss:$8 sps:$4 sm:$0xff]   ;;  %v1447_v25 = vld [vmem:[%s1693_s30 + $0x30] ss:$8 sps:$4 sm:$0xff]  }
  0x3c   : > { %786 = vmatprep.subr.bf16.mxu1 %v1439_v20  ;;  %v1460_v26 = vld [vmem:[%s1693_s30 + $0x104] ss:$8 sps:$4 sm:$0xff]   ;;  %v1462_v27 = vld [vmem:[%s1693_s30 + $0x100] ss:$8 sps:$4 sm:$0xff]   ;;  %v1466_v29 = vld [vmem:[%s1693_s30 + $0x114] ss:$8 sps:$4 sm:$0xff]  }
  0x3d   : > { %v1448_v28 = vld [vmem:[%s1693_s30 + $0x44] ss:$8 sps:$4 sm:$0xff]   ;;  %857 = vmatprep.subr.bf16.mxu0 %v1460_v26  ;;  %v1468_v30 = vld [vmem:[%s1693_s30 + $0x110] ss:$8 sps:$4 sm:$0xff]   ;;  %v1450_v31 = vld [vmem:[%s1693_s30 + $0x40] ss:$8 sps:$4 sm:$0xff]  }
  0x3e   : > { %858 = vmatpush1.bf16.msra.mxu0 %v1462_v27  ;;  %v1451_v32 = vld [vmem:[%s1693_s30 + $0x54] ss:$8 sps:$4 sm:$0xff]   ;;  %v1472_v33 = vld [vmem:[%s1693_s30 + $0x124] ss:$8 sps:$4 sm:$0xff]   ;;  %v1474_v34 = vld [vmem:[%s1693_s30 + $0x120] ss:$8 sps:$4 sm:$0xff]  }
  0x3f   : > { %787 = vmatpush1.bf16.msra.mxu1 %v1441_v21  ;;  %859 = vmatprep.subr.bf16.mxu0 %v1466_v29  ;;  %v1453_v35 = vld [vmem:[%s1693_s30 + $0x50] ss:$8 sps:$4 sm:$0xff]   ;;  %v1478_v36 = vld [vmem:[%s1693_s30 + $0x134] ss:$8 sps:$4 sm:$0xff]   ;;  %v1454_v37 = vld [vmem:[%s1693_s30 + $0x64] ss:$8 sps:$4 sm:$0xff]  }
  0x40   : > { %788 = vmatprep.subr.bf16.mxu1 %v1442_v22  ;;  %v1480_v38 = vld [vmem:[%s1693_s30 + $0x130] ss:$8 sps:$4 sm:$0xff]   ;;  %v1456_v39 = vld [vmem:[%s1693_s30 + $0x60] ss:$8 sps:$4 sm:$0xff]   ;;  %v1484_v40 = vld [vmem:[%s1693_s30 + $0x144] ss:$8 sps:$4 sm:$0xff]  }
  0x41   : > { %v1457_v41 = vld [vmem:[%s1693_s30 + $0x74] ss:$8 sps:$4 sm:$0xff]   ;;  %v1486_v42 = vld [vmem:[%s1693_s30 + $0x140] ss:$8 sps:$4 sm:$0xff]   ;;  %v1459_v43 = vld [vmem:[%s1693_s30 + $0x70] ss:$8 sps:$4 sm:$0xff]  }
  0x42   : > { %860 = vmatpush1.bf16.msra.mxu0 %v1468_v30  ;;  %v1490_v44 = vld [vmem:[%s1693_s30 + $0x154] ss:$8 sps:$4 sm:$0xff]   ;;  %v1463_v45 = vld [vmem:[%s1693_s30 + $0x84] ss:$8 sps:$4 sm:$0xff]   ;;  %v1492_v46 = vld [vmem:[%s1693_s30 + $0x150] ss:$8 sps:$4 sm:$0xff]  }
  0x43   : > { %789 = vmatpush1.bf16.msra.mxu1 %v1444_v23  ;;  %861 = vmatprep.subr.bf16.mxu0 %v1472_v33  ;;  %v1465_v47 = vld [vmem:[%s1693_s30 + $0x80] ss:$8 sps:$4 sm:$0xff]   ;;  %v1496_v48 = vld [vmem:[%s1693_s30 + $0x164] ss:$8 sps:$4 sm:$0xff]   ;;  %v1469_v49 = vld [vmem:[%s1693_s30 + $0x94] ss:$8 sps:$4 sm:$0xff]  }
  0x44   : > { %790 = vmatprep.subr.bf16.mxu1 %v1445_v24  ;;  %v1471_v50 = vld [vmem:[%s1693_s30 + $0x90] ss:$8 sps:$4 sm:$0xff]   ;;  %v1498_v51 = vld [vmem:[%s1693_s30 + $0x160] ss:$8 sps:$4 sm:$0xff]   ;;  %v1502_v53 = vld [vmem:[%s1693_s30 + $0x174] ss:$8 sps:$4 sm:$0xff]  }
  0x45   : > { %v1511_v52 = vld [vmem:[%s1700_s15 + $0x4] ss:$12 sps:$4 sm:$0xff]   ;;  %v1477_v56 = vld [vmem:[%s1693_s30 + $0xa0] ss:$8 sps:$4 sm:$0xff]   ;;  %v1481_v57 = vld [vmem:[%s1693_s30 + $0xb4] ss:$8 sps:$4 sm:$0xff]  }
  0x46   : > { %862 = vmatpush1.bf16.msra.mxu0 %v1474_v34  ;;  %v1475_v54 = vld [vmem:[%s1693_s30 + $0xa4] ss:$8 sps:$4 sm:$0xff]   ;;  %816 = vmatprep.mubr.bf16.mxu1 %v1511_v52  ;;  %v1504_v55 = vld [vmem:[%s1693_s30 + $0x170] ss:$8 sps:$4 sm:$0xff]   ;;  %v1508_v58 = vld [vmem:[%s1700_s15 + $0x8] ss:$12 sps:$4 sm:$0xff]  }
  0x47   : > { %791 = vmatpush1.bf16.msra.mxu1 %v1447_v25  ;;  %863 = vmatprep.subr.bf16.mxu0 %v1478_v36  ;;  %v1483_v59 = vld [vmem:[%s1693_s30 + $0xb0] ss:$8 sps:$4 sm:$0xff]   ;;  %v1487_v60 = vld [vmem:[%s1693_s30 + $0xc4] ss:$8 sps:$4 sm:$0xff]   ;;  %v1489_v61 = vld [vmem:[%s1693_s30 + $0xc0] ss:$8 sps:$4 sm:$0xff]  }
  0x48   : > { %792 = vmatprep.subr.bf16.mxu1 %v1448_v28  ;;  %v1493_v62 = vld [vmem:[%s1693_s30 + $0xd4] ss:$8 sps:$4 sm:$0xff]   ;;  %v1512_v63 = vld [vmem:[%s1700_s15 + $0x20] ss:$12 sps:$4 sm:$0xff]   ;;  %v1495_v0 = vld [vmem:[%s1693_s30 + $0xd0] ss:$8 sps:$4 sm:$0xff]  }
  0x49   : > { %v1499_v1 = vld [vmem:[%s1693_s30 + $0xe4] ss:$8 sps:$4 sm:$0xff]   ;;  %v1501_v2 = vld [vmem:[%s1693_s30 + $0xe0] ss:$8 sps:$4 sm:$0xff]   ;;  %v1505_v3 = vld [vmem:[%s1693_s30 + $0xf4] ss:$8 sps:$4 sm:$0xff]  }
  0x4a   : > { %864 = vmatpush1.bf16.msra.mxu0 %v1480_v38  ;;  %v1516_v4 = vld [vmem:[%s1700_s15 + $0x38] ss:$12 sps:$4 sm:$0xff]   ;;  %v1509_v6 = vld [vmem:[%s1700_s15] ss:$12 sps:$4 sm:$0xff]   ;;  %v1513_v7 = vld [vmem:[%s1700_s15 + $0x1c] ss:$12 sps:$4 sm:$0xff]  }
  0x4b   : > { %793 = vmatpush1.bf16.msra.mxu1 %v1450_v31  ;;  %865 = vmatprep.subr.bf16.mxu0 %v1484_v40  ;;  %v1507_v5 = vld [vmem:[%s1693_s30 + $0xf0] ss:$8 sps:$4 sm:$0xff]   ;;  %v1517_v10 = vld [vmem:[%s1700_s15 + $0x34] ss:$12 sps:$4 sm:$0xff]   ;;  %v401_v29 = vld [vmem:[#allocation2 + $0x8] sm:$0xff] }
  0x4c   : > { %794 = vmatprep.subr.bf16.mxu1 %v1451_v32  ;;  %v1520_v8 = vld [vmem:[%s1700_s15 + $0x50] ss:$12 sps:$4 sm:$0xff]   ;;  %v1515_v9 = vld [vmem:[%s1700_s15 + $0x18] ss:$12 sps:$4 sm:$0xff]   ;;  %v1523_v13 = vld [vmem:[%s1700_s15 + $0x48] ss:$12 sps:$4 sm:$0xff]  }
  0x4d   : > { %v1519_v11 = vld [vmem:[%s1700_s15 + $0x30] ss:$12 sps:$4 sm:$0xff]   ;;  %v1521_v12 = vld [vmem:[%s1700_s15 + $0x4c] ss:$12 sps:$4 sm:$0xff]   ;;  %v400_v26 = vld [vmem:[#allocation2] sm:$0xff] }
  0x4e   : > { %866 = vmatpush1.bf16.msra.mxu0 %v1486_v42  ;;  %v402_v32 = vld [vmem:[#allocation2 + $0x10] sm:$0xff]  ;;  %v403_v36 = vld [vmem:[#allocation2 + $0x18] sm:$0xff] }
  0x4f   : > { %795 = vmatpush1.bf16.msra.mxu1 %v1453_v35  ;;  %867 = vmatprep.subr.bf16.mxu0 %v1490_v44  ;;  %v406_v52 = vld [vmem:[#allocation2 + $0x30] sm:$0xff] }
  0x50   : > { %796 = vmatprep.subr.bf16.mxu1 %v1454_v37 }
  0x52   : > { %868 = vmatpush1.bf16.msra.mxu0 %v1492_v46  ;;  %v404_v46 = vld [vmem:[#allocation2 + $0x20] sm:$0xff] }
  0x53   : > { %797 = vmatpush1.bf16.msra.mxu1 %v1456_v39  ;;  %869 = vmatprep.subr.bf16.mxu0 %v1496_v48 }
  0x54   : > { %798 = vmatprep.subr.bf16.mxu1 %v1457_v41 }
  0x56   : > { %870 = vmatpush1.bf16.msra.mxu0 %v1498_v51 }
  0x57   : > { %799 = vmatpush1.bf16.msra.mxu1 %v1459_v43  ;;  %871 = vmatprep.subr.bf16.mxu0 %v1502_v53 }
  0x58   : > { %800 = vmatprep.subr.bf16.mxu1 %v1463_v45 }
  0x5a   : > { %872 = vmatpush1.bf16.msra.mxu0 %v1504_v55 }
  0x5b   : > { %801 = vmatpush1.bf16.msra.mxu1 %v1465_v47 }
  0x5c   : > { %802 = vmatprep.subr.bf16.mxu1 %v1469_v49  ;;  %v405_v49 = vld [vmem:[#allocation2 + $0x28] sm:$0xff] }
  0x5d   : > { %890 = vmatmul.mubr.bf16.vlgmr.msra.gmra.mrb[0].mxu0 %v1508_v58 }
  0x5e   : > { %899 = vmatprep.mubr.bf16.mxu0 %v1581_v19 }
  0x5f   : > { %803 = vmatpush1.bf16.msra.mxu1 %v1471_v50 }
  0x60   : > { %804 = vmatprep.subr.bf16.mxu1 %v1475_v54 }
  0x63   : > { %805 = vmatpush1.bf16.msra.mxu1 %v1477_v56  ;;  %v407_v56 = vld [vmem:[#allocation2 + $0x38] sm:$0xff] }
  0x64   : > { %806 = vmatprep.subr.bf16.mxu1 %v1481_v57 }
  0x65   : > { %900 = vmatmul.mubr.bf16.gmra.mrb[4].mxu0 %v1512_v63 }
  0x66   : > { %909 = vmatprep.mubr.bf16.mxu0 %v1581_v19 }
  0x67   : > { %807 = vmatpush1.bf16.msra.mxu1 %v1483_v59 }
  0x68   : > { %808 = vmatprep.subr.bf16.mxu1 %v1487_v60 }
  0x6b   : > { %809 = vmatpush1.bf16.msra.mxu1 %v1489_v61 }
  0x6c   : > { %810 = vmatprep.subr.bf16.mxu1 %v1493_v62  ;;  %v408_v62 = vld [vmem:[#allocation2 + $0x40] sm:$0xff] }
  0x6d   : > { %910 = vmatmul.mubr.bf16.gmra.mrb[8].mxu0 %v1516_v4  ;;  %v410_v4 = vld [vmem:[#allocation2 + $0x50] sm:$0xff] }
  0x6e   : > { %919 = vmatprep.mubr.bf16.mxu0 %v1581_v19 }
  0x6f   : > { %811 = vmatpush1.bf16.msra.mxu1 %v1495_v0 }
  0x70   : > { %812 = vmatprep.subr.bf16.mxu1 %v1499_v1  ;;  %v409_v1 = vld [vmem:[#allocation2 + $0x48] sm:$0xff] }
  0x73   : > { %813 = vmatpush1.bf16.msra.mxu1 %v1501_v2 }
  0x74   : > { %814 = vmatprep.subr.bf16.mxu1 %v1505_v3 }
  0x75   : > { %920 = vmatmul.mubr.bf16.gmra.mrb[12].mxu0 %v1520_v8  ;;  %v411_v8 = vld [vmem:[#allocation2 + $0x58] sm:$0xff] }
  0x77   : > { %815 = vmatpush1.bf16.msra.mxu1 %v1507_v5 }
  0x7a   : > { %817 = vmatmul.mubr.bf16.vlgmr.msra.gmra.mrb[0].mxu1 %v1509_v6 }
  0x7b   : > { %826 = vmatprep.mubr.bf16.mxu1 %v1513_v7 }
  0x82   : > { %827 = vmatmul.mubr.bf16.gmra.mrb[4].mxu1 %v1515_v9 }
  0x83   : > { %836 = vmatprep.mubr.bf16.mxu1 %v1517_v10 }
  0x8a   : > { %837 = vmatmul.mubr.bf16.gmra.mrb[8].mxu1 %v1519_v11 }
  0x8b   : > { %846 = vmatprep.mubr.bf16.mxu1 %v1521_v12 }
  0x92   : > { %847 = vmatmul.mubr.bf16.gmra.mrb[12].mxu1 %v1523_v13 }
 0x130   : > { %v891_v14 = vpop.f32.mrb[0].mxu0 }
 0x131   : > { %v893_v15 = vpop.f32.mrb[1].mxu0 }
 0x132   : > { %v895_v16 = vpop.f32.mrb[2].mxu0 }
 0x133   : > { %v897_v17 = vpop.f32.mrb[3].mxu0 }
 0x138   : > { %v901_v18 = vpop.f32.mrb[4].mxu0 }
 0x139   : > { %v903_v19 = vpop.f32.mrb[5].mxu0 }
 0x13a   : > { %v905_v20 = vpop.f32.mrb[6].mxu0 }
 0x13b   : > { %v907_v21 = vpop.f32.mrb[7].mxu0 }
 0x140   : > { %v911_v22 = vpop.f32.mrb[8].mxu0 }
 0x141   : > { %v913_v23 = vpop.f32.mrb[9].mxu0 }
 0x142   : > { %v915_v24 = vpop.f32.mrb[10].mxu0 }
 0x143   : > { %v917_v25 = vpop.f32.mrb[11].mxu0 }
 0x148   : > { %v921_v38 = vpop.f32.mrb[12].mxu0 }
 0x149   : > { %v923_v41 = vpop.f32.mrb[13].mxu0 }
 0x14a   : > { %v925_v43 = vpop.f32.mrb[14].mxu0 }
 0x14b   : > { %v927_v45 = vpop.f32.mrb[15].mxu0 }
 0x14d   : > { %v818_v27 = vpop.f32.mrb[0].mxu1 }
 0x14e   : > { %v892_v28 = vadd.f32 %v891_v14, %v818_v27  ;;  %v820_v30 = vpop.f32.mrb[1].mxu1  ;;  %v412_v14 = vld [vmem:[#allocation2 + $0x60] sm:$0xff] }
 0x14f   : > { %v894_v31 = vadd.f32 %v893_v15, %v820_v30  ;;  %v822_v33 = vpop.f32.mrb[2].mxu1  ;;  %v984_v30 = vlaneseq (!%p1338_p13) }
 0x150   : > { %v930_v34 = vadd.f32 %v892_v28, %v400_v26  ;;  %v896_v35 = vadd.f32 %v895_v16, %v822_v33  ;;  %v824_v37 = vpop.f32.mrb[3].mxu1 }
 0x151   : > { %v931_v39 = vadd.f32 %v894_v31, %v401_v29  ;;  %v898_v40 = vadd.f32 %v897_v17, %v824_v37  ;;  %v413_v17 = vld [vmem:[#allocation2 + $0x68] sm:$0xff]  ;;  %v985_v31 = vshrl.u32 (!%p1338_p13), %v984_v30, 7  ;;  %v1010_v37 = vld [vmem:[%s1851_s3] sm:$0xff] (!%p1338_p13) }
 0x152   : > { %946 = vst [vmem:[#allocation2] sm:$0xff] %v930_v34  ;;  %v932_v42 = vadd.f32 %v896_v35, %v402_v32  ;;  %v982_v32 = vld [vmem:[%s1850_s2] sm:$0x3] (!%p1338_p13) }
 0x153   : > { %947 = vst [vmem:[#allocation2 + $0x8] sm:$0xff] %v931_v39  ;;  %v933_v44 = vadd.f32 %v898_v40, %v403_v36  ;;  %v986_v35 = vsub.s32 (!%p1338_p13), 0, %v985_v31  ;;  %v990_v36 = vsub.s32 (!%p1338_p13), 1, %v985_v31  ;;  %v1024_v31 = vld [vmem:[%s1851_s3 + $0x70] sm:$0xff] (!%p1338_p13) }
 0x154   : > { %948 = vst [vmem:[#allocation2 + $0x10] sm:$0xff] %v932_v42 }
 0x155   : > { %949 = vst [vmem:[#allocation2 + $0x18] sm:$0xff] %v933_v44  ;;  %v828_v47 = vpop.f32.mrb[4].mxu1  ;;  %v987_v42 = vrot.slane (!%p1338_p13), %v982_v32, %v986_v35 }
 0x156   : > { %v902_v48 = vadd.f32 %v901_v18, %v828_v47  ;;  %v830_v50 = vpop.f32.mrb[5].mxu1  ;;  %v1012_v47 = vld [vmem:[%s1851_s3 + $0x10] sm:$0xff] (!%p1338_p13) }
 0x157   : > { %v904_v51 = vadd.f32 %v903_v19, %v830_v50  ;;  %v832_v53 = vpop.f32.mrb[6].mxu1 }
 0x158   : > { %v934_v54 = vadd.f32 %v902_v48, %v404_v46  ;;  %v906_v55 = vadd.f32 %v905_v20, %v832_v53  ;;  %v834_v57 = vpop.f32.mrb[7].mxu1  ;;  %v414_v20 = vld [vmem:[#allocation2 + $0x70] sm:$0xff]  ;;  %v1013_v48 = vld [vmem:[%s1851_s3 + $0x18] sm:$0xff] (!%p1338_p13) }
 0x159   : > { %v935_v58 = vadd.f32 %v904_v51, %v405_v49  ;;  %v908_v59 = vadd.f32 %v907_v21, %v834_v57  ;;  %v966_v33 = vld [vmem:[#allocation2] sm:$0xff] (!%p1338_p13) }
 0x15a   : > { %950 = vst [vmem:[#allocation2 + $0x20] sm:$0xff] %v934_v54  ;;  %v936_v60 = vadd.f32 %v906_v55, %v406_v52  ;;  %v967_v34 = vld [vmem:[#allocation2 + $0x8] sm:$0xff] (!%p1338_p13)  ;;  %v1014_v49 = vld [vmem:[%s1851_s3 + $0x20] sm:$0xff] (!%p1338_p13)  ;;  %v994_v50 = vadd.f32 (!%p1338_p13), %v987_v42, %v966_v33  ;;  %v1016_v55 = vld [vmem:[%s1851_s3 + $0x30] sm:$0xff] (!%p1338_p13) }
 0x15b   : > { %951 = vst [vmem:[#allocation2 + $0x28] sm:$0xff] %v935_v58  ;;  %v937_v61 = vadd.f32 %v908_v59, %v407_v56  ;;  %v968_v39 = vld [vmem:[#allocation2 + $0x10] sm:$0xff] (!%p1338_p13)  ;;  %v1015_v54 = vld [vmem:[%s1851_s3 + $0x28] sm:$0xff] (!%p1338_p13)  ;;  %v1017_v56 = vld [vmem:[%s1851_s3 + $0x38] sm:$0xff] (!%p1338_p13) }
 0x15c   : > { %952 = vst [vmem:[#allocation2 + $0x30] sm:$0xff] %v936_v60  ;;  %v969_v40 = vld [vmem:[#allocation2 + $0x18] sm:$0xff] (!%p1338_p13)  ;;  %v996_v52 = vadd.f32 (!%p1338_p13), %v987_v42, %v968_v39 }
 0x15d   : > { %953 = vst [vmem:[#allocation2 + $0x38] sm:$0xff] %v937_v61  ;;  %v838_v63 = vpop.f32.mrb[8].mxu1 }
 0x15e   : > { %v912_v0 = vadd.f32 %v911_v22, %v838_v63  ;;  %v840_v2 = vpop.f32.mrb[9].mxu1  ;;  %v1018_v63 = vld [vmem:[%s1851_s3 + $0x40] sm:$0xff] (!%p1338_p13) }
 0x15f   : > { %v914_v3 = vadd.f32 %v913_v23, %v840_v2  ;;  %v842_v5 = vpop.f32.mrb[10].mxu1  ;;  %v1028_v2 = vadd.f32 (!%p1338_p13), %v1012_v47, %v996_v52 }
 0x160   : > { %v938_v6 = vadd.f32 %v912_v0, %v408_v62  ;;  %v916_v7 = vadd.f32 %v915_v24, %v842_v5  ;;  %v844_v9 = vpop.f32.mrb[11].mxu1  ;;  %v415_v24 = vld [vmem:[#allocation2 + $0x78] sm:$0xff]  ;;  %v1026_v0 = vadd.f32 (!%p1338_p13), %v1010_v37, %v994_v50 }
 0x161   : > { %v939_v10 = vadd.f32 %v914_v3, %v409_v1  ;;  %v918_v11 = vadd.f32 %v917_v25, %v844_v9 }
 0x162   : > { %954 = vst [vmem:[#allocation2 + $0x40] sm:$0xff] %v938_v6  ;;  %v940_v12 = vadd.f32 %v916_v7, %v410_v4  ;;  %v971_v44 = vld [vmem:[#allocation2 + $0x28] sm:$0xff] (!%p1338_p13) }
 0x163   : > { %955 = vst [vmem:[#allocation2 + $0x48] sm:$0xff] %v939_v10  ;;  %v941_v13 = vadd.f32 %v918_v11, %v411_v8  ;;  %v1019_v4 = vld [vmem:[%s1851_s3 + $0x48] sm:$0xff] (!%p1338_p13)  ;;  %v1020_v11 = vld [vmem:[%s1851_s3 + $0x50] sm:$0xff] (!%p1338_p13) }
 0x164   : > { %956 = vst [vmem:[#allocation2 + $0x50] sm:$0xff] %v940_v12  ;;  %v973_v46 = vld [vmem:[#allocation2 + $0x38] sm:$0xff] (!%p1338_p13) }
 0x165   : > { %957 = vst [vmem:[#allocation2 + $0x58] sm:$0xff] %v941_v13  ;;  %v848_v15 = vpop.f32.mrb[12].mxu1 }
 0x166   : > { %v922_v16 = vadd.f32 %v921_v38, %v848_v15  ;;  %v850_v18 = vpop.f32.mrb[13].mxu1  ;;  %v1011_v38 = vld [vmem:[%s1851_s3 + $0x8] sm:$0xff] (!%p1338_p13) }
 0x167   : > { %v924_v19 = vadd.f32 %v923_v41, %v850_v18  ;;  %v852_v21 = vpop.f32.mrb[14].mxu1  ;;  %965 = sbr.rel (%p1338_p13) target bundleno = 380 (0x17c), region = 70  ;;  %v970_v41 = vld [vmem:[#allocation2 + $0x20] sm:$0xff] (!%p1338_p13)  ;;  %v1021_v18 = vld [vmem:[%s1851_s3 + $0x58] sm:$0xff] (!%p1338_p13) }
 0x168   : > { %v942_v22 = vadd.f32 %v922_v16, %v412_v14  ;;  %v926_v23 = vadd.f32 %v925_v43, %v852_v21  ;;  %v854_v26 = vpop.f32.mrb[15].mxu1  ;;  %v991_v43 = vrot.slane (!%p1338_p13), %v982_v32, %v990_v36  ;;  %v998_v57 = vadd.f32 (!%p1338_p13), %v987_v42, %v970_v41  ;;  %v1025_v32 = vld [vmem:[%s1851_s3 + $0x78] sm:$0xff] (!%p1338_p13) }
 0x169   : > { %v943_v27 = vadd.f32 %v924_v19, %v413_v17  ;;  %v928_v25 = vadd.f32 %v927_v45, %v854_v26  ;;  %v972_v45 = vld [vmem:[#allocation2 + $0x30] sm:$0xff] (!%p1338_p13)  ;;  %v974_v61 = vld [vmem:[#allocation2 + $0x40] sm:$0xff] (!%p1338_p13) }
 0x16a   : > { %958 = vst [vmem:[#allocation2 + $0x60] sm:$0xff] %v942_v22  ;;  %v944_v28 = vadd.f32 %v926_v23, %v414_v20  ;;  %v995_v51 = vadd.f32 (!%p1338_p13), %v991_v43, %v967_v34  ;;  %v997_v53 = vadd.f32 (!%p1338_p13), %v991_v43, %v969_v40  ;;  %v999_v58 = vadd.f32 (!%p1338_p13), %v991_v43, %v971_v44  ;;  %v975_v62 = vld [vmem:[#allocation2 + $0x48] sm:$0xff] (!%p1338_p13)  ;;  %v1022_v26 = vld [vmem:[%s1851_s3 + $0x60] sm:$0xff] (!%p1338_p13) }
 0x16b   : > { %959 = vst [vmem:[#allocation2 + $0x68] sm:$0xff] %v943_v27  ;;  %v945_v29 = vadd.f32 %v928_v25, %v415_v24  ;;  %v1000_v59 = vadd.f32 (!%p1338_p13), %v987_v42, %v972_v45  ;;  %v1001_v60 = vadd.f32 (!%p1338_p13), %v991_v43, %v973_v46  ;;  %v976_v5 = vld [vmem:[#allocation2 + $0x50] sm:$0xff] (!%p1338_p13)  ;;  %v1030_v7 = vadd.f32 (!%p1338_p13), %v1014_v49, %v998_v57  ;;  %v1023_v27 = vld [vmem:[%s1851_s3 + $0x68] sm:$0xff] (!%p1338_p13) }
 0x16c   : > { %960 = vst [vmem:[#allocation2 + $0x70] sm:$0xff] %v944_v28  ;;  %v1027_v1 = vadd.f32 (!%p1338_p13), %v1011_v38, %v995_v51  ;;  %v1029_v3 = vadd.f32 (!%p1338_p13), %v1013_v48, %v997_v53  ;;  %v977_v6 = vld [vmem:[#allocation2 + $0x58] sm:$0xff] (!%p1338_p13)  ;;  %v1031_v8 = vadd.f32 (!%p1338_p13), %v1015_v54, %v999_v58  ;;  %v1002_v16 = vadd.f32 (!%p1338_p13), %v987_v42, %v974_v61 }
 0x16d   : > { %961 = vst [vmem:[#allocation2 + $0x78] sm:$0xff] %v945_v29  ;;  %v1032_v9 = vadd.f32 (!%p1338_p13), %v1016_v55, %v1000_v59  ;;  %v1033_v10 = vadd.f32 (!%p1338_p13), %v1017_v56, %v1001_v60  ;;  %v1003_v17 = vadd.f32 (!%p1338_p13), %v991_v43, %v975_v62  ;;  %v1004_v23 = vadd.f32 (!%p1338_p13), %v987_v42, %v976_v5 }
 0x16e   : > { %v1351_v14 = vpack.c.bf16 %v1027_v1, %v1026_v0  ;;  %v1352_v15 = vpack.c.bf16 %v1029_v3, %v1028_v2  ;;  %v1353_v21 = vpack.c.bf16 %v1031_v8, %v1030_v7  ;;  %v1005_v24 = vadd.f32 %v991_v43, %v977_v6 }
 0x16f   : > { %v1354_v22 = vpack.c.bf16 %v1033_v10, %v1032_v9  ;;  %v1034_v25 = vadd.f32 %v1018_v63, %v1002_v16  ;;  %v1035_v28 = vadd.f32 %v1019_v4, %v1003_v17  ;;  %v1036_v33 = vadd.f32 %v1020_v11, %v1004_v23 }
 0x170   : > { %1090 = vst [vmem:[%s1698_s8] sm:$0xff] %v1351_v14  ;;  %1091 = vst [vmem:[%s1698_s8 + $0x8] sm:$0xff] %v1352_v15  ;;  %v1037_v34 = vadd.f32 %v1021_v18, %v1005_v24 }
 0x171   : > { %v978_v12 = vld [vmem:[#allocation2 + $0x60] sm:$0xff]  ;;  %1092 = vst [vmem:[%s1698_s8 + $0x10] sm:$0xff] %v1353_v21  ;;  %1093 = vst [vmem:[%s1698_s8 + $0x18] sm:$0xff] %v1354_v22  ;;  %v1355_v37 = vpack.c.bf16 %v1035_v28, %v1034_v25 }
 0x172   : > { %v979_v13 = vld [vmem:[#allocation2 + $0x68] sm:$0xff]  ;;  %v1006_v29 = vadd.f32 %v987_v42, %v978_v12  ;;  %v1356_v40 = vpack.c.bf16 %v1037_v34, %v1036_v33 }
 0x173   : > { %v980_v19 = vld [vmem:[#allocation2 + $0x70] sm:$0xff]  ;;  %v1007_v30 = vadd.f32 %v991_v43, %v979_v13  ;;  %1094 = vst [vmem:[%s1698_s8 + $0x20] sm:$0xff] %v1355_v37 }
 0x174   : > { %v981_v20 = vld [vmem:[#allocation2 + $0x78] sm:$0xff]  ;;  %v1008_v35 = vadd.f32 %v987_v42, %v980_v19  ;;  %v1038_v38 = vadd.f32 %v1022_v26, %v1006_v29  ;;  %1095 = vst [vmem:[%s1698_s8 + $0x28] sm:$0xff] %v1356_v40 }
 0x175   : > { %v1009_v36 = vadd.f32 %v991_v43, %v981_v20  ;;  %v1039_v39 = vadd.f32 %v1023_v27, %v1007_v30 }
 0x176   : > { %v1040_v41 = vadd.f32 %v1024_v31, %v1008_v35 }
 0x177   : > { %v1041_v44 = vadd.f32 %v1025_v32, %v1009_v36  ;;  %v1357_v45 = vpack.c.bf16 %v1039_v39, %v1038_v38 }
 0x179   : > { %v1358_v46 = vpack.c.bf16 %v1041_v44, %v1040_v41  ;;  %1096 = vst [vmem:[%s1698_s8 + $0x30] sm:$0xff] %v1357_v45 }
 0x17b   : > { %1097 = vst [vmem:[%s1698_s8 + $0x38] sm:$0xff] %v1358_v46 }
 0x17c PF: > { %s14_s21 = sadd.s32 1, %s1578_s21   ;;  %s1853_s15 = smov %s1558_s16 }
 0x17d   : > { %p11_p0 = scmp.ge.s32.totalorder %s14_s21, 6   ;;  %s1854_s16 = smov %s1658_s28 }
 0x17e   : > { %s1855_s17 = smov %s1570_s19  ;;  %s1856_s18 = smov %s1574_s20 }
 0x17f   : > { %s1857_s19 = smov %s1860_s22  ;;  %s1858_s20 = smov %s1864_s23 }
 0x180   :  { %13 = sbr.rel (!%p11_p0) target bundleno = 4 (0x4), region = 120 }

// kernel: sam_image_embedding.14
= control target key start
LH: loop header
LB: loop body
LE: loop exit
PB: predicated region body
PF: predicated region fallthrough
CT: control target
= control target key end

     0   :  { %s1816_s18 = smov 0   ;;  %s1818_s19 = smov 0   ;;  %s2551_s0 = inlined_call_operand.vmem [shape: bf16[128,256], index: 0, kind: input, shape index: {}]   ;;  %s2552_s1 = inlined_call_operand.vmem [shape: f32[1,256], index: 1, kind: input, shape index: {}]   ;;  %s2553_s2 = inlined_call_operand.vmem [shape: f32[1,256], index: 2, kind: input, shape index: {}]   ;;  %s2554_s3 = inlined_call_operand.vmem [shape: bf16[256,768], index: 3, kind: input, shape index: {}]   ;;  %s2555_s4 = inlined_call_operand.vmem [shape: f32[1,768], index: 4, kind: input, shape index: {}]   ;;  %s2556_s5 = inlined_call_operand.vmem [shape: bf16[128,768], index: 5, kind: output, shape index: {}]  }
   0x1   :  { %s1820_s20 = smov 0   ;;  %s1822_s21 = smov 0  }
   0x2   :  { %s1824_s22 = smov 0  }
   0x3 LB: > { %s24_s23 = sadd.s32 1, %s1780_s21  ;;  %s1510_s24 = sadd.s32 4294967295, %s1784_s22   ;;  %s1784_s22 = sphi %s1824_s22, %s15_s22   ;;  %s1780_s21 = sphi %s1822_s21, %s2561_s21   ;;  %s1776_s20 = sphi %s1820_s20, %s2560_s20   ;;  %s1772_s19 = sphi %s1818_s19, %s2559_s19   ;;  %s1768_s18 = sphi %s1816_s18, %s2558_s18  }
   0x4   : > { %p25_p0 = scmp.ge.s32.totalorder %s24_s23, 3  ;;  %p109_p1 = scmp.ne.s32.totalorder %s1772_s19, %s1768_s18 }
   0x5   : > { %p110_p2 = scmp.eq.s32.totalorder %s1784_s22, 0  ;;  %p167_p4 = scmp.eq.s32.totalorder %s1510_s24, 2 }
   0x6   : > { %s2563_s23 = smov (%p25_p0, %s24_s23), 0  ;;  %s102_s26 = sadd.s32 1, %s1772_s19 }
   0x7   : > { %p111_p3 = por %p110_p2, %p109_p1  ;;  %s99_s25 = ssub.s32 %s1780_s21, %s2563_s23 }
   0x8   : > { %p100_p5 = scmp.eq.s32.totalorder %s99_s25, 0  ;;  %p1851_p6 = por %p167_p4, %p109_p1 }
   0x9   : > { %p1514_p7 = scmp.ge.s32.totalorder %s1784_s22, 3 }
   0xa   : > { %s1856_s28 = scalar_select %p100_p5, %s1772_s19, %s102_s26  }
   0xb   : > { %205 = sbr.rel (%p1514_p7) target bundleno = 38 (0x26), region = 28 }
  0x12   : > { %208 = sbr.rel (!%p111_p3) target bundleno = 38 (0x26), region = 32  ;;  %s210_s29 = sand.u32 (%p111_p3), 1, %s1772_s19  }
  0x13   : > { %s1576_s30 = sshll.u32 (%p111_p3), %s1780_s21, 3  ;;  %s1515_s6 = sshll.u32 (%p111_p3), %s210_s29, 8 }
  0x14   : > { %s1864_s9 = scalar_lea.vmem (%p111_p3), %s2554_s3, %s1576_s30  ;;  %s1869_s10 = scalar_lea.vmem (%p111_p3), [#allocation3], %s1515_s6 }
  0x15   : > { %v305_v0 = vld [vmem:[%s1864_s9] sm:$0xff] (%p111_p3)  ;;  %v307_v1 = vld [vmem:[%s1864_s9 + $0x18] sm:$0xff] (%p111_p3)  ;;  %v309_v2 = vld [vmem:[%s1864_s9 + $0x30] sm:$0xff] (%p111_p3) }
  0x16   : > { %306 = vst [vmem:[%s1869_s10] sm:$0xff] (%p111_p3), %v305_v0  ;;  %308 = vst [vmem:[%s1869_s10 + $0x8] sm:$0xff] (%p111_p3), %v307_v1  ;;  %v311_v3 = vld [vmem:[%s1864_s9 + $0x48] sm:$0xff] (%p111_p3)  ;;  %v313_v4 = vld [vmem:[%s1864_s9 + $0x60] sm:$0xff] (%p111_p3) }
  0x17   : > { %310 = vst [vmem:[%s1869_s10 + $0x10] sm:$0xff] (%p111_p3), %v309_v2  ;;  %v315_v5 = vld [vmem:[%s1864_s9 + $0x78] sm:$0xff] (%p111_p3)  ;;  %312 = vst [vmem:[%s1869_s10 + $0x18] sm:$0xff] (%p111_p3), %v311_v3  ;;  %v317_v6 = vld [vmem:[%s1864_s9 + $0x90] sm:$0xff] (%p111_p3) }
  0x18   : > { %314 = vst [vmem:[%s1869_s10 + $0x20] sm:$0xff] (%p111_p3), %v313_v4  ;;  %316 = vst [vmem:[%s1869_s10 + $0x28] sm:$0xff] (%p111_p3), %v315_v5  ;;  %v319_v7 = vld [vmem:[%s1864_s9 + $0xa8] sm:$0xff] (%p111_p3)  ;;  %v321_v8 = vld [vmem:[%s1864_s9 + $0xc0] sm:$0xff] (%p111_p3) }
  0x19   : > { %318 = vst [vmem:[%s1869_s10 + $0x30] sm:$0xff] %v317_v6  ;;  %320 = vst [vmem:[%s1869_s10 + $0x38] sm:$0xff] %v319_v7  ;;  %v323_v9 = vld [vmem:[%s1864_s9 + $0xd8] sm:$0xff]  ;;  %v325_v10 = vld [vmem:[%s1864_s9 + $0xf0] sm:$0xff] }
  0x1a   : > { %322 = vst [vmem:[%s1869_s10 + $0x40] sm:$0xff] %v321_v8  ;;  %v327_v11 = vld [vmem:[%s1864_s9 + $0x108] sm:$0xff]  ;;  %324 = vst [vmem:[%s1869_s10 + $0x48] sm:$0xff] %v323_v9  ;;  %v329_v12 = vld [vmem:[%s1864_s9 + $0x120] sm:$0xff] }
  0x1b   : > { %326 = vst [vmem:[%s1869_s10 + $0x50] sm:$0xff] %v325_v10  ;;  %328 = vst [vmem:[%s1869_s10 + $0x58] sm:$0xff] %v327_v11  ;;  %v331_v13 = vld [vmem:[%s1864_s9 + $0x138] sm:$0xff]  ;;  %v333_v14 = vld [vmem:[%s1864_s9 + $0x150] sm:$0xff] }
  0x1c   : > { %330 = vst [vmem:[%s1869_s10 + $0x60] sm:$0xff] %v329_v12  ;;  %332 = vst [vmem:[%s1869_s10 + $0x68] sm:$0xff] %v331_v13  ;;  %v335_v15 = vld [vmem:[%s1864_s9 + $0x168] sm:$0xff]  ;;  %v337_v16 = vld [vmem:[%s1864_s9 + $0x180] sm:$0xff] }
  0x1d   : > { %334 = vst [vmem:[%s1869_s10 + $0x70] sm:$0xff] %v333_v14  ;;  %v339_v17 = vld [vmem:[%s1864_s9 + $0x198] sm:$0xff]  ;;  %336 = vst [vmem:[%s1869_s10 + $0x78] sm:$0xff] %v335_v15  ;;  %v341_v18 = vld [vmem:[%s1864_s9 + $0x1b0] sm:$0xff] }
  0x1e   : > { %338 = vst [vmem:[%s1869_s10 + $0x80] sm:$0xff] %v337_v16  ;;  %340 = vst [vmem:[%s1869_s10 + $0x88] sm:$0xff] %v339_v17  ;;  %v343_v19 = vld [vmem:[%s1864_s9 + $0x1c8] sm:$0xff]  ;;  %v345_v20 = vld [vmem:[%s1864_s9 + $0x1e0] sm:$0xff] }
  0x1f   : > { %342 = vst [vmem:[%s1869_s10 + $0x90] sm:$0xff] %v341_v18  ;;  %344 = vst [vmem:[%s1869_s10 + $0x98] sm:$0xff] %v343_v19  ;;  %v347_v21 = vld [vmem:[%s1864_s9 + $0x1f8] sm:$0xff]  ;;  %v349_v22 = vld [vmem:[%s1864_s9 + $0x210] sm:$0xff] }
  0x20   : > { %346 = vst [vmem:[%s1869_s10 + $0xa0] sm:$0xff] %v345_v20  ;;  %v351_v23 = vld [vmem:[%s1864_s9 + $0x228] sm:$0xff]  ;;  %348 = vst [vmem:[%s1869_s10 + $0xa8] sm:$0xff] %v347_v21  ;;  %v353_v24 = vld [vmem:[%s1864_s9 + $0x240] sm:$0xff] }
  0x21   : > { %350 = vst [vmem:[%s1869_s10 + $0xb0] sm:$0xff] %v349_v22  ;;  %352 = vst [vmem:[%s1869_s10 + $0xb8] sm:$0xff] %v351_v23  ;;  %v355_v25 = vld [vmem:[%s1864_s9 + $0x258] sm:$0xff]  ;;  %v357_v26 = vld [vmem:[%s1864_s9 + $0x270] sm:$0xff] }
  0x22   : > { %354 = vst [vmem:[%s1869_s10 + $0xc0] sm:$0xff] %v353_v24  ;;  %356 = vst [vmem:[%s1869_s10 + $0xc8] sm:$0xff] %v355_v25  ;;  %v359_v27 = vld [vmem:[%s1864_s9 + $0x288] sm:$0xff]  ;;  %v361_v28 = vld [vmem:[%s1864_s9 + $0x2a0] sm:$0xff] }
  0x23   : > { %358 = vst [vmem:[%s1869_s10 + $0xd0] sm:$0xff] %v357_v26  ;;  %v363_v29 = vld [vmem:[%s1864_s9 + $0x2b8] sm:$0xff]  ;;  %360 = vst [vmem:[%s1869_s10 + $0xd8] sm:$0xff] %v359_v27  ;;  %v365_v30 = vld [vmem:[%s1864_s9 + $0x2d0] sm:$0xff] }
  0x24   : > { %362 = vst [vmem:[%s1869_s10 + $0xe0] sm:$0xff] %v361_v28  ;;  %364 = vst [vmem:[%s1869_s10 + $0xe8] sm:$0xff] %v363_v29  ;;  %v367_v31 = vld [vmem:[%s1864_s9 + $0x2e8] sm:$0xff] }
  0x25   : > { %366 = vst [vmem:[%s1869_s10 + $0xf0] sm:$0xff] %v365_v30  ;;  %368 = vst [vmem:[%s1869_s10 + $0xf8] sm:$0xff] %v367_v31 }
  0x26 PF: > { %p1518_p8 = scmp.ge.s32.totalorder %s1784_s22, 1  ;;  %p381_p9 = scmp.lt.s32.totalorder %s1784_s22, 4 }
  0x28   : > { %p382_p10 = pnand %p1518_p8, %p381_p9 }
  0x29   : > { %s388_s11 = sand.u32 (!%p382_p10), 1, %s1768_s18   ;;  %s1521_s12 = sshll.u32 (!%p382_p10), %s1776_s20, 1 }
  0x2a   : > { %385 = sbr.rel (%p382_p10) target bundleno = 728 (0x2d8), region = 74  ;;  %s1519_s13 = sshll.u32 (!%p382_p10), %s388_s11, 8 }
  0x2b   : > { %s1520_s14 = sshll.u32 (!%p382_p10), %s388_s11, 7  ;;  %p433_p11 = scmp.lt.s32.totalorder (!%p382_p10), %s1521_s12, 5 }
  0x2c   : > { %s1942_s24 = scalar_lea.vmem (!%p382_p10), [#allocation3], %s1519_s13  ;;  %s1944_s25 = scalar_lea.vmem (!%p382_p10), [#allocation4], %s1520_s14 }
  0x2d   : > { %p1522_p12 = scmp.ne.s32.totalorder (!%p382_p10), %s1776_s20, 0 }
  0x31   : > { %s2565_s12 = smov (!%p433_p11, %s1521_s12), 5  ;;  %442 = sbr.rel (%p1522_p12) target bundleno = 410 (0x19a), region = 82 }
  0x32   : > { %s435_s17 = scalar_lea.vmem %s2555_s4, %s2565_s12  ;;  %v1950_v32 = vld [vmem:[%s2551_s0] sm:$0xff] (!%p1522_p12)  ;;  %v1955_v33 = vld [vmem:[%s2551_s0 + $0x10] sm:$0xff] (!%p1522_p12)  ;;  %v1960_v34 = vld [vmem:[%s2551_s0 + $0x8] sm:$0xff] (!%p1522_p12) }
  0x33   : > { %v459_v35 = vunpack.c.l.bf16 (!%p1522_p12), %v1950_v32  ;;  %v460_v36 = vunpack.c.h.bf16 (!%p1522_p12), %v1950_v32  ;;  %v463_v37 = vunpack.c.l.bf16 (!%p1522_p12), %v1955_v33  ;;  %v464_v38 = vunpack.c.h.bf16 (!%p1522_p12), %v1955_v33  ;;  %v1969_v39 = vld [vmem:[%s2551_s0 + $0x18] sm:$0xff] (!%p1522_p12)  ;;  %v1974_v40 = vld [vmem:[%s2551_s0 + $0x20] sm:$0xff] (!%p1522_p12)  ;;  %v1983_v45 = vld [vmem:[%s2551_s0 + $0x28] sm:$0xff] (!%p1522_p12) }
  0x34   : > { %v461_v41 = vunpack.c.l.bf16 (!%p1522_p12), %v1960_v34  ;;  %v462_v42 = vunpack.c.h.bf16 (!%p1522_p12), %v1960_v34  ;;  %v465_v43 = vunpack.c.l.bf16 (!%p1522_p12), %v1969_v39  ;;  %v466_v44 = vunpack.c.h.bf16 (!%p1522_p12), %v1969_v39  ;;  %v2008_v54 = vld [vmem:[%s2551_s0 + $0x30] sm:$0xff] (!%p1522_p12)  ;;  %v2013_v55 = vld [vmem:[%s2551_s0 + $0x38] sm:$0xff] (!%p1522_p12)  ;;  %v2030_v62 = vld [vmem:[%s2551_s0 + $0x40] sm:$0xff] (!%p1522_p12) }
  0x35   : > { %v491_v46 = vadd.f32 (!%p1522_p12), %v460_v36, %v459_v35  ;;  %v497_v47 = vadd.f32 (!%p1522_p12), %v464_v38, %v463_v37  ;;  %v467_v48 = vunpack.c.l.bf16 (!%p1522_p12), %v1974_v40  ;;  %v468_v49 = vunpack.c.h.bf16 (!%p1522_p12), %v1974_v40  ;;  %v2035_v63 = vld [vmem:[%s2551_s0 + $0x48] sm:$0xff] (!%p1522_p12)  ;;  %v2052_v6 = vld [vmem:[%s2551_s0 + $0x50] sm:$0xff] (!%p1522_p12)  ;;  %v2057_v7 = vld [vmem:[%s2551_s0 + $0x58] sm:$0xff] (!%p1522_p12) }
  0x36   : > { %v494_v50 = vadd.f32 (!%p1522_p12), %v462_v42, %v461_v41  ;;  %v500_v51 = vadd.f32 (!%p1522_p12), %v466_v44, %v465_v43  ;;  %v469_v52 = vunpack.c.l.bf16 (!%p1522_p12), %v1983_v45  ;;  %v470_v53 = vunpack.c.h.bf16 (!%p1522_p12), %v1983_v45  ;;  %v2074_v14 = vld [vmem:[%s2551_s0 + $0x60] sm:$0xff] (!%p1522_p12)  ;;  %v2079_v15 = vld [vmem:[%s2551_s0 + $0x68] sm:$0xff] (!%p1522_p12)  ;;  %v2096_v22 = vld [vmem:[%s2551_s0 + $0x70] sm:$0xff] (!%p1522_p12) }
  0x37   : > { %492 = vadd.xlane.f32.xlu0 (!%p1522_p12), %v491_v46  ;;  %498 = vadd.xlane.f32.xlu1 (!%p1522_p12), %v497_v47  ;;  %v503_v56 = vadd.f32 (!%p1522_p12), %v468_v49, %v467_v48  ;;  %v471_v57 = vunpack.c.l.bf16 (!%p1522_p12), %v2008_v54  ;;  %v472_v59 = vunpack.c.h.bf16 (!%p1522_p12), %v2008_v54  ;;  %v473_v60 = vunpack.c.l.bf16 (!%p1522_p12), %v2013_v55  ;;  %v2101_v23 = vld [vmem:[%s2551_s0 + $0x78] sm:$0xff] (!%p1522_p12) }
  0x38   : > { %v506_v58 = vadd.f32 %v470_v53, %v469_v52  ;;  %v474_v61 = vunpack.c.h.bf16 %v2013_v55  ;;  %v475_v0 = vunpack.c.l.bf16 %v2030_v62  ;;  %v476_v1 = vunpack.c.h.bf16 %v2030_v62 }
  0x39   : > { %v509_v2 = vadd.f32 %v472_v59, %v471_v57  ;;  %v477_v4 = vunpack.c.l.bf16 %v2035_v63  ;;  %v478_v5 = vunpack.c.h.bf16 %v2035_v63  ;;  %v479_v9 = vunpack.c.l.bf16 %v2052_v6 }
  0x3a   : > { %v512_v3 = vadd.f32 %v474_v61, %v473_v60  ;;  %v515_v8 = vadd.f32 %v476_v1, %v475_v0  ;;  %v480_v11 = vunpack.c.h.bf16 %v2052_v6  ;;  %v481_v12 = vunpack.c.l.bf16 %v2057_v7 }
  0x3b   : > { %495 = vadd.xlane.f32.xlu0 %v494_v50  ;;  %501 = vadd.xlane.f32.xlu1 %v500_v51  ;;  %v518_v10 = vadd.f32 %v478_v5, %v477_v4  ;;  %v482_v13 = vunpack.c.h.bf16 %v2057_v7  ;;  %v483_v16 = vunpack.c.l.bf16 %v2074_v14  ;;  %v484_v17 = vunpack.c.h.bf16 %v2074_v14 }
  0x3c   : > { %v521_v18 = vadd.f32 %v480_v11, %v479_v9  ;;  %v485_v20 = vunpack.c.l.bf16 %v2079_v15  ;;  %v486_v21 = vunpack.c.h.bf16 %v2079_v15  ;;  %v487_v25 = vunpack.c.l.bf16 %v2096_v22 }
  0x3d   : > { %v524_v19 = vadd.f32 %v482_v13, %v481_v12  ;;  %v527_v24 = vadd.f32 %v484_v17, %v483_v16  ;;  %v488_v27 = vunpack.c.h.bf16 %v2096_v22  ;;  %v489_v28 = vunpack.c.l.bf16 %v2101_v23 }
  0x3e   : > { %v530_v26 = vadd.f32 %v486_v21, %v485_v20  ;;  %v490_v29 = vunpack.c.h.bf16 %v2101_v23 }
  0x3f   : > { %504 = vadd.xlane.f32.xlu0 %v503_v56  ;;  %507 = vadd.xlane.f32.xlu1 %v506_v58  ;;  %v533_v30 = vadd.f32 %v488_v27, %v487_v25 }
  0x40   : > { %v536_v31 = vadd.f32 %v490_v29, %v489_v28 }
  0x43   : > { %510 = vadd.xlane.f32.xlu0 %v509_v2  ;;  %513 = vadd.xlane.f32.xlu1 %v512_v3 }
  0x47   : > { %516 = vadd.xlane.f32.xlu0 %v515_v8  ;;  %519 = vadd.xlane.f32.xlu1 %v518_v10 }
  0x4b   : > { %522 = vadd.xlane.f32.xlu0 %v521_v18  ;;  %525 = vadd.xlane.f32.xlu1 %v524_v19 }
  0x4f   : > { %528 = vadd.xlane.f32.xlu0 %v527_v24  ;;  %531 = vadd.xlane.f32.xlu1 %v530_v26 }
  0x53   : > { %534 = vadd.xlane.f32.xlu0 %v533_v30  ;;  %537 = vadd.xlane.f32.xlu1 %v536_v31 }
  0xc4   : > { %v493_v46 = vpop.xlane.xlu0 %492  ;;  %v499_v47 = vpop.xlane.xlu1 %498 }
  0xc5   : > { %v540_v50 = vmul.f32 0.00390625, %v493_v46  ;;  %v542_v51 = vmul.f32 0.00390625, %v499_v47 }
  0xc7   : > { %v2125_v56 = vsub.f32 %v459_v35, %v540_v50  ;;  %v2129_v58 = vsub.f32 %v460_v36, %v540_v50  ;;  %v2133_v2 = vsub.f32 %v463_v37, %v542_v51  ;;  %v2137_v3 = vsub.f32 %v464_v38, %v542_v51 }
  0xc8   : > { %v496_v8 = vpop.xlane.xlu0 %495  ;;  %v502_v10 = vpop.xlane.xlu1 %501 }
  0xc9   : > { %v541_v18 = vmul.f32 0.00390625, %v496_v8  ;;  %v543_v19 = vmul.f32 0.00390625, %v502_v10  ;;  %v588_v35 = vmul.f32 %v2125_v56, %v2125_v56  ;;  %v589_v32 = vmul.f32 %v2129_v58, %v2129_v58 }
  0xca   : > { %v592_v36 = vmul.f32 %v2133_v2, %v2133_v2  ;;  %v593_v37 = vmul.f32 %v2137_v3, %v2137_v3 }
  0xcb   : > { %v2149_v33 = vsub.f32 %v461_v41, %v541_v18  ;;  %v2153_v38 = vsub.f32 %v462_v42, %v541_v18  ;;  %v2157_v24 = vsub.f32 %v465_v43, %v543_v19  ;;  %v2161_v26 = vsub.f32 %v466_v44, %v543_v19 }
  0xcc   : > { %v505_v30 = vpop.xlane.xlu0 %504  ;;  %v620_v31 = vadd.f32 %v589_v32, %v588_v35  ;;  %v508_v46 = vpop.xlane.xlu1 %507  ;;  %v626_v42 = vadd.f32 %v593_v37, %v592_v36 }
  0xcd   : > { %v544_v47 = vmul.f32 0.00390625, %v505_v30  ;;  %v545_v50 = vmul.f32 0.00390625, %v508_v46  ;;  %v590_v41 = vmul.f32 %v2149_v33, %v2149_v33  ;;  %v591_v34 = vmul.f32 %v2153_v38, %v2153_v38 }
  0xce   : > { %621 = vadd.xlane.f32.xlu0 %v620_v31  ;;  %v594_v43 = vmul.f32 %v2157_v24, %v2157_v24  ;;  %v595_v39 = vmul.f32 %v2161_v26, %v2161_v26 }
  0xcf   : > { %v2173_v44 = vsub.f32 %v467_v48, %v544_v47  ;;  %v2177_v51 = vsub.f32 %v468_v49, %v544_v47  ;;  %v2181_v8 = vsub.f32 %v469_v52, %v545_v50  ;;  %v2185_v10 = vsub.f32 %v470_v53, %v545_v50 }
  0xd0   : > { %v511_v18 = vpop.xlane.xlu0 %510  ;;  %v623_v19 = vadd.f32 %v591_v34, %v590_v41  ;;  %v514_v35 = vpop.xlane.xlu1 %513  ;;  %v629_v49 = vadd.f32 %v595_v39, %v594_v43 }
  0xd1   : > { %v546_v32 = vmul.f32 0.00390625, %v511_v18  ;;  %v547_v36 = vmul.f32 0.00390625, %v514_v35  ;;  %v596_v48 = vmul.f32 %v2173_v44, %v2173_v44  ;;  %v597_v40 = vmul.f32 %v2177_v51, %v2177_v51 }
  0xd2   : > { %627 = vadd.xlane.f32.xlu0 %v626_v42  ;;  %624 = vadd.xlane.f32.xlu1 %v623_v19  ;;  %v598_v52 = vmul.f32 %v2181_v8, %v2181_v8  ;;  %v599_v45 = vmul.f32 %v2185_v10, %v2185_v10 }
  0xd3   : > { %v2197_v53 = vsub.f32 %v471_v57, %v546_v32  ;;  %v2201_v37 = vsub.f32 %v472_v59, %v546_v32  ;;  %v2205_v30 = vsub.f32 %v473_v60, %v547_v36  ;;  %v2209_v31 = vsub.f32 %v474_v61, %v547_v36 }
  0xd4   : > { %v517_v46 = vpop.xlane.xlu0 %516  ;;  %v632_v47 = vadd.f32 %v597_v40, %v596_v48  ;;  %v520_v50 = vpop.xlane.xlu1 %519  ;;  %v635_v59 = vadd.f32 %v599_v45, %v598_v52 }
  0xd5   : > { %v548_v41 = vmul.f32 0.00390625, %v517_v46  ;;  %v549_v34 = vmul.f32 0.00390625, %v520_v50  ;;  %v600_v57 = vmul.f32 %v2197_v53, %v2197_v53  ;;  %v601_v54 = vmul.f32 %v2201_v37, %v2201_v37 }
  0xd6   : > { %630 = vadd.xlane.f32.xlu1 %v629_v49  ;;  %633 = vadd.xlane.f32.xlu0 %v632_v47  ;;  %v602_v60 = vmul.f32 %v2205_v30, %v2205_v30  ;;  %v603_v55 = vmul.f32 %v2209_v31, %v2209_v31 }
  0xd7   : > { %v2221_v61 = vsub.f32 %v475_v0, %v548_v41  ;;  %v2225_v42 = vsub.f32 %v476_v1, %v548_v41  ;;  %v2229_v43 = vsub.f32 %v477_v4, %v549_v34  ;;  %v2233_v39 = vsub.f32 %v478_v5, %v549_v34 }
  0xd8   : > { %v523_v18 = vpop.xlane.xlu0 %522  ;;  %v638_v19 = vadd.f32 %v601_v54, %v600_v57  ;;  %v526_v35 = vpop.xlane.xlu1 %525  ;;  %v641_v1 = vadd.f32 %v603_v55, %v602_v60 }
  0xd9   : > { %v550_v32 = vmul.f32 0.00390625, %v523_v18  ;;  %v551_v36 = vmul.f32 0.00390625, %v526_v35  ;;  %v604_v0 = vmul.f32 %v2221_v61, %v2221_v61  ;;  %v605_v62 = vmul.f32 %v2225_v42, %v2225_v42 }
  0xda   : > { %636 = vadd.xlane.f32.xlu1 %v635_v59  ;;  %639 = vadd.xlane.f32.xlu0 %v638_v19  ;;  %v606_v4 = vmul.f32 %v2229_v43, %v2229_v43  ;;  %v607_v63 = vmul.f32 %v2233_v39, %v2233_v39 }
  0xdb   : > { %v2245_v5 = vsub.f32 %v479_v9, %v550_v32  ;;  %v2249_v48 = vsub.f32 %v480_v11, %v550_v32  ;;  %v2253_v40 = vsub.f32 %v481_v12, %v551_v36  ;;  %v2257_v49 = vsub.f32 %v482_v13, %v551_v36 }
  0xdc   : > { %v529_v52 = vpop.xlane.xlu0 %528  ;;  %v644_v45 = vadd.f32 %v605_v62, %v604_v0  ;;  %v532_v46 = vpop.xlane.xlu1 %531  ;;  %v647_v11 = vadd.f32 %v607_v63, %v606_v4  ;;  %v750_v4 = vlaneseq }
  0xdd   : > { %v552_v47 = vmul.f32 0.00390625, %v529_v52  ;;  %v553_v50 = vmul.f32 0.00390625, %v532_v46  ;;  %v608_v9 = vmul.f32 %v2245_v5, %v2245_v5  ;;  %v609_v6 = vmul.f32 %v2249_v48, %v2249_v48 }
  0xde   : > { %642 = vadd.xlane.f32.xlu1 %v641_v1  ;;  %645 = vadd.xlane.f32.xlu0 %v644_v45  ;;  %v610_v12 = vmul.f32 %v2253_v40, %v2253_v40  ;;  %v611_v7 = vmul.f32 %v2257_v49, %v2257_v49 }
  0xdf   : > { %v2269_v13 = vsub.f32 %v483_v16, %v552_v47  ;;  %v2273_v41 = vsub.f32 %v484_v17, %v552_v47  ;;  %v2277_v34 = vsub.f32 %v485_v20, %v553_v50  ;;  %v2281_v57 = vsub.f32 %v486_v21, %v553_v50 }
  0xe0   : > { %v535_v54 = vpop.xlane.xlu0 %534  ;;  %v650_v59 = vadd.f32 %v609_v6, %v608_v9  ;;  %v538_v60 = vpop.xlane.xlu1 %537  ;;  %v653_v17 = vadd.f32 %v611_v7, %v610_v12  ;;  %v751_v50 = vshrl.u32 %v750_v4, 7 }
  0xe1   : > { %v554_v55 = vmul.f32 0.00390625, %v535_v54  ;;  %v555_v18 = vmul.f32 0.00390625, %v538_v60  ;;  %v612_v16 = vmul.f32 %v2269_v13, %v2269_v13  ;;  %v613_v14 = vmul.f32 %v2273_v41, %v2273_v41 }
  0xe2   : > { %648 = vadd.xlane.f32.xlu1 %v647_v11  ;;  %651 = vadd.xlane.f32.xlu0 %v650_v59  ;;  %v614_v20 = vmul.f32 %v2277_v34, %v2277_v34  ;;  %v615_v15 = vmul.f32 %v2281_v57, %v2281_v57  ;;  %v752_v59 = vsub.s32 0, %v751_v50  ;;  %v756_v60 = vsub.s32 1, %v751_v50 }
  0xe3   : > { %v2293_v21 = vsub.f32 %v487_v25, %v554_v55  ;;  %v2297_v19 = vsub.f32 %v488_v27, %v554_v55  ;;  %v2301_v35 = vsub.f32 %v489_v28, %v555_v18  ;;  %v2305_v32 = vsub.f32 %v490_v29, %v555_v18  ;;  %v748_v55 = vld [vmem:[%s2552_s1] sm:$0x3] }
  0xe4   : > { %v656_v36 = vadd.f32 %v613_v14, %v612_v16  ;;  %v659_v22 = vadd.f32 %v615_v15, %v614_v20  ;;  %v792_v20 = vld [vmem:[%s2553_s2] sm:$0x3] }
  0xe5   : > { %v616_v0 = vmul.f32 %v2293_v21, %v2293_v21  ;;  %v617_v25 = vmul.f32 %v2297_v19, %v2297_v19  ;;  %v618_v27 = vmul.f32 %v2301_v35, %v2301_v35  ;;  %v619_v28 = vmul.f32 %v2305_v32, %v2305_v32 }
  0xe6   : > { %654 = vadd.xlane.f32.xlu1 %v653_v17  ;;  %657 = vadd.xlane.f32.xlu0 %v656_v36 }
  0xe7   : > { %v662_v62 = vadd.f32 %v617_v25, %v616_v0  ;;  %v665_v23 = vadd.f32 %v619_v28, %v618_v27  ;;  %v2321_v0 = vrot.slane %v748_v55, %v752_v59  ;;  %v2323_v25 = vrot.slane %v748_v55, %v756_v60 }
  0xea   : > { %660 = vadd.xlane.f32.xlu1 %v659_v22  ;;  %663 = vadd.xlane.f32.xlu0 %v662_v62  ;;  %v2325_v62 = vrot.slane %v792_v20, %v752_v59 }
  0xee   : > { %666 = vadd.xlane.f32.xlu1 %v665_v23 }
 0x15b   : > { %v622_v29 = vpop.xlane.xlu0 %621 }
 0x15c   : > { %v668_v1 = vmul.f32 0.00390625, %v622_v29 }
 0x15e   : > { %v684_v63 = vadd.f32 1e-06, %v668_v1 }
 0x15f   : > { %v625_v52 = vpop.xlane.xlu1 %624  ;;  %v628_v45 = vpop.xlane.xlu0 %627 }
 0x160   : > { %1666 = vrsqrt.f32 %v684_v63  ;;  %v669_v46 = vmul.f32 0.00390625, %v625_v52  ;;  %v670_v47 = vmul.f32 0.00390625, %v628_v45  ;;  %v2329_v45 = vrot.slane %v792_v20, %v756_v60 }
 0x162   : > { %v685_v9 = vadd.f32 1e-06, %v669_v46  ;;  %v686_v6 = vadd.f32 1e-06, %v670_v47 }
 0x163   : > { %v631_v11 = vpop.xlane.xlu1 %630  ;;  %v634_v12 = vpop.xlane.xlu0 %633 }
 0x164   : > { %1668 = vrsqrt.f32 %v685_v9  ;;  %v671_v7 = vmul.f32 0.00390625, %v631_v11  ;;  %v672_v54 = vmul.f32 0.00390625, %v634_v12 }
 0x165   : > { %1670 = vrsqrt.f32 %v686_v6 }
 0x166   : > { %v687_v18 = vadd.f32 1e-06, %v671_v7  ;;  %v688_v16 = vadd.f32 1e-06, %v672_v54 }
 0x167   : > { %v637_v14 = vpop.xlane.xlu1 %636  ;;  %v640_v17 = vpop.xlane.xlu0 %639 }
 0x168   : > { %1672 = vrsqrt.f32 %v687_v18  ;;  %v673_v15 = vmul.f32 0.00390625, %v637_v14  ;;  %v674_v36 = vmul.f32 0.00390625, %v640_v17 }
 0x169   : > { %1674 = vrsqrt.f32 %v688_v16 }
 0x16a   : > { %v1667_v22 = vpop.eup %1666  ;;  %v689_v27 = vadd.f32 1e-06, %v673_v15  ;;  %v690_v28 = vadd.f32 1e-06, %v674_v36 }
 0x16b   : > { %v716_v23 = vmul.f32 %v1667_v22, %v2125_v56  ;;  %v717_v29 = vmul.f32 %v1667_v22, %v2129_v58  ;;  %v643_v1 = vpop.xlane.xlu1 %642  ;;  %v646_v4 = vpop.xlane.xlu0 %645 }
 0x16c   : > { %1676 = vrsqrt.f32 %v689_v27  ;;  %v675_v63 = vmul.f32 0.00390625, %v643_v1  ;;  %v676_v52 = vmul.f32 0.00390625, %v646_v4 }
 0x16d   : > { %v760_v46 = vmul.f32 %v2321_v0, %v716_v23  ;;  %v761_v47 = vmul.f32 %v2323_v25, %v717_v29  ;;  %1678 = vrsqrt.f32 %v690_v28 }
 0x16e   : > { %v1669_v50 = vpop.eup %1668  ;;  %v691_v9 = vadd.f32 1e-06, %v675_v63  ;;  %v692_v6 = vadd.f32 1e-06, %v676_v52 }
 0x16f   : > { %v1671_v11 = vpop.eup %1670  ;;  %v804_v56 = vadd.f32 %v2325_v62, %v760_v46  ;;  %v718_v58 = vmul.f32 %v1669_v50, %v2149_v33  ;;  %v719_v12 = vmul.f32 %v1669_v50, %v2153_v38  ;;  %v649_v7 = vpop.xlane.xlu1 %648  ;;  %v805_v18 = vadd.f32 %v2329_v45, %v761_v47 }
 0x170   : > { %v652_v54 = vpop.xlane.xlu0 %651  ;;  %v720_v59 = vmul.f32 %v1671_v11, %v2133_v2  ;;  %v721_v60 = vmul.f32 %v1671_v11, %v2137_v3  ;;  %1680 = vrsqrt.f32 %v691_v9  ;;  %v677_v55 = vmul.f32 0.00390625, %v649_v7 }
 0x171   : > { %v762_v16 = vmul.f32 %v2321_v0, %v718_v58  ;;  %v763_v14 = vmul.f32 %v2323_v25, %v719_v12  ;;  %1682 = vrsqrt.f32 %v692_v6  ;;  %v678_v15 = vmul.f32 0.00390625, %v652_v54 }
 0x172   : > { %v1673_v17 = vpop.eup %1672  ;;  %v764_v33 = vmul.f32 %v2321_v0, %v720_v59  ;;  %v765_v38 = vmul.f32 %v2323_v25, %v721_v60  ;;  %v693_v20 = vadd.f32 1e-06, %v677_v55 }
 0x173   : > { %v1675_v36 = vpop.eup %1674  ;;  %v806_v2 = vadd.f32 %v2325_v62, %v762_v16  ;;  %v807_v3 = vadd.f32 %v2329_v45, %v763_v14  ;;  %v722_v22 = vmul.f32 %v1673_v17, %v2157_v24  ;;  %v723_v27 = vmul.f32 %v1673_v17, %v2161_v26  ;;  %v655_v28 = vpop.xlane.xlu1 %654 }
 0x174   : > { %v808_v23 = vadd.f32 %v2325_v62, %v764_v33  ;;  %v809_v29 = vadd.f32 %v2329_v45, %v765_v38  ;;  %v724_v1 = vmul.f32 %v1675_v36, %v2173_v44  ;;  %v725_v4 = vmul.f32 %v1675_v36, %v2177_v51  ;;  %v658_v6 = vpop.xlane.xlu0 %657 }
 0x175   : > { %v836_v63 = vpack.c.bf16 %v806_v2, %v804_v56  ;;  %v837_v52 = vpack.c.bf16 %v807_v3, %v805_v18  ;;  %v766_v46 = vmul.f32 %v2321_v0, %v722_v22  ;;  %v767_v47 = vmul.f32 %v2323_v25, %v723_v27 }
 0x176   : > { %v1677_v50 = vpop.eup %1676  ;;  %v768_v24 = vmul.f32 %v2321_v0, %v724_v1  ;;  %v769_v26 = vmul.f32 %v2323_v25, %v725_v4  ;;  %1684 = vrsqrt.f32 %v693_v20  ;;  %v694_v9 = vadd.f32 1e-06, %v678_v15 }
 0x177   : > { %v1679_v11 = vpop.eup %1678  ;;  %852 = vst [vmem:[#allocation2] sm:$0xff] %v836_v63  ;;  %853 = vst [vmem:[#allocation2 + $0x8] sm:$0xff] %v837_v52  ;;  %v810_v44 = vadd.f32 %v2325_v62, %v766_v46  ;;  %v811_v51 = vadd.f32 %v2329_v45, %v767_v47  ;;  %v726_v56 = vmul.f32 %v1677_v50, %v2181_v8  ;;  %v661_v14 = vpop.xlane.xlu1 %660  ;;  %v679_v33 = vmul.f32 0.00390625, %v655_v28 }
 0x178   : > { %v727_v58 = vmul.f32 %v1677_v50, %v2185_v10  ;;  %v812_v12 = vadd.f32 %v2325_v62, %v768_v24  ;;  %v813_v7 = vadd.f32 %v2329_v45, %v769_v26  ;;  %v728_v54 = vmul.f32 %v1679_v11, %v2197_v53  ;;  %v664_v3 = vpop.xlane.xlu0 %663 }
 0x179   : > { %v729_v59 = vmul.f32 %v1679_v11, %v2201_v37  ;;  %v838_v60 = vpack.c.bf16 %v810_v44, %v808_v23  ;;  %v839_v55 = vpack.c.bf16 %v811_v51, %v809_v29  ;;  %v770_v18 = vmul.f32 %v2321_v0, %v726_v56 }
 0x17a   : > { %v771_v16 = vmul.f32 %v2323_v25, %v727_v58  ;;  %v1681_v17 = vpop.eup %1680  ;;  %v772_v8 = vmul.f32 %v2321_v0, %v728_v54  ;;  %1686 = vrsqrt.f32 %v694_v9  ;;  %v695_v4 = vadd.f32 1e-06, %v679_v33 }
 0x17b   : > { %v773_v10 = vmul.f32 %v2323_v25, %v729_v59  ;;  %v1683_v38 = vpop.eup %1682  ;;  %854 = vst [vmem:[#allocation2 + $0x10] sm:$0xff] %v838_v60  ;;  %855 = vst [vmem:[#allocation2 + $0x18] sm:$0xff] %v839_v55  ;;  %v814_v53 = vadd.f32 %v2325_v62, %v770_v18  ;;  %v730_v20 = vmul.f32 %v1681_v17, %v2205_v30  ;;  %v680_v63 = vmul.f32 0.00390625, %v658_v6  ;;  %v667_v52 = vpop.xlane.xlu1 %666 }
 0x17c   : > { %v815_v37 = vadd.f32 %v2329_v45, %v771_v16  ;;  %v731_v15 = vmul.f32 %v1681_v17, %v2209_v31  ;;  %v732_v36 = vmul.f32 %v1683_v38, %v2221_v61  ;;  %v733_v2 = vmul.f32 %v1683_v38, %v2225_v42 }
 0x17d   : > { %v840_v22 = vpack.c.bf16 %v814_v53, %v812_v12  ;;  %v774_v28 = vmul.f32 %v2321_v0, %v730_v20  ;;  %v816_v29 = vadd.f32 %v2325_v62, %v772_v8  ;;  %v817_v1 = vadd.f32 %v2329_v45, %v773_v10 }
 0x17e   : > { %v841_v27 = vpack.c.bf16 %v815_v37, %v813_v7  ;;  %v775_v23 = vmul.f32 %v2323_v25, %v731_v15  ;;  %v681_v61 = vmul.f32 0.00390625, %v661_v14  ;;  %v682_v42 = vmul.f32 0.00390625, %v664_v3 }
 0x17f   : > { %856 = vst [vmem:[#allocation2 + $0x20] sm:$0xff] %v840_v22  ;;  %v818_v30 = vadd.f32 %v2325_v62, %v774_v28  ;;  %v776_v47 = vmul.f32 %v2321_v0, %v732_v36  ;;  %v777_v50 = vmul.f32 %v2323_v25, %v733_v2  ;;  %1688 = vrsqrt.f32 %v695_v4 }
 0x180   : > { %857 = vst [vmem:[#allocation2 + $0x28] sm:$0xff] %v841_v27  ;;  %v819_v31 = vadd.f32 %v2329_v45, %v775_v23  ;;  %v1685_v46 = vpop.eup %1684  ;;  %v696_v24 = vadd.f32 1e-06, %v680_v63  ;;  %v697_v44 = vadd.f32 1e-06, %v681_v61  ;;  %v683_v56 = vmul.f32 0.00390625, %v667_v52 }
 0x181   : > { %v842_v26 = vpack.c.bf16 %v818_v30, %v816_v29  ;;  %v734_v6 = vmul.f32 %v1685_v46, %v2229_v43  ;;  %v735_v11 = vmul.f32 %v1685_v46, %v2233_v39  ;;  %v698_v51 = vadd.f32 1e-06, %v682_v42 }
 0x182   : > { %v843_v9 = vpack.c.bf16 %v819_v31, %v817_v1  ;;  %1690 = vrsqrt.f32 %v696_v24  ;;  %v699_v54 = vadd.f32 1e-06, %v683_v56  ;;  %v820_v59 = vadd.f32 %v2325_v62, %v776_v47 }
 0x183   : > { %858 = vst [vmem:[#allocation2 + $0x30] sm:$0xff] %v842_v26  ;;  %v778_v58 = vmul.f32 %v2321_v0, %v734_v6  ;;  %v779_v12 = vmul.f32 %v2323_v25, %v735_v11  ;;  %1692 = vrsqrt.f32 %v697_v44  ;;  %v821_v60 = vadd.f32 %v2329_v45, %v777_v50 }
 0x184   : > { %859 = vst [vmem:[#allocation2 + $0x38] sm:$0xff] %v843_v9  ;;  %v1687_v7 = vpop.eup %1686  ;;  %1694 = vrsqrt.f32 %v698_v51 }
 0x185   : > { %v822_v43 = vadd.f32 %v2325_v62, %v778_v58  ;;  %v823_v39 = vadd.f32 %v2329_v45, %v779_v12  ;;  %v736_v55 = vmul.f32 %v1687_v7, %v2245_v5  ;;  %v737_v18 = vmul.f32 %v1687_v7, %v2249_v48 }
 0x186   : > { %1696 = vrsqrt.f32 %v699_v54 }
 0x187   : > { %v844_v16 = vpack.c.bf16 %v822_v43, %v820_v59  ;;  %v845_v14 = vpack.c.bf16 %v823_v39, %v821_v60  ;;  %v780_v8 = vmul.f32 %v2321_v0, %v736_v55  ;;  %v781_v10 = vmul.f32 %v2323_v25, %v737_v18 }
 0x189   : > { %860 = vst [vmem:[#allocation2 + $0x40] sm:$0xff] %v844_v16  ;;  %861 = vst [vmem:[#allocation2 + $0x48] sm:$0xff] %v845_v14  ;;  %v1689_v17 = vpop.eup %1688  ;;  %v824_v36 = vadd.f32 %v2325_v62, %v780_v8  ;;  %v825_v2 = vadd.f32 %v2329_v45, %v781_v10 }
 0x18a   : > { %v738_v33 = vmul.f32 %v1689_v17, %v2253_v40  ;;  %v739_v38 = vmul.f32 %v1689_v17, %v2257_v49 }
 0x18c   : > { %v1691_v53 = vpop.eup %1690  ;;  %v782_v5 = vmul.f32 %v2321_v0, %v738_v33  ;;  %v783_v48 = vmul.f32 %v2323_v25, %v739_v38 }
 0x18d   : > { %v740_v37 = vmul.f32 %v1691_v53, %v2269_v13  ;;  %v741_v20 = vmul.f32 %v1691_v53, %v2273_v41  ;;  %v1693_v15 = vpop.eup %1692 }
 0x18e   : > { %v826_v3 = vadd.f32 %v2325_v62, %v782_v5  ;;  %v827_v40 = vadd.f32 %v2329_v45, %v783_v48  ;;  %v1695_v27 = vpop.eup %1694  ;;  %v742_v28 = vmul.f32 %v1693_v15, %v2277_v34  ;;  %v743_v13 = vmul.f32 %v1693_v15, %v2281_v57 }
 0x18f   : > { %v784_v49 = vmul.f32 %v2321_v0, %v740_v37  ;;  %v785_v22 = vmul.f32 %v2323_v25, %v741_v20  ;;  %v744_v63 = vmul.f32 %v1695_v27, %v2293_v21  ;;  %v745_v30 = vmul.f32 %v1695_v27, %v2297_v19 }
 0x190   : > { %v846_v23 = vpack.c.bf16 %v826_v3, %v824_v36  ;;  %v847_v41 = vpack.c.bf16 %v827_v40, %v825_v2  ;;  %v1697_v29 = vpop.eup %1696  ;;  %v786_v1 = vmul.f32 %v2321_v0, %v742_v28  ;;  %v787_v4 = vmul.f32 %v2323_v25, %v743_v13 }
 0x191   : > { %v828_v31 = vadd.f32 %v2325_v62, %v784_v49  ;;  %v829_v61 = vadd.f32 %v2329_v45, %v785_v22  ;;  %v746_v34 = vmul.f32 %v1697_v29, %v2301_v35  ;;  %v747_v57 = vmul.f32 %v1697_v29, %v2305_v32 }
 0x192   : > { %862 = vst [vmem:[#allocation2 + $0x50] sm:$0xff] %v846_v23  ;;  %863 = vst [vmem:[#allocation2 + $0x58] sm:$0xff] %v847_v41  ;;  %v830_v42 = vadd.f32 %v2325_v62, %v786_v1  ;;  %v831_v52 = vadd.f32 %v2329_v45, %v787_v4  ;;  %v788_v46 = vmul.f32 %v2321_v0, %v744_v63 }
 0x193   : > { %v789_v21 = vmul.f32 %v2323_v25, %v745_v30  ;;  %v790_v19 = vmul.f32 %v2321_v0, %v746_v34  ;;  %v791_v47 = vmul.f32 %v2323_v25, %v747_v57 }
 0x194   : > { %v848_v50 = vpack.c.bf16 %v830_v42, %v828_v31  ;;  %v849_v24 = vpack.c.bf16 %v831_v52, %v829_v61  ;;  %v832_v26 = vadd.f32 %v2325_v62, %v788_v46 }
 0x195   : > { %v833_v35 = vadd.f32 %v2329_v45, %v789_v21  ;;  %v834_v32 = vadd.f32 %v2325_v62, %v790_v19  ;;  %v835_v9 = vadd.f32 %v2329_v45, %v791_v47 }
 0x196   : > { %864 = vst [vmem:[#allocation2 + $0x60] sm:$0xff] %v848_v50  ;;  %865 = vst [vmem:[#allocation2 + $0x68] sm:$0xff] %v849_v24 }
 0x197   : > { %v850_v6 = vpack.c.bf16 %v834_v32, %v832_v26  ;;  %v851_v11 = vpack.c.bf16 %v835_v9, %v833_v35 }
 0x199   : > { %866 = vst [vmem:[#allocation2 + $0x70] sm:$0xff] %v850_v6  ;;  %867 = vst [vmem:[#allocation2 + $0x78] sm:$0xff] %v851_v11 }
 0x19a PF: > { %v1698_v0 = vld [vmem:[%s1942_s24 + $0x4] ss:$8 sps:$4 sm:$0xff]   ;;  %v1700_v25 = vld [vmem:[%s1942_s24] ss:$8 sps:$4 sm:$0xff]   ;;  %v1701_v62 = vld [vmem:[%s1942_s24 + $0x14] ss:$8 sps:$4 sm:$0xff]   ;;  %v918_v34 = vlaneseq }
 0x19b   : > { %1088 = vmatprep.subr.bf16.mxu0 %v1698_v0  ;;  %1594 = vmatprep.subr.bf16.mxu1 %v1698_v0  ;;  %v1703_v45 = vld [vmem:[%s1942_s24 + $0x10] ss:$8 sps:$4 sm:$0xff]   ;;  %v1704_v44 = vld [vmem:[%s1942_s24 + $0x24] ss:$8 sps:$4 sm:$0xff]   ;;  %v1706_v51 = vld [vmem:[%s1942_s24 + $0x20] ss:$8 sps:$4 sm:$0xff]  }
 0x19c   : > { %1089 = vmatpush1.bf16.msra.mxu0 %v1700_v25  ;;  %1610 = vmatpush1.bf16.msra.mxu1 %v1700_v25  ;;  %v1707_v56 = vld [vmem:[%s1942_s24 + $0x34] ss:$8 sps:$4 sm:$0xff]   ;;  %v1709_v58 = vld [vmem:[%s1942_s24 + $0x30] ss:$8 sps:$4 sm:$0xff]   ;;  %v1710_v12 = vld [vmem:[%s1942_s24 + $0x44] ss:$8 sps:$4 sm:$0xff]  }
 0x19d   : > { %1090 = vmatprep.subr.bf16.mxu0 %v1701_v62  ;;  %1595 = vmatprep.subr.bf16.mxu1 %v1701_v62  ;;  %v1712_v7 = vld [vmem:[%s1942_s24 + $0x40] ss:$8 sps:$4 sm:$0xff]   ;;  %v1713_v54 = vld [vmem:[%s1942_s24 + $0x54] ss:$8 sps:$4 sm:$0xff]   ;;  %v1715_v59 = vld [vmem:[%s1942_s24 + $0x50] ss:$8 sps:$4 sm:$0xff]  }
 0x19e   : > { %v1716_v60 = vld [vmem:[%s1942_s24 + $0x64] ss:$8 sps:$4 sm:$0xff]   ;;  %v1718_v55 = vld [vmem:[%s1942_s24 + $0x60] ss:$8 sps:$4 sm:$0xff]   ;;  %v1719_v18 = vld [vmem:[%s1942_s24 + $0x74] ss:$8 sps:$4 sm:$0xff]  }
 0x19f   : > { %v869_v43 = vld [vmem:[#allocation2 + $0x8] sm:$0xff]  ;;  %v1721_v16 = vld [vmem:[%s1942_s24 + $0x70] ss:$8 sps:$4 sm:$0xff]   ;;  %v1725_v8 = vld [vmem:[%s1942_s24 + $0x94] ss:$8 sps:$4 sm:$0xff]   ;;  %v919_v57 = vshrl.u32 %v918_v34, 7 }
 0x1a0   : > { %1091 = vmatpush1.bf16.msra.mxu0 %v1703_v45  ;;  %1611 = vmatpush1.bf16.msra.mxu1 %v1703_v45  ;;  %v877_v39 = vld [vmem:[#allocation2 + $0x48] sm:$0xff]  ;;  %v1727_v10 = vld [vmem:[%s1942_s24 + $0x90] ss:$8 sps:$4 sm:$0xff]   ;;  %v1731_v53 = vld [vmem:[%s1942_s24 + $0xb4] ss:$8 sps:$4 sm:$0xff]   ;;  %s1593_s12 = sshll.u32 (%p1851_p6), %s1776_s20, 3 }
 0x1a1   : > { %1092 = vmatprep.subr.bf16.mxu0 %v1704_v44  ;;  %1596 = vmatprep.subr.bf16.mxu1 %v1704_v44  ;;  %v1722_v14 = vld [vmem:[%s1942_s24 + $0x84] ss:$8 sps:$4 sm:$0xff]   ;;  %v1724_v17 = vld [vmem:[%s1942_s24 + $0x80] ss:$8 sps:$4 sm:$0xff]   ;;  %v1733_v5 = vld [vmem:[%s1942_s24 + $0xb0] ss:$8 sps:$4 sm:$0xff]   ;;  %s1325_s13 = scalar_lea.vmem (%p1851_p6), %s2556_s5, %s1593_s12 }
 0x1a2   : > { %1120 = vmatprep.mubr.bf16.mxu0 %v869_v43  ;;  %1160 = vmatprep.mubr.bf16.mxu1 %v877_v39  ;;  %v1728_v33 = vld [vmem:[%s1942_s24 + $0xa4] ss:$8 sps:$4 sm:$0xff]   ;;  %v1730_v38 = vld [vmem:[%s1942_s24 + $0xa0] ss:$8 sps:$4 sm:$0xff]   ;;  %v1737_v20 = vld [vmem:[%s1942_s24 + $0xd4] ss:$8 sps:$4 sm:$0xff]  }
 0x1a3   : > { %v1734_v48 = vld [vmem:[%s1942_s24 + $0xc4] ss:$8 sps:$4 sm:$0xff]   ;;  %v1736_v37 = vld [vmem:[%s1942_s24 + $0xc0] ss:$8 sps:$4 sm:$0xff]   ;;  %v1739_v15 = vld [vmem:[%s1942_s24 + $0xd0] ss:$8 sps:$4 sm:$0xff]  }
 0x1a4   : > { %1093 = vmatpush1.bf16.msra.mxu0 %v1706_v51  ;;  %1612 = vmatpush1.bf16.msra.mxu1 %v1706_v51  ;;  %v1740_v36 = vld [vmem:[%s1942_s24 + $0xe4] ss:$8 sps:$4 sm:$0xff]   ;;  %v1742_v2 = vld [vmem:[%s1942_s24 + $0xe0] ss:$8 sps:$4 sm:$0xff]   ;;  %v1743_v3 = vld [vmem:[%s1942_s24 + $0xf4] ss:$8 sps:$4 sm:$0xff]  }
 0x1a5   : > { %1094 = vmatprep.subr.bf16.mxu0 %v1707_v56  ;;  %1597 = vmatprep.subr.bf16.mxu1 %v1707_v56  ;;  %v1745_v40 = vld [vmem:[%s1942_s24 + $0xf0] ss:$8 sps:$4 sm:$0xff]   ;;  %v868_v49 = vld [vmem:[#allocation2] sm:$0xff]  ;;  %v873_v41 = vld [vmem:[#allocation2 + $0x28] sm:$0xff]  ;;  %v920_v42 = vsub.s32 0, %v919_v57  ;;  %v924_v46 = vsub.s32 1, %v919_v57 }
 0x1a6   : > { %v876_v22 = vld [vmem:[#allocation2 + $0x40] sm:$0xff]  ;;  %v871_v27 = vld [vmem:[#allocation2 + $0x18] sm:$0xff]  ;;  %v870_v13 = vld [vmem:[#allocation2 + $0x10] sm:$0xff] }
 0x1a7   : > { %v879_v28 = vld [vmem:[#allocation2 + $0x58] sm:$0xff]  ;;  %v878_v23 = vld [vmem:[#allocation2 + $0x50] sm:$0xff]  ;;  %v881_v29 = vld [vmem:[#allocation2 + $0x68] sm:$0xff] }
 0x1a8   : > { %1095 = vmatpush1.bf16.msra.mxu0 %v1709_v58  ;;  %1613 = vmatpush1.bf16.msra.mxu1 %v1709_v58  ;;  %v872_v1 = vld [vmem:[#allocation2 + $0x20] sm:$0xff]  ;;  %v875_v63 = vld [vmem:[#allocation2 + $0x38] sm:$0xff]  ;;  %v874_v31 = vld [vmem:[#allocation2 + $0x30] sm:$0xff] }
 0x1a9   : > { %1096 = vmatprep.subr.bf16.mxu0 %v1710_v12  ;;  %1598 = vmatprep.subr.bf16.mxu1 %v1710_v12  ;;  %v880_v4 = vld [vmem:[#allocation2 + $0x60] sm:$0xff]  ;;  %v883_v30 = vld [vmem:[#allocation2 + $0x78] sm:$0xff]  ;;  %v882_v61 = vld [vmem:[#allocation2 + $0x70] sm:$0xff] }
 0x1aa   : > { %v916_v52 = vld [vmem:[%s435_s17] sm:$0x3] }
 0x1ab   : > { %v2462_v21 = vrot.slane %v916_v52, %v920_v42  ;;  %v2464_v19 = vrot.slane %v916_v52, %v924_v46 }
 0x1ac   : > { %1097 = vmatpush1.bf16.msra.mxu0 %v1712_v7  ;;  %1614 = vmatpush1.bf16.msra.mxu1 %v1712_v7 }
 0x1ad   : > { %1098 = vmatprep.subr.bf16.mxu0 %v1713_v54  ;;  %1599 = vmatprep.subr.bf16.mxu1 %v1713_v54 }
 0x1b0   : > { %1099 = vmatpush1.bf16.msra.mxu0 %v1715_v59  ;;  %1615 = vmatpush1.bf16.msra.mxu1 %v1715_v59 }
 0x1b1   : > { %1100 = vmatprep.subr.bf16.mxu0 %v1716_v60  ;;  %1600 = vmatprep.subr.bf16.mxu1 %v1716_v60 }
 0x1b4   : > { %1101 = vmatpush1.bf16.msra.mxu0 %v1718_v55  ;;  %1616 = vmatpush1.bf16.msra.mxu1 %v1718_v55 }
 0x1b5   : > { %1102 = vmatprep.subr.bf16.mxu0 %v1719_v18  ;;  %1601 = vmatprep.subr.bf16.mxu1 %v1719_v18 }
 0x1b8   : > { %1103 = vmatpush1.bf16.msra.mxu0 %v1721_v16  ;;  %1617 = vmatpush1.bf16.msra.mxu1 %v1721_v16 }
 0x1b9   : > { %1104 = vmatprep.subr.bf16.mxu0 %v1722_v14  ;;  %1602 = vmatprep.subr.bf16.mxu1 %v1722_v14 }
 0x1bc   : > { %1105 = vmatpush1.bf16.msra.mxu0 %v1724_v17  ;;  %1618 = vmatpush1.bf16.msra.mxu1 %v1724_v17 }
 0x1bd   : > { %1106 = vmatprep.subr.bf16.mxu0 %v1725_v8  ;;  %1603 = vmatprep.subr.bf16.mxu1 %v1725_v8 }
 0x1c0   : > { %1107 = vmatpush1.bf16.msra.mxu0 %v1727_v10  ;;  %1619 = vmatpush1.bf16.msra.mxu1 %v1727_v10 }
 0x1c1   : > { %1108 = vmatprep.subr.bf16.mxu0 %v1728_v33  ;;  %1604 = vmatprep.subr.bf16.mxu1 %v1728_v33 }
 0x1c4   : > { %1109 = vmatpush1.bf16.msra.mxu0 %v1730_v38  ;;  %1620 = vmatpush1.bf16.msra.mxu1 %v1730_v38 }
 0x1c5   : > { %1110 = vmatprep.subr.bf16.mxu0 %v1731_v53  ;;  %1605 = vmatprep.subr.bf16.mxu1 %v1731_v53 }
 0x1c8   : > { %1111 = vmatpush1.bf16.msra.mxu0 %v1733_v5  ;;  %1621 = vmatpush1.bf16.msra.mxu1 %v1733_v5 }
 0x1c9   : > { %1112 = vmatprep.subr.bf16.mxu0 %v1734_v48  ;;  %1606 = vmatprep.subr.bf16.mxu1 %v1734_v48 }
 0x1cc   : > { %1113 = vmatpush1.bf16.msra.mxu0 %v1736_v37  ;;  %1622 = vmatpush1.bf16.msra.mxu1 %v1736_v37 }
 0x1cd   : > { %1114 = vmatprep.subr.bf16.mxu0 %v1737_v20  ;;  %1607 = vmatprep.subr.bf16.mxu1 %v1737_v20 }
 0x1d0   : > { %1115 = vmatpush1.bf16.msra.mxu0 %v1739_v15  ;;  %1623 = vmatpush1.bf16.msra.mxu1 %v1739_v15 }
 0x1d1   : > { %1116 = vmatprep.subr.bf16.mxu0 %v1740_v36  ;;  %1608 = vmatprep.subr.bf16.mxu1 %v1740_v36 }
 0x1d4   : > { %1117 = vmatpush1.bf16.msra.mxu0 %v1742_v2  ;;  %1624 = vmatpush1.bf16.msra.mxu1 %v1742_v2 }
 0x1d5   : > { %1118 = vmatprep.subr.bf16.mxu0 %v1743_v3  ;;  %1609 = vmatprep.subr.bf16.mxu1 %v1743_v3 }
 0x1d8   : > { %1119 = vmatpush1.bf16.msra.mxu0 %v1745_v40  ;;  %1625 = vmatpush1.bf16.msra.mxu1 %v1745_v40 }
 0x1db   : > { %1121 = vmatmul.mubr.bf16.vlgmr.msra.gmra.mrb[0].mxu0 %v868_v49  ;;  %1161 = vmatmul.mubr.bf16.vlgmr.msra.gmra.mrb[0].mxu1 %v876_v22 }
 0x1dc   : > { %1130 = vmatprep.mubr.bf16.mxu0 %v871_v27  ;;  %1170 = vmatprep.mubr.bf16.mxu1 %v879_v28 }
 0x1e3   : > { %1131 = vmatmul.mubr.bf16.gmra.mrb[4].mxu0 %v870_v13  ;;  %1171 = vmatmul.mubr.bf16.gmra.mrb[4].mxu1 %v878_v23 }
 0x1e4   : > { %1140 = vmatprep.mubr.bf16.mxu0 %v873_v41  ;;  %1180 = vmatprep.mubr.bf16.mxu1 %v881_v29 }
 0x1eb   : > { %1141 = vmatmul.mubr.bf16.gmra.mrb[8].mxu0 %v872_v1  ;;  %1181 = vmatmul.mubr.bf16.gmra.mrb[8].mxu1 %v880_v4 }
 0x1ec   : > { %1150 = vmatprep.mubr.bf16.mxu0 %v875_v63  ;;  %1190 = vmatprep.mubr.bf16.mxu1 %v883_v30 }
 0x1f3   : > { %1151 = vmatmul.mubr.bf16.gmra.mrb[12].mxu0 %v874_v31  ;;  %1191 = vmatmul.mubr.bf16.gmra.mrb[12].mxu1 %v882_v61 }
 0x2ae   : > { %v1122_v47 = vpop.f32.mrb[0].mxu0  ;;  %v1162_v50 = vpop.f32.mrb[0].mxu1 }
 0x2af   : > { %v1123_v24 = vadd.f32 %v1122_v47, %v2462_v21  ;;  %v1163_v26 = vadd.f32 %v1162_v50, %v2462_v21  ;;  %v1124_v35 = vpop.f32.mrb[1].mxu0  ;;  %v1164_v32 = vpop.f32.mrb[1].mxu1 }
 0x2b0   : > { %v1125_v9 = vadd.f32 %v1124_v35, %v2464_v19  ;;  %v1165_v6 = vadd.f32 %v1164_v32, %v2464_v19  ;;  %v1126_v11 = vpop.f32.mrb[2].mxu0  ;;  %v1166_v0 = vpop.f32.mrb[2].mxu1 }
 0x2b1   : > { %v1127_v25 = vadd.f32 %v1126_v11, %v2462_v21  ;;  %v1167_v62 = vadd.f32 %v1166_v0, %v2462_v21  ;;  %v1128_v45 = vpop.f32.mrb[3].mxu0  ;;  %v1168_v44 = vpop.f32.mrb[3].mxu1 }
 0x2b2   : > { %v1577_v51 = vpack.c.bf16 %v1125_v9, %v1123_v24  ;;  %v1585_v56 = vpack.c.bf16 %v1165_v6, %v1163_v26  ;;  %v1129_v58 = vadd.f32 %v1128_v45, %v2464_v19  ;;  %v1169_v12 = vadd.f32 %v1168_v44, %v2464_v19 }
 0x2b4   : > { %1297 = vst [vmem:[%s1944_s25] sm:$0xff] %v1577_v51  ;;  %1305 = vst [vmem:[%s1944_s25 + $0x40] sm:$0xff] %v1585_v56  ;;  %v1578_v7 = vpack.c.bf16 %v1129_v58, %v1127_v25  ;;  %v1586_v54 = vpack.c.bf16 %v1169_v12, %v1167_v62 }
 0x2b6   : > { %1298 = vst [vmem:[%s1944_s25 + $0x8] sm:$0xff] %v1578_v7  ;;  %1306 = vst [vmem:[%s1944_s25 + $0x48] sm:$0xff] %v1586_v54  ;;  %v1132_v59 = vpop.f32.mrb[4].mxu0  ;;  %v1172_v60 = vpop.f32.mrb[4].mxu1 }
 0x2b7   : > { %v1133_v43 = vadd.f32 %v1132_v59, %v2462_v21  ;;  %v1173_v39 = vadd.f32 %v1172_v60, %v2462_v21  ;;  %v1134_v55 = vpop.f32.mrb[5].mxu0  ;;  %v1174_v18 = vpop.f32.mrb[5].mxu1 }
 0x2b8   : > { %v1135_v16 = vadd.f32 %v1134_v55, %v2464_v19  ;;  %v1175_v14 = vadd.f32 %v1174_v18, %v2464_v19  ;;  %v1136_v17 = vpop.f32.mrb[6].mxu0  ;;  %v1176_v8 = vpop.f32.mrb[6].mxu1 }
 0x2b9   : > { %v1137_v10 = vadd.f32 %v1136_v17, %v2462_v21  ;;  %v1177_v33 = vadd.f32 %v1176_v8, %v2462_v21  ;;  %v1138_v38 = vpop.f32.mrb[7].mxu0  ;;  %v1178_v53 = vpop.f32.mrb[7].mxu1 }
 0x2ba   : > { %v1579_v5 = vpack.c.bf16 %v1135_v16, %v1133_v43  ;;  %v1587_v48 = vpack.c.bf16 %v1175_v14, %v1173_v39  ;;  %v1139_v37 = vadd.f32 %v1138_v38, %v2464_v19  ;;  %v1179_v20 = vadd.f32 %v1178_v53, %v2464_v19 }
 0x2bb   : > { %v1399_v55 = vld [vmem:[%s1944_s25 + $0x40] sm:$0xff] (%p1851_p6) }
 0x2bc   : > { %1299 = vst [vmem:[%s1944_s25 + $0x10] sm:$0xff] %v1579_v5  ;;  %1307 = vst [vmem:[%s1944_s25 + $0x50] sm:$0xff] %v1587_v48  ;;  %v1580_v15 = vpack.c.bf16 %v1139_v37, %v1137_v10  ;;  %v1588_v36 = vpack.c.bf16 %v1179_v20, %v1177_v33 }
 0x2bd   : > { %1400 = vst [vmem:[%s1325_s13 + $0xc0] sm:$0xff] (%p1851_p6), %v1399_v55  ;;  %v1401_v18 = vld [vmem:[%s1944_s25 + $0x48] sm:$0xff] (%p1851_p6) }
 0x2be   : > { %1300 = vst [vmem:[%s1944_s25 + $0x18] sm:$0xff] %v1580_v15  ;;  %1308 = vst [vmem:[%s1944_s25 + $0x58] sm:$0xff] %v1588_v36  ;;  %v1142_v2 = vpop.f32.mrb[8].mxu0  ;;  %v1182_v3 = vpop.f32.mrb[8].mxu1 }
 0x2bf   : > { %v1143_v40 = vadd.f32 %v1142_v2, %v2462_v21  ;;  %v1183_v49 = vadd.f32 %v1182_v3, %v2462_v21  ;;  %v1144_v22 = vpop.f32.mrb[9].mxu0  ;;  %v1184_v27 = vpop.f32.mrb[9].mxu1  ;;  %1402 = vst [vmem:[%s1325_s13 + $0xd8] sm:$0xff] (%p1851_p6), %v1401_v18 }
 0x2c0   : > { %v1145_v28 = vadd.f32 %v1144_v22, %v2464_v19  ;;  %v1185_v13 = vadd.f32 %v1184_v27, %v2464_v19  ;;  %v1146_v23 = vpop.f32.mrb[10].mxu0  ;;  %v1186_v41 = vpop.f32.mrb[10].mxu1 }
 0x2c1   : > { %v1147_v29 = vadd.f32 %v1146_v23, %v2462_v21  ;;  %v1187_v1 = vadd.f32 %v1186_v41, %v2462_v21  ;;  %v1148_v4 = vpop.f32.mrb[11].mxu0  ;;  %v1188_v63 = vpop.f32.mrb[11].mxu1 }
 0x2c2   : > { %v1581_v30 = vpack.c.bf16 %v1145_v28, %v1143_v40  ;;  %v1589_v31 = vpack.c.bf16 %v1185_v13, %v1183_v49  ;;  %v1149_v61 = vadd.f32 %v1148_v4, %v2464_v19  ;;  %v1189_v34 = vadd.f32 %v1188_v63, %v2464_v19 }
 0x2c3   : > { %v1387_v7 = vld [vmem:[%s1944_s25 + $0x10] sm:$0xff] (%p1851_p6) }
 0x2c4   : > { %1301 = vst [vmem:[%s1944_s25 + $0x20] sm:$0xff] %v1581_v30  ;;  %1309 = vst [vmem:[%s1944_s25 + $0x60] sm:$0xff] %v1589_v31  ;;  %v1582_v57 = vpack.c.bf16 %v1149_v61, %v1147_v29  ;;  %v1590_v42 = vpack.c.bf16 %v1189_v34, %v1187_v1  ;;  %v1403_v16 = vld [vmem:[%s1944_s25 + $0x50] sm:$0xff] (%p1851_p6) }
 0x2c5   : > { %v1389_v54 = vld [vmem:[%s1944_s25 + $0x18] sm:$0xff] (%p1851_p6)  ;;  %1388 = vst [vmem:[%s1325_s13 + $0x30] sm:$0xff] (%p1851_p6), %v1387_v7  ;;  %1404 = vst [vmem:[%s1325_s13 + $0xf0] sm:$0xff] (%p1851_p6), %v1403_v16 }
 0x2c6   : > { %1302 = vst [vmem:[%s1944_s25 + $0x28] sm:$0xff] %v1582_v57  ;;  %1310 = vst [vmem:[%s1944_s25 + $0x68] sm:$0xff] %v1590_v42  ;;  %v1152_v52 = vpop.f32.mrb[12].mxu0  ;;  %v1192_v46 = vpop.f32.mrb[12].mxu1  ;;  %v1405_v14 = vld [vmem:[%s1944_s25 + $0x58] sm:$0xff] (%p1851_p6) }
 0x2c7   : > { %v1153_v47 = vadd.f32 %v1152_v52, %v2462_v21  ;;  %v1193_v50 = vadd.f32 %v1192_v46, %v2462_v21  ;;  %v1154_v24 = vpop.f32.mrb[13].mxu0  ;;  %v1194_v26 = vpop.f32.mrb[13].mxu1  ;;  %1390 = vst [vmem:[%s1325_s13 + $0x48] sm:$0xff] (%p1851_p6), %v1389_v54  ;;  %1406 = vst [vmem:[%s1325_s13 + $0x108] sm:$0xff] (%p1851_p6), %v1405_v14 }
 0x2c8   : > { %v1155_v35 = vadd.f32 %v1154_v24, %v2464_v19  ;;  %v1195_v32 = vadd.f32 %v1194_v26, %v2464_v19  ;;  %v1156_v9 = vpop.f32.mrb[14].mxu0  ;;  %v1196_v6 = vpop.f32.mrb[14].mxu1  ;;  %1319 = sbr.rel (!%p1851_p6) target bundleno = 728 (0x2d8), region = 86 }
 0x2c9   : > { %v1157_v11 = vadd.f32 %v1156_v9, %v2462_v21  ;;  %v1197_v0 = vadd.f32 %v1196_v6, %v2462_v21  ;;  %v1158_v25 = vpop.f32.mrb[15].mxu0  ;;  %v1198_v62 = vpop.f32.mrb[15].mxu1  ;;  %v1383_v21 = vld [vmem:[%s1944_s25] sm:$0xff] (%p1851_p6) }
 0x2ca   : > { %v1583_v45 = vpack.c.bf16 %v1155_v35, %v1153_v47  ;;  %v1591_v44 = vpack.c.bf16 %v1195_v32, %v1193_v50  ;;  %v1159_v51 = vadd.f32 %v1158_v25, %v2464_v19  ;;  %v1199_v56 = vadd.f32 %v1198_v62, %v2464_v19  ;;  %v1385_v19 = vld [vmem:[%s1944_s25 + $0x8] sm:$0xff] (%p1851_p6)  ;;  %1384 = vst [vmem:[%s1325_s13] sm:$0xff] (%p1851_p6), %v1383_v21 }
 0x2cb   : > { %v1391_v59 = vld [vmem:[%s1944_s25 + $0x20] sm:$0xff] (%p1851_p6)  ;;  %1386 = vst [vmem:[%s1325_s13 + $0x18] sm:$0xff] (%p1851_p6), %v1385_v19 }
 0x2cc   : > { %1303 = vst [vmem:[%s1944_s25 + $0x30] sm:$0xff] %v1583_v45  ;;  %1311 = vst [vmem:[%s1944_s25 + $0x70] sm:$0xff] %v1591_v44  ;;  %v1584_v58 = vpack.c.bf16 %v1159_v51, %v1157_v11  ;;  %v1592_v12 = vpack.c.bf16 %v1199_v56, %v1197_v0  ;;  %v1407_v17 = vld [vmem:[%s1944_s25 + $0x60] sm:$0xff] (%p1851_p6) }
 0x2cd   : > { %v1393_v60 = vld [vmem:[%s1944_s25 + $0x28] sm:$0xff] (%p1851_p6)  ;;  %1392 = vst [vmem:[%s1325_s13 + $0x60] sm:$0xff] (%p1851_p6), %v1391_v59  ;;  %1408 = vst [vmem:[%s1325_s13 + $0x120] sm:$0xff] (%p1851_p6), %v1407_v17 }
 0x2ce   : > { %1304 = vst [vmem:[%s1944_s25 + $0x38] sm:$0xff] %v1584_v58  ;;  %1312 = vst [vmem:[%s1944_s25 + $0x78] sm:$0xff] %v1592_v12  ;;  %v1409_v8 = vld [vmem:[%s1944_s25 + $0x68] sm:$0xff] (%p1851_p6) }
 0x2cf   : > { %1394 = vst [vmem:[%s1325_s13 + $0x78] sm:$0xff] %v1393_v60  ;;  %1410 = vst [vmem:[%s1325_s13 + $0x138] sm:$0xff] %v1409_v8 }
 0x2d3   : > { %v1395_v43 = vld [vmem:[%s1944_s25 + $0x30] sm:$0xff] }
 0x2d4   : > { %1396 = vst [vmem:[%s1325_s13 + $0x90] sm:$0xff] %v1395_v43  ;;  %v1411_v10 = vld [vmem:[%s1944_s25 + $0x70] sm:$0xff] }
 0x2d5   : > { %v1397_v39 = vld [vmem:[%s1944_s25 + $0x38] sm:$0xff]  ;;  %1412 = vst [vmem:[%s1325_s13 + $0x150] sm:$0xff] %v1411_v10 }
 0x2d6   : > { %1398 = vst [vmem:[%s1325_s13 + $0xa8] sm:$0xff] %v1397_v39  ;;  %v1413_v33 = vld [vmem:[%s1944_s25 + $0x78] sm:$0xff] }
 0x2d7   : > { %1414 = vst [vmem:[%s1325_s13 + $0x168] sm:$0xff] %v1413_v33 }
 0x2d8 PF: > { %s15_s22 = sadd.s32 1, %s1784_s22   ;;  %s2558_s18 = smov %s1772_s19 }
 0x2d9   : > { %p12_p13 = scmp.ge.s32.totalorder %s15_s22, 5   ;;  %s2559_s19 = smov %s1856_s28 }
 0x2da   : > { %s2560_s20 = smov %s1780_s21  ;;  %s2561_s21 = smov %s2563_s23 }
 0x2db   :  { %14 = sbr.rel (!%p12_p13) target bundleno = 3 (0x3), region = 161 }

// kernel: sam_image_embedding.15
= control target key start
LH: loop header
LB: loop body
LE: loop exit
PB: predicated region body
PF: predicated region fallthrough
CT: control target
= control target key end

     0   :  { %s1012_s6 = smov 0   ;;  %s1014_s7 = smov 0   ;;  %s1164_s0 = inlined_call_operand.vmem [shape: bf16[2,64,768], index: 0, kind: input, shape index: {}]   ;;  %s1165_s1 = inlined_call_operand.vmem [shape: bf16[2,64,256], index: 1, kind: output, shape index: {}]  }
   0x1   :  { %s1016_s8 = smov 0   ;;  %s1018_s9 = smov 0  }
   0x2   :  { %s1020_s10 = smov 0   ;;  %s1022_s11 = smov 0  }
   0x3   :  { %s1024_s12 = smov 0  }
   0x4 LB: > { %s20_s13 = sadd.s32 1, %s992_s10  ;;  %s23_s14 = sadd.s32 1, %s996_s11  ;;  %s1000_s12 = sphi %s1024_s12, %s11_s12   ;;  %s996_s11 = sphi %s1022_s11, %s1172_s11   ;;  %s992_s10 = sphi %s1020_s10, %s1171_s10   ;;  %s988_s9 = sphi %s1018_s9, %s1170_s9   ;;  %s984_s8 = sphi %s1016_s8, %s1169_s8   ;;  %s980_s7 = sphi %s1014_s7, %s1168_s7   ;;  %s976_s6 = sphi %s1012_s6, %s1167_s6  }
   0x5   : > { %p21_p0 = scmp.ge.s32.totalorder %s20_s13, 2  ;;  %s708_s15 = sadd.s32 4294967295, %s1000_s12  }
   0x6   : > { %p39_p1 = scmp.ne.s32.totalorder %s980_s7, %s976_s6  ;;  %p40_p2 = scmp.eq.s32.totalorder %s1000_s12, 0 }
   0x7   : > { %s1174_s13 = smov (%p21_p0, %s20_s13), 0  ;;  %s1176_s14 = smov (!%p21_p0, %s23_s14), %s996_s11 }
   0x8   : > { %p25_p3 = scmp.ge.s32.totalorder %s1176_s14, 2  ;;  %p71_p4 = scmp.eq.s32.totalorder %s708_s15, 3 }
   0x9   : > { %s28_s16 = ssub.s32 %s992_s10, %s1174_s13  ;;  %p41_p5 = por %p40_p2, %p39_p1 }
   0xa   : > { %s1178_s14 = smov (%p25_p3, %s1176_s14), 0  ;;  %p1060_p6 = por %p71_p4, %p39_p1 }
   0xb   : > { %s27_s18 = ssub.s32 %s996_s11, %s1178_s14  ;;  %s32_s20 = sadd.s32 1, %s980_s7 }
   0xc   : > { %s29_s19 = sor.u32 %s28_s16, %s27_s18  ;;  %p711_p8 = scmp.ge.s32.totalorder %s1000_s12, 4 }
   0xd   : > { %p30_p7 = scmp.eq.s32.totalorder %s29_s19, 0 }
   0xe   : > { %93 = sbr.rel (%p711_p8) target bundleno = 39 (0x27), region = 16 }
   0xf   : > { %s1068_s21 = scalar_select %p30_p7, %s980_s7, %s32_s20  }
  0x15   : > { %96 = sbr.rel (!%p41_p5) target bundleno = 39 (0x27), region = 20  ;;  %s98_s22 = sand.u32 (%p41_p5), 1, %s980_s7  }
  0x16   : > { %s101_s23 = smul.u32 (%p41_p5), 3, %s992_s10 }
  0x17   : > { %s839_s24 = smul.u32 (%p41_p5), 96, %s98_s22 }
  0x18   : > { %s840_s25 = smul.u32 (%p41_p5), 48, %s996_s11 }
  0x19   : > { %s100_s2 = scalar_lea.vmem (%p41_p5), [#allocation2], %s839_s24 }
  0x1a   : > { %s103_s26 = sadd.s32 (%p41_p5), %s840_s25, %s101_s23 }
  0x1b   : > { %s712_s27 = sshll.u32 (%p41_p5), %s103_s26, 2 }
  0x1c   : > { %s1077_s30 = scalar_lea.vmem %s1164_s0, %s712_s27 }
  0x1d   : > { %v120_v0 = vld [vmem:[%s1077_s30] sm:$0xff]  ;;  %v122_v1 = vld [vmem:[%s1077_s30 + $0x18] sm:$0xff]  ;;  %v124_v2 = vld [vmem:[%s1077_s30 + $0x30] sm:$0xff] }
  0x1e   : > { %121 = vst [vmem:[%s100_s2] sm:$0xff] %v120_v0  ;;  %123 = vst [vmem:[%s100_s2 + $0xc] sm:$0xff] %v122_v1  ;;  %v126_v3 = vld [vmem:[%s1077_s30 + $0x48] sm:$0xff]  ;;  %v128_v4 = vld [vmem:[%s1077_s30 + $0x60] sm:$0xff] }
  0x1f   : > { %125 = vst [vmem:[%s100_s2 + $0x18] sm:$0xff] %v124_v2  ;;  %v130_v5 = vld [vmem:[%s1077_s30 + $0x78] sm:$0xff]  ;;  %127 = vst [vmem:[%s100_s2 + $0x24] sm:$0xff] %v126_v3  ;;  %v132_v6 = vld [vmem:[%s1077_s30 + $0x90] sm:$0xff] }
  0x20   : > { %129 = vst [vmem:[%s100_s2 + $0x30] sm:$0xff] %v128_v4  ;;  %131 = vst [vmem:[%s100_s2 + $0x3c] sm:$0xff] %v130_v5  ;;  %v134_v7 = vld [vmem:[%s1077_s30 + $0xa8] sm:$0xff]  ;;  %v715_v9 = vld [vmem:[%s1077_s30 + $0x20] sm:$0xf] }
  0x21   : > { %v713_v8 = vld [vmem:[%s1077_s30 + $0x8] sm:$0xf]  ;;  %133 = vst [vmem:[%s100_s2 + $0x48] sm:$0xff] %v132_v6  ;;  %135 = vst [vmem:[%s100_s2 + $0x54] sm:$0xff] %v134_v7  ;;  %v717_v10 = vld [vmem:[%s1077_s30 + $0x38] sm:$0xf] }
  0x22   : > { %714 = vst [vmem:[%s100_s2 + $0x8] sm:$0xf] %v713_v8  ;;  %v719_v11 = vld [vmem:[%s1077_s30 + $0x50] sm:$0xf]  ;;  %716 = vst [vmem:[%s100_s2 + $0x14] sm:$0xf] %v715_v9 }
  0x23   : > { %718 = vst [vmem:[%s100_s2 + $0x20] sm:$0xf] %v717_v10  ;;  %720 = vst [vmem:[%s100_s2 + $0x2c] sm:$0xf] %v719_v11  ;;  %v721_v12 = vld [vmem:[%s1077_s30 + $0x68] sm:$0xf] }
  0x24   : > { %v723_v13 = vld [vmem:[%s1077_s30 + $0x80] sm:$0xf]  ;;  %v725_v14 = vld [vmem:[%s1077_s30 + $0x98] sm:$0xf]  ;;  %722 = vst [vmem:[%s100_s2 + $0x38] sm:$0xf] %v721_v12 }
  0x25   : > { %724 = vst [vmem:[%s100_s2 + $0x44] sm:$0xf] %v723_v13  ;;  %726 = vst [vmem:[%s100_s2 + $0x50] sm:$0xf] %v725_v14  ;;  %v727_v15 = vld [vmem:[%s1077_s30 + $0xb0] sm:$0xf] }
  0x26   : > { %728 = vst [vmem:[%s100_s2 + $0x5c] sm:$0xf] %v727_v15 }
  0x27 PF: > { %p729_p9 = scmp.ge.s32.totalorder %s1000_s12, 1  ;;  %p163_p10 = scmp.lt.s32.totalorder %s1000_s12, 5 }
  0x29   : > { %p164_p11 = pnand %p729_p9, %p163_p10 }
  0x2a   : > { %s170_s3 = sand.u32 (!%p164_p11), 1, %s976_s6   ;;  %vm319_vm0 = vcmask (!%p164_p11), 523264  }
  0x2b   : > { %167 = sbr.rel (%p164_p11) target bundleno = 854 (0x356), region = 46  ;;  %s730_s15 = sshll.u32 (!%p164_p11), %s170_s3, 5 }
  0x2c   : > { %s841_s4 = smul.u32 (!%p164_p11), 96, %s170_s3  ;;  %s187_s16 = scalar_lea.vmem (!%p164_p11), [#allocation3], %s730_s15 }
  0x2e   : > { %s1100_s5 = scalar_lea.vmem (!%p164_p11), [#allocation2], %s841_s4 }
  0x2f   : > { %v898_v16 = vld [vmem:[%s1100_s5 + $0x4] ss:$12 sps:$4 sm:$0xff] (!%p164_p11)   ;;  %v900_v17 = vld [vmem:[%s1100_s5 + $0x1c] ss:$12 sps:$4 sm:$0xff] (!%p164_p11)   ;;  %v906_v18 = vld [vmem:[%s1100_s5] ss:$12 sps:$4 sm:$0xff] (!%p164_p11)  }
  0x30   : > { %807 = vmatprep.subr.bf16.mxu0 (!%p164_p11), %v898_v16  ;;  %815 = vmatprep.mubr.bf16.mxu0 (!%p164_p11), %v906_v18  ;;  %v902_v19 = vld [vmem:[%s1100_s5 + $0x34] ss:$12 sps:$4 sm:$0xff] (!%p164_p11)   ;;  %v904_v20 = vld [vmem:[%s1100_s5 + $0x4c] ss:$12 sps:$4 sm:$0xff] (!%p164_p11)   ;;  %v908_v22 = vld [vmem:[%s1100_s5 + $0x30] ss:$12 sps:$4 sm:$0xff] (!%p164_p11)  }
  0x31   : > { %808 = vmatpush3.bf16.xpose.msra.mxu0 (!%p164_p11), %v898_v16  ;;  %v907_v21 = vld [vmem:[%s1100_s5 + $0x18] ss:$12 sps:$4 sm:$0xff] (!%p164_p11)   ;;  %v909_v23 = vld [vmem:[%s1100_s5 + $0x48] ss:$12 sps:$4 sm:$0xff] (!%p164_p11)  }
  0x32   : > { %809 = vmatprep.subr.bf16.mxu0 %v900_v17  ;;  %s756_s6 = sshll.u32 (%p1060_p6), %s988_s9, 4 }
  0x33   : > { %s561_s18 = sadd.s32 (%p1060_p6), %s984_s8, %s756_s6 }
  0x34   : > { %s757_s19 = sshll.u32 (%p1060_p6), %s561_s18, 2 }
  0x35   : > { %s563_s23 = scalar_lea.vmem (%p1060_p6), %s1165_s1, %s757_s19 }
  0x39   : > { %810 = vmatpush3.bf16.xpose.msra.mxu0 %v900_v17 }
  0x3a   : > { %811 = vmatprep.subr.bf16.mxu0 %v902_v19 }
  0x41   : > { %812 = vmatpush3.bf16.xpose.msra.mxu0 %v902_v19 }
  0x42   : > { %813 = vmatprep.subr.bf16.mxu0 %v904_v20 }
  0x49   : > { %814 = vmatpush3.bf16.xpose.msra.mxu0 %v904_v20 }
  0x50   : > { %816 = vmatmul.mubr.bf16.vlgmr.msra.gmra.mrb[0].mxu0 %v907_v21 }
  0x51   : > { %819 = vmatprep.mubr.bf16.mxu0 %v908_v22 }
  0x58   : > { %820 = vmatmul.mubr.bf16.gmra.mrb[4].mxu0 %v909_v23 }
 0x123   : > { %v817_v24 = vpop.f32.mrb[0].mxu0 }
 0x124   : > { %v313_v25 = vmul.f32 0.088388346, %v817_v24  ;;  %v280_v26 = vpop.f32.mrb[1].mxu0  ;;  %v910_v24 = vld [vmem:[%s1100_s5 + $0x8] ss:$12 sps:$4 sm:$0xff]  }
 0x125   : > { %v311_v27 = vmul.f32 0.088388346, %v280_v26  ;;  %v818_v28 = vpop.f32.mrb[2].mxu0  ;;  %823 = vmatprep.subr.bf16.mxu1 %v910_v24  ;;  %v912_v26 = vld [vmem:[%s1100_s5 + $0x38] ss:$12 sps:$4 sm:$0xff]  }
 0x126   : > { %v314_v29 = vmul.f32 0.088388346, %v818_v28  ;;  %v283_v30 = vpop.f32.mrb[3].mxu0  ;;  %v326_v31 = vsel %vm319_vm0, %v313_v25, -inf  ;;  %824 = vmatpush3.bf16.msra.mxu1 %v910_v24 }
 0x127   : > { %v312_v32 = vmul.f32 0.088388346, %v283_v30  ;;  %327 = vmax.xlane.f32.xlu1 %v326_v31  ;;  %v320_v33 = vsel %vm319_vm0, %v311_v27, -inf }
 0x128   : > { %321 = vmax.xlane.f32.xlu0 %v320_v33  ;;  %v329_v34 = vsel %vm319_vm0, %v314_v29, -inf }
 0x129   : > { %v323_v36 = vsel %vm319_vm0, %v312_v32, -inf }
 0x12b   : > { %330 = vmax.xlane.f32.xlu1 %v329_v34  ;;  %v821_v35 = vpop.f32.mrb[4].mxu0 }
 0x12c   : > { %324 = vmax.xlane.f32.xlu0 %v323_v36  ;;  %v296_v37 = vpop.f32.mrb[5].mxu0  ;;  %v317_v41 = vmul.f32 0.088388346, %v821_v35 }
 0x12d   : > { %v315_v38 = vmul.f32 0.088388346, %v296_v37  ;;  %v822_v39 = vpop.f32.mrb[6].mxu0 }
 0x12e   : > { %v299_v40 = vpop.f32.mrb[7].mxu0  ;;  %v318_v44 = vmul.f32 0.088388346, %v822_v39  ;;  %v338_v46 = vsel %vm319_vm0, %v317_v41, -inf }
 0x12f   : > { %v316_v42 = vmul.f32 0.088388346, %v299_v40  ;;  %v332_v43 = vsel %vm319_vm0, %v315_v38, -inf }
 0x130   : > { %333 = vmax.xlane.f32.xlu0 %v332_v43  ;;  %v341_v47 = vsel %vm319_vm0, %v318_v44, -inf }
 0x131   : > { %v335_v45 = vsel %vm319_vm0, %v316_v42, -inf }
 0x132   : > { %336 = vmax.xlane.f32.xlu1 %v335_v45 }
 0x134   : > { %339 = vmax.xlane.f32.xlu0 %v338_v46 }
 0x136   : > { %342 = vmax.xlane.f32.xlu1 %v341_v47 }
 0x1b4   : > { %v328_v48 = vpop.xlane.xlu1 %327 }
 0x1b5   : > { %v346_v49 = vsub.f32 %v313_v25, %v328_v48  ;;  %v322_v50 = vpop.xlane.xlu0 %321  ;;  %v911_v25 = vld [vmem:[%s1100_s5 + $0x20] ss:$12 sps:$4 sm:$0xff]  }
 0x1b6   : > { %v344_v51 = vsub.f32 %v311_v27, %v322_v50  ;;  %825 = vmatprep.subr.bf16.mxu1 %v911_v25  ;;  %v913_v27 = vld [vmem:[%s1100_s5 + $0x50] ss:$12 sps:$4 sm:$0xff]  }
 0x1b7   : > { %v356_v52 = vmul.f32 1.442695, %v346_v49  ;;  %826 = vmatpush3.bf16.msra.mxu1 %v911_v25 }
 0x1b8   : > { %v352_v53 = vmul.f32 1.442695, %v344_v51  ;;  %v331_v54 = vpop.xlane.xlu1 %330  ;;  %827 = vmatprep.subr.bf16.mxu1 %v912_v26 }
 0x1b9   : > { %v347_v55 = vsub.f32 %v314_v29, %v331_v54  ;;  %v325_v56 = vpop.xlane.xlu0 %324 }
 0x1ba   : > { %914 = vpow2.f32 %v352_v53  ;;  %v345_v57 = vsub.f32 %v312_v32, %v325_v56 }
 0x1bb   : > { %916 = vpow2.f32 %v356_v52  ;;  %v358_v58 = vmul.f32 1.442695, %v347_v55  ;;  %828 = vmatpush3.bf16.msra.mxu1 %v912_v26 }
 0x1bc   : > { %v354_v59 = vmul.f32 1.442695, %v345_v57  ;;  %829 = vmatprep.subr.bf16.mxu1 %v913_v27 }
 0x1bd   : > { %v334_v60 = vpop.xlane.xlu0 %333 }
 0x1be   : > { %918 = vpow2.f32 %v354_v59  ;;  %v348_v61 = vsub.f32 %v315_v38, %v334_v60 }
 0x1bf   : > { %v337_v62 = vpop.xlane.xlu1 %336  ;;  %920 = vpow2.f32 %v358_v58  ;;  %830 = vmatpush3.bf16.msra.mxu1 %v913_v27 }
 0x1c0   : > { %v360_v63 = vmul.f32 1.442695, %v348_v61  ;;  %v349_v0 = vsub.f32 %v316_v42, %v337_v62 }
 0x1c1   : > { %v340_v1 = vpop.xlane.xlu0 %339 }
 0x1c2   : > { %922 = vpow2.f32 %v360_v63  ;;  %v362_v2 = vmul.f32 1.442695, %v349_v0  ;;  %v350_v3 = vsub.f32 %v317_v41, %v340_v1 }
 0x1c3   : > { %v343_v4 = vpop.xlane.xlu1 %342 }
 0x1c4   : > { %v915_v5 = vpop.eup %914  ;;  %924 = vpow2.f32 %v362_v2  ;;  %v364_v6 = vmul.f32 1.442695, %v350_v3  ;;  %v351_v7 = vsub.f32 %v318_v44, %v343_v4 }
 0x1c5   : > { %v368_v8 = vsel %vm319_vm0, %v915_v5, 0.0  ;;  %v917_v9 = vpop.eup %916 }
 0x1c6   : > { %926 = vpow2.f32 %v364_v6  ;;  %v366_v10 = vmul.f32 1.442695, %v351_v7  ;;  %369 = vadd.xlane.f32.xlu0 %v368_v8  ;;  %v374_v12 = vsel %vm319_vm0, %v917_v9, 0.0 }
 0x1c8   : > { %v919_v11 = vpop.eup %918  ;;  %928 = vpow2.f32 %v366_v10 }
 0x1c9   : > { %v371_v13 = vsel %vm319_vm0, %v919_v11, 0.0  ;;  %v921_v14 = vpop.eup %920 }
 0x1ca   : > { %375 = vadd.xlane.f32.xlu0 %v374_v12  ;;  %372 = vadd.xlane.f32.xlu1 %v371_v13  ;;  %v377_v17 = vsel %vm319_vm0, %v921_v14, 0.0 }
 0x1cc   : > { %v923_v15 = vpop.eup %922 }
 0x1cd   : > { %v380_v16 = vsel %vm319_vm0, %v923_v15, 0.0 }
 0x1ce   : > { %v925_v18 = vpop.eup %924  ;;  %381 = vadd.xlane.f32.xlu0 %v380_v16  ;;  %378 = vadd.xlane.f32.xlu1 %v377_v17 }
 0x1cf   : > { %v383_v21 = vsel %vm319_vm0, %v925_v18, 0.0 }
 0x1d0   : > { %v927_v19 = vpop.eup %926 }
 0x1d1   : > { %v386_v20 = vsel %vm319_vm0, %v927_v19, 0.0 }
 0x1d2   : > { %v929_v22 = vpop.eup %928  ;;  %387 = vadd.xlane.f32.xlu0 %v386_v20  ;;  %384 = vadd.xlane.f32.xlu1 %v383_v21 }
 0x1d3   : > { %v389_v23 = vsel %vm319_vm0, %v929_v22, 0.0 }
 0x1d6   : > { %390 = vadd.xlane.f32.xlu1 %v389_v23 }
 0x253   : > { %v370_v28 = vpop.xlane.xlu0 %369 }
 0x254   : > { %930 = vrcp.f32 %v370_v28 }
 0x257   : > { %v376_v29 = vpop.xlane.xlu0 %375  ;;  %v373_v30 = vpop.xlane.xlu1 %372 }
 0x258   : > { %932 = vrcp.f32 %v373_v30 }
 0x259   : > { %934 = vrcp.f32 %v376_v29 }
 0x25b   : > { %v382_v31 = vpop.xlane.xlu0 %381  ;;  %v379_v32 = vpop.xlane.xlu1 %378 }
 0x25c   : > { %936 = vrcp.f32 %v379_v32 }
 0x25d   : > { %938 = vrcp.f32 %v382_v31 }
 0x25e   : > { %v931_v35 = vpop.eup %930 }
 0x25f   : > { %v388_v33 = vpop.xlane.xlu0 %387  ;;  %v385_v34 = vpop.xlane.xlu1 %384  ;;  %v400_v38 = vmul.f32 %v931_v35, %v915_v5 }
 0x260   : > { %940 = vrcp.f32 %v385_v34 }
 0x261   : > { %942 = vrcp.f32 %v388_v33 }
 0x262   : > { %v933_v36 = vpop.eup %932 }
 0x263   : > { %v391_v37 = vpop.xlane.xlu1 %390  ;;  %v401_v39 = vmul.f32 %v933_v36, %v919_v11  ;;  %v935_v40 = vpop.eup %934 }
 0x264   : > { %944 = vrcp.f32 %v391_v37  ;;  %v402_v43 = vmul.f32 %v935_v40, %v917_v9 }
 0x265   : > { %v408_v41 = vpack.c.bf16 %v401_v39, %v400_v38 }
 0x266   : > { %v937_v42 = vpop.eup %936 }
 0x267   : > { %831 = vmatprep.mubr.msk.bf16.mxu1 %vm319_vm0, %v408_v41  ;;  %v403_v44 = vmul.f32 %v937_v42, %v921_v14  ;;  %v939_v45 = vpop.eup %938 }
 0x268   : > { %v404_v49 = vmul.f32 %v939_v45, %v923_v15 }
 0x269   : > { %v409_v46 = vpack.c.bf16 %v403_v44, %v402_v43 }
 0x26a   : > { %v941_v47 = vpop.eup %940 }
 0x26b   : > { %v943_v48 = vpop.eup %942  ;;  %832 = vmatmul.mubr.msk.bf16.vlgmr.msra.gmra.mrb[0].mxu1 %vm319_vm0, %v409_v46  ;;  %v405_v50 = vmul.f32 %v941_v47, %v925_v18 }
 0x26c   : > { %v406_v53 = vmul.f32 %v943_v48, %v927_v19 }
 0x26d   : > { %v410_v52 = vpack.c.bf16 %v405_v50, %v404_v49 }
 0x26e   : > { %v945_v51 = vpop.eup %944 }
 0x26f   : > { %v407_v54 = vmul.f32 %v945_v51, %v929_v22  ;;  %835 = vmatprep.mubr.msk.bf16.mxu1 %vm319_vm0, %v410_v52 }
 0x271   : > { %v411_v55 = vpack.c.bf16 %v407_v54, %v406_v53 }
 0x273   : > { %836 = vmatmul.mubr.msk.bf16.gmra.mrb[4].mxu1 %vm319_vm0, %v411_v55 }
 0x33e   : > { %v833_v56 = vpop.f32.mrb[0].mxu1 }
 0x33f   : > { %v482_v57 = vpop.f32.mrb[1].mxu1 }
 0x340   : > { %v834_v58 = vpop.f32.mrb[2].mxu1 }
 0x341   : > { %v776_v59 = vpack.c.bf16 %v834_v58, %v833_v56  ;;  %v485_v60 = vpop.f32.mrb[3].mxu1 }
 0x342   : > { %v771_v61 = vpack.c.bf16 %v485_v60, %v482_v57 }
 0x343   : > { %788 = vst [vmem:[%s187_s16 + $0x8] sm:$0xff] %v776_v59  }
 0x344   : > { %772 = vst [vmem:[%s187_s16] sm:$0xff] %v771_v61  }
 0x346   : > { %v837_v62 = vpop.f32.mrb[4].mxu1  ;;  %559 = sbr.rel (!%p1060_p6) target bundleno = 854 (0x356), region = 54 }
 0x347   : > { %v498_v63 = vpop.f32.mrb[5].mxu1 }
 0x348   : > { %v838_v0 = vpop.f32.mrb[6].mxu1 }
 0x349   : > { %v786_v1 = vpack.c.bf16 %v838_v0, %v837_v62  ;;  %v501_v2 = vpop.f32.mrb[7].mxu1 }
 0x34a   : > { %v781_v3 = vpack.c.bf16 %v501_v2, %v498_v63  ;;  %v583_v6 = vld [vmem:[%s187_s16 + $0x8] sm:$0xf] (%p1060_p6)  ;;  %v585_v7 = vld [vmem:[%s187_s16 + $0xc] sm:$0xf] (%p1060_p6) }
 0x34b   : > { %790 = vst [vmem:[%s187_s16 + $0x18] sm:$0xff] %v786_v1   ;;  %v579_v4 = vld [vmem:[%s187_s16] sm:$0xf] (%p1060_p6)  ;;  %v581_v5 = vld [vmem:[%s187_s16 + $0x4] sm:$0xf] (%p1060_p6) }
 0x34c   : > { %789 = vst [vmem:[%s187_s16 + $0x10] sm:$0xff] %v781_v3   ;;  %580 = vst [vmem:[%s563_s23] sm:$0xf] (%p1060_p6), %v579_v4 }
 0x34d   : > { %582 = vst [vmem:[%s563_s23 + $0x8] sm:$0xf] %v581_v5  ;;  %584 = vst [vmem:[%s563_s23 + $0x10] sm:$0xf] %v583_v6 }
 0x34e   : > { %586 = vst [vmem:[%s563_s23 + $0x18] sm:$0xf] %v585_v7 }
 0x352   : > { %v591_v10 = vld [vmem:[%s187_s16 + $0x18] sm:$0xf]  ;;  %v593_v11 = vld [vmem:[%s187_s16 + $0x1c] sm:$0xf] }
 0x353   : > { %v587_v8 = vld [vmem:[%s187_s16 + $0x10] sm:$0xf]  ;;  %v589_v9 = vld [vmem:[%s187_s16 + $0x14] sm:$0xf]  ;;  %592 = vst [vmem:[%s563_s23 + $0x30] sm:$0xf] %v591_v10 }
 0x354   : > { %588 = vst [vmem:[%s563_s23 + $0x20] sm:$0xf] %v587_v8  ;;  %590 = vst [vmem:[%s563_s23 + $0x28] sm:$0xf] %v589_v9 }
 0x355   : > { %594 = vst [vmem:[%s563_s23 + $0x38] sm:$0xf] %v593_v11 }
 0x356 PF: > { %s11_s12 = sadd.s32 1, %s1000_s12   ;;  %s1167_s6 = smov %s980_s7 }
 0x357   : > { %p8_p12 = scmp.ge.s32.totalorder %s11_s12, 6   ;;  %s1168_s7 = smov %s1068_s21 }
 0x358   : > { %s1169_s8 = smov %s992_s10  ;;  %s1170_s9 = smov %s996_s11 }
 0x359   : > { %s1171_s10 = smov %s1174_s13  ;;  %s1172_s11 = smov %s1178_s14 }
 0x35a   :  { %10 = sbr.rel (!%p8_p12) target bundleno = 4 (0x4), region = 132 }

// kernel: sam_image_embedding.16
= control target key start
LH: loop header
LB: loop body
LE: loop exit
PB: predicated region body
PF: predicated region fallthrough
CT: control target
= control target key end

     0   :  { %v587_v48 = vlaneseq  ;;  %s1313_s1 = inlined_call_operand.vmem [shape: bf16[256,256], index: 1, kind: input, shape index: {}]   ;;  %s1314_s0 = inlined_call_operand.vmem [shape: bf16[128,256], index: 0, kind: input, shape index: {}]   ;;  %s1315_s2 = inlined_call_operand.vmem [shape: f32[1,256], index: 2, kind: input, shape index: {}]   ;;  %s1316_s3 = inlined_call_operand.vmem [shape: bf16[128,256], index: 3, kind: input, shape index: {}]   ;;  %s1317_s4 = inlined_call_operand.vmem [shape: bf16[128,256], index: 4, kind: output, shape index: {}]  }
   0x1   :  { %v937_v0 = vld [vmem:[%s1313_s1 + $0x4] ss:$8 sps:$4 sm:$0xff]   ;;  %v939_v1 = vld [vmem:[%s1313_s1] ss:$8 sps:$4 sm:$0xff]   ;;  %v940_v2 = vld [vmem:[%s1313_s1 + $0x14] ss:$8 sps:$4 sm:$0xff]  }
   0x2   :  { %373 = vmatprep.subr.bf16.mxu0 %v937_v0  ;;  %905 = vmatprep.subr.bf16.mxu1 %v937_v0  ;;  %v942_v3 = vld [vmem:[%s1313_s1 + $0x10] ss:$8 sps:$4 sm:$0xff]   ;;  %v943_v4 = vld [vmem:[%s1313_s1 + $0x24] ss:$8 sps:$4 sm:$0xff]   ;;  %v945_v5 = vld [vmem:[%s1313_s1 + $0x20] ss:$8 sps:$4 sm:$0xff]  }
   0x3   :  { %374 = vmatpush1.bf16.msra.mxu0 %v939_v1  ;;  %921 = vmatpush1.bf16.msra.mxu1 %v939_v1  ;;  %v946_v6 = vld [vmem:[%s1313_s1 + $0x34] ss:$8 sps:$4 sm:$0xff]   ;;  %v948_v7 = vld [vmem:[%s1313_s1 + $0x30] ss:$8 sps:$4 sm:$0xff]   ;;  %v949_v8 = vld [vmem:[%s1313_s1 + $0x44] ss:$8 sps:$4 sm:$0xff]  }
   0x4   :  { %375 = vmatprep.subr.bf16.mxu0 %v940_v2  ;;  %906 = vmatprep.subr.bf16.mxu1 %v940_v2  ;;  %v951_v9 = vld [vmem:[%s1313_s1 + $0x40] ss:$8 sps:$4 sm:$0xff]   ;;  %v952_v10 = vld [vmem:[%s1313_s1 + $0x54] ss:$8 sps:$4 sm:$0xff]   ;;  %v954_v11 = vld [vmem:[%s1313_s1 + $0x50] ss:$8 sps:$4 sm:$0xff]  }
   0x5   :  { %v955_v12 = vld [vmem:[%s1313_s1 + $0x64] ss:$8 sps:$4 sm:$0xff]   ;;  %v957_v14 = vld [vmem:[%s1313_s1 + $0x60] ss:$8 sps:$4 sm:$0xff]   ;;  %v958_v16 = vld [vmem:[%s1313_s1 + $0x74] ss:$8 sps:$4 sm:$0xff]  }
   0x6   :  { %v987_v13 = vld [vmem:[%s1314_s0 + $0x4] ss:$8 sps:$4 sm:$0xff]   ;;  %v960_v17 = vld [vmem:[%s1313_s1 + $0x70] ss:$8 sps:$4 sm:$0xff]   ;;  %v963_v19 = vld [vmem:[%s1313_s1 + $0x80] ss:$8 sps:$4 sm:$0xff]  }
   0x7   :  { %376 = vmatpush1.bf16.msra.mxu0 %v942_v3  ;;  %922 = vmatpush1.bf16.msra.mxu1 %v942_v3  ;;  %v990_v15 = vld [vmem:[%s1314_s0 + $0x44] ss:$8 sps:$4 sm:$0xff]   ;;  %v964_v20 = vld [vmem:[%s1313_s1 + $0x94] ss:$8 sps:$4 sm:$0xff]   ;;  %v966_v21 = vld [vmem:[%s1313_s1 + $0x90] ss:$8 sps:$4 sm:$0xff]  }
   0x8   :  { %377 = vmatprep.subr.bf16.mxu0 %v943_v4  ;;  %907 = vmatprep.subr.bf16.mxu1 %v943_v4  ;;  %v961_v18 = vld [vmem:[%s1313_s1 + $0x84] ss:$8 sps:$4 sm:$0xff]   ;;  %v969_v23 = vld [vmem:[%s1313_s1 + $0xa0] ss:$8 sps:$4 sm:$0xff]   ;;  %v970_v24 = vld [vmem:[%s1313_s1 + $0xb4] ss:$8 sps:$4 sm:$0xff]  }
   0x9   :  { %405 = vmatprep.mubr.bf16.mxu0 %v987_v13  ;;  %445 = vmatprep.mubr.bf16.mxu1 %v990_v15  ;;  %v967_v22 = vld [vmem:[%s1313_s1 + $0xa4] ss:$8 sps:$4 sm:$0xff]   ;;  %v972_v25 = vld [vmem:[%s1313_s1 + $0xb0] ss:$8 sps:$4 sm:$0xff]   ;;  %v975_v27 = vld [vmem:[%s1313_s1 + $0xc0] ss:$8 sps:$4 sm:$0xff]  }
   0xa   :  { %v973_v26 = vld [vmem:[%s1313_s1 + $0xc4] ss:$8 sps:$4 sm:$0xff]   ;;  %v976_v28 = vld [vmem:[%s1313_s1 + $0xd4] ss:$8 sps:$4 sm:$0xff]   ;;  %v978_v29 = vld [vmem:[%s1313_s1 + $0xd0] ss:$8 sps:$4 sm:$0xff]  }
   0xb   :  { %378 = vmatpush1.bf16.msra.mxu0 %v945_v5  ;;  %923 = vmatpush1.bf16.msra.mxu1 %v945_v5  ;;  %v979_v30 = vld [vmem:[%s1313_s1 + $0xe4] ss:$8 sps:$4 sm:$0xff]   ;;  %v981_v31 = vld [vmem:[%s1313_s1 + $0xe0] ss:$8 sps:$4 sm:$0xff]   ;;  %v982_v32 = vld [vmem:[%s1313_s1 + $0xf4] ss:$8 sps:$4 sm:$0xff]  }
   0xc   :  { %379 = vmatprep.subr.bf16.mxu0 %v946_v6  ;;  %908 = vmatprep.subr.bf16.mxu1 %v946_v6  ;;  %v984_v33 = vld [vmem:[%s1313_s1 + $0xf0] ss:$8 sps:$4 sm:$0xff]   ;;  %v985_v34 = vld [vmem:[%s1314_s0] ss:$8 sps:$4 sm:$0xff]   ;;  %v991_v36 = vld [vmem:[%s1314_s0 + $0x14] ss:$8 sps:$4 sm:$0xff]  }
   0xd   :  { %v988_v35 = vld [vmem:[%s1314_s0 + $0x40] ss:$8 sps:$4 sm:$0xff]   ;;  %v993_v37 = vld [vmem:[%s1314_s0 + $0x54] ss:$8 sps:$4 sm:$0xff]   ;;  %v995_v38 = vld [vmem:[%s1314_s0 + $0x10] ss:$8 sps:$4 sm:$0xff]  }
   0xe   :  { %v996_v39 = vld [vmem:[%s1314_s0 + $0x50] ss:$8 sps:$4 sm:$0xff]   ;;  %v997_v40 = vld [vmem:[%s1314_s0 + $0x24] ss:$8 sps:$4 sm:$0xff]   ;;  %v1001_v42 = vld [vmem:[%s1314_s0 + $0x20] ss:$8 sps:$4 sm:$0xff]  }
   0xf   :  { %380 = vmatpush1.bf16.msra.mxu0 %v948_v7  ;;  %924 = vmatpush1.bf16.msra.mxu1 %v948_v7  ;;  %v999_v41 = vld [vmem:[%s1314_s0 + $0x64] ss:$8 sps:$4 sm:$0xff]   ;;  %v1002_v43 = vld [vmem:[%s1314_s0 + $0x60] ss:$8 sps:$4 sm:$0xff]   ;;  %v1003_v44 = vld [vmem:[%s1314_s0 + $0x34] ss:$8 sps:$4 sm:$0xff]  }
  0x10   :  { %381 = vmatprep.subr.bf16.mxu0 %v949_v8  ;;  %909 = vmatprep.subr.bf16.mxu1 %v949_v8  ;;  %v1005_v45 = vld [vmem:[%s1314_s0 + $0x74] ss:$8 sps:$4 sm:$0xff]   ;;  %v1007_v46 = vld [vmem:[%s1314_s0 + $0x30] ss:$8 sps:$4 sm:$0xff]   ;;  %v588_v49 = vshrl.u32 %v587_v48, 7  ;;  %v629_v53 = vld [vmem:[%s1316_s3] sm:$0xff] }
  0x11   :  { %v1008_v47 = vld [vmem:[%s1314_s0 + $0x70] ss:$8 sps:$4 sm:$0xff]   ;;  %v585_v51 = vld [vmem:[%s1315_s2] sm:$0x3]  ;;  %v630_v57 = vld [vmem:[%s1316_s3 + $0x8] sm:$0xff]  ;;  %v645_v59 = vunpack.c.l.bf16 %v629_v53  ;;  %v646_v63 = vunpack.c.h.bf16 %v629_v53 }
  0x12   :  { %v589_v50 = vsub.s32 0, %v588_v49  ;;  %v593_v52 = vsub.s32 1, %v588_v49  ;;  %v637_v54 = vld [vmem:[%s1316_s3 + $0x40] sm:$0xff]  ;;  %v638_v58 = vld [vmem:[%s1316_s3 + $0x48] sm:$0xff]  ;;  %v647_v5 = vunpack.c.l.bf16 %v630_v57 }
  0x13   :  { %382 = vmatpush1.bf16.msra.mxu0 %v951_v9  ;;  %925 = vmatpush1.bf16.msra.mxu1 %v951_v9  ;;  %v661_v60 = vunpack.c.l.bf16 %v637_v54  ;;  %v662_v0 = vunpack.c.h.bf16 %v637_v54  ;;  %v663_v6 = vunpack.c.l.bf16 %v638_v58 }
  0x14   :  { %383 = vmatprep.subr.bf16.mxu0 %v952_v10  ;;  %910 = vmatprep.subr.bf16.mxu1 %v952_v10  ;;  %v1187_v55 = vrot.slane %v585_v51, %v589_v50  ;;  %v1189_v56 = vrot.slane %v585_v51, %v593_v52 }
  0x17   :  { %384 = vmatpush1.bf16.msra.mxu0 %v954_v11  ;;  %926 = vmatpush1.bf16.msra.mxu1 %v954_v11  ;;  %v648_v11 = vunpack.c.h.bf16 %v630_v57 }
  0x18   :  { %385 = vmatprep.subr.bf16.mxu0 %v955_v12  ;;  %911 = vmatprep.subr.bf16.mxu1 %v955_v12  ;;  %v664_v12 = vunpack.c.h.bf16 %v638_v58 }
  0x1b   :  { %386 = vmatpush1.bf16.msra.mxu0 %v957_v14  ;;  %927 = vmatpush1.bf16.msra.mxu1 %v957_v14 }
  0x1c   :  { %387 = vmatprep.subr.bf16.mxu0 %v958_v16  ;;  %912 = vmatprep.subr.bf16.mxu1 %v958_v16 }
  0x1f   :  { %388 = vmatpush1.bf16.msra.mxu0 %v960_v17  ;;  %928 = vmatpush1.bf16.msra.mxu1 %v960_v17 }
  0x20   :  { %389 = vmatprep.subr.bf16.mxu0 %v961_v18  ;;  %913 = vmatprep.subr.bf16.mxu1 %v961_v18 }
  0x23   :  { %390 = vmatpush1.bf16.msra.mxu0 %v963_v19  ;;  %929 = vmatpush1.bf16.msra.mxu1 %v963_v19 }
  0x24   :  { %391 = vmatprep.subr.bf16.mxu0 %v964_v20  ;;  %914 = vmatprep.subr.bf16.mxu1 %v964_v20 }
  0x27   :  { %392 = vmatpush1.bf16.msra.mxu0 %v966_v21  ;;  %930 = vmatpush1.bf16.msra.mxu1 %v966_v21 }
  0x28   :  { %393 = vmatprep.subr.bf16.mxu0 %v967_v22  ;;  %915 = vmatprep.subr.bf16.mxu1 %v967_v22 }
  0x2b   :  { %394 = vmatpush1.bf16.msra.mxu0 %v969_v23  ;;  %931 = vmatpush1.bf16.msra.mxu1 %v969_v23  ;;  %v631_v23 = vld [vmem:[%s1316_s3 + $0x10] sm:$0xff] }
  0x2c   :  { %395 = vmatprep.subr.bf16.mxu0 %v970_v24  ;;  %916 = vmatprep.subr.bf16.mxu1 %v970_v24  ;;  %v639_v24 = vld [vmem:[%s1316_s3 + $0x50] sm:$0xff] }
  0x2f   :  { %396 = vmatpush1.bf16.msra.mxu0 %v972_v25  ;;  %932 = vmatpush1.bf16.msra.mxu1 %v972_v25 }
  0x30   :  { %397 = vmatprep.subr.bf16.mxu0 %v973_v26  ;;  %917 = vmatprep.subr.bf16.mxu1 %v973_v26 }
  0x33   :  { %398 = vmatpush1.bf16.msra.mxu0 %v975_v27  ;;  %933 = vmatpush1.bf16.msra.mxu1 %v975_v27 }
  0x34   :  { %399 = vmatprep.subr.bf16.mxu0 %v976_v28  ;;  %918 = vmatprep.subr.bf16.mxu1 %v976_v28 }
  0x37   :  { %400 = vmatpush1.bf16.msra.mxu0 %v978_v29  ;;  %934 = vmatpush1.bf16.msra.mxu1 %v978_v29 }
  0x38   :  { %401 = vmatprep.subr.bf16.mxu0 %v979_v30  ;;  %919 = vmatprep.subr.bf16.mxu1 %v979_v30 }
  0x3b   :  { %402 = vmatpush1.bf16.msra.mxu0 %v981_v31  ;;  %935 = vmatpush1.bf16.msra.mxu1 %v981_v31  ;;  %v632_v31 = vld [vmem:[%s1316_s3 + $0x18] sm:$0xff] }
  0x3c   :  { %403 = vmatprep.subr.bf16.mxu0 %v982_v32  ;;  %920 = vmatprep.subr.bf16.mxu1 %v982_v32  ;;  %v640_v32 = vld [vmem:[%s1316_s3 + $0x58] sm:$0xff]  ;;  %v652_v51 = vunpack.c.h.bf16 %v632_v31 }
  0x3d   :  { %v668_v52 = vunpack.c.h.bf16 %v640_v32 }
  0x3f   :  { %404 = vmatpush1.bf16.msra.mxu0 %v984_v33  ;;  %936 = vmatpush1.bf16.msra.mxu1 %v984_v33  ;;  %v649_v33 = vunpack.c.l.bf16 %v631_v23 }
  0x42   :  { %406 = vmatmul.mubr.bf16.vlgmr.msra.gmra.mrb[0].mxu0 %v985_v34  ;;  %446 = vmatmul.mubr.bf16.vlgmr.msra.gmra.mrb[0].mxu1 %v988_v35  ;;  %v665_v34 = vunpack.c.l.bf16 %v639_v24 }
  0x43   :  { %415 = vmatprep.mubr.bf16.mxu0 %v991_v36  ;;  %455 = vmatprep.mubr.bf16.mxu1 %v993_v37 }
  0x4a   :  { %416 = vmatmul.mubr.bf16.gmra.mrb[4].mxu0 %v995_v38  ;;  %456 = vmatmul.mubr.bf16.gmra.mrb[4].mxu1 %v996_v39  ;;  %v650_v39 = vunpack.c.h.bf16 %v631_v23 }
  0x4b   :  { %425 = vmatprep.mubr.bf16.mxu0 %v997_v40  ;;  %465 = vmatprep.mubr.bf16.mxu1 %v999_v41  ;;  %v666_v40 = vunpack.c.h.bf16 %v639_v24 }
  0x52   :  { %426 = vmatmul.mubr.bf16.gmra.mrb[8].mxu0 %v1001_v42  ;;  %466 = vmatmul.mubr.bf16.gmra.mrb[8].mxu1 %v1002_v43 }
  0x53   :  { %435 = vmatprep.mubr.bf16.mxu0 %v1003_v44  ;;  %475 = vmatprep.mubr.bf16.mxu1 %v1005_v45  ;;  %v651_v45 = vunpack.c.l.bf16 %v632_v31 }
  0x5a   :  { %436 = vmatmul.mubr.bf16.gmra.mrb[12].mxu0 %v1007_v46  ;;  %476 = vmatmul.mubr.bf16.gmra.mrb[12].mxu1 %v1008_v47  ;;  %v667_v46 = vunpack.c.l.bf16 %v640_v32 }
 0x115   :  { %v407_v61 = vpop.f32.mrb[0].mxu0  ;;  %v447_v62 = vpop.f32.mrb[0].mxu1 }
 0x116   :  { %v597_v1 = vadd.f32 %v1187_v55, %v407_v61  ;;  %v613_v2 = vadd.f32 %v1187_v55, %v447_v62  ;;  %v409_v3 = vpop.f32.mrb[1].mxu0  ;;  %v449_v4 = vpop.f32.mrb[1].mxu1 }
 0x117   :  { %v598_v7 = vadd.f32 %v1189_v56, %v409_v3  ;;  %v614_v8 = vadd.f32 %v1189_v56, %v449_v4  ;;  %v411_v9 = vpop.f32.mrb[2].mxu0  ;;  %v451_v10 = vpop.f32.mrb[2].mxu1 }
 0x118   :  { %v677_v13 = vadd.f32 %v645_v59, %v597_v1  ;;  %v693_v14 = vadd.f32 %v661_v60, %v613_v2  ;;  %v599_v15 = vadd.f32 %v1187_v55, %v411_v9  ;;  %v615_v16 = vadd.f32 %v1187_v55, %v451_v10  ;;  %v413_v17 = vpop.f32.mrb[3].mxu0  ;;  %v453_v18 = vpop.f32.mrb[3].mxu1  ;;  %v633_v1 = vld [vmem:[%s1316_s3 + $0x20] sm:$0xff]  ;;  %v634_v9 = vld [vmem:[%s1316_s3 + $0x28] sm:$0xff] }
 0x119   :  { %v678_v19 = vadd.f32 %v646_v63, %v598_v7  ;;  %v694_v20 = vadd.f32 %v662_v0, %v614_v8  ;;  %v600_v21 = vadd.f32 %v1189_v56, %v413_v17  ;;  %v616_v22 = vadd.f32 %v1189_v56, %v453_v18  ;;  %v641_v2 = vld [vmem:[%s1316_s3 + $0x60] sm:$0xff]  ;;  %v642_v10 = vld [vmem:[%s1316_s3 + $0x68] sm:$0xff] }
 0x11a   :  { %v679_v25 = vadd.f32 %v647_v5, %v599_v15  ;;  %v695_v26 = vadd.f32 %v663_v6, %v615_v16  ;;  %v654_v17 = vunpack.c.h.bf16 %v633_v1  ;;  %v670_v18 = vunpack.c.h.bf16 %v641_v2 }
 0x11b   :  { %v889_v27 = vpack.c.bf16 %v678_v19, %v677_v13  ;;  %v897_v28 = vpack.c.bf16 %v694_v20, %v693_v14  ;;  %v680_v29 = vadd.f32 %v648_v11, %v600_v21  ;;  %v696_v30 = vadd.f32 %v664_v12, %v616_v22 }
 0x11c   :  { %v653_v11 = vunpack.c.l.bf16 %v633_v1  ;;  %v669_v12 = vunpack.c.l.bf16 %v641_v2  ;;  %v655_v23 = vunpack.c.l.bf16 %v634_v9  ;;  %v671_v24 = vunpack.c.l.bf16 %v642_v10 }
 0x11d   :  { %805 = vst [vmem:[%s1317_s4] sm:$0xff] %v889_v27  ;;  %813 = vst [vmem:[%s1317_s4 + $0x40] sm:$0xff] %v897_v28  ;;  %v890_v35 = vpack.c.bf16 %v680_v29, %v679_v25  ;;  %v898_v36 = vpack.c.bf16 %v696_v30, %v695_v26  ;;  %v417_v37 = vpop.f32.mrb[4].mxu0  ;;  %v457_v38 = vpop.f32.mrb[4].mxu1  ;;  %v656_v29 = vunpack.c.h.bf16 %v634_v9  ;;  %v672_v30 = vunpack.c.h.bf16 %v642_v10 }
 0x11e   :  { %v601_v41 = vadd.f32 %v1187_v55, %v417_v37  ;;  %v617_v42 = vadd.f32 %v1187_v55, %v457_v38  ;;  %v419_v43 = vpop.f32.mrb[5].mxu0  ;;  %v459_v44 = vpop.f32.mrb[5].mxu1 }
 0x11f   :  { %806 = vst [vmem:[%s1317_s4 + $0x8] sm:$0xff] %v890_v35  ;;  %814 = vst [vmem:[%s1317_s4 + $0x48] sm:$0xff] %v898_v36  ;;  %v602_v47 = vadd.f32 %v1189_v56, %v419_v43  ;;  %v618_v48 = vadd.f32 %v1189_v56, %v459_v44  ;;  %v421_v49 = vpop.f32.mrb[6].mxu0  ;;  %v461_v50 = vpop.f32.mrb[6].mxu1 }
 0x120   :  { %v681_v53 = vadd.f32 %v649_v33, %v601_v41  ;;  %v697_v54 = vadd.f32 %v665_v34, %v617_v42  ;;  %v603_v57 = vadd.f32 %v1187_v55, %v421_v49  ;;  %v619_v58 = vadd.f32 %v1187_v55, %v461_v50  ;;  %v423_v59 = vpop.f32.mrb[7].mxu0  ;;  %v463_v60 = vpop.f32.mrb[7].mxu1  ;;  %v635_v41 = vld [vmem:[%s1316_s3 + $0x30] sm:$0xff]  ;;  %v636_v49 = vld [vmem:[%s1316_s3 + $0x38] sm:$0xff] }
 0x121   :  { %v682_v61 = vadd.f32 %v650_v39, %v602_v47  ;;  %v698_v62 = vadd.f32 %v666_v40, %v618_v48  ;;  %v604_v63 = vadd.f32 %v1189_v56, %v423_v59  ;;  %v620_v0 = vadd.f32 %v1189_v56, %v463_v60  ;;  %v643_v42 = vld [vmem:[%s1316_s3 + $0x70] sm:$0xff]  ;;  %v644_v50 = vld [vmem:[%s1316_s3 + $0x78] sm:$0xff] }
 0x122   :  { %v683_v3 = vadd.f32 %v651_v45, %v603_v57  ;;  %v699_v4 = vadd.f32 %v667_v46, %v619_v58  ;;  %v658_v59 = vunpack.c.h.bf16 %v635_v41  ;;  %v674_v60 = vunpack.c.h.bf16 %v643_v42 }
 0x123   :  { %v891_v5 = vpack.c.bf16 %v682_v61, %v681_v53  ;;  %v899_v6 = vpack.c.bf16 %v698_v62, %v697_v54  ;;  %v684_v7 = vadd.f32 %v652_v51, %v604_v63  ;;  %v700_v8 = vadd.f32 %v668_v52, %v620_v0 }
 0x124   :  { %v657_v51 = vunpack.c.l.bf16 %v635_v41  ;;  %v673_v52 = vunpack.c.l.bf16 %v643_v42  ;;  %v659_v1 = vunpack.c.l.bf16 %v636_v49  ;;  %v675_v2 = vunpack.c.l.bf16 %v644_v50 }
 0x125   :  { %807 = vst [vmem:[%s1317_s4 + $0x10] sm:$0xff] %v891_v5  ;;  %815 = vst [vmem:[%s1317_s4 + $0x50] sm:$0xff] %v899_v6  ;;  %v892_v13 = vpack.c.bf16 %v684_v7, %v683_v3  ;;  %v900_v14 = vpack.c.bf16 %v700_v8, %v699_v4  ;;  %v427_v15 = vpop.f32.mrb[8].mxu0  ;;  %v467_v16 = vpop.f32.mrb[8].mxu1  ;;  %v660_v7 = vunpack.c.h.bf16 %v636_v49  ;;  %v676_v8 = vunpack.c.h.bf16 %v644_v50 }
 0x126   :  { %v605_v19 = vadd.f32 %v1187_v55, %v427_v15  ;;  %v621_v20 = vadd.f32 %v1187_v55, %v467_v16  ;;  %v429_v21 = vpop.f32.mrb[9].mxu0  ;;  %v469_v22 = vpop.f32.mrb[9].mxu1 }
 0x127   :  { %808 = vst [vmem:[%s1317_s4 + $0x18] sm:$0xff] %v892_v13  ;;  %816 = vst [vmem:[%s1317_s4 + $0x58] sm:$0xff] %v900_v14  ;;  %v606_v25 = vadd.f32 %v1189_v56, %v429_v21  ;;  %v622_v26 = vadd.f32 %v1189_v56, %v469_v22  ;;  %v431_v27 = vpop.f32.mrb[10].mxu0  ;;  %v471_v28 = vpop.f32.mrb[10].mxu1 }
 0x128   :  { %v685_v31 = vadd.f32 %v653_v11, %v605_v19  ;;  %v701_v32 = vadd.f32 %v669_v12, %v621_v20  ;;  %v607_v33 = vadd.f32 %v1187_v55, %v431_v27  ;;  %v623_v34 = vadd.f32 %v1187_v55, %v471_v28  ;;  %v433_v35 = vpop.f32.mrb[11].mxu0  ;;  %v473_v36 = vpop.f32.mrb[11].mxu1 }
 0x129   :  { %v686_v37 = vadd.f32 %v654_v17, %v606_v25  ;;  %v702_v38 = vadd.f32 %v670_v18, %v622_v26  ;;  %v608_v39 = vadd.f32 %v1189_v56, %v433_v35  ;;  %v624_v40 = vadd.f32 %v1189_v56, %v473_v36 }
 0x12a   :  { %v687_v43 = vadd.f32 %v655_v23, %v607_v33  ;;  %v703_v44 = vadd.f32 %v671_v24, %v623_v34 }
 0x12b   :  { %v893_v45 = vpack.c.bf16 %v686_v37, %v685_v31  ;;  %v901_v46 = vpack.c.bf16 %v702_v38, %v701_v32  ;;  %v688_v47 = vadd.f32 %v656_v29, %v608_v39  ;;  %v704_v48 = vadd.f32 %v672_v30, %v624_v40 }
 0x12d   :  { %809 = vst [vmem:[%s1317_s4 + $0x20] sm:$0xff] %v893_v45  ;;  %817 = vst [vmem:[%s1317_s4 + $0x60] sm:$0xff] %v901_v46  ;;  %v894_v53 = vpack.c.bf16 %v688_v47, %v687_v43  ;;  %v902_v54 = vpack.c.bf16 %v704_v48, %v703_v44  ;;  %v437_v57 = vpop.f32.mrb[12].mxu0  ;;  %v477_v58 = vpop.f32.mrb[12].mxu1 }
 0x12e   :  { %v609_v61 = vadd.f32 %v1187_v55, %v437_v57  ;;  %v625_v62 = vadd.f32 %v1187_v55, %v477_v58  ;;  %v439_v63 = vpop.f32.mrb[13].mxu0  ;;  %v479_v0 = vpop.f32.mrb[13].mxu1 }
 0x12f   :  { %810 = vst [vmem:[%s1317_s4 + $0x28] sm:$0xff] %v894_v53  ;;  %818 = vst [vmem:[%s1317_s4 + $0x68] sm:$0xff] %v902_v54  ;;  %v610_v3 = vadd.f32 %v1189_v56, %v439_v63  ;;  %v626_v4 = vadd.f32 %v1189_v56, %v479_v0  ;;  %v441_v5 = vpop.f32.mrb[14].mxu0  ;;  %v481_v6 = vpop.f32.mrb[14].mxu1 }
 0x130   :  { %v689_v9 = vadd.f32 %v657_v51, %v609_v61  ;;  %v705_v10 = vadd.f32 %v673_v52, %v625_v62  ;;  %v611_v11 = vadd.f32 %v1187_v55, %v441_v5  ;;  %v627_v12 = vadd.f32 %v1187_v55, %v481_v6  ;;  %v443_v13 = vpop.f32.mrb[15].mxu0  ;;  %v483_v14 = vpop.f32.mrb[15].mxu1 }
 0x131   :  { %v690_v15 = vadd.f32 %v658_v59, %v610_v3  ;;  %v706_v16 = vadd.f32 %v674_v60, %v626_v4  ;;  %v612_v17 = vadd.f32 %v1189_v56, %v443_v13  ;;  %v628_v18 = vadd.f32 %v1189_v56, %v483_v14 }
 0x132   :  { %v691_v19 = vadd.f32 %v659_v1, %v611_v11  ;;  %v707_v20 = vadd.f32 %v675_v2, %v627_v12 }
 0x133   :  { %v895_v21 = vpack.c.bf16 %v690_v15, %v689_v9  ;;  %v903_v22 = vpack.c.bf16 %v706_v16, %v705_v10  ;;  %v692_v23 = vadd.f32 %v660_v7, %v612_v17  ;;  %v708_v24 = vadd.f32 %v676_v8, %v628_v18 }
 0x135   :  { %811 = vst [vmem:[%s1317_s4 + $0x30] sm:$0xff] %v895_v21  ;;  %819 = vst [vmem:[%s1317_s4 + $0x70] sm:$0xff] %v903_v22  ;;  %v896_v55 = vpack.c.bf16 %v692_v23, %v691_v19  ;;  %v904_v25 = vpack.c.bf16 %v708_v24, %v707_v20 }
 0x137   :  { %812 = vst [vmem:[%s1317_s4 + $0x38] sm:$0xff] %v896_v55  ;;  %820 = vst [vmem:[%s1317_s4 + $0x78] sm:$0xff] %v904_v25 }

// kernel: sam_image_embedding.17
= control target key start
LH: loop header
LB: loop body
LE: loop exit
PB: predicated region body
PF: predicated region fallthrough
CT: control target
= control target key end

     0   :  { %s2168_s18 = smov 0   ;;  %s2170_s19 = smov 0   ;;  %s3178_s0 = inlined_call_operand.vmem [shape: bf16[128,256], index: 0, kind: input, shape index: {}]   ;;  %s3179_s1 = inlined_call_operand.vmem [shape: f32[1,256], index: 1, kind: input, shape index: {}]   ;;  %s3180_s2 = inlined_call_operand.vmem [shape: f32[1,256], index: 2, kind: input, shape index: {}]   ;;  %s3181_s3 = inlined_call_operand.vmem [shape: bf16[256,512], index: 3, kind: input, shape index: {}]   ;;  %s3182_s4 = inlined_call_operand.vmem [shape: f32[1,512], index: 4, kind: input, shape index: {}]   ;;  %s3183_s5 = inlined_call_operand.vmem [shape: bf16[128,512], index: 5, kind: output, shape index: {}]  }
   0x1   :  { %s2172_s20 = smov 0   ;;  %s2174_s21 = smov 0  }
   0x2   :  { %s2176_s22 = smov 0  }
   0x3 LB: > { %s24_s23 = sadd.s32 1, %s2132_s21  ;;  %s1798_s24 = sadd.s32 4294967295, %s2136_s22   ;;  %s2136_s22 = sphi %s2176_s22, %s15_s22   ;;  %s2132_s21 = sphi %s2174_s21, %s3188_s21   ;;  %s2128_s20 = sphi %s2172_s20, %s3187_s20   ;;  %s2124_s19 = sphi %s2170_s19, %s3186_s19   ;;  %s2120_s18 = sphi %s2168_s18, %s3185_s18  }
   0x4   : > { %p25_p0 = scmp.ge.s32.totalorder %s24_s23, 2  ;;  %p109_p1 = scmp.ne.s32.totalorder %s2124_s19, %s2120_s18 }
   0x5   : > { %p110_p2 = scmp.eq.s32.totalorder %s2136_s22, 0  ;;  %p167_p4 = scmp.eq.s32.totalorder %s1798_s24, 1 }
   0x6   : > { %s3190_s23 = smov (%p25_p0, %s24_s23), 0  ;;  %s102_s26 = sadd.s32 1, %s2124_s19 }
   0x7   : > { %p111_p3 = por %p110_p2, %p109_p1  ;;  %s99_s25 = ssub.s32 %s2132_s21, %s3190_s23 }
   0x8   : > { %p100_p5 = scmp.eq.s32.totalorder %s99_s25, 0  ;;  %p2203_p6 = por %p167_p4, %p109_p1 }
   0x9   : > { %p1802_p7 = scmp.ge.s32.totalorder %s2136_s22, 2 }
   0xa   : > { %s2208_s28 = scalar_select %p100_p5, %s2124_s19, %s102_s26  }
   0xb   : > { %205 = sbr.rel (%p1802_p7) target bundleno = 38 (0x26), region = 28 }
  0x12   : > { %208 = sbr.rel (!%p111_p3) target bundleno = 38 (0x26), region = 32  ;;  %s210_s29 = sand.u32 (%p111_p3), 1, %s2124_s19  }
  0x13   : > { %s1864_s30 = sshll.u32 (%p111_p3), %s2132_s21, 3  ;;  %s1803_s6 = sshll.u32 (%p111_p3), %s210_s29, 8 }
  0x14   : > { %s2216_s9 = scalar_lea.vmem (%p111_p3), %s3181_s3, %s1864_s30  ;;  %s2221_s10 = scalar_lea.vmem (%p111_p3), [#allocation3], %s1803_s6 }
  0x15   : > { %v305_v0 = vld [vmem:[%s2216_s9] sm:$0xff] (%p111_p3)  ;;  %v307_v1 = vld [vmem:[%s2216_s9 + $0x10] sm:$0xff] (%p111_p3) }
  0x16   : > { %v309_v2 = vld [vmem:[%s2216_s9 + $0x20] sm:$0xff] (%p111_p3)  ;;  %306 = vst [vmem:[%s2221_s10] sm:$0xff] (%p111_p3), %v305_v0  ;;  %308 = vst [vmem:[%s2221_s10 + $0x8] sm:$0xff] (%p111_p3), %v307_v1  ;;  %v311_v3 = vld [vmem:[%s2216_s9 + $0x30] sm:$0xff] (%p111_p3) }
  0x17   : > { %310 = vst [vmem:[%s2221_s10 + $0x10] sm:$0xff] (%p111_p3), %v309_v2  ;;  %v313_v4 = vld [vmem:[%s2216_s9 + $0x40] sm:$0xff] (%p111_p3)  ;;  %v315_v5 = vld [vmem:[%s2216_s9 + $0x50] sm:$0xff] (%p111_p3)  ;;  %312 = vst [vmem:[%s2221_s10 + $0x18] sm:$0xff] (%p111_p3), %v311_v3 }
  0x18   : > { %314 = vst [vmem:[%s2221_s10 + $0x20] sm:$0xff] (%p111_p3), %v313_v4  ;;  %316 = vst [vmem:[%s2221_s10 + $0x28] sm:$0xff] (%p111_p3), %v315_v5  ;;  %v317_v6 = vld [vmem:[%s2216_s9 + $0x60] sm:$0xff] (%p111_p3)  ;;  %v319_v7 = vld [vmem:[%s2216_s9 + $0x70] sm:$0xff] (%p111_p3) }
  0x19   : > { %v321_v8 = vld [vmem:[%s2216_s9 + $0x80] sm:$0xff]  ;;  %318 = vst [vmem:[%s2221_s10 + $0x30] sm:$0xff] %v317_v6  ;;  %320 = vst [vmem:[%s2221_s10 + $0x38] sm:$0xff] %v319_v7  ;;  %v323_v9 = vld [vmem:[%s2216_s9 + $0x90] sm:$0xff] }
  0x1a   : > { %322 = vst [vmem:[%s2221_s10 + $0x40] sm:$0xff] %v321_v8  ;;  %v325_v10 = vld [vmem:[%s2216_s9 + $0xa0] sm:$0xff]  ;;  %v327_v11 = vld [vmem:[%s2216_s9 + $0xb0] sm:$0xff]  ;;  %324 = vst [vmem:[%s2221_s10 + $0x48] sm:$0xff] %v323_v9 }
  0x1b   : > { %326 = vst [vmem:[%s2221_s10 + $0x50] sm:$0xff] %v325_v10  ;;  %328 = vst [vmem:[%s2221_s10 + $0x58] sm:$0xff] %v327_v11  ;;  %v329_v12 = vld [vmem:[%s2216_s9 + $0xc0] sm:$0xff]  ;;  %v331_v13 = vld [vmem:[%s2216_s9 + $0xd0] sm:$0xff] }
  0x1c   : > { %v333_v14 = vld [vmem:[%s2216_s9 + $0xe0] sm:$0xff]  ;;  %330 = vst [vmem:[%s2221_s10 + $0x60] sm:$0xff] %v329_v12  ;;  %332 = vst [vmem:[%s2221_s10 + $0x68] sm:$0xff] %v331_v13  ;;  %v335_v15 = vld [vmem:[%s2216_s9 + $0xf0] sm:$0xff] }
  0x1d   : > { %334 = vst [vmem:[%s2221_s10 + $0x70] sm:$0xff] %v333_v14  ;;  %v337_v16 = vld [vmem:[%s2216_s9 + $0x100] sm:$0xff]  ;;  %v339_v17 = vld [vmem:[%s2216_s9 + $0x110] sm:$0xff]  ;;  %336 = vst [vmem:[%s2221_s10 + $0x78] sm:$0xff] %v335_v15 }
  0x1e   : > { %338 = vst [vmem:[%s2221_s10 + $0x80] sm:$0xff] %v337_v16  ;;  %340 = vst [vmem:[%s2221_s10 + $0x88] sm:$0xff] %v339_v17  ;;  %v341_v18 = vld [vmem:[%s2216_s9 + $0x120] sm:$0xff]  ;;  %v343_v19 = vld [vmem:[%s2216_s9 + $0x130] sm:$0xff] }
  0x1f   : > { %v345_v20 = vld [vmem:[%s2216_s9 + $0x140] sm:$0xff]  ;;  %342 = vst [vmem:[%s2221_s10 + $0x90] sm:$0xff] %v341_v18  ;;  %344 = vst [vmem:[%s2221_s10 + $0x98] sm:$0xff] %v343_v19  ;;  %v347_v21 = vld [vmem:[%s2216_s9 + $0x150] sm:$0xff] }
  0x20   : > { %346 = vst [vmem:[%s2221_s10 + $0xa0] sm:$0xff] %v345_v20  ;;  %v349_v22 = vld [vmem:[%s2216_s9 + $0x160] sm:$0xff]  ;;  %v351_v23 = vld [vmem:[%s2216_s9 + $0x170] sm:$0xff]  ;;  %348 = vst [vmem:[%s2221_s10 + $0xa8] sm:$0xff] %v347_v21 }
  0x21   : > { %350 = vst [vmem:[%s2221_s10 + $0xb0] sm:$0xff] %v349_v22  ;;  %352 = vst [vmem:[%s2221_s10 + $0xb8] sm:$0xff] %v351_v23  ;;  %v353_v24 = vld [vmem:[%s2216_s9 + $0x180] sm:$0xff]  ;;  %v355_v25 = vld [vmem:[%s2216_s9 + $0x190] sm:$0xff] }
  0x22   : > { %v357_v26 = vld [vmem:[%s2216_s9 + $0x1a0] sm:$0xff]  ;;  %354 = vst [vmem:[%s2221_s10 + $0xc0] sm:$0xff] %v353_v24  ;;  %356 = vst [vmem:[%s2221_s10 + $0xc8] sm:$0xff] %v355_v25  ;;  %v359_v27 = vld [vmem:[%s2216_s9 + $0x1b0] sm:$0xff] }
  0x23   : > { %358 = vst [vmem:[%s2221_s10 + $0xd0] sm:$0xff] %v357_v26  ;;  %v361_v28 = vld [vmem:[%s2216_s9 + $0x1c0] sm:$0xff]  ;;  %v363_v29 = vld [vmem:[%s2216_s9 + $0x1d0] sm:$0xff]  ;;  %360 = vst [vmem:[%s2221_s10 + $0xd8] sm:$0xff] %v359_v27 }
  0x24   : > { %362 = vst [vmem:[%s2221_s10 + $0xe0] sm:$0xff] %v361_v28  ;;  %364 = vst [vmem:[%s2221_s10 + $0xe8] sm:$0xff] %v363_v29  ;;  %v365_v30 = vld [vmem:[%s2216_s9 + $0x1e0] sm:$0xff]  ;;  %v367_v31 = vld [vmem:[%s2216_s9 + $0x1f0] sm:$0xff] }
  0x25   : > { %366 = vst [vmem:[%s2221_s10 + $0xf0] sm:$0xff] %v365_v30  ;;  %368 = vst [vmem:[%s2221_s10 + $0xf8] sm:$0xff] %v367_v31 }
  0x26 PF: > { %p1806_p8 = scmp.ge.s32.totalorder %s2136_s22, 1  ;;  %p381_p9 = scmp.lt.s32.totalorder %s2136_s22, 3 }
  0x28   : > { %p382_p10 = pnand %p1806_p8, %p381_p9 }
  0x29   : > { %s388_s11 = sand.u32 (!%p382_p10), 1, %s2120_s18   ;;  %s1809_s12 = sshll.u32 (!%p382_p10), %s2128_s20, 1 }
  0x2a   : > { %385 = sbr.rel (%p382_p10) target bundleno = 799 (0x31f), region = 74  ;;  %s1807_s13 = sshll.u32 (!%p382_p10), %s388_s11, 8 }
  0x2b   : > { %s1808_s14 = sshll.u32 (!%p382_p10), %s388_s11, 7  ;;  %p433_p11 = scmp.lt.s32.totalorder (!%p382_p10), %s1809_s12, 3 }
  0x2c   : > { %s2294_s24 = scalar_lea.vmem (!%p382_p10), [#allocation3], %s1807_s13  ;;  %s2296_s25 = scalar_lea.vmem (!%p382_p10), [#allocation4], %s1808_s14 }
  0x2d   : > { %p1810_p12 = scmp.ne.s32.totalorder (!%p382_p10), %s2128_s20, 0 }
  0x31   : > { %s3192_s12 = smov (!%p433_p11, %s1809_s12), 3  ;;  %442 = sbr.rel (%p1810_p12) target bundleno = 410 (0x19a), region = 82 }
  0x32   : > { %s435_s17 = scalar_lea.vmem %s3182_s4, %s3192_s12  ;;  %v2302_v32 = vld [vmem:[%s3178_s0] sm:$0xff] (!%p1810_p12)  ;;  %v2307_v33 = vld [vmem:[%s3178_s0 + $0x10] sm:$0xff] (!%p1810_p12)  ;;  %v2312_v34 = vld [vmem:[%s3178_s0 + $0x8] sm:$0xff] (!%p1810_p12) }
  0x33   : > { %v459_v35 = vunpack.c.l.bf16 (!%p1810_p12), %v2302_v32  ;;  %v460_v36 = vunpack.c.h.bf16 (!%p1810_p12), %v2302_v32  ;;  %v463_v37 = vunpack.c.l.bf16 (!%p1810_p12), %v2307_v33  ;;  %v464_v38 = vunpack.c.h.bf16 (!%p1810_p12), %v2307_v33  ;;  %v2321_v39 = vld [vmem:[%s3178_s0 + $0x18] sm:$0xff] (!%p1810_p12)  ;;  %v2326_v40 = vld [vmem:[%s3178_s0 + $0x20] sm:$0xff] (!%p1810_p12)  ;;  %v2335_v45 = vld [vmem:[%s3178_s0 + $0x28] sm:$0xff] (!%p1810_p12) }
  0x34   : > { %v461_v41 = vunpack.c.l.bf16 (!%p1810_p12), %v2312_v34  ;;  %v462_v42 = vunpack.c.h.bf16 (!%p1810_p12), %v2312_v34  ;;  %v465_v43 = vunpack.c.l.bf16 (!%p1810_p12), %v2321_v39  ;;  %v466_v44 = vunpack.c.h.bf16 (!%p1810_p12), %v2321_v39  ;;  %v2360_v54 = vld [vmem:[%s3178_s0 + $0x30] sm:$0xff] (!%p1810_p12)  ;;  %v2365_v55 = vld [vmem:[%s3178_s0 + $0x38] sm:$0xff] (!%p1810_p12)  ;;  %v2382_v62 = vld [vmem:[%s3178_s0 + $0x40] sm:$0xff] (!%p1810_p12) }
  0x35   : > { %v491_v46 = vadd.f32 (!%p1810_p12), %v460_v36, %v459_v35  ;;  %v497_v47 = vadd.f32 (!%p1810_p12), %v464_v38, %v463_v37  ;;  %v467_v48 = vunpack.c.l.bf16 (!%p1810_p12), %v2326_v40  ;;  %v468_v49 = vunpack.c.h.bf16 (!%p1810_p12), %v2326_v40  ;;  %v2387_v63 = vld [vmem:[%s3178_s0 + $0x48] sm:$0xff] (!%p1810_p12)  ;;  %v2404_v6 = vld [vmem:[%s3178_s0 + $0x50] sm:$0xff] (!%p1810_p12)  ;;  %v2409_v7 = vld [vmem:[%s3178_s0 + $0x58] sm:$0xff] (!%p1810_p12) }
  0x36   : > { %v494_v50 = vadd.f32 (!%p1810_p12), %v462_v42, %v461_v41  ;;  %v500_v51 = vadd.f32 (!%p1810_p12), %v466_v44, %v465_v43  ;;  %v469_v52 = vunpack.c.l.bf16 (!%p1810_p12), %v2335_v45  ;;  %v470_v53 = vunpack.c.h.bf16 (!%p1810_p12), %v2335_v45  ;;  %v2426_v14 = vld [vmem:[%s3178_s0 + $0x60] sm:$0xff] (!%p1810_p12)  ;;  %v2431_v15 = vld [vmem:[%s3178_s0 + $0x68] sm:$0xff] (!%p1810_p12)  ;;  %v2448_v22 = vld [vmem:[%s3178_s0 + $0x70] sm:$0xff] (!%p1810_p12) }
  0x37   : > { %492 = vadd.xlane.f32.xlu0 (!%p1810_p12), %v491_v46  ;;  %498 = vadd.xlane.f32.xlu1 (!%p1810_p12), %v497_v47  ;;  %v503_v56 = vadd.f32 (!%p1810_p12), %v468_v49, %v467_v48  ;;  %v471_v57 = vunpack.c.l.bf16 (!%p1810_p12), %v2360_v54  ;;  %v472_v59 = vunpack.c.h.bf16 (!%p1810_p12), %v2360_v54  ;;  %v473_v60 = vunpack.c.l.bf16 (!%p1810_p12), %v2365_v55  ;;  %v2453_v23 = vld [vmem:[%s3178_s0 + $0x78] sm:$0xff] (!%p1810_p12) }
  0x38   : > { %v506_v58 = vadd.f32 %v470_v53, %v469_v52  ;;  %v474_v61 = vunpack.c.h.bf16 %v2365_v55  ;;  %v475_v0 = vunpack.c.l.bf16 %v2382_v62  ;;  %v476_v1 = vunpack.c.h.bf16 %v2382_v62 }
  0x39   : > { %v509_v2 = vadd.f32 %v472_v59, %v471_v57  ;;  %v477_v4 = vunpack.c.l.bf16 %v2387_v63  ;;  %v478_v5 = vunpack.c.h.bf16 %v2387_v63  ;;  %v479_v9 = vunpack.c.l.bf16 %v2404_v6 }
  0x3a   : > { %v512_v3 = vadd.f32 %v474_v61, %v473_v60  ;;  %v515_v8 = vadd.f32 %v476_v1, %v475_v0  ;;  %v480_v11 = vunpack.c.h.bf16 %v2404_v6  ;;  %v481_v12 = vunpack.c.l.bf16 %v2409_v7 }
  0x3b   : > { %495 = vadd.xlane.f32.xlu0 %v494_v50  ;;  %501 = vadd.xlane.f32.xlu1 %v500_v51  ;;  %v518_v10 = vadd.f32 %v478_v5, %v477_v4  ;;  %v482_v13 = vunpack.c.h.bf16 %v2409_v7  ;;  %v483_v16 = vunpack.c.l.bf16 %v2426_v14  ;;  %v484_v17 = vunpack.c.h.bf16 %v2426_v14 }
  0x3c   : > { %v521_v18 = vadd.f32 %v480_v11, %v479_v9  ;;  %v485_v20 = vunpack.c.l.bf16 %v2431_v15  ;;  %v486_v21 = vunpack.c.h.bf16 %v2431_v15  ;;  %v487_v25 = vunpack.c.l.bf16 %v2448_v22 }
  0x3d   : > { %v524_v19 = vadd.f32 %v482_v13, %v481_v12  ;;  %v527_v24 = vadd.f32 %v484_v17, %v483_v16  ;;  %v488_v27 = vunpack.c.h.bf16 %v2448_v22  ;;  %v489_v28 = vunpack.c.l.bf16 %v2453_v23 }
  0x3e   : > { %v530_v26 = vadd.f32 %v486_v21, %v485_v20  ;;  %v490_v29 = vunpack.c.h.bf16 %v2453_v23 }
  0x3f   : > { %504 = vadd.xlane.f32.xlu0 %v503_v56  ;;  %507 = vadd.xlane.f32.xlu1 %v506_v58  ;;  %v533_v30 = vadd.f32 %v488_v27, %v487_v25 }
  0x40   : > { %v536_v31 = vadd.f32 %v490_v29, %v489_v28 }
  0x43   : > { %510 = vadd.xlane.f32.xlu0 %v509_v2  ;;  %513 = vadd.xlane.f32.xlu1 %v512_v3 }
  0x47   : > { %516 = vadd.xlane.f32.xlu0 %v515_v8  ;;  %519 = vadd.xlane.f32.xlu1 %v518_v10 }
  0x4b   : > { %522 = vadd.xlane.f32.xlu0 %v521_v18  ;;  %525 = vadd.xlane.f32.xlu1 %v524_v19 }
  0x4f   : > { %528 = vadd.xlane.f32.xlu0 %v527_v24  ;;  %531 = vadd.xlane.f32.xlu1 %v530_v26 }
  0x53   : > { %534 = vadd.xlane.f32.xlu0 %v533_v30  ;;  %537 = vadd.xlane.f32.xlu1 %v536_v31 }
  0xc4   : > { %v493_v46 = vpop.xlane.xlu0 %492  ;;  %v499_v47 = vpop.xlane.xlu1 %498 }
  0xc5   : > { %v540_v50 = vmul.f32 0.00390625, %v493_v46  ;;  %v542_v51 = vmul.f32 0.00390625, %v499_v47 }
  0xc7   : > { %v2477_v56 = vsub.f32 %v459_v35, %v540_v50  ;;  %v2481_v58 = vsub.f32 %v460_v36, %v540_v50  ;;  %v2485_v2 = vsub.f32 %v463_v37, %v542_v51  ;;  %v2489_v3 = vsub.f32 %v464_v38, %v542_v51 }
  0xc8   : > { %v496_v8 = vpop.xlane.xlu0 %495  ;;  %v502_v10 = vpop.xlane.xlu1 %501 }
  0xc9   : > { %v541_v18 = vmul.f32 0.00390625, %v496_v8  ;;  %v543_v19 = vmul.f32 0.00390625, %v502_v10  ;;  %v588_v35 = vmul.f32 %v2477_v56, %v2477_v56  ;;  %v589_v32 = vmul.f32 %v2481_v58, %v2481_v58 }
  0xca   : > { %v592_v36 = vmul.f32 %v2485_v2, %v2485_v2  ;;  %v593_v37 = vmul.f32 %v2489_v3, %v2489_v3 }
  0xcb   : > { %v2501_v33 = vsub.f32 %v461_v41, %v541_v18  ;;  %v2505_v38 = vsub.f32 %v462_v42, %v541_v18  ;;  %v2509_v24 = vsub.f32 %v465_v43, %v543_v19  ;;  %v2513_v26 = vsub.f32 %v466_v44, %v543_v19 }
  0xcc   : > { %v505_v30 = vpop.xlane.xlu0 %504  ;;  %v620_v31 = vadd.f32 %v589_v32, %v588_v35  ;;  %v508_v46 = vpop.xlane.xlu1 %507  ;;  %v626_v42 = vadd.f32 %v593_v37, %v592_v36 }
  0xcd   : > { %v544_v47 = vmul.f32 0.00390625, %v505_v30  ;;  %v545_v50 = vmul.f32 0.00390625, %v508_v46  ;;  %v590_v41 = vmul.f32 %v2501_v33, %v2501_v33  ;;  %v591_v34 = vmul.f32 %v2505_v38, %v2505_v38 }
  0xce   : > { %621 = vadd.xlane.f32.xlu0 %v620_v31  ;;  %v594_v43 = vmul.f32 %v2509_v24, %v2509_v24  ;;  %v595_v39 = vmul.f32 %v2513_v26, %v2513_v26 }
  0xcf   : > { %v2525_v44 = vsub.f32 %v467_v48, %v544_v47  ;;  %v2529_v51 = vsub.f32 %v468_v49, %v544_v47  ;;  %v2533_v8 = vsub.f32 %v469_v52, %v545_v50  ;;  %v2537_v10 = vsub.f32 %v470_v53, %v545_v50 }
  0xd0   : > { %v511_v18 = vpop.xlane.xlu0 %510  ;;  %v623_v19 = vadd.f32 %v591_v34, %v590_v41  ;;  %v514_v35 = vpop.xlane.xlu1 %513  ;;  %v629_v49 = vadd.f32 %v595_v39, %v594_v43 }
  0xd1   : > { %v546_v32 = vmul.f32 0.00390625, %v511_v18  ;;  %v547_v36 = vmul.f32 0.00390625, %v514_v35  ;;  %v596_v48 = vmul.f32 %v2525_v44, %v2525_v44  ;;  %v597_v40 = vmul.f32 %v2529_v51, %v2529_v51 }
  0xd2   : > { %627 = vadd.xlane.f32.xlu0 %v626_v42  ;;  %624 = vadd.xlane.f32.xlu1 %v623_v19  ;;  %v598_v52 = vmul.f32 %v2533_v8, %v2533_v8  ;;  %v599_v45 = vmul.f32 %v2537_v10, %v2537_v10 }
  0xd3   : > { %v2549_v53 = vsub.f32 %v471_v57, %v546_v32  ;;  %v2553_v37 = vsub.f32 %v472_v59, %v546_v32  ;;  %v2557_v30 = vsub.f32 %v473_v60, %v547_v36  ;;  %v2561_v31 = vsub.f32 %v474_v61, %v547_v36 }
  0xd4   : > { %v517_v46 = vpop.xlane.xlu0 %516  ;;  %v632_v47 = vadd.f32 %v597_v40, %v596_v48  ;;  %v520_v50 = vpop.xlane.xlu1 %519  ;;  %v635_v59 = vadd.f32 %v599_v45, %v598_v52 }
  0xd5   : > { %v548_v41 = vmul.f32 0.00390625, %v517_v46  ;;  %v549_v34 = vmul.f32 0.00390625, %v520_v50  ;;  %v600_v57 = vmul.f32 %v2549_v53, %v2549_v53  ;;  %v601_v54 = vmul.f32 %v2553_v37, %v2553_v37 }
  0xd6   : > { %630 = vadd.xlane.f32.xlu1 %v629_v49  ;;  %633 = vadd.xlane.f32.xlu0 %v632_v47  ;;  %v602_v60 = vmul.f32 %v2557_v30, %v2557_v30  ;;  %v603_v55 = vmul.f32 %v2561_v31, %v2561_v31 }
  0xd7   : > { %v2573_v61 = vsub.f32 %v475_v0, %v548_v41  ;;  %v2577_v42 = vsub.f32 %v476_v1, %v548_v41  ;;  %v2581_v43 = vsub.f32 %v477_v4, %v549_v34  ;;  %v2585_v39 = vsub.f32 %v478_v5, %v549_v34 }
  0xd8   : > { %v523_v18 = vpop.xlane.xlu0 %522  ;;  %v638_v19 = vadd.f32 %v601_v54, %v600_v57  ;;  %v526_v35 = vpop.xlane.xlu1 %525  ;;  %v641_v1 = vadd.f32 %v603_v55, %v602_v60 }
  0xd9   : > { %v550_v32 = vmul.f32 0.00390625, %v523_v18  ;;  %v551_v36 = vmul.f32 0.00390625, %v526_v35  ;;  %v604_v0 = vmul.f32 %v2573_v61, %v2573_v61  ;;  %v605_v62 = vmul.f32 %v2577_v42, %v2577_v42 }
  0xda   : > { %636 = vadd.xlane.f32.xlu1 %v635_v59  ;;  %639 = vadd.xlane.f32.xlu0 %v638_v19  ;;  %v606_v4 = vmul.f32 %v2581_v43, %v2581_v43  ;;  %v607_v63 = vmul.f32 %v2585_v39, %v2585_v39 }
  0xdb   : > { %v2597_v5 = vsub.f32 %v479_v9, %v550_v32  ;;  %v2601_v48 = vsub.f32 %v480_v11, %v550_v32  ;;  %v2605_v40 = vsub.f32 %v481_v12, %v551_v36  ;;  %v2609_v49 = vsub.f32 %v482_v13, %v551_v36 }
  0xdc   : > { %v529_v52 = vpop.xlane.xlu0 %528  ;;  %v644_v45 = vadd.f32 %v605_v62, %v604_v0  ;;  %v532_v46 = vpop.xlane.xlu1 %531  ;;  %v647_v11 = vadd.f32 %v607_v63, %v606_v4  ;;  %v750_v4 = vlaneseq }
  0xdd   : > { %v552_v47 = vmul.f32 0.00390625, %v529_v52  ;;  %v553_v50 = vmul.f32 0.00390625, %v532_v46  ;;  %v608_v9 = vmul.f32 %v2597_v5, %v2597_v5  ;;  %v609_v6 = vmul.f32 %v2601_v48, %v2601_v48 }
  0xde   : > { %642 = vadd.xlane.f32.xlu1 %v641_v1  ;;  %645 = vadd.xlane.f32.xlu0 %v644_v45  ;;  %v610_v12 = vmul.f32 %v2605_v40, %v2605_v40  ;;  %v611_v7 = vmul.f32 %v2609_v49, %v2609_v49 }
  0xdf   : > { %v2621_v13 = vsub.f32 %v483_v16, %v552_v47  ;;  %v2625_v41 = vsub.f32 %v484_v17, %v552_v47  ;;  %v2629_v34 = vsub.f32 %v485_v20, %v553_v50  ;;  %v2633_v57 = vsub.f32 %v486_v21, %v553_v50 }
  0xe0   : > { %v535_v54 = vpop.xlane.xlu0 %534  ;;  %v650_v59 = vadd.f32 %v609_v6, %v608_v9  ;;  %v538_v60 = vpop.xlane.xlu1 %537  ;;  %v653_v17 = vadd.f32 %v611_v7, %v610_v12  ;;  %v751_v50 = vshrl.u32 %v750_v4, 7 }
  0xe1   : > { %v554_v55 = vmul.f32 0.00390625, %v535_v54  ;;  %v555_v18 = vmul.f32 0.00390625, %v538_v60  ;;  %v612_v16 = vmul.f32 %v2621_v13, %v2621_v13  ;;  %v613_v14 = vmul.f32 %v2625_v41, %v2625_v41 }
  0xe2   : > { %648 = vadd.xlane.f32.xlu1 %v647_v11  ;;  %651 = vadd.xlane.f32.xlu0 %v650_v59  ;;  %v614_v20 = vmul.f32 %v2629_v34, %v2629_v34  ;;  %v615_v15 = vmul.f32 %v2633_v57, %v2633_v57  ;;  %v752_v59 = vsub.s32 0, %v751_v50  ;;  %v756_v60 = vsub.s32 1, %v751_v50 }
  0xe3   : > { %v2645_v21 = vsub.f32 %v487_v25, %v554_v55  ;;  %v2649_v19 = vsub.f32 %v488_v27, %v554_v55  ;;  %v2653_v35 = vsub.f32 %v489_v28, %v555_v18  ;;  %v2657_v32 = vsub.f32 %v490_v29, %v555_v18  ;;  %v748_v55 = vld [vmem:[%s3179_s1] sm:$0x3] }
  0xe4   : > { %v656_v36 = vadd.f32 %v613_v14, %v612_v16  ;;  %v659_v22 = vadd.f32 %v615_v15, %v614_v20  ;;  %v792_v20 = vld [vmem:[%s3180_s2] sm:$0x3] }
  0xe5   : > { %v616_v0 = vmul.f32 %v2645_v21, %v2645_v21  ;;  %v617_v25 = vmul.f32 %v2649_v19, %v2649_v19  ;;  %v618_v27 = vmul.f32 %v2653_v35, %v2653_v35  ;;  %v619_v28 = vmul.f32 %v2657_v32, %v2657_v32 }
  0xe6   : > { %654 = vadd.xlane.f32.xlu1 %v653_v17  ;;  %657 = vadd.xlane.f32.xlu0 %v656_v36 }
  0xe7   : > { %v662_v62 = vadd.f32 %v617_v25, %v616_v0  ;;  %v665_v23 = vadd.f32 %v619_v28, %v618_v27  ;;  %v2673_v0 = vrot.slane %v748_v55, %v752_v59  ;;  %v2675_v25 = vrot.slane %v748_v55, %v756_v60 }
  0xea   : > { %660 = vadd.xlane.f32.xlu1 %v659_v22  ;;  %663 = vadd.xlane.f32.xlu0 %v662_v62  ;;  %v2677_v62 = vrot.slane %v792_v20, %v752_v59 }
  0xee   : > { %666 = vadd.xlane.f32.xlu1 %v665_v23 }
 0x15b   : > { %v622_v29 = vpop.xlane.xlu0 %621 }
 0x15c   : > { %v668_v1 = vmul.f32 0.00390625, %v622_v29 }
 0x15e   : > { %v684_v63 = vadd.f32 1e-06, %v668_v1 }
 0x15f   : > { %v625_v52 = vpop.xlane.xlu1 %624  ;;  %v628_v45 = vpop.xlane.xlu0 %627 }
 0x160   : > { %1954 = vrsqrt.f32 %v684_v63  ;;  %v669_v46 = vmul.f32 0.00390625, %v625_v52  ;;  %v670_v47 = vmul.f32 0.00390625, %v628_v45  ;;  %v2681_v45 = vrot.slane %v792_v20, %v756_v60 }
 0x162   : > { %v685_v9 = vadd.f32 1e-06, %v669_v46  ;;  %v686_v6 = vadd.f32 1e-06, %v670_v47 }
 0x163   : > { %v631_v11 = vpop.xlane.xlu1 %630  ;;  %v634_v12 = vpop.xlane.xlu0 %633 }
 0x164   : > { %1956 = vrsqrt.f32 %v685_v9  ;;  %v671_v7 = vmul.f32 0.00390625, %v631_v11  ;;  %v672_v54 = vmul.f32 0.00390625, %v634_v12 }
 0x165   : > { %1958 = vrsqrt.f32 %v686_v6 }
 0x166   : > { %v687_v18 = vadd.f32 1e-06, %v671_v7  ;;  %v688_v16 = vadd.f32 1e-06, %v672_v54 }
 0x167   : > { %v637_v14 = vpop.xlane.xlu1 %636  ;;  %v640_v17 = vpop.xlane.xlu0 %639 }
 0x168   : > { %1960 = vrsqrt.f32 %v687_v18  ;;  %v673_v15 = vmul.f32 0.00390625, %v637_v14  ;;  %v674_v36 = vmul.f32 0.00390625, %v640_v17 }
 0x169   : > { %1962 = vrsqrt.f32 %v688_v16 }
 0x16a   : > { %v1955_v22 = vpop.eup %1954  ;;  %v689_v27 = vadd.f32 1e-06, %v673_v15  ;;  %v690_v28 = vadd.f32 1e-06, %v674_v36 }
 0x16b   : > { %v716_v23 = vmul.f32 %v1955_v22, %v2477_v56  ;;  %v717_v29 = vmul.f32 %v1955_v22, %v2481_v58  ;;  %v643_v1 = vpop.xlane.xlu1 %642  ;;  %v646_v4 = vpop.xlane.xlu0 %645 }
 0x16c   : > { %1964 = vrsqrt.f32 %v689_v27  ;;  %v675_v63 = vmul.f32 0.00390625, %v643_v1  ;;  %v676_v52 = vmul.f32 0.00390625, %v646_v4 }
 0x16d   : > { %v760_v46 = vmul.f32 %v2673_v0, %v716_v23  ;;  %v761_v47 = vmul.f32 %v2675_v25, %v717_v29  ;;  %1966 = vrsqrt.f32 %v690_v28 }
 0x16e   : > { %v1957_v50 = vpop.eup %1956  ;;  %v691_v9 = vadd.f32 1e-06, %v675_v63  ;;  %v692_v6 = vadd.f32 1e-06, %v676_v52 }
 0x16f   : > { %v1959_v11 = vpop.eup %1958  ;;  %v804_v56 = vadd.f32 %v2677_v62, %v760_v46  ;;  %v718_v58 = vmul.f32 %v1957_v50, %v2501_v33  ;;  %v719_v12 = vmul.f32 %v1957_v50, %v2505_v38  ;;  %v649_v7 = vpop.xlane.xlu1 %648  ;;  %v805_v18 = vadd.f32 %v2681_v45, %v761_v47 }
 0x170   : > { %v652_v54 = vpop.xlane.xlu0 %651  ;;  %v720_v59 = vmul.f32 %v1959_v11, %v2485_v2  ;;  %v721_v60 = vmul.f32 %v1959_v11, %v2489_v3  ;;  %1968 = vrsqrt.f32 %v691_v9  ;;  %v677_v55 = vmul.f32 0.00390625, %v649_v7 }
 0x171   : > { %v762_v16 = vmul.f32 %v2673_v0, %v718_v58  ;;  %v763_v14 = vmul.f32 %v2675_v25, %v719_v12  ;;  %1970 = vrsqrt.f32 %v692_v6  ;;  %v678_v15 = vmul.f32 0.00390625, %v652_v54 }
 0x172   : > { %v1961_v17 = vpop.eup %1960  ;;  %v764_v33 = vmul.f32 %v2673_v0, %v720_v59  ;;  %v765_v38 = vmul.f32 %v2675_v25, %v721_v60  ;;  %v693_v20 = vadd.f32 1e-06, %v677_v55 }
 0x173   : > { %v1963_v36 = vpop.eup %1962  ;;  %v806_v2 = vadd.f32 %v2677_v62, %v762_v16  ;;  %v807_v3 = vadd.f32 %v2681_v45, %v763_v14  ;;  %v722_v22 = vmul.f32 %v1961_v17, %v2509_v24  ;;  %v723_v27 = vmul.f32 %v1961_v17, %v2513_v26  ;;  %v655_v28 = vpop.xlane.xlu1 %654 }
 0x174   : > { %v808_v23 = vadd.f32 %v2677_v62, %v764_v33  ;;  %v809_v29 = vadd.f32 %v2681_v45, %v765_v38  ;;  %v724_v1 = vmul.f32 %v1963_v36, %v2525_v44  ;;  %v725_v4 = vmul.f32 %v1963_v36, %v2529_v51  ;;  %v658_v6 = vpop.xlane.xlu0 %657 }
 0x175   : > { %v836_v63 = vpack.c.bf16 %v806_v2, %v804_v56  ;;  %v837_v52 = vpack.c.bf16 %v807_v3, %v805_v18  ;;  %v766_v46 = vmul.f32 %v2673_v0, %v722_v22  ;;  %v767_v47 = vmul.f32 %v2675_v25, %v723_v27 }
 0x176   : > { %v1965_v50 = vpop.eup %1964  ;;  %v768_v24 = vmul.f32 %v2673_v0, %v724_v1  ;;  %v769_v26 = vmul.f32 %v2675_v25, %v725_v4  ;;  %1972 = vrsqrt.f32 %v693_v20  ;;  %v694_v9 = vadd.f32 1e-06, %v678_v15 }
 0x177   : > { %v1967_v11 = vpop.eup %1966  ;;  %852 = vst [vmem:[#allocation2] sm:$0xff] %v836_v63  ;;  %853 = vst [vmem:[#allocation2 + $0x8] sm:$0xff] %v837_v52  ;;  %v810_v44 = vadd.f32 %v2677_v62, %v766_v46  ;;  %v811_v51 = vadd.f32 %v2681_v45, %v767_v47  ;;  %v726_v56 = vmul.f32 %v1965_v50, %v2533_v8  ;;  %v661_v14 = vpop.xlane.xlu1 %660  ;;  %v679_v33 = vmul.f32 0.00390625, %v655_v28 }
 0x178   : > { %v727_v58 = vmul.f32 %v1965_v50, %v2537_v10  ;;  %v812_v12 = vadd.f32 %v2677_v62, %v768_v24  ;;  %v813_v7 = vadd.f32 %v2681_v45, %v769_v26  ;;  %v728_v54 = vmul.f32 %v1967_v11, %v2549_v53  ;;  %v664_v3 = vpop.xlane.xlu0 %663 }
 0x179   : > { %v729_v59 = vmul.f32 %v1967_v11, %v2553_v37  ;;  %v838_v60 = vpack.c.bf16 %v810_v44, %v808_v23  ;;  %v839_v55 = vpack.c.bf16 %v811_v51, %v809_v29  ;;  %v770_v18 = vmul.f32 %v2673_v0, %v726_v56 }
 0x17a   : > { %v771_v16 = vmul.f32 %v2675_v25, %v727_v58  ;;  %v1969_v17 = vpop.eup %1968  ;;  %v772_v8 = vmul.f32 %v2673_v0, %v728_v54  ;;  %1974 = vrsqrt.f32 %v694_v9  ;;  %v695_v4 = vadd.f32 1e-06, %v679_v33 }
 0x17b   : > { %v773_v10 = vmul.f32 %v2675_v25, %v729_v59  ;;  %v1971_v38 = vpop.eup %1970  ;;  %854 = vst [vmem:[#allocation2 + $0x10] sm:$0xff] %v838_v60  ;;  %855 = vst [vmem:[#allocation2 + $0x18] sm:$0xff] %v839_v55  ;;  %v814_v53 = vadd.f32 %v2677_v62, %v770_v18  ;;  %v730_v20 = vmul.f32 %v1969_v17, %v2557_v30  ;;  %v680_v63 = vmul.f32 0.00390625, %v658_v6  ;;  %v667_v52 = vpop.xlane.xlu1 %666 }
 0x17c   : > { %v815_v37 = vadd.f32 %v2681_v45, %v771_v16  ;;  %v731_v15 = vmul.f32 %v1969_v17, %v2561_v31  ;;  %v732_v36 = vmul.f32 %v1971_v38, %v2573_v61  ;;  %v733_v2 = vmul.f32 %v1971_v38, %v2577_v42 }
 0x17d   : > { %v840_v22 = vpack.c.bf16 %v814_v53, %v812_v12  ;;  %v774_v28 = vmul.f32 %v2673_v0, %v730_v20  ;;  %v816_v29 = vadd.f32 %v2677_v62, %v772_v8  ;;  %v817_v1 = vadd.f32 %v2681_v45, %v773_v10 }
 0x17e   : > { %v841_v27 = vpack.c.bf16 %v815_v37, %v813_v7  ;;  %v775_v23 = vmul.f32 %v2675_v25, %v731_v15  ;;  %v681_v61 = vmul.f32 0.00390625, %v661_v14  ;;  %v682_v42 = vmul.f32 0.00390625, %v664_v3 }
 0x17f   : > { %856 = vst [vmem:[#allocation2 + $0x20] sm:$0xff] %v840_v22  ;;  %v818_v30 = vadd.f32 %v2677_v62, %v774_v28  ;;  %v776_v47 = vmul.f32 %v2673_v0, %v732_v36  ;;  %v777_v50 = vmul.f32 %v2675_v25, %v733_v2  ;;  %1976 = vrsqrt.f32 %v695_v4 }
 0x180   : > { %857 = vst [vmem:[#allocation2 + $0x28] sm:$0xff] %v841_v27  ;;  %v819_v31 = vadd.f32 %v2681_v45, %v775_v23  ;;  %v1973_v46 = vpop.eup %1972  ;;  %v696_v24 = vadd.f32 1e-06, %v680_v63  ;;  %v697_v44 = vadd.f32 1e-06, %v681_v61  ;;  %v683_v56 = vmul.f32 0.00390625, %v667_v52 }
 0x181   : > { %v842_v26 = vpack.c.bf16 %v818_v30, %v816_v29  ;;  %v734_v6 = vmul.f32 %v1973_v46, %v2581_v43  ;;  %v735_v11 = vmul.f32 %v1973_v46, %v2585_v39  ;;  %v698_v51 = vadd.f32 1e-06, %v682_v42 }
 0x182   : > { %v843_v9 = vpack.c.bf16 %v819_v31, %v817_v1  ;;  %1978 = vrsqrt.f32 %v696_v24  ;;  %v699_v54 = vadd.f32 1e-06, %v683_v56  ;;  %v820_v59 = vadd.f32 %v2677_v62, %v776_v47 }
 0x183   : > { %858 = vst [vmem:[#allocation2 + $0x30] sm:$0xff] %v842_v26  ;;  %v778_v58 = vmul.f32 %v2673_v0, %v734_v6  ;;  %v779_v12 = vmul.f32 %v2675_v25, %v735_v11  ;;  %1980 = vrsqrt.f32 %v697_v44  ;;  %v821_v60 = vadd.f32 %v2681_v45, %v777_v50 }
 0x184   : > { %859 = vst [vmem:[#allocation2 + $0x38] sm:$0xff] %v843_v9  ;;  %v1975_v7 = vpop.eup %1974  ;;  %1982 = vrsqrt.f32 %v698_v51 }
 0x185   : > { %v822_v43 = vadd.f32 %v2677_v62, %v778_v58  ;;  %v823_v39 = vadd.f32 %v2681_v45, %v779_v12  ;;  %v736_v55 = vmul.f32 %v1975_v7, %v2597_v5  ;;  %v737_v18 = vmul.f32 %v1975_v7, %v2601_v48 }
 0x186   : > { %1984 = vrsqrt.f32 %v699_v54 }
 0x187   : > { %v844_v16 = vpack.c.bf16 %v822_v43, %v820_v59  ;;  %v845_v14 = vpack.c.bf16 %v823_v39, %v821_v60  ;;  %v780_v8 = vmul.f32 %v2673_v0, %v736_v55  ;;  %v781_v10 = vmul.f32 %v2675_v25, %v737_v18 }
 0x189   : > { %860 = vst [vmem:[#allocation2 + $0x40] sm:$0xff] %v844_v16  ;;  %861 = vst [vmem:[#allocation2 + $0x48] sm:$0xff] %v845_v14  ;;  %v1977_v17 = vpop.eup %1976  ;;  %v824_v36 = vadd.f32 %v2677_v62, %v780_v8  ;;  %v825_v2 = vadd.f32 %v2681_v45, %v781_v10 }
 0x18a   : > { %v738_v33 = vmul.f32 %v1977_v17, %v2605_v40  ;;  %v739_v38 = vmul.f32 %v1977_v17, %v2609_v49 }
 0x18c   : > { %v1979_v53 = vpop.eup %1978  ;;  %v782_v5 = vmul.f32 %v2673_v0, %v738_v33  ;;  %v783_v48 = vmul.f32 %v2675_v25, %v739_v38 }
 0x18d   : > { %v740_v37 = vmul.f32 %v1979_v53, %v2621_v13  ;;  %v741_v20 = vmul.f32 %v1979_v53, %v2625_v41  ;;  %v1981_v15 = vpop.eup %1980 }
 0x18e   : > { %v826_v3 = vadd.f32 %v2677_v62, %v782_v5  ;;  %v827_v40 = vadd.f32 %v2681_v45, %v783_v48  ;;  %v1983_v27 = vpop.eup %1982  ;;  %v742_v28 = vmul.f32 %v1981_v15, %v2629_v34  ;;  %v743_v13 = vmul.f32 %v1981_v15, %v2633_v57 }
 0x18f   : > { %v784_v49 = vmul.f32 %v2673_v0, %v740_v37  ;;  %v785_v22 = vmul.f32 %v2675_v25, %v741_v20  ;;  %v744_v63 = vmul.f32 %v1983_v27, %v2645_v21  ;;  %v745_v30 = vmul.f32 %v1983_v27, %v2649_v19 }
 0x190   : > { %v846_v23 = vpack.c.bf16 %v826_v3, %v824_v36  ;;  %v847_v41 = vpack.c.bf16 %v827_v40, %v825_v2  ;;  %v1985_v29 = vpop.eup %1984  ;;  %v786_v1 = vmul.f32 %v2673_v0, %v742_v28  ;;  %v787_v4 = vmul.f32 %v2675_v25, %v743_v13 }
 0x191   : > { %v828_v31 = vadd.f32 %v2677_v62, %v784_v49  ;;  %v829_v61 = vadd.f32 %v2681_v45, %v785_v22  ;;  %v746_v34 = vmul.f32 %v1985_v29, %v2653_v35  ;;  %v747_v57 = vmul.f32 %v1985_v29, %v2657_v32 }
 0x192   : > { %862 = vst [vmem:[#allocation2 + $0x50] sm:$0xff] %v846_v23  ;;  %863 = vst [vmem:[#allocation2 + $0x58] sm:$0xff] %v847_v41  ;;  %v830_v42 = vadd.f32 %v2677_v62, %v786_v1  ;;  %v831_v52 = vadd.f32 %v2681_v45, %v787_v4  ;;  %v788_v46 = vmul.f32 %v2673_v0, %v744_v63 }
 0x193   : > { %v789_v21 = vmul.f32 %v2675_v25, %v745_v30  ;;  %v790_v19 = vmul.f32 %v2673_v0, %v746_v34  ;;  %v791_v47 = vmul.f32 %v2675_v25, %v747_v57 }
 0x194   : > { %v848_v50 = vpack.c.bf16 %v830_v42, %v828_v31  ;;  %v849_v24 = vpack.c.bf16 %v831_v52, %v829_v61  ;;  %v832_v26 = vadd.f32 %v2677_v62, %v788_v46 }
 0x195   : > { %v833_v35 = vadd.f32 %v2681_v45, %v789_v21  ;;  %v834_v32 = vadd.f32 %v2677_v62, %v790_v19  ;;  %v835_v9 = vadd.f32 %v2681_v45, %v791_v47 }
 0x196   : > { %864 = vst [vmem:[#allocation2 + $0x60] sm:$0xff] %v848_v50  ;;  %865 = vst [vmem:[#allocation2 + $0x68] sm:$0xff] %v849_v24 }
 0x197   : > { %v850_v6 = vpack.c.bf16 %v834_v32, %v832_v26  ;;  %v851_v11 = vpack.c.bf16 %v835_v9, %v833_v35 }
 0x199   : > { %866 = vst [vmem:[#allocation2 + $0x70] sm:$0xff] %v850_v6  ;;  %867 = vst [vmem:[#allocation2 + $0x78] sm:$0xff] %v851_v11 }
 0x19a PF: > { %v1986_v0 = vld [vmem:[%s2294_s24 + $0x4] ss:$8 sps:$4 sm:$0xff]   ;;  %v1988_v25 = vld [vmem:[%s2294_s24] ss:$8 sps:$4 sm:$0xff]   ;;  %v1989_v62 = vld [vmem:[%s2294_s24 + $0x14] ss:$8 sps:$4 sm:$0xff]   ;;  %v918_v34 = vlaneseq }
 0x19b   : > { %1088 = vmatprep.subr.bf16.mxu0 %v1986_v0  ;;  %1882 = vmatprep.subr.bf16.mxu1 %v1986_v0  ;;  %v1991_v45 = vld [vmem:[%s2294_s24 + $0x10] ss:$8 sps:$4 sm:$0xff]   ;;  %v1992_v44 = vld [vmem:[%s2294_s24 + $0x24] ss:$8 sps:$4 sm:$0xff]   ;;  %v1994_v51 = vld [vmem:[%s2294_s24 + $0x20] ss:$8 sps:$4 sm:$0xff]  }
 0x19c   : > { %1089 = vmatpush1.bf16.msra.mxu0 %v1988_v25  ;;  %1898 = vmatpush1.bf16.msra.mxu1 %v1988_v25  ;;  %v1995_v56 = vld [vmem:[%s2294_s24 + $0x34] ss:$8 sps:$4 sm:$0xff]   ;;  %v1997_v58 = vld [vmem:[%s2294_s24 + $0x30] ss:$8 sps:$4 sm:$0xff]   ;;  %v1998_v12 = vld [vmem:[%s2294_s24 + $0x44] ss:$8 sps:$4 sm:$0xff]  }
 0x19d   : > { %1090 = vmatprep.subr.bf16.mxu0 %v1989_v62  ;;  %1883 = vmatprep.subr.bf16.mxu1 %v1989_v62  ;;  %v2000_v7 = vld [vmem:[%s2294_s24 + $0x40] ss:$8 sps:$4 sm:$0xff]   ;;  %v2001_v54 = vld [vmem:[%s2294_s24 + $0x54] ss:$8 sps:$4 sm:$0xff]   ;;  %v2003_v59 = vld [vmem:[%s2294_s24 + $0x50] ss:$8 sps:$4 sm:$0xff]  }
 0x19e   : > { %v2004_v60 = vld [vmem:[%s2294_s24 + $0x64] ss:$8 sps:$4 sm:$0xff]   ;;  %v2006_v55 = vld [vmem:[%s2294_s24 + $0x60] ss:$8 sps:$4 sm:$0xff]   ;;  %v2007_v18 = vld [vmem:[%s2294_s24 + $0x74] ss:$8 sps:$4 sm:$0xff]  }
 0x19f   : > { %v869_v43 = vld [vmem:[#allocation2 + $0x8] sm:$0xff]  ;;  %v2009_v16 = vld [vmem:[%s2294_s24 + $0x70] ss:$8 sps:$4 sm:$0xff]   ;;  %v2013_v8 = vld [vmem:[%s2294_s24 + $0x94] ss:$8 sps:$4 sm:$0xff]   ;;  %v919_v57 = vshrl.u32 %v918_v34, 7 }
 0x1a0   : > { %1091 = vmatpush1.bf16.msra.mxu0 %v1991_v45  ;;  %1899 = vmatpush1.bf16.msra.mxu1 %v1991_v45  ;;  %v877_v39 = vld [vmem:[#allocation2 + $0x48] sm:$0xff]  ;;  %v2015_v10 = vld [vmem:[%s2294_s24 + $0x90] ss:$8 sps:$4 sm:$0xff]   ;;  %v2019_v53 = vld [vmem:[%s2294_s24 + $0xb4] ss:$8 sps:$4 sm:$0xff]   ;;  %s1881_s12 = sshll.u32 (%p2203_p6), %s2128_s20, 3 }
 0x1a1   : > { %1092 = vmatprep.subr.bf16.mxu0 %v1992_v44  ;;  %1884 = vmatprep.subr.bf16.mxu1 %v1992_v44  ;;  %v2010_v14 = vld [vmem:[%s2294_s24 + $0x84] ss:$8 sps:$4 sm:$0xff]   ;;  %v2012_v17 = vld [vmem:[%s2294_s24 + $0x80] ss:$8 sps:$4 sm:$0xff]   ;;  %v2021_v5 = vld [vmem:[%s2294_s24 + $0xb0] ss:$8 sps:$4 sm:$0xff]   ;;  %s1613_s13 = scalar_lea.vmem (%p2203_p6), %s3183_s5, %s1881_s12 }
 0x1a2   : > { %1120 = vmatprep.mubr.bf16.mxu0 %v869_v43  ;;  %1160 = vmatprep.mubr.bf16.mxu1 %v877_v39  ;;  %v2016_v33 = vld [vmem:[%s2294_s24 + $0xa4] ss:$8 sps:$4 sm:$0xff]   ;;  %v2018_v38 = vld [vmem:[%s2294_s24 + $0xa0] ss:$8 sps:$4 sm:$0xff]   ;;  %v2025_v20 = vld [vmem:[%s2294_s24 + $0xd4] ss:$8 sps:$4 sm:$0xff]  }
 0x1a3   : > { %v2022_v48 = vld [vmem:[%s2294_s24 + $0xc4] ss:$8 sps:$4 sm:$0xff]   ;;  %v2024_v37 = vld [vmem:[%s2294_s24 + $0xc0] ss:$8 sps:$4 sm:$0xff]   ;;  %v2027_v15 = vld [vmem:[%s2294_s24 + $0xd0] ss:$8 sps:$4 sm:$0xff]  }
 0x1a4   : > { %1093 = vmatpush1.bf16.msra.mxu0 %v1994_v51  ;;  %1900 = vmatpush1.bf16.msra.mxu1 %v1994_v51  ;;  %v2028_v36 = vld [vmem:[%s2294_s24 + $0xe4] ss:$8 sps:$4 sm:$0xff]   ;;  %v2030_v2 = vld [vmem:[%s2294_s24 + $0xe0] ss:$8 sps:$4 sm:$0xff]   ;;  %v2031_v3 = vld [vmem:[%s2294_s24 + $0xf4] ss:$8 sps:$4 sm:$0xff]  }
 0x1a5   : > { %1094 = vmatprep.subr.bf16.mxu0 %v1995_v56  ;;  %1885 = vmatprep.subr.bf16.mxu1 %v1995_v56  ;;  %v2033_v40 = vld [vmem:[%s2294_s24 + $0xf0] ss:$8 sps:$4 sm:$0xff]   ;;  %v868_v49 = vld [vmem:[#allocation2] sm:$0xff]  ;;  %v873_v41 = vld [vmem:[#allocation2 + $0x28] sm:$0xff]  ;;  %v920_v42 = vsub.s32 0, %v919_v57  ;;  %v924_v46 = vsub.s32 1, %v919_v57 }
 0x1a6   : > { %v876_v22 = vld [vmem:[#allocation2 + $0x40] sm:$0xff]  ;;  %v871_v27 = vld [vmem:[#allocation2 + $0x18] sm:$0xff]  ;;  %v870_v13 = vld [vmem:[#allocation2 + $0x10] sm:$0xff] }
 0x1a7   : > { %v879_v28 = vld [vmem:[#allocation2 + $0x58] sm:$0xff]  ;;  %v878_v23 = vld [vmem:[#allocation2 + $0x50] sm:$0xff]  ;;  %v881_v29 = vld [vmem:[#allocation2 + $0x68] sm:$0xff] }
 0x1a8   : > { %1095 = vmatpush1.bf16.msra.mxu0 %v1997_v58  ;;  %1901 = vmatpush1.bf16.msra.mxu1 %v1997_v58  ;;  %v872_v1 = vld [vmem:[#allocation2 + $0x20] sm:$0xff]  ;;  %v875_v63 = vld [vmem:[#allocation2 + $0x38] sm:$0xff]  ;;  %v874_v31 = vld [vmem:[#allocation2 + $0x30] sm:$0xff] }
 0x1a9   : > { %1096 = vmatprep.subr.bf16.mxu0 %v1998_v12  ;;  %1886 = vmatprep.subr.bf16.mxu1 %v1998_v12  ;;  %v880_v4 = vld [vmem:[#allocation2 + $0x60] sm:$0xff]  ;;  %v883_v30 = vld [vmem:[#allocation2 + $0x78] sm:$0xff]  ;;  %v882_v61 = vld [vmem:[#allocation2 + $0x70] sm:$0xff] }
 0x1aa   : > { %v916_v52 = vld [vmem:[%s435_s17] sm:$0x3] }
 0x1ab   : > { %v2814_v21 = vrot.slane %v916_v52, %v920_v42  ;;  %v2816_v19 = vrot.slane %v916_v52, %v924_v46 }
 0x1ac   : > { %1097 = vmatpush1.bf16.msra.mxu0 %v2000_v7  ;;  %1902 = vmatpush1.bf16.msra.mxu1 %v2000_v7 }
 0x1ad   : > { %1098 = vmatprep.subr.bf16.mxu0 %v2001_v54  ;;  %1887 = vmatprep.subr.bf16.mxu1 %v2001_v54 }
 0x1b0   : > { %1099 = vmatpush1.bf16.msra.mxu0 %v2003_v59  ;;  %1903 = vmatpush1.bf16.msra.mxu1 %v2003_v59 }
 0x1b1   : > { %1100 = vmatprep.subr.bf16.mxu0 %v2004_v60  ;;  %1888 = vmatprep.subr.bf16.mxu1 %v2004_v60 }
 0x1b4   : > { %1101 = vmatpush1.bf16.msra.mxu0 %v2006_v55  ;;  %1904 = vmatpush1.bf16.msra.mxu1 %v2006_v55 }
 0x1b5   : > { %1102 = vmatprep.subr.bf16.mxu0 %v2007_v18  ;;  %1889 = vmatprep.subr.bf16.mxu1 %v2007_v18 }
 0x1b8   : > { %1103 = vmatpush1.bf16.msra.mxu0 %v2009_v16  ;;  %1905 = vmatpush1.bf16.msra.mxu1 %v2009_v16 }
 0x1b9   : > { %1104 = vmatprep.subr.bf16.mxu0 %v2010_v14  ;;  %1890 = vmatprep.subr.bf16.mxu1 %v2010_v14 }
 0x1bc   : > { %1105 = vmatpush1.bf16.msra.mxu0 %v2012_v17  ;;  %1906 = vmatpush1.bf16.msra.mxu1 %v2012_v17 }
 0x1bd   : > { %1106 = vmatprep.subr.bf16.mxu0 %v2013_v8  ;;  %1891 = vmatprep.subr.bf16.mxu1 %v2013_v8 }
 0x1c0   : > { %1107 = vmatpush1.bf16.msra.mxu0 %v2015_v10  ;;  %1907 = vmatpush1.bf16.msra.mxu1 %v2015_v10 }
 0x1c1   : > { %1108 = vmatprep.subr.bf16.mxu0 %v2016_v33  ;;  %1892 = vmatprep.subr.bf16.mxu1 %v2016_v33 }
 0x1c4   : > { %1109 = vmatpush1.bf16.msra.mxu0 %v2018_v38  ;;  %1908 = vmatpush1.bf16.msra.mxu1 %v2018_v38 }
 0x1c5   : > { %1110 = vmatprep.subr.bf16.mxu0 %v2019_v53  ;;  %1893 = vmatprep.subr.bf16.mxu1 %v2019_v53 }
 0x1c8   : > { %1111 = vmatpush1.bf16.msra.mxu0 %v2021_v5  ;;  %1909 = vmatpush1.bf16.msra.mxu1 %v2021_v5 }
 0x1c9   : > { %1112 = vmatprep.subr.bf16.mxu0 %v2022_v48  ;;  %1894 = vmatprep.subr.bf16.mxu1 %v2022_v48 }
 0x1cc   : > { %1113 = vmatpush1.bf16.msra.mxu0 %v2024_v37  ;;  %1910 = vmatpush1.bf16.msra.mxu1 %v2024_v37 }
 0x1cd   : > { %1114 = vmatprep.subr.bf16.mxu0 %v2025_v20  ;;  %1895 = vmatprep.subr.bf16.mxu1 %v2025_v20 }
 0x1d0   : > { %1115 = vmatpush1.bf16.msra.mxu0 %v2027_v15  ;;  %1911 = vmatpush1.bf16.msra.mxu1 %v2027_v15 }
 0x1d1   : > { %1116 = vmatprep.subr.bf16.mxu0 %v2028_v36  ;;  %1896 = vmatprep.subr.bf16.mxu1 %v2028_v36 }
 0x1d4   : > { %1117 = vmatpush1.bf16.msra.mxu0 %v2030_v2  ;;  %1912 = vmatpush1.bf16.msra.mxu1 %v2030_v2 }
 0x1d5   : > { %1118 = vmatprep.subr.bf16.mxu0 %v2031_v3  ;;  %1897 = vmatprep.subr.bf16.mxu1 %v2031_v3 }
 0x1d8   : > { %1119 = vmatpush1.bf16.msra.mxu0 %v2033_v40  ;;  %1913 = vmatpush1.bf16.msra.mxu1 %v2033_v40 }
 0x1db   : > { %1121 = vmatmul.mubr.bf16.vlgmr.msra.gmra.mrb[0].mxu0 %v868_v49  ;;  %1161 = vmatmul.mubr.bf16.vlgmr.msra.gmra.mrb[0].mxu1 %v876_v22 }
 0x1dc   : > { %1130 = vmatprep.mubr.bf16.mxu0 %v871_v27  ;;  %1170 = vmatprep.mubr.bf16.mxu1 %v879_v28 }
 0x1e3   : > { %1131 = vmatmul.mubr.bf16.gmra.mrb[4].mxu0 %v870_v13  ;;  %1171 = vmatmul.mubr.bf16.gmra.mrb[4].mxu1 %v878_v23 }
 0x1e4   : > { %1140 = vmatprep.mubr.bf16.mxu0 %v873_v41  ;;  %1180 = vmatprep.mubr.bf16.mxu1 %v881_v29 }
 0x1eb   : > { %1141 = vmatmul.mubr.bf16.gmra.mrb[8].mxu0 %v872_v1  ;;  %1181 = vmatmul.mubr.bf16.gmra.mrb[8].mxu1 %v880_v4 }
 0x1ec   : > { %1150 = vmatprep.mubr.bf16.mxu0 %v875_v63  ;;  %1190 = vmatprep.mubr.bf16.mxu1 %v883_v30 }
 0x1f3   : > { %1151 = vmatmul.mubr.bf16.gmra.mrb[12].mxu0 %v874_v31  ;;  %1191 = vmatmul.mubr.bf16.gmra.mrb[12].mxu1 %v882_v61 }
 0x2ae   : > { %v1122_v47 = vpop.f32.mrb[0].mxu0  ;;  %v1162_v50 = vpop.f32.mrb[0].mxu1 }
 0x2af   : > { %v2819_v24 = vadd.f32 %v1122_v47, %v2814_v21  ;;  %v2822_v26 = vadd.f32 %v1162_v50, %v2814_v21  ;;  %v1124_v35 = vpop.f32.mrb[1].mxu0  ;;  %v1164_v32 = vpop.f32.mrb[1].mxu1 }
 0x2b0   : > { %v2825_v9 = vadd.f32 %v1124_v35, %v2816_v19  ;;  %v2828_v6 = vadd.f32 %v1164_v32, %v2816_v19  ;;  %v1126_v11 = vpop.f32.mrb[2].mxu0  ;;  %v1166_v0 = vpop.f32.mrb[2].mxu1 }
 0x2b1   : > { %v1201_v25 = vmul.f32 %v2819_v24, %v2819_v24  ;;  %v1217_v62 = vmul.f32 %v2822_v26, %v2822_v26  ;;  %v2835_v45 = vadd.f32 %v1126_v11, %v2814_v21  ;;  %v2838_v44 = vadd.f32 %v1166_v0, %v2814_v21  ;;  %v1128_v51 = vpop.f32.mrb[3].mxu0  ;;  %v1168_v56 = vpop.f32.mrb[3].mxu1 }
 0x2b2   : > { %v1202_v58 = vmul.f32 %v2825_v9, %v2825_v9  ;;  %v1218_v12 = vmul.f32 %v2828_v6, %v2828_v6  ;;  %v2845_v7 = vadd.f32 %v1128_v51, %v2816_v19  ;;  %v2848_v54 = vadd.f32 %v1168_v56, %v2816_v19 }
 0x2b3   : > { %v1233_v59 = vmul.f32 %v1201_v25, %v2819_v24  ;;  %v1249_v60 = vmul.f32 %v1217_v62, %v2822_v26  ;;  %v1203_v43 = vmul.f32 %v2835_v45, %v2835_v45  ;;  %v1219_v39 = vmul.f32 %v2838_v44, %v2838_v44 }
 0x2b4   : > { %v1234_v55 = vmul.f32 %v1202_v58, %v2825_v9  ;;  %v1250_v18 = vmul.f32 %v1218_v12, %v2828_v6  ;;  %v1204_v16 = vmul.f32 %v2845_v7, %v2845_v7  ;;  %v1220_v14 = vmul.f32 %v2848_v54, %v2848_v54 }
 0x2b5   : > { %v1265_v17 = vmul.f32 0.044715, %v1233_v59  ;;  %v1281_v8 = vmul.f32 0.044715, %v1249_v60  ;;  %v1235_v10 = vmul.f32 %v1203_v43, %v2835_v45  ;;  %v1251_v33 = vmul.f32 %v1219_v39, %v2838_v44 }
 0x2b6   : > { %v1266_v38 = vmul.f32 0.044715, %v1234_v55  ;;  %v1282_v53 = vmul.f32 0.044715, %v1250_v18  ;;  %v1236_v5 = vmul.f32 %v1204_v16, %v2845_v7  ;;  %v1252_v48 = vmul.f32 %v1220_v14, %v2848_v54  ;;  %v1132_v37 = vpop.f32.mrb[4].mxu0  ;;  %v1172_v20 = vpop.f32.mrb[4].mxu1 }
 0x2b7   : > { %v1297_v15 = vadd.f32 %v1265_v17, %v2819_v24  ;;  %v1313_v36 = vadd.f32 %v1281_v8, %v2822_v26  ;;  %v1267_v2 = vmul.f32 0.044715, %v1235_v10  ;;  %v1283_v3 = vmul.f32 0.044715, %v1251_v33  ;;  %v1134_v40 = vpop.f32.mrb[5].mxu0  ;;  %v1174_v49 = vpop.f32.mrb[5].mxu1 }
 0x2b8   : > { %v1298_v22 = vadd.f32 %v1266_v38, %v2825_v9  ;;  %v1314_v27 = vadd.f32 %v1282_v53, %v2828_v6  ;;  %v1268_v28 = vmul.f32 0.044715, %v1236_v5  ;;  %v1284_v13 = vmul.f32 0.044715, %v1252_v48  ;;  %v1136_v23 = vpop.f32.mrb[6].mxu0  ;;  %v1176_v41 = vpop.f32.mrb[6].mxu1 }
 0x2b9   : > { %v1329_v29 = vmul.f32 0.7978846, %v1297_v15  ;;  %v1345_v1 = vmul.f32 0.7978846, %v1313_v36  ;;  %v1299_v4 = vadd.f32 %v1267_v2, %v2835_v45  ;;  %v1315_v63 = vadd.f32 %v1283_v3, %v2838_v44  ;;  %v1138_v30 = vpop.f32.mrb[7].mxu0  ;;  %v1178_v31 = vpop.f32.mrb[7].mxu1 }
 0x2ba   : > { %v1330_v61 = vmul.f32 0.7978846, %v1298_v22  ;;  %v1346_v34 = vmul.f32 0.7978846, %v1314_v27  ;;  %v1300_v57 = vadd.f32 %v1268_v28, %v2845_v7  ;;  %v1316_v42 = vadd.f32 %v1284_v13, %v2848_v54 }
 0x2bb   : > { %2034 = vtanh.f32 %v1329_v29  ;;  %v1331_v52 = vmul.f32 0.7978846, %v1299_v4  ;;  %v1347_v46 = vmul.f32 0.7978846, %v1315_v63  ;;  %v2875_v47 = vadd.f32 %v1132_v37, %v2814_v21 }
 0x2bc   : > { %2036 = vtanh.f32 %v1345_v1  ;;  %v1332_v50 = vmul.f32 0.7978846, %v1300_v57  ;;  %v1348_v35 = vmul.f32 0.7978846, %v1316_v42  ;;  %v2878_v32 = vadd.f32 %v1172_v20, %v2814_v21 }
 0x2bd   : > { %2038 = vtanh.f32 %v1330_v61  ;;  %v1205_v11 = vmul.f32 %v2875_v47, %v2875_v47  ;;  %v2883_v0 = vadd.f32 %v1134_v40, %v2816_v19  ;;  %v2886_v25 = vadd.f32 %v1174_v49, %v2816_v19 }
 0x2be   : > { %2040 = vtanh.f32 %v1346_v34  ;;  %v1221_v62 = vmul.f32 %v2878_v32, %v2878_v32  ;;  %v2891_v51 = vadd.f32 %v1136_v23, %v2814_v21  ;;  %v2894_v56 = vadd.f32 %v1176_v41, %v2814_v21  ;;  %v2896_v58 = vpop.f32.mrb[8].mxu0  ;;  %v2898_v12 = vpop.f32.mrb[8].mxu1 }
 0x2bf   : > { %2042 = vtanh.f32 %v1331_v52  ;;  %v1237_v59 = vmul.f32 %v1205_v11, %v2875_v47  ;;  %v1206_v60 = vmul.f32 %v2883_v0, %v2883_v0  ;;  %v1222_v43 = vmul.f32 %v2886_v25, %v2886_v25  ;;  %v2905_v39 = vpop.f32.mrb[9].mxu0  ;;  %v2907_v55 = vpop.f32.mrb[9].mxu1 }
 0x2c0   : > { %2044 = vtanh.f32 %v1347_v46  ;;  %v1253_v18 = vmul.f32 %v1221_v62, %v2878_v32  ;;  %v1207_v16 = vmul.f32 %v2891_v51, %v2891_v51  ;;  %v1223_v14 = vmul.f32 %v2894_v56, %v2894_v56  ;;  %v2914_v17 = vpop.f32.mrb[10].mxu0  ;;  %v2916_v8 = vpop.f32.mrb[10].mxu1 }
 0x2c1   : > { %2046 = vtanh.f32 %v1332_v50  ;;  %v1269_v10 = vmul.f32 0.044715, %v1237_v59  ;;  %v1238_v33 = vmul.f32 %v1206_v60, %v2883_v0  ;;  %v1254_v38 = vmul.f32 %v1222_v43, %v2886_v25  ;;  %v2920_v53 = vpop.f32.mrb[11].mxu0  ;;  %v2922_v5 = vpop.f32.mrb[11].mxu1 }
 0x2c2   : > { %2048 = vtanh.f32 %v1348_v35  ;;  %v1285_v48 = vmul.f32 0.044715, %v1253_v18  ;;  %v1239_v37 = vmul.f32 %v1207_v16, %v2891_v51  ;;  %v1255_v20 = vmul.f32 %v1223_v14, %v2894_v56 }
 0x2c3   : > { %v1301_v15 = vadd.f32 %v1269_v10, %v2875_v47  ;;  %v1270_v36 = vmul.f32 0.044715, %v1238_v33  ;;  %v1286_v2 = vmul.f32 0.044715, %v1254_v38  ;;  %v2928_v3 = vadd.f32 %v1138_v30, %v2816_v19 }
 0x2c4   : > { %v1317_v40 = vadd.f32 %v1285_v48, %v2878_v32  ;;  %v1271_v49 = vmul.f32 0.044715, %v1239_v37  ;;  %v1287_v22 = vmul.f32 0.044715, %v1255_v20  ;;  %v2932_v27 = vadd.f32 %v1178_v31, %v2816_v19 }
 0x2c5   : > { %v2035_v28 = vpop.eup %2034  ;;  %v1333_v13 = vmul.f32 0.7978846, %v1301_v15  ;;  %v1302_v23 = vadd.f32 %v1270_v36, %v2883_v0  ;;  %v1318_v41 = vadd.f32 %v1286_v2, %v2886_v25  ;;  %v1208_v29 = vmul.f32 %v2928_v3, %v2928_v3 }
 0x2c6   : > { %v2037_v1 = vpop.eup %2036  ;;  %v1393_v4 = vadd.f32 1.0, %v2035_v28  ;;  %v1349_v63 = vmul.f32 0.7978846, %v1317_v40  ;;  %v1303_v30 = vadd.f32 %v1271_v49, %v2891_v51  ;;  %v1319_v61 = vadd.f32 %v1287_v22, %v2894_v56  ;;  %v2940_v34 = vpop.f32.mrb[12].mxu0 }
 0x2c7   : > { %v2942_v31 = vpop.f32.mrb[12].mxu1  ;;  %v2039_v57 = vpop.eup %2038  ;;  %v1409_v42 = vadd.f32 1.0, %v2037_v1  ;;  %2050 = vtanh.f32 %v1333_v13  ;;  %v1334_v52 = vmul.f32 0.7978846, %v1302_v23  ;;  %v1350_v46 = vmul.f32 0.7978846, %v1318_v41 }
 0x2c8   : > { %v2944_v50 = vpop.f32.mrb[13].mxu0  ;;  %v2041_v35 = vpop.eup %2040  ;;  %v1425_v11 = vmul.f32 0.5, %v1393_v4  ;;  %v1394_v62 = vadd.f32 1.0, %v2039_v57  ;;  %2052 = vtanh.f32 %v1349_v63  ;;  %v1335_v59 = vmul.f32 0.7978846, %v1303_v30 }
 0x2c9   : > { %v2946_v60 = vpop.f32.mrb[13].mxu1  ;;  %v2948_v43 = vpop.f32.mrb[14].mxu0  ;;  %v1441_v16 = vmul.f32 0.5, %v1409_v42  ;;  %v1410_v14 = vadd.f32 1.0, %v2041_v35  ;;  %2054 = vtanh.f32 %v1334_v52  ;;  %v1351_v10 = vmul.f32 0.7978846, %v1319_v61 }
 0x2ca   : > { %v2043_v18 = vpop.eup %2042  ;;  %v2950_v33 = vpop.f32.mrb[14].mxu1  ;;  %v1457_v37 = vmul.f32 %v1425_v11, %v2819_v24  ;;  %v1426_v20 = vmul.f32 0.5, %v1394_v62  ;;  %2056 = vtanh.f32 %v1350_v46  ;;  %v1240_v63 = vmul.f32 %v1208_v29, %v2928_v3 }
 0x2cb   : > { %v2952_v38 = vpop.f32.mrb[15].mxu0  ;;  %v2045_v48 = vpop.eup %2044  ;;  %v1395_v15 = vadd.f32 1.0, %v2043_v18  ;;  %v1473_v40 = vmul.f32 %v1441_v16, %v2822_v26  ;;  %v1442_v49 = vmul.f32 0.5, %v1410_v14  ;;  %2058 = vtanh.f32 %v1335_v59 }
 0x2cc   : > { %v2955_v36 = vpop.f32.mrb[15].mxu1  ;;  %v2047_v2 = vpop.eup %2046  ;;  %v1411_v22 = vadd.f32 1.0, %v2045_v48  ;;  %v1458_v13 = vmul.f32 %v1426_v20, %v2825_v9  ;;  %2060 = vtanh.f32 %v1351_v10  ;;  %v1224_v57 = vmul.f32 %v2932_v27, %v2932_v27 }
 0x2cd   : > { %v2049_v28 = vpop.eup %2048  ;;  %v1427_v23 = vmul.f32 0.5, %v1395_v15  ;;  %v1396_v41 = vadd.f32 1.0, %v2047_v2  ;;  %v1474_v24 = vmul.f32 %v1442_v49, %v2828_v6  ;;  %v1272_v46 = vmul.f32 0.044715, %v1240_v63 }
 0x2ce   : > { %v1443_v1 = vmul.f32 0.5, %v1411_v22  ;;  %v1412_v4 = vadd.f32 1.0, %v2049_v28  ;;  %v1865_v30 = vpack.c.bf16 %v1458_v13, %v1457_v37  ;;  %v1256_v35 = vmul.f32 %v1224_v57, %v2932_v27 }
 0x2cf   : > { %v1459_v26 = vmul.f32 %v1427_v23, %v2835_v45  ;;  %v1428_v61 = vmul.f32 0.5, %v1396_v41  ;;  %v1873_v42 = vpack.c.bf16 %v1474_v24, %v1473_v40  ;;  %v2970_v29 = vadd.f32 %v2896_v58, %v2814_v21 }
 0x2d0   : > { %v1475_v9 = vmul.f32 %v1443_v1, %v2838_v44  ;;  %v1444_v52 = vmul.f32 0.5, %v1412_v4  ;;  %1585 = vst [vmem:[%s2296_s25] sm:$0xff] %v1865_v30  ;;  %v2974_v45 = vadd.f32 %v2898_v12, %v2814_v21  ;;  %v1304_v62 = vadd.f32 %v1272_v46, %v2928_v3 }
 0x2d1   : > { %v1460_v6 = vmul.f32 %v1428_v61, %v2845_v7  ;;  %v2051_v11 = vpop.eup %2050  ;;  %1593 = vst [vmem:[%s2296_s25 + $0x40] sm:$0xff] %v1873_v42  ;;  %v2981_v7 = vadd.f32 %v2905_v39, %v2816_v19  ;;  %v2985_v59 = vadd.f32 %v2907_v55, %v2816_v19  ;;  %v1288_v16 = vmul.f32 0.044715, %v1256_v35 }
 0x2d2   : > { %v1476_v44 = vmul.f32 %v1444_v52, %v2848_v54  ;;  %v2053_v58 = vpop.eup %2052  ;;  %v1397_v12 = vadd.f32 1.0, %v2051_v11  ;;  %v1209_v14 = vmul.f32 %v2970_v29, %v2970_v29  ;;  %v1336_v37 = vmul.f32 0.7978846, %v1304_v62 }
 0x2d3   : > { %v1866_v18 = vpack.c.bf16 %v1460_v6, %v1459_v26  ;;  %v2055_v10 = vpop.eup %2054  ;;  %v1413_v48 = vadd.f32 1.0, %v2053_v58  ;;  %v1225_v39 = vmul.f32 %v2974_v45, %v2974_v45  ;;  %v1320_v2 = vadd.f32 %v1288_v16, %v2932_v27 }
 0x2d4   : > { %v1874_v54 = vpack.c.bf16 %v1476_v44, %v1475_v9  ;;  %v2057_v20 = vpop.eup %2056  ;;  %v1429_v15 = vmul.f32 0.5, %v1397_v12  ;;  %v1398_v55 = vadd.f32 1.0, %v2055_v10  ;;  %v1241_v40 = vmul.f32 %v1209_v14, %v2970_v29 }
 0x2d5   : > { %1586 = vst [vmem:[%s2296_s25 + $0x8] sm:$0xff] %v1866_v18  ;;  %v2059_v49 = vpop.eup %2058  ;;  %v1445_v22 = vmul.f32 0.5, %v1413_v48  ;;  %v1414_v28 = vadd.f32 1.0, %v2057_v20  ;;  %2062 = vtanh.f32 %v1336_v37  ;;  %v1257_v13 = vmul.f32 %v1225_v39, %v2974_v45 }
 0x2d6   : > { %1594 = vst [vmem:[%s2296_s25 + $0x48] sm:$0xff] %v1874_v54  ;;  %v2061_v23 = vpop.eup %2060  ;;  %v1461_v41 = vmul.f32 %v1429_v15, %v2875_v47  ;;  %v1430_v24 = vmul.f32 0.5, %v1398_v55  ;;  %v1399_v1 = vadd.f32 1.0, %v2059_v49  ;;  %v1352_v4 = vmul.f32 0.7978846, %v1320_v2 }
 0x2d7   : > { %v1477_v63 = vmul.f32 %v1445_v22, %v2878_v32  ;;  %v1446_v30 = vmul.f32 0.5, %v1414_v28  ;;  %v1415_v26 = vadd.f32 1.0, %v2061_v23  ;;  %v1273_v61 = vmul.f32 0.044715, %v1241_v40 }
 0x2d8   : > { %v1462_v57 = vmul.f32 %v1430_v24, %v2883_v0  ;;  %v1431_v42 = vmul.f32 0.5, %v1399_v1  ;;  %2064 = vtanh.f32 %v1352_v4  ;;  %v1289_v9 = vmul.f32 0.044715, %v1257_v13 }
 0x2d9   : > { %v1478_v52 = vmul.f32 %v1446_v30, %v2886_v25  ;;  %v1447_v46 = vmul.f32 0.5, %v1415_v26  ;;  %v1305_v47 = vadd.f32 %v1273_v61, %v2970_v29  ;;  %v1210_v6 = vmul.f32 %v2981_v7, %v2981_v7 }
 0x2da   : > { %v1867_v35 = vpack.c.bf16 %v1462_v57, %v1461_v41  ;;  %v1463_v32 = vmul.f32 %v1431_v42, %v2891_v51  ;;  %v1321_v11 = vadd.f32 %v1289_v9, %v2974_v45  ;;  %v1226_v0 = vmul.f32 %v2985_v59, %v2985_v59 }
 0x2db   : > { %v1875_v44 = vpack.c.bf16 %v1478_v52, %v1477_v63  ;;  %v3008_v62 = vmul.f32 %v1447_v46, %v2894_v56  ;;  %v1337_v25 = vmul.f32 0.7978846, %v1305_v47  ;;  %v1242_v58 = vmul.f32 %v1210_v6, %v2981_v7 }
 0x2dc   : > { %1587 = vst [vmem:[%s2296_s25 + $0x10] sm:$0xff] %v1867_v35  ;;  %v1353_v18 = vmul.f32 0.7978846, %v1321_v11  ;;  %v1258_v12 = vmul.f32 %v1226_v0, %v2985_v59  ;;  %v3015_v16 = vadd.f32 %v2914_v17, %v2814_v21  ;;  %v3019_v51 = vadd.f32 %v2916_v8, %v2814_v21 }
 0x2dd   : > { %1595 = vst [vmem:[%s2296_s25 + $0x50] sm:$0xff] %v1875_v44  ;;  %2066 = vtanh.f32 %v1337_v25  ;;  %v1274_v14 = vmul.f32 0.044715, %v1242_v58  ;;  %v3024_v56 = vadd.f32 %v2920_v53, %v2816_v19  ;;  %v3028_v10 = vadd.f32 %v2922_v5, %v2816_v19 }
 0x2de   : > { %2068 = vtanh.f32 %v1353_v18  ;;  %v1290_v54 = vmul.f32 0.044715, %v1258_v12  ;;  %v1211_v17 = vmul.f32 %v3015_v16, %v3015_v16  ;;  %v1227_v8 = vmul.f32 %v3019_v51, %v3019_v51 }
 0x2df   : > { %v2063_v48 = vpop.eup %2062  ;;  %v1306_v37 = vadd.f32 %v1274_v14, %v2981_v7  ;;  %v1212_v39 = vmul.f32 %v3024_v56, %v3024_v56  ;;  %v1228_v53 = vmul.f32 %v3028_v10, %v3028_v10  ;;  %v3041_v5 = vadd.f32 %v2940_v34, %v2814_v21 }
 0x2e0   : > { %v1400_v20 = vadd.f32 1.0, %v2063_v48  ;;  %v1322_v15 = vadd.f32 %v1290_v54, %v2985_v59  ;;  %v1243_v55 = vmul.f32 %v1211_v17, %v3015_v16  ;;  %v1259_v2 = vmul.f32 %v1227_v8, %v3019_v51 }
 0x2e1   : > { %v1338_v40 = vmul.f32 0.7978846, %v1306_v37  ;;  %v1244_v49 = vmul.f32 %v1212_v39, %v3024_v56  ;;  %v1260_v22 = vmul.f32 %v1228_v53, %v3028_v10  ;;  %v1213_v28 = vmul.f32 %v3041_v5, %v3041_v5 }
 0x2e2   : > { %v2065_v13 = vpop.eup %2064  ;;  %v1432_v23 = vmul.f32 0.5, %v1400_v20  ;;  %v1354_v41 = vmul.f32 0.7978846, %v1322_v15  ;;  %v1275_v34 = vmul.f32 0.044715, %v1243_v55  ;;  %v3052_v24 = vadd.f32 %v2942_v31, %v2814_v21 }
 0x2e3   : > { %v1416_v1 = vadd.f32 1.0, %v2065_v13  ;;  %2070 = vtanh.f32 %v1338_v40  ;;  %v1291_v4 = vmul.f32 0.044715, %v1259_v2  ;;  %v1276_v63 = vmul.f32 0.044715, %v1244_v49 }
 0x2e4   : > { %v1464_v30 = vmul.f32 %v1432_v23, %v2928_v3  ;;  %2072 = vtanh.f32 %v1354_v41  ;;  %v1307_v26 = vadd.f32 %v1275_v34, %v3015_v16  ;;  %v1292_v61 = vmul.f32 0.044715, %v1260_v22 }
 0x2e5   : > { %v1448_v57 = vmul.f32 0.5, %v1416_v1  ;;  %v1323_v42 = vadd.f32 %v1291_v4, %v3019_v51  ;;  %v1308_v9 = vadd.f32 %v1276_v63, %v3024_v56  ;;  %v1245_v52 = vmul.f32 %v1213_v28, %v3041_v5 }
 0x2e6   : > { %v1868_v31 = vpack.c.bf16 %v1464_v30, %v1463_v32  ;;  %v1339_v46 = vmul.f32 0.7978846, %v1307_v26  ;;  %v1324_v47 = vadd.f32 %v1292_v61, %v3028_v10  ;;  %v1229_v6 = vmul.f32 %v3052_v24, %v3052_v24 }
 0x2e7   : > { %v2067_v3 = vpop.eup %2066  ;;  %v1480_v35 = vmul.f32 %v1448_v57, %v2932_v27  ;;  %v1355_v11 = vmul.f32 0.7978846, %v1323_v42  ;;  %v1340_v0 = vmul.f32 0.7978846, %v1308_v9  ;;  %v1277_v44 = vmul.f32 0.044715, %v1245_v52 }
 0x2e8   : > { %v2069_v25 = vpop.eup %2068  ;;  %1588 = vst [vmem:[%s2296_s25 + $0x18] sm:$0xff] %v1868_v31  ;;  %v1401_v58 = vadd.f32 1.0, %v2067_v3  ;;  %2074 = vtanh.f32 %v1339_v46  ;;  %v1356_v18 = vmul.f32 0.7978846, %v1324_v47  ;;  %v1261_v32 = vmul.f32 %v1229_v6, %v3052_v24 }
 0x2e9   : > { %v1876_v12 = vpack.c.bf16 %v1480_v35, %v3008_v62  ;;  %v1417_v14 = vadd.f32 1.0, %v2069_v25  ;;  %2076 = vtanh.f32 %v1355_v11  ;;  %v1309_v54 = vadd.f32 %v1277_v44, %v3041_v5 }
 0x2ea   : > { %v1433_v17 = vmul.f32 0.5, %v1401_v58  ;;  %2078 = vtanh.f32 %v1340_v0  ;;  %v1293_v27 = vmul.f32 0.044715, %v1261_v32  ;;  %v3069_v8 = vadd.f32 %v2944_v50, %v2816_v19 }
 0x2eb   : > { %1596 = vst [vmem:[%s2296_s25 + $0x58] sm:$0xff] %v1876_v12  ;;  %v1449_v48 = vmul.f32 0.5, %v1417_v14  ;;  %2080 = vtanh.f32 %v1356_v18  ;;  %v1341_v37 = vmul.f32 0.7978846, %v1309_v54  ;;  %v3074_v39 = vadd.f32 %v2946_v60, %v2816_v19 }
 0x2ec   : > { %v1465_v62 = vmul.f32 %v1433_v17, %v2970_v29  ;;  %v1325_v53 = vadd.f32 %v1293_v27, %v3052_v24  ;;  %v1214_v20 = vmul.f32 %v3069_v8, %v3069_v8  ;;  %v3082_v15 = vadd.f32 %v2948_v43, %v2814_v21 }
 0x2ed   : > { %v2071_v50 = vpop.eup %2070  ;;  %v1481_v55 = vmul.f32 %v1449_v48, %v2974_v45  ;;  %2082 = vtanh.f32 %v1341_v37  ;;  %v1230_v2 = vmul.f32 %v3074_v39, %v3074_v39  ;;  %v3089_v60 = vadd.f32 %v2950_v33, %v2814_v21 }
 0x2ee   : > { %v2073_v29 = vpop.eup %2072  ;;  %v1402_v40 = vadd.f32 1.0, %v2071_v50  ;;  %v1357_v49 = vmul.f32 0.7978846, %v1325_v53  ;;  %v1246_v22 = vmul.f32 %v1214_v20, %v3069_v8  ;;  %v1215_v43 = vmul.f32 %v3082_v15, %v3082_v15 }
 0x2ef   : > { %v1418_v28 = vadd.f32 1.0, %v2073_v29  ;;  %v1262_v13 = vmul.f32 %v1230_v2, %v3074_v39  ;;  %v1231_v45 = vmul.f32 %v3089_v60, %v3089_v60  ;;  %v3099_v23 = vadd.f32 %v2952_v38, %v2816_v19 }
 0x2f0   : > { %v1434_v21 = vmul.f32 0.5, %v1402_v40  ;;  %2084 = vtanh.f32 %v1357_v49  ;;  %v1278_v33 = vmul.f32 0.044715, %v1246_v22  ;;  %v1247_v41 = vmul.f32 %v1215_v43, %v3082_v15 }
 0x2f1   : > { %v1450_v34 = vmul.f32 0.5, %v1418_v28  ;;  %v1294_v1 = vmul.f32 0.044715, %v1262_v13  ;;  %v1263_v4 = vmul.f32 %v1231_v45, %v3089_v60  ;;  %v1216_v63 = vmul.f32 %v3099_v23, %v3099_v23 }
 0x2f2   : > { %v2075_v30 = vpop.eup %2074  ;;  %v1466_v26 = vmul.f32 %v1434_v21, %v2981_v7  ;;  %v1310_v61 = vadd.f32 %v1278_v33, %v3069_v8  ;;  %v1279_v57 = vmul.f32 0.044715, %v1247_v41  ;;  %v3109_v38 = vadd.f32 %v2955_v36, %v2816_v19 }
 0x2f3   : > { %v2077_v42 = vpop.eup %2076  ;;  %v1482_v9 = vmul.f32 %v1450_v34, %v2985_v59  ;;  %v1403_v52 = vadd.f32 1.0, %v2075_v30  ;;  %v1326_v31 = vadd.f32 %v1294_v1, %v3074_v39  ;;  %v1295_v46 = vmul.f32 0.044715, %v1263_v4 }
 0x2f4   : > { %v2079_v47 = vpop.eup %2078  ;;  %v1869_v6 = vpack.c.bf16 %v1466_v26, %v1465_v62  ;;  %v1419_v3 = vadd.f32 1.0, %v2077_v42  ;;  %v1342_v7 = vmul.f32 0.7978846, %v1310_v61  ;;  %v1311_v35 = vadd.f32 %v1279_v57, %v3082_v15 }
 0x2f5   : > { %v2081_v11 = vpop.eup %2080  ;;  %v1877_v0 = vpack.c.bf16 %v1482_v9, %v1481_v55  ;;  %v1435_v44 = vmul.f32 0.5, %v1403_v52  ;;  %v1404_v19 = vadd.f32 1.0, %v2079_v47  ;;  %v1358_v36 = vmul.f32 0.7978846, %v1326_v31 }
 0x2f6   : > { %1589 = vst [vmem:[%s2296_s25 + $0x20] sm:$0xff] %v1869_v6  ;;  %v1451_v25 = vmul.f32 0.5, %v1419_v3  ;;  %v1420_v58 = vadd.f32 1.0, %v2081_v11  ;;  %2086 = vtanh.f32 %v1342_v7  ;;  %v1343_v59 = vmul.f32 0.7978846, %v1311_v35 }
 0x2f7   : > { %v2083_v18 = vpop.eup %2082  ;;  %1597 = vst [vmem:[%s2296_s25 + $0x60] sm:$0xff] %v1877_v0  ;;  %v1467_v32 = vmul.f32 %v1435_v44, %v3015_v16  ;;  %v1436_v12 = vmul.f32 0.5, %v1404_v19  ;;  %2088 = vtanh.f32 %v1358_v36  ;;  %v1327_v14 = vadd.f32 %v1295_v46, %v3089_v60 }
 0x2f8   : > { %v1483_v54 = vmul.f32 %v1451_v25, %v3019_v51  ;;  %v1452_v17 = vmul.f32 0.5, %v1420_v58  ;;  %2090 = vtanh.f32 %v1343_v59  ;;  %v1248_v37 = vmul.f32 %v1216_v63, %v3099_v23  ;;  %v1687_v59 = vld [vmem:[%s2296_s25 + $0x40] sm:$0xff] (%p2203_p6) }
 0x2f9   : > { %v1468_v27 = vmul.f32 %v1436_v12, %v3024_v56  ;;  %v1359_v48 = vmul.f32 0.7978846, %v1327_v14  ;;  %v1232_v62 = vmul.f32 %v3109_v38, %v3109_v38  ;;  %v1405_v50 = vadd.f32 1.0, %v2083_v18  ;;  %1688 = vst [vmem:[%s1613_s13 + $0x80] sm:$0xff] (%p2203_p6), %v1687_v59  ;;  %v1689_v18 = vld [vmem:[%s2296_s25 + $0x48] sm:$0xff] (%p2203_p6)  ;;  %v1693_v12 = vld [vmem:[%s2296_s25 + $0x58] sm:$0xff] (%p2203_p6) }
 0x2fa   : > { %v2085_v53 = vpop.eup %2084  ;;  %v1484_v16 = vmul.f32 %v1452_v17, %v3028_v10  ;;  %v1280_v55 = vmul.f32 0.044715, %v1248_v37  ;;  %1690 = vst [vmem:[%s1613_s13 + $0x90] sm:$0xff] (%p2203_p6), %v1689_v18  ;;  %1694 = vst [vmem:[%s1613_s13 + $0xb0] sm:$0xff] (%p2203_p6), %v1693_v12 }
 0x2fb   : > { %v1870_v20 = vpack.c.bf16 %v1468_v27, %v1467_v32  ;;  %v1421_v51 = vadd.f32 1.0, %v2085_v53  ;;  %2092 = vtanh.f32 %v1359_v48  ;;  %v1264_v29 = vmul.f32 %v1232_v62, %v3109_v38  ;;  %v1691_v32 = vld [vmem:[%s2296_s25 + $0x50] sm:$0xff] (%p2203_p6) }
 0x2fc   : > { %v1878_v2 = vpack.c.bf16 %v1484_v16, %v1483_v54  ;;  %v1312_v56 = vadd.f32 %v1280_v55, %v3099_v23  ;;  %v1437_v49 = vmul.f32 0.5, %v1405_v50  ;;  %1692 = vst [vmem:[%s1613_s13 + $0xa0] sm:$0xff] (%p2203_p6), %v1691_v32 }
 0x2fd   : > { %1590 = vst [vmem:[%s2296_s25 + $0x28] sm:$0xff] %v1870_v20  ;;  %v1296_v40 = vmul.f32 0.044715, %v1264_v29  ;;  %v1453_v28 = vmul.f32 0.5, %v1421_v51  ;;  %v1679_v19 = vld [vmem:[%s2296_s25 + $0x20] sm:$0xff] (%p2203_p6) }
 0x2fe   : > { %1598 = vst [vmem:[%s2296_s25 + $0x68] sm:$0xff] %v1878_v2  ;;  %v1344_v22 = vmul.f32 0.7978846, %v1312_v56  ;;  %v1469_v34 = vmul.f32 %v1437_v49, %v3041_v5  ;;  %1680 = vst [vmem:[%s1613_s13 + $0x40] sm:$0xff] (%p2203_p6), %v1679_v19  ;;  %v1695_v14 = vld [vmem:[%s2296_s25 + $0x60] sm:$0xff] (%p2203_p6) }
 0x2ff   : > { %v1328_v13 = vadd.f32 %v1296_v40, %v3109_v38  ;;  %v1485_v4 = vmul.f32 %v1453_v28, %v3052_v24  ;;  %1696 = vst [vmem:[%s1613_s13 + $0xc0] sm:$0xff] (%p2203_p6), %v1695_v14 }
 0x300   : > { %v2087_v43 = vpop.eup %2086  ;;  %2094 = vtanh.f32 %v1344_v22 }
 0x301   : > { %v2089_v10 = vpop.eup %2088  ;;  %v1406_v45 = vadd.f32 1.0, %v2087_v43  ;;  %v1360_v41 = vmul.f32 0.7978846, %v1328_v13 }
 0x302   : > { %v2091_v21 = vpop.eup %2090  ;;  %v1422_v33 = vadd.f32 1.0, %v2089_v10 }
 0x303   : > { %v1438_v1 = vmul.f32 0.5, %v1406_v45  ;;  %2096 = vtanh.f32 %v1360_v41  ;;  %v1407_v57 = vadd.f32 1.0, %v2091_v21 }
 0x304   : > { %v1454_v63 = vmul.f32 0.5, %v1422_v33  ;;  %v1681_v36 = vld [vmem:[%s2296_s25 + $0x28] sm:$0xff] (%p2203_p6) }
 0x305   : > { %v1470_v30 = vmul.f32 %v1438_v1, %v3069_v8  ;;  %v2093_v26 = vpop.eup %2092  ;;  %v1439_v31 = vmul.f32 0.5, %v1407_v57  ;;  %1682 = vst [vmem:[%s1613_s13 + $0x50] sm:$0xff] (%p2203_p6), %v1681_v36  ;;  %v1697_v54 = vld [vmem:[%s2296_s25 + $0x68] sm:$0xff] (%p2203_p6) }
 0x306   : > { %v1486_v61 = vmul.f32 %v1454_v63, %v3074_v39  ;;  %v1423_v52 = vadd.f32 1.0, %v2093_v26  ;;  %1698 = vst [vmem:[%s1613_s13 + $0xd0] sm:$0xff] (%p2203_p6), %v1697_v54 }
 0x307   : > { %v1871_v42 = vpack.c.bf16 %v1470_v30, %v1469_v34  ;;  %v1471_v6 = vmul.f32 %v1439_v31, %v3082_v15  ;;  %v1671_v15 = vld [vmem:[%s2296_s25] sm:$0xff] (%p2203_p6) }
 0x308   : > { %v1879_v9 = vpack.c.bf16 %v1486_v61, %v1485_v4  ;;  %v1455_v47 = vmul.f32 0.5, %v1423_v52  ;;  %1672 = vst [vmem:[%s1613_s13] sm:$0xff] (%p2203_p6), %v1671_v15 }
 0x309   : > { %1591 = vst [vmem:[%s2296_s25 + $0x30] sm:$0xff] %v1871_v42 }
 0x30a   : > { %1599 = vst [vmem:[%s2296_s25 + $0x70] sm:$0xff] %v1879_v9  ;;  %v2095_v5 = vpop.eup %2094  ;;  %v1487_v39 = vmul.f32 %v1455_v47, %v3089_v60  ;;  %v1673_v60 = vld [vmem:[%s2296_s25 + $0x8] sm:$0xff] (%p2203_p6) }
 0x30b   : > { %v1408_v46 = vadd.f32 1.0, %v2095_v5  ;;  %1674 = vst [vmem:[%s1613_s13 + $0x10] sm:$0xff] (%p2203_p6), %v1673_v60 }
 0x30d   : > { %v2097_v24 = vpop.eup %2096  ;;  %v1440_v3 = vmul.f32 0.5, %v1408_v46 }
 0x30e   : > { %v1424_v8 = vadd.f32 1.0, %v2097_v24 }
 0x30f   : > { %v1472_v7 = vmul.f32 %v1440_v3, %v3099_v23  ;;  %v1675_v23 = vld [vmem:[%s2296_s25 + $0x10] sm:$0xff] (%p2203_p6) }
 0x310   : > { %v1456_v35 = vmul.f32 0.5, %v1424_v8  ;;  %1607 = sbr.rel (!%p2203_p6) target bundleno = 799 (0x31f), region = 86  ;;  %1676 = vst [vmem:[%s1613_s13 + $0x20] sm:$0xff] (%p2203_p6), %v1675_v23  ;;  %v1683_v25 = vld [vmem:[%s2296_s25 + $0x30] sm:$0xff] (%p2203_p6) }
 0x311   : > { %v1872_v11 = vpack.c.bf16 %v1472_v7, %v1471_v6  ;;  %1684 = vst [vmem:[%s1613_s13 + $0x60] sm:$0xff] (%p2203_p6), %v1683_v25  ;;  %v1699_v17 = vld [vmem:[%s2296_s25 + $0x70] sm:$0xff] (%p2203_p6) }
 0x312   : > { %v1488_v0 = vmul.f32 %v1456_v35, %v3109_v38  ;;  %v1677_v38 = vld [vmem:[%s2296_s25 + $0x18] sm:$0xff] (%p2203_p6)  ;;  %1700 = vst [vmem:[%s1613_s13 + $0xe0] sm:$0xff] (%p2203_p6), %v1699_v17 }
 0x313   : > { %1592 = vst [vmem:[%s2296_s25 + $0x38] sm:$0xff] %v1872_v11  ;;  %1678 = vst [vmem:[%s1613_s13 + $0x30] sm:$0xff] (%p2203_p6), %v1677_v38 }
 0x314   : > { %v1880_v44 = vpack.c.bf16 %v1488_v0, %v1487_v39 }
 0x316   : > { %1600 = vst [vmem:[%s2296_s25 + $0x78] sm:$0xff] %v1880_v44 }
 0x31a   : > { %v1685_v58 = vld [vmem:[%s2296_s25 + $0x38] sm:$0xff] }
 0x31b   : > { %1686 = vst [vmem:[%s1613_s13 + $0x70] sm:$0xff] %v1685_v58 }
 0x31d   : > { %v1701_v27 = vld [vmem:[%s2296_s25 + $0x78] sm:$0xff] }
 0x31e   : > { %1702 = vst [vmem:[%s1613_s13 + $0xf0] sm:$0xff] %v1701_v27 }
 0x31f PF: > { %s15_s22 = sadd.s32 1, %s2136_s22   ;;  %s3185_s18 = smov %s2124_s19 }
 0x320   : > { %p12_p13 = scmp.ge.s32.totalorder %s15_s22, 4   ;;  %s3186_s19 = smov %s2208_s28 }
 0x321   : > { %s3187_s20 = smov %s2132_s21  ;;  %s3188_s21 = smov %s3190_s23 }
 0x322   :  { %14 = sbr.rel (!%p12_p13) target bundleno = 3 (0x3), region = 161 }

// kernel: sam_image_embedding.18
= control target key start
LH: loop header
LB: loop body
LE: loop exit
PB: predicated region body
PF: predicated region fallthrough
CT: control target
= control target key end

     0   :  { %s1978_s1 = inlined_call_operand.vmem [shape: bf16[512,256], index: 1, kind: input, shape index: {}]   ;;  %s1979_s0 = inlined_call_operand.vmem [shape: bf16[128,512], index: 0, kind: input, shape index: {}]   ;;  %s1980_s2 = inlined_call_operand.vmem [shape: f32[1,256], index: 2, kind: input, shape index: {}]   ;;  %s1981_s3 = inlined_call_operand.vmem [shape: bf16[128,256], index: 3, kind: input, shape index: {}]   ;;  %s1982_s4 = inlined_call_operand.vmem [shape: bf16[128,256], index: 4, kind: output, shape index: {}]  }
   0x1   :  { %v1386_v0 = vld [vmem:[%s1978_s1 + $0x4] ss:$8 sps:$4 sm:$0xff]   ;;  %v1390_v2 = vld [vmem:[%s1978_s1] ss:$8 sps:$4 sm:$0xff]   ;;  %v1392_v4 = vld [vmem:[%s1978_s1 + $0x14] ss:$8 sps:$4 sm:$0xff]  }
   0x2   :  { %v1388_v1 = vld [vmem:[%s1978_s1 + $0x104] ss:$8 sps:$4 sm:$0xff]   ;;  %661 = vmatprep.subr.bf16.mxu1 %v1386_v0  ;;  %v1391_v3 = vld [vmem:[%s1978_s1 + $0x100] ss:$8 sps:$4 sm:$0xff]   ;;  %v1394_v5 = vld [vmem:[%s1978_s1 + $0x114] ss:$8 sps:$4 sm:$0xff]  }
   0x3   :  { %774 = vmatprep.subr.bf16.mxu0 %v1388_v1  ;;  %662 = vmatpush1.bf16.msra.mxu1 %v1390_v2  ;;  %v1396_v6 = vld [vmem:[%s1978_s1 + $0x10] ss:$8 sps:$4 sm:$0xff]   ;;  %v1398_v8 = vld [vmem:[%s1978_s1 + $0x24] ss:$8 sps:$4 sm:$0xff]   ;;  %v1402_v10 = vld [vmem:[%s1978_s1 + $0x20] ss:$8 sps:$4 sm:$0xff]  }
   0x4   :  { %775 = vmatpush1.bf16.msra.mxu0 %v1391_v3  ;;  %663 = vmatprep.subr.bf16.mxu1 %v1392_v4  ;;  %v1397_v7 = vld [vmem:[%s1978_s1 + $0x110] ss:$8 sps:$4 sm:$0xff]   ;;  %v1400_v9 = vld [vmem:[%s1978_s1 + $0x124] ss:$8 sps:$4 sm:$0xff]   ;;  %v1403_v11 = vld [vmem:[%s1978_s1 + $0x120] ss:$8 sps:$4 sm:$0xff]  }
   0x5   :  { %776 = vmatprep.subr.bf16.mxu0 %v1394_v5  ;;  %v1404_v12 = vld [vmem:[%s1978_s1 + $0x34] ss:$8 sps:$4 sm:$0xff]   ;;  %v1408_v14 = vld [vmem:[%s1978_s1 + $0x30] ss:$8 sps:$4 sm:$0xff]   ;;  %v1410_v16 = vld [vmem:[%s1978_s1 + $0x44] ss:$8 sps:$4 sm:$0xff]  }
   0x6   :  { %v1406_v13 = vld [vmem:[%s1978_s1 + $0x134] ss:$8 sps:$4 sm:$0xff]   ;;  %v1409_v15 = vld [vmem:[%s1978_s1 + $0x130] ss:$8 sps:$4 sm:$0xff]   ;;  %v1412_v17 = vld [vmem:[%s1978_s1 + $0x144] ss:$8 sps:$4 sm:$0xff]  }
   0x7   :  { %664 = vmatpush1.bf16.msra.mxu1 %v1396_v6  ;;  %v1414_v18 = vld [vmem:[%s1978_s1 + $0x40] ss:$8 sps:$4 sm:$0xff]   ;;  %v1416_v20 = vld [vmem:[%s1978_s1 + $0x54] ss:$8 sps:$4 sm:$0xff]   ;;  %v1420_v22 = vld [vmem:[%s1978_s1 + $0x50] ss:$8 sps:$4 sm:$0xff]  }
   0x8   :  { %777 = vmatpush1.bf16.msra.mxu0 %v1397_v7  ;;  %665 = vmatprep.subr.bf16.mxu1 %v1398_v8  ;;  %v1415_v19 = vld [vmem:[%s1978_s1 + $0x140] ss:$8 sps:$4 sm:$0xff]   ;;  %v1418_v21 = vld [vmem:[%s1978_s1 + $0x154] ss:$8 sps:$4 sm:$0xff]   ;;  %v1421_v23 = vld [vmem:[%s1978_s1 + $0x150] ss:$8 sps:$4 sm:$0xff]  }
   0x9   :  { %778 = vmatprep.subr.bf16.mxu0 %v1400_v9  ;;  %v1422_v24 = vld [vmem:[%s1978_s1 + $0x64] ss:$8 sps:$4 sm:$0xff]   ;;  %v1426_v26 = vld [vmem:[%s1978_s1 + $0x60] ss:$8 sps:$4 sm:$0xff]   ;;  %v1428_v28 = vld [vmem:[%s1978_s1 + $0x74] ss:$8 sps:$4 sm:$0xff]  }
   0xa   :  { %v1424_v25 = vld [vmem:[%s1978_s1 + $0x164] ss:$8 sps:$4 sm:$0xff]   ;;  %v1427_v27 = vld [vmem:[%s1978_s1 + $0x160] ss:$8 sps:$4 sm:$0xff]   ;;  %v1430_v29 = vld [vmem:[%s1978_s1 + $0x174] ss:$8 sps:$4 sm:$0xff]  }
   0xb   :  { %666 = vmatpush1.bf16.msra.mxu1 %v1402_v10  ;;  %v1432_v30 = vld [vmem:[%s1978_s1 + $0x70] ss:$8 sps:$4 sm:$0xff]   ;;  %v1434_v32 = vld [vmem:[%s1978_s1 + $0x84] ss:$8 sps:$4 sm:$0xff]   ;;  %v1438_v34 = vld [vmem:[%s1978_s1 + $0x80] ss:$8 sps:$4 sm:$0xff]  }
   0xc   :  { %779 = vmatpush1.bf16.msra.mxu0 %v1403_v11  ;;  %667 = vmatprep.subr.bf16.mxu1 %v1404_v12  ;;  %v1433_v31 = vld [vmem:[%s1978_s1 + $0x170] ss:$8 sps:$4 sm:$0xff]   ;;  %v1436_v33 = vld [vmem:[%s1978_s1 + $0x184] ss:$8 sps:$4 sm:$0xff]   ;;  %v1439_v35 = vld [vmem:[%s1978_s1 + $0x180] ss:$8 sps:$4 sm:$0xff]  }
   0xd   :  { %780 = vmatprep.subr.bf16.mxu0 %v1406_v13  ;;  %v1440_v36 = vld [vmem:[%s1978_s1 + $0x94] ss:$8 sps:$4 sm:$0xff]   ;;  %v1444_v38 = vld [vmem:[%s1978_s1 + $0x90] ss:$8 sps:$4 sm:$0xff]   ;;  %v1446_v40 = vld [vmem:[%s1978_s1 + $0xa4] ss:$8 sps:$4 sm:$0xff]  }
   0xe   :  { %v1442_v37 = vld [vmem:[%s1978_s1 + $0x194] ss:$8 sps:$4 sm:$0xff]   ;;  %v1445_v39 = vld [vmem:[%s1978_s1 + $0x190] ss:$8 sps:$4 sm:$0xff]   ;;  %v1448_v41 = vld [vmem:[%s1978_s1 + $0x1a4] ss:$8 sps:$4 sm:$0xff]  }
   0xf   :  { %668 = vmatpush1.bf16.msra.mxu1 %v1408_v14  ;;  %v1450_v42 = vld [vmem:[%s1978_s1 + $0xa0] ss:$8 sps:$4 sm:$0xff]   ;;  %v1452_v44 = vld [vmem:[%s1978_s1 + $0xb4] ss:$8 sps:$4 sm:$0xff]   ;;  %v1456_v46 = vld [vmem:[%s1978_s1 + $0xb0] ss:$8 sps:$4 sm:$0xff]  }
  0x10   :  { %781 = vmatpush1.bf16.msra.mxu0 %v1409_v15  ;;  %669 = vmatprep.subr.bf16.mxu1 %v1410_v16  ;;  %v1451_v43 = vld [vmem:[%s1978_s1 + $0x1a0] ss:$8 sps:$4 sm:$0xff]   ;;  %v1454_v45 = vld [vmem:[%s1978_s1 + $0x1b4] ss:$8 sps:$4 sm:$0xff]   ;;  %v1457_v47 = vld [vmem:[%s1978_s1 + $0x1b0] ss:$8 sps:$4 sm:$0xff]  }
  0x11   :  { %782 = vmatprep.subr.bf16.mxu0 %v1412_v17  ;;  %v1458_v48 = vld [vmem:[%s1978_s1 + $0xc4] ss:$8 sps:$4 sm:$0xff]   ;;  %v1462_v52 = vld [vmem:[%s1978_s1 + $0xc0] ss:$8 sps:$4 sm:$0xff]   ;;  %v1464_v54 = vld [vmem:[%s1978_s1 + $0xd4] ss:$8 sps:$4 sm:$0xff]  }
  0x12   :  { %v1484_v49 = vld [vmem:[%s1979_s0 + $0x4] ss:$16 sps:$4 sm:$0xff]   ;;  %v1487_v51 = vld [vmem:[%s1979_s0 + $0xc] ss:$16 sps:$4 sm:$0xff]   ;;  %v1463_v53 = vld [vmem:[%s1978_s1 + $0x1c0] ss:$8 sps:$4 sm:$0xff]  }
  0x13   :  { %670 = vmatpush1.bf16.msra.mxu1 %v1414_v18  ;;  %v1460_v50 = vld [vmem:[%s1978_s1 + $0x1c4] ss:$8 sps:$4 sm:$0xff]   ;;  %693 = vmatprep.mubr.bf16.mxu1 %v1484_v49  ;;  %v1466_v55 = vld [vmem:[%s1978_s1 + $0x1d4] ss:$8 sps:$4 sm:$0xff]   ;;  %v1468_v56 = vld [vmem:[%s1978_s1 + $0xd0] ss:$8 sps:$4 sm:$0xff]  }
  0x14   :  { %783 = vmatpush1.bf16.msra.mxu0 %v1415_v19  ;;  %671 = vmatprep.subr.bf16.mxu1 %v1416_v20  ;;  %v1469_v57 = vld [vmem:[%s1978_s1 + $0x1d0] ss:$8 sps:$4 sm:$0xff]   ;;  %v1470_v58 = vld [vmem:[%s1978_s1 + $0xe4] ss:$8 sps:$4 sm:$0xff]   ;;  %v1474_v60 = vld [vmem:[%s1978_s1 + $0xe0] ss:$8 sps:$4 sm:$0xff]  }
  0x15   :  { %784 = vmatprep.subr.bf16.mxu0 %v1418_v21  ;;  %806 = vmatprep.mubr.bf16.mxu0 %v1487_v51  ;;  %v1472_v59 = vld [vmem:[%s1978_s1 + $0x1e4] ss:$8 sps:$4 sm:$0xff]   ;;  %v1475_v61 = vld [vmem:[%s1978_s1 + $0x1e0] ss:$8 sps:$4 sm:$0xff]   ;;  %v1476_v62 = vld [vmem:[%s1978_s1 + $0xf4] ss:$8 sps:$4 sm:$0xff]  }
  0x16   :  { %v1478_v63 = vld [vmem:[%s1978_s1 + $0x1f4] ss:$8 sps:$4 sm:$0xff]   ;;  %v1480_v0 = vld [vmem:[%s1978_s1 + $0xf0] ss:$8 sps:$4 sm:$0xff]  }
  0x17   :  { %672 = vmatpush1.bf16.msra.mxu1 %v1420_v22  ;;  %v1481_v1 = vld [vmem:[%s1978_s1 + $0x1f0] ss:$8 sps:$4 sm:$0xff]   ;;  %v1488_v4 = vld [vmem:[%s1979_s0 + $0x24] ss:$16 sps:$4 sm:$0xff]   ;;  %v1490_v5 = vld [vmem:[%s1979_s0 + $0x2c] ss:$16 sps:$4 sm:$0xff]  }
  0x18   :  { %785 = vmatpush1.bf16.msra.mxu0 %v1421_v23  ;;  %673 = vmatprep.subr.bf16.mxu1 %v1422_v24  ;;  %v1482_v2 = vld [vmem:[%s1979_s0] ss:$16 sps:$4 sm:$0xff]   ;;  %v1485_v3 = vld [vmem:[%s1979_s0 + $0x8] ss:$16 sps:$4 sm:$0xff]   ;;  %v1494_v8 = vld [vmem:[%s1979_s0 + $0x44] ss:$16 sps:$4 sm:$0xff]  }
  0x19   :  { %786 = vmatprep.subr.bf16.mxu0 %v1424_v25  ;;  %v1492_v6 = vld [vmem:[%s1979_s0 + $0x20] ss:$16 sps:$4 sm:$0xff]   ;;  %v1493_v7 = vld [vmem:[%s1979_s0 + $0x28] ss:$16 sps:$4 sm:$0xff]   ;;  %v1496_v9 = vld [vmem:[%s1979_s0 + $0x4c] ss:$16 sps:$4 sm:$0xff]  }
  0x1a   :  { %v1498_v10 = vld [vmem:[%s1979_s0 + $0x40] ss:$16 sps:$4 sm:$0xff]   ;;  %v1499_v11 = vld [vmem:[%s1979_s0 + $0x48] ss:$16 sps:$4 sm:$0xff]   ;;  %v1500_v12 = vld [vmem:[%s1979_s0 + $0x64] ss:$16 sps:$4 sm:$0xff]  }
  0x1b   :  { %674 = vmatpush1.bf16.msra.mxu1 %v1426_v26  ;;  %v1502_v13 = vld [vmem:[%s1979_s0 + $0x6c] ss:$16 sps:$4 sm:$0xff]   ;;  %v1504_v14 = vld [vmem:[%s1979_s0 + $0x60] ss:$16 sps:$4 sm:$0xff]   ;;  %v1505_v15 = vld [vmem:[%s1979_s0 + $0x68] ss:$16 sps:$4 sm:$0xff]  }
  0x1c   :  { %787 = vmatpush1.bf16.msra.mxu0 %v1427_v27  ;;  %675 = vmatprep.subr.bf16.mxu1 %v1428_v28  ;;  %v1506_v16 = vld [vmem:[%s1979_s0 + $0x84] ss:$16 sps:$4 sm:$0xff]   ;;  %v1508_v17 = vld [vmem:[%s1979_s0 + $0x8c] ss:$16 sps:$4 sm:$0xff]   ;;  %v1510_v18 = vld [vmem:[%s1979_s0 + $0x80] ss:$16 sps:$4 sm:$0xff]  }
  0x1d   :  { %788 = vmatprep.subr.bf16.mxu0 %v1430_v29  ;;  %v1511_v19 = vld [vmem:[%s1979_s0 + $0x88] ss:$16 sps:$4 sm:$0xff]   ;;  %v1512_v20 = vld [vmem:[%s1979_s0 + $0xa4] ss:$16 sps:$4 sm:$0xff]   ;;  %v1514_v21 = vld [vmem:[%s1979_s0 + $0xac] ss:$16 sps:$4 sm:$0xff]  }
  0x1e   :  { %v1516_v22 = vld [vmem:[%s1979_s0 + $0xa0] ss:$16 sps:$4 sm:$0xff]   ;;  %v1517_v23 = vld [vmem:[%s1979_s0 + $0xa8] ss:$16 sps:$4 sm:$0xff]   ;;  %v1518_v24 = vld [vmem:[%s1979_s0 + $0xc4] ss:$16 sps:$4 sm:$0xff]  }
  0x1f   :  { %676 = vmatpush1.bf16.msra.mxu1 %v1432_v30  ;;  %v1520_v25 = vld [vmem:[%s1979_s0 + $0xcc] ss:$16 sps:$4 sm:$0xff]   ;;  %v1522_v26 = vld [vmem:[%s1979_s0 + $0xc0] ss:$16 sps:$4 sm:$0xff]   ;;  %v1523_v27 = vld [vmem:[%s1979_s0 + $0xc8] ss:$16 sps:$4 sm:$0xff]  }
  0x20   :  { %789 = vmatpush1.bf16.msra.mxu0 %v1433_v31  ;;  %677 = vmatprep.subr.bf16.mxu1 %v1434_v32  ;;  %v1524_v28 = vld [vmem:[%s1979_s0 + $0xe4] ss:$16 sps:$4 sm:$0xff]   ;;  %v1526_v29 = vld [vmem:[%s1979_s0 + $0xec] ss:$16 sps:$4 sm:$0xff]   ;;  %v1528_v30 = vld [vmem:[%s1979_s0 + $0xe0] ss:$16 sps:$4 sm:$0xff]   ;;  %v988_v32 = vlaneseq }
  0x21   :  { %790 = vmatprep.subr.bf16.mxu0 %v1436_v33  ;;  %v1529_v31 = vld [vmem:[%s1979_s0 + $0xe8] ss:$16 sps:$4 sm:$0xff]  }
  0x22   :  { %v989_v33 = vshrl.u32 %v988_v32, 7 }
  0x23   :  { %678 = vmatpush1.bf16.msra.mxu1 %v1438_v34 }
  0x24   :  { %791 = vmatpush1.bf16.msra.mxu0 %v1439_v35  ;;  %679 = vmatprep.subr.bf16.mxu1 %v1440_v36  ;;  %v990_v34 = vsub.s32 0, %v989_v33  ;;  %v986_v35 = vld [vmem:[%s1980_s2] sm:$0x3]  ;;  %v994_v36 = vsub.s32 1, %v989_v33  ;;  %v1035_v33 = vld [vmem:[%s1981_s3 + $0x28] sm:$0xff] }
  0x25   :  { %792 = vmatprep.subr.bf16.mxu0 %v1442_v37  ;;  %v1030_v37 = vld [vmem:[%s1981_s3] sm:$0xff] }
  0x27   :  { %680 = vmatpush1.bf16.msra.mxu1 %v1444_v38  ;;  %v1849_v38 = vrot.slane %v986_v35, %v990_v34 }
  0x28   :  { %793 = vmatpush1.bf16.msra.mxu0 %v1445_v39  ;;  %681 = vmatprep.subr.bf16.mxu1 %v1446_v40 }
  0x29   :  { %794 = vmatprep.subr.bf16.mxu0 %v1448_v41  ;;  %v1851_v41 = vrot.slane %v986_v35, %v994_v36 }
  0x2b   :  { %682 = vmatpush1.bf16.msra.mxu1 %v1450_v42  ;;  %v1031_v42 = vld [vmem:[%s1981_s3 + $0x8] sm:$0xff] }
  0x2c   :  { %795 = vmatpush1.bf16.msra.mxu0 %v1451_v43  ;;  %683 = vmatprep.subr.bf16.mxu1 %v1452_v44  ;;  %v1046_v44 = vunpack.c.l.bf16 %v1030_v37 }
  0x2d   :  { %796 = vmatprep.subr.bf16.mxu0 %v1454_v45 }
  0x2f   :  { %684 = vmatpush1.bf16.msra.mxu1 %v1456_v46 }
  0x30   :  { %797 = vmatpush1.bf16.msra.mxu0 %v1457_v47  ;;  %685 = vmatprep.subr.bf16.mxu1 %v1458_v48  ;;  %v1047_v48 = vunpack.c.h.bf16 %v1030_v37 }
  0x31   :  { %798 = vmatprep.subr.bf16.mxu0 %v1460_v50 }
  0x33   :  { %686 = vmatpush1.bf16.msra.mxu1 %v1462_v52 }
  0x34   :  { %799 = vmatpush1.bf16.msra.mxu0 %v1463_v53  ;;  %687 = vmatprep.subr.bf16.mxu1 %v1464_v54  ;;  %v1048_v53 = vunpack.c.l.bf16 %v1031_v42 }
  0x35   :  { %800 = vmatprep.subr.bf16.mxu0 %v1466_v55 }
  0x37   :  { %688 = vmatpush1.bf16.msra.mxu1 %v1468_v56 }
  0x38   :  { %801 = vmatpush1.bf16.msra.mxu0 %v1469_v57  ;;  %689 = vmatprep.subr.bf16.mxu1 %v1470_v58  ;;  %v1049_v58 = vunpack.c.h.bf16 %v1031_v42 }
  0x39   :  { %802 = vmatprep.subr.bf16.mxu0 %v1472_v59 }
  0x3b   :  { %690 = vmatpush1.bf16.msra.mxu1 %v1474_v60 }
  0x3c   :  { %803 = vmatpush1.bf16.msra.mxu0 %v1475_v61  ;;  %691 = vmatprep.subr.bf16.mxu1 %v1476_v62 }
  0x3d   :  { %804 = vmatprep.subr.bf16.mxu0 %v1478_v63  ;;  %v1032_v63 = vld [vmem:[%s1981_s3 + $0x10] sm:$0xff] }
  0x3f   :  { %692 = vmatpush1.bf16.msra.mxu1 %v1480_v0 }
  0x40   :  { %805 = vmatpush1.bf16.msra.mxu0 %v1481_v1 }
  0x42   :  { %694 = vmatmul.mubr.bf16.vlgmr.msra.gmra.mrb[0].mxu1 %v1482_v2 }
  0x43   :  { %807 = vmatmul.mubr.bf16.vlgmr.msra.gmra.mrb[0].mxu0 %v1485_v3  ;;  %703 = vmatprep.mubr.bf16.mxu1 %v1488_v4 }
  0x44   :  { %816 = vmatprep.mubr.bf16.mxu0 %v1490_v5  ;;  %v1033_v5 = vld [vmem:[%s1981_s3 + $0x18] sm:$0xff] }
  0x4a   :  { %704 = vmatmul.mubr.bf16.gmra.mrb[4].mxu1 %v1492_v6 }
  0x4b   :  { %817 = vmatmul.mubr.bf16.gmra.mrb[4].mxu0 %v1493_v7  ;;  %713 = vmatprep.mubr.bf16.mxu1 %v1494_v8  ;;  %v1050_v7 = vunpack.c.l.bf16 %v1032_v63 }
  0x4c   :  { %826 = vmatprep.mubr.bf16.mxu0 %v1496_v9 }
  0x52   :  { %714 = vmatmul.mubr.bf16.gmra.mrb[8].mxu1 %v1498_v10 }
  0x53   :  { %827 = vmatmul.mubr.bf16.gmra.mrb[8].mxu0 %v1499_v11  ;;  %723 = vmatprep.mubr.bf16.mxu1 %v1500_v12  ;;  %v1051_v12 = vunpack.c.h.bf16 %v1032_v63  ;;  %v1037_v63 = vld [vmem:[%s1981_s3 + $0x38] sm:$0xff] }
  0x54   :  { %836 = vmatprep.mubr.bf16.mxu0 %v1502_v13 }
  0x5a   :  { %724 = vmatmul.mubr.bf16.gmra.mrb[12].mxu1 %v1504_v14 }
  0x5b   :  { %837 = vmatmul.mubr.bf16.gmra.mrb[12].mxu0 %v1505_v15  ;;  %733 = vmatprep.mubr.bf16.mxu1 %v1506_v16 }
  0x5c   :  { %846 = vmatprep.mubr.bf16.mxu0 %v1508_v17  ;;  %v1052_v17 = vunpack.c.l.bf16 %v1033_v5 }
  0x62   :  { %734 = vmatmul.mubr.bf16.gmra.mrb[16].mxu1 %v1510_v18 }
  0x63   :  { %847 = vmatmul.mubr.bf16.gmra.mrb[16].mxu0 %v1511_v19  ;;  %743 = vmatprep.mubr.bf16.mxu1 %v1512_v20 }
  0x64   :  { %856 = vmatprep.mubr.bf16.mxu0 %v1514_v21 }
  0x6a   :  { %744 = vmatmul.mubr.bf16.gmra.mrb[20].mxu1 %v1516_v22  ;;  %v1053_v22 = vunpack.c.h.bf16 %v1033_v5 }
  0x6b   :  { %857 = vmatmul.mubr.bf16.gmra.mrb[20].mxu0 %v1517_v23  ;;  %753 = vmatprep.mubr.bf16.mxu1 %v1518_v24 }
  0x6c   :  { %866 = vmatprep.mubr.bf16.mxu0 %v1520_v25 }
  0x72   :  { %754 = vmatmul.mubr.bf16.gmra.mrb[24].mxu1 %v1522_v26 }
  0x73   :  { %867 = vmatmul.mubr.bf16.gmra.mrb[24].mxu0 %v1523_v27  ;;  %763 = vmatprep.mubr.bf16.mxu1 %v1524_v28  ;;  %v1034_v27 = vld [vmem:[%s1981_s3 + $0x20] sm:$0xff] }
  0x74   :  { %876 = vmatprep.mubr.bf16.mxu0 %v1526_v29  ;;  %v1054_v35 = vunpack.c.l.bf16 %v1034_v27  ;;  %v1055_v42 = vunpack.c.h.bf16 %v1034_v27  ;;  %v1039_v27 = vld [vmem:[%s1981_s3 + $0x48] sm:$0xff] }
  0x7a   :  { %764 = vmatmul.mubr.bf16.gmra.mrb[28].mxu1 %v1528_v30 }
  0x7b   :  { %877 = vmatmul.mubr.bf16.gmra.mrb[28].mxu0 %v1529_v31 }
 0x115   :  { %v695_v39 = vpop.f32.mrb[0].mxu1 }
 0x116   :  { %v808_v40 = vpop.f32.mrb[0].mxu0  ;;  %v697_v45 = vpop.f32.mrb[1].mxu1 }
 0x117   :  { %v809_v43 = vadd.f32 %v808_v40, %v695_v39  ;;  %v810_v46 = vpop.f32.mrb[1].mxu0  ;;  %v699_v49 = vpop.f32.mrb[2].mxu1 }
 0x118   :  { %v811_v47 = vadd.f32 %v810_v46, %v697_v45  ;;  %v812_v50 = vpop.f32.mrb[2].mxu0  ;;  %v701_v54 = vpop.f32.mrb[3].mxu1 }
 0x119   :  { %v998_v51 = vadd.f32 %v1849_v38, %v809_v43  ;;  %v813_v52 = vadd.f32 %v812_v50, %v699_v49  ;;  %v814_v55 = vpop.f32.mrb[3].mxu0 }
 0x11a   :  { %v999_v56 = vadd.f32 %v1851_v41, %v811_v47  ;;  %v815_v57 = vadd.f32 %v814_v55, %v701_v54  ;;  %v1056_v47 = vunpack.c.l.bf16 %v1035_v33 }
 0x11b   :  { %v1078_v59 = vadd.f32 %v1046_v44, %v998_v51  ;;  %v1000_v60 = vadd.f32 %v1849_v38, %v813_v52  ;;  %v1057_v52 = vunpack.c.h.bf16 %v1035_v33 }
 0x11c   :  { %v1079_v61 = vadd.f32 %v1047_v48, %v999_v56  ;;  %v1001_v62 = vadd.f32 %v1851_v41, %v815_v57  ;;  %v1036_v57 = vld [vmem:[%s1981_s3 + $0x30] sm:$0xff] }
 0x11d   :  { %v1080_v0 = vadd.f32 %v1048_v53, %v1000_v60  ;;  %v705_v3 = vpop.f32.mrb[4].mxu1 }
 0x11e   :  { %v1338_v1 = vpack.c.bf16 %v1079_v61, %v1078_v59  ;;  %v1081_v2 = vadd.f32 %v1049_v58, %v1001_v62  ;;  %v818_v4 = vpop.f32.mrb[4].mxu0  ;;  %v707_v8 = vpop.f32.mrb[5].mxu1 }
 0x11f   :  { %v819_v6 = vadd.f32 %v818_v4, %v705_v3  ;;  %v820_v9 = vpop.f32.mrb[5].mxu0  ;;  %v709_v13 = vpop.f32.mrb[6].mxu1 }
 0x120   :  { %1206 = vst [vmem:[%s1982_s4] sm:$0xff] %v1338_v1  ;;  %v1339_v10 = vpack.c.bf16 %v1081_v2, %v1080_v0  ;;  %v821_v11 = vadd.f32 %v820_v9, %v707_v8  ;;  %v822_v14 = vpop.f32.mrb[6].mxu0  ;;  %v711_v18 = vpop.f32.mrb[7].mxu1  ;;  %v1058_v1 = vunpack.c.l.bf16 %v1036_v57 }
 0x121   :  { %v1002_v15 = vadd.f32 %v1849_v38, %v819_v6  ;;  %v823_v16 = vadd.f32 %v822_v14, %v709_v13  ;;  %v824_v19 = vpop.f32.mrb[7].mxu0  ;;  %v1059_v6 = vunpack.c.h.bf16 %v1036_v57  ;;  %v1041_v57 = vld [vmem:[%s1981_s3 + $0x58] sm:$0xff] }
 0x122   :  { %1207 = vst [vmem:[%s1982_s4 + $0x8] sm:$0xff] %v1339_v10  ;;  %v1003_v20 = vadd.f32 %v1851_v41, %v821_v11  ;;  %v825_v21 = vadd.f32 %v824_v19, %v711_v18  ;;  %v1060_v11 = vunpack.c.l.bf16 %v1037_v63 }
 0x123   :  { %v1082_v23 = vadd.f32 %v1050_v7, %v1002_v15  ;;  %v1004_v24 = vadd.f32 %v1849_v38, %v823_v16  ;;  %v1061_v16 = vunpack.c.h.bf16 %v1037_v63 }
 0x124   :  { %v1083_v25 = vadd.f32 %v1051_v12, %v1003_v20  ;;  %v1005_v26 = vadd.f32 %v1851_v41, %v825_v21  ;;  %v1038_v21 = vld [vmem:[%s1981_s3 + $0x40] sm:$0xff] }
 0x125   :  { %v1084_v28 = vadd.f32 %v1052_v17, %v1004_v24  ;;  %v715_v31 = vpop.f32.mrb[8].mxu1 }
 0x126   :  { %v1340_v29 = vpack.c.bf16 %v1083_v25, %v1082_v23  ;;  %v1085_v30 = vadd.f32 %v1053_v22, %v1005_v26  ;;  %v828_v32 = vpop.f32.mrb[8].mxu0  ;;  %v717_v36 = vpop.f32.mrb[9].mxu1 }
 0x127   :  { %v829_v34 = vadd.f32 %v828_v32, %v715_v31  ;;  %v830_v37 = vpop.f32.mrb[9].mxu0  ;;  %v719_v43 = vpop.f32.mrb[10].mxu1 }
 0x128   :  { %1208 = vst [vmem:[%s1982_s4 + $0x10] sm:$0xff] %v1340_v29  ;;  %v1341_v39 = vpack.c.bf16 %v1085_v30, %v1084_v28  ;;  %v831_v40 = vadd.f32 %v830_v37, %v717_v36  ;;  %v832_v44 = vpop.f32.mrb[10].mxu0  ;;  %v721_v48 = vpop.f32.mrb[11].mxu1  ;;  %v1062_v29 = vunpack.c.l.bf16 %v1038_v21 }
 0x129   :  { %v1006_v45 = vadd.f32 %v1849_v38, %v829_v34  ;;  %v833_v46 = vadd.f32 %v832_v44, %v719_v43  ;;  %v834_v49 = vpop.f32.mrb[11].mxu0  ;;  %v1063_v34 = vunpack.c.h.bf16 %v1038_v21  ;;  %v1043_v21 = vld [vmem:[%s1981_s3 + $0x68] sm:$0xff] }
 0x12a   :  { %1209 = vst [vmem:[%s1982_s4 + $0x18] sm:$0xff] %v1341_v39  ;;  %v1007_v50 = vadd.f32 %v1851_v41, %v831_v40  ;;  %v835_v51 = vadd.f32 %v834_v49, %v721_v48  ;;  %v1064_v40 = vunpack.c.l.bf16 %v1039_v27 }
 0x12b   :  { %v1086_v53 = vadd.f32 %v1054_v35, %v1006_v45  ;;  %v1008_v54 = vadd.f32 %v1849_v38, %v833_v46  ;;  %v1065_v46 = vunpack.c.h.bf16 %v1039_v27 }
 0x12c   :  { %v1087_v55 = vadd.f32 %v1055_v42, %v1007_v50  ;;  %v1009_v56 = vadd.f32 %v1851_v41, %v835_v51  ;;  %v1040_v51 = vld [vmem:[%s1981_s3 + $0x50] sm:$0xff] }
 0x12d   :  { %v1088_v58 = vadd.f32 %v1056_v47, %v1008_v54  ;;  %v725_v61 = vpop.f32.mrb[12].mxu1 }
 0x12e   :  { %v1342_v59 = vpack.c.bf16 %v1087_v55, %v1086_v53  ;;  %v1089_v60 = vadd.f32 %v1057_v52, %v1009_v56  ;;  %v838_v62 = vpop.f32.mrb[12].mxu0  ;;  %v727_v2 = vpop.f32.mrb[13].mxu1 }
 0x12f   :  { %v839_v0 = vadd.f32 %v838_v62, %v725_v61  ;;  %v840_v3 = vpop.f32.mrb[13].mxu0  ;;  %v729_v7 = vpop.f32.mrb[14].mxu1 }
 0x130   :  { %1210 = vst [vmem:[%s1982_s4 + $0x20] sm:$0xff] %v1342_v59  ;;  %v1343_v4 = vpack.c.bf16 %v1089_v60, %v1088_v58  ;;  %v841_v5 = vadd.f32 %v840_v3, %v727_v2  ;;  %v842_v8 = vpop.f32.mrb[14].mxu0  ;;  %v731_v12 = vpop.f32.mrb[15].mxu1  ;;  %v1066_v59 = vunpack.c.l.bf16 %v1040_v51 }
 0x131   :  { %v1010_v9 = vadd.f32 %v1849_v38, %v839_v0  ;;  %v843_v10 = vadd.f32 %v842_v8, %v729_v7  ;;  %v844_v13 = vpop.f32.mrb[15].mxu0  ;;  %v1067_v0 = vunpack.c.h.bf16 %v1040_v51  ;;  %v1045_v51 = vld [vmem:[%s1981_s3 + $0x78] sm:$0xff] }
 0x132   :  { %1211 = vst [vmem:[%s1982_s4 + $0x28] sm:$0xff] %v1343_v4  ;;  %v1011_v14 = vadd.f32 %v1851_v41, %v841_v5  ;;  %v845_v15 = vadd.f32 %v844_v13, %v731_v12  ;;  %v1068_v5 = vunpack.c.l.bf16 %v1041_v57 }
 0x133   :  { %v1090_v17 = vadd.f32 %v1058_v1, %v1010_v9  ;;  %v1012_v18 = vadd.f32 %v1849_v38, %v843_v10  ;;  %v1069_v10 = vunpack.c.h.bf16 %v1041_v57 }
 0x134   :  { %v1091_v19 = vadd.f32 %v1059_v6, %v1011_v14  ;;  %v1013_v20 = vadd.f32 %v1851_v41, %v845_v15  ;;  %v1042_v15 = vld [vmem:[%s1981_s3 + $0x60] sm:$0xff] }
 0x135   :  { %v1092_v22 = vadd.f32 %v1060_v11, %v1012_v18  ;;  %v735_v25 = vpop.f32.mrb[16].mxu1 }
 0x136   :  { %v1344_v23 = vpack.c.bf16 %v1091_v19, %v1090_v17  ;;  %v1093_v24 = vadd.f32 %v1061_v16, %v1013_v20  ;;  %v848_v26 = vpop.f32.mrb[16].mxu0  ;;  %v737_v30 = vpop.f32.mrb[17].mxu1 }
 0x137   :  { %v849_v28 = vadd.f32 %v848_v26, %v735_v25  ;;  %v850_v31 = vpop.f32.mrb[17].mxu0  ;;  %v739_v35 = vpop.f32.mrb[18].mxu1 }
 0x138   :  { %1212 = vst [vmem:[%s1982_s4 + $0x30] sm:$0xff] %v1344_v23  ;;  %v1345_v32 = vpack.c.bf16 %v1093_v24, %v1092_v22  ;;  %v851_v33 = vadd.f32 %v850_v31, %v737_v30  ;;  %v852_v36 = vpop.f32.mrb[18].mxu0  ;;  %v741_v42 = vpop.f32.mrb[19].mxu1  ;;  %v1070_v23 = vunpack.c.l.bf16 %v1042_v15 }
 0x139   :  { %v1014_v37 = vadd.f32 %v1849_v38, %v849_v28  ;;  %v853_v39 = vadd.f32 %v852_v36, %v739_v35  ;;  %v854_v43 = vpop.f32.mrb[19].mxu0  ;;  %v1071_v28 = vunpack.c.h.bf16 %v1042_v15 }
 0x13a   :  { %1213 = vst [vmem:[%s1982_s4 + $0x38] sm:$0xff] %v1345_v32  ;;  %v1015_v44 = vadd.f32 %v1851_v41, %v851_v33  ;;  %v855_v45 = vadd.f32 %v854_v43, %v741_v42  ;;  %v1072_v33 = vunpack.c.l.bf16 %v1043_v21 }
 0x13b   :  { %v1094_v47 = vadd.f32 %v1062_v29, %v1014_v37  ;;  %v1016_v48 = vadd.f32 %v1849_v38, %v853_v39  ;;  %v1073_v39 = vunpack.c.h.bf16 %v1043_v21 }
 0x13c   :  { %v1095_v49 = vadd.f32 %v1063_v34, %v1015_v44  ;;  %v1017_v50 = vadd.f32 %v1851_v41, %v855_v45  ;;  %v1044_v45 = vld [vmem:[%s1981_s3 + $0x70] sm:$0xff] }
 0x13d   :  { %v1096_v52 = vadd.f32 %v1064_v40, %v1016_v48  ;;  %v745_v55 = vpop.f32.mrb[20].mxu1 }
 0x13e   :  { %v1346_v53 = vpack.c.bf16 %v1095_v49, %v1094_v47  ;;  %v1097_v54 = vadd.f32 %v1065_v46, %v1017_v50  ;;  %v858_v56 = vpop.f32.mrb[20].mxu0  ;;  %v747_v60 = vpop.f32.mrb[21].mxu1 }
 0x13f   :  { %v859_v58 = vadd.f32 %v858_v56, %v745_v55  ;;  %v860_v61 = vpop.f32.mrb[21].mxu0  ;;  %v749_v1 = vpop.f32.mrb[22].mxu1 }
 0x140   :  { %1214 = vst [vmem:[%s1982_s4 + $0x40] sm:$0xff] %v1346_v53  ;;  %v1347_v62 = vpack.c.bf16 %v1097_v54, %v1096_v52  ;;  %v861_v63 = vadd.f32 %v860_v61, %v747_v60  ;;  %v862_v2 = vpop.f32.mrb[22].mxu0  ;;  %v751_v6 = vpop.f32.mrb[23].mxu1  ;;  %v1074_v53 = vunpack.c.l.bf16 %v1044_v45 }
 0x141   :  { %v1018_v3 = vadd.f32 %v1849_v38, %v859_v58  ;;  %v863_v4 = vadd.f32 %v862_v2, %v749_v1  ;;  %v864_v7 = vpop.f32.mrb[23].mxu0  ;;  %v1075_v58 = vunpack.c.h.bf16 %v1044_v45 }
 0x142   :  { %1215 = vst [vmem:[%s1982_s4 + $0x48] sm:$0xff] %v1347_v62  ;;  %v1019_v8 = vadd.f32 %v1851_v41, %v861_v63  ;;  %v865_v9 = vadd.f32 %v864_v7, %v751_v6  ;;  %v1076_v63 = vunpack.c.l.bf16 %v1045_v51 }
 0x143   :  { %v1098_v11 = vadd.f32 %v1066_v59, %v1018_v3  ;;  %v1020_v12 = vadd.f32 %v1849_v38, %v863_v4  ;;  %v1077_v4 = vunpack.c.h.bf16 %v1045_v51 }
 0x144   :  { %v1099_v13 = vadd.f32 %v1067_v0, %v1019_v8  ;;  %v1021_v14 = vadd.f32 %v1851_v41, %v865_v9 }
 0x145   :  { %v1100_v16 = vadd.f32 %v1068_v5, %v1020_v12  ;;  %v755_v19 = vpop.f32.mrb[24].mxu1 }
 0x146   :  { %v1348_v17 = vpack.c.bf16 %v1099_v13, %v1098_v11  ;;  %v1101_v18 = vadd.f32 %v1069_v10, %v1021_v14  ;;  %v868_v20 = vpop.f32.mrb[24].mxu0  ;;  %v757_v24 = vpop.f32.mrb[25].mxu1 }
 0x147   :  { %v869_v22 = vadd.f32 %v868_v20, %v755_v19  ;;  %v870_v25 = vpop.f32.mrb[25].mxu0  ;;  %v759_v29 = vpop.f32.mrb[26].mxu1 }
 0x148   :  { %1216 = vst [vmem:[%s1982_s4 + $0x50] sm:$0xff] %v1348_v17  ;;  %v1349_v26 = vpack.c.bf16 %v1101_v18, %v1100_v16  ;;  %v871_v27 = vadd.f32 %v870_v25, %v757_v24  ;;  %v872_v30 = vpop.f32.mrb[26].mxu0  ;;  %v761_v34 = vpop.f32.mrb[27].mxu1 }
 0x149   :  { %v1022_v31 = vadd.f32 %v1849_v38, %v869_v22  ;;  %v873_v32 = vadd.f32 %v872_v30, %v759_v29  ;;  %v874_v35 = vpop.f32.mrb[27].mxu0 }
 0x14a   :  { %1217 = vst [vmem:[%s1982_s4 + $0x58] sm:$0xff] %v1349_v26  ;;  %v1023_v36 = vadd.f32 %v1851_v41, %v871_v27  ;;  %v875_v37 = vadd.f32 %v874_v35, %v761_v34 }
 0x14b   :  { %v1102_v40 = vadd.f32 %v1070_v23, %v1022_v31  ;;  %v1024_v42 = vadd.f32 %v1849_v38, %v873_v32 }
 0x14c   :  { %v1103_v43 = vadd.f32 %v1071_v28, %v1023_v36  ;;  %v1025_v44 = vadd.f32 %v1851_v41, %v875_v37 }
 0x14d   :  { %v1104_v46 = vadd.f32 %v1072_v33, %v1024_v42  ;;  %v765_v49 = vpop.f32.mrb[28].mxu1 }
 0x14e   :  { %v1350_v47 = vpack.c.bf16 %v1103_v43, %v1102_v40  ;;  %v1105_v48 = vadd.f32 %v1073_v39, %v1025_v44  ;;  %v878_v50 = vpop.f32.mrb[28].mxu0  ;;  %v767_v54 = vpop.f32.mrb[29].mxu1 }
 0x14f   :  { %v879_v52 = vadd.f32 %v878_v50, %v765_v49  ;;  %v880_v55 = vpop.f32.mrb[29].mxu0  ;;  %v769_v59 = vpop.f32.mrb[30].mxu1 }
 0x150   :  { %1218 = vst [vmem:[%s1982_s4 + $0x60] sm:$0xff] %v1350_v47  ;;  %v1351_v56 = vpack.c.bf16 %v1105_v48, %v1104_v46  ;;  %v881_v57 = vadd.f32 %v880_v55, %v767_v54  ;;  %v882_v60 = vpop.f32.mrb[30].mxu0  ;;  %v771_v0 = vpop.f32.mrb[31].mxu1 }
 0x151   :  { %v1026_v61 = vadd.f32 %v1849_v38, %v879_v52  ;;  %v883_v62 = vadd.f32 %v882_v60, %v769_v59  ;;  %v884_v1 = vpop.f32.mrb[31].mxu0 }
 0x152   :  { %1219 = vst [vmem:[%s1982_s4 + $0x68] sm:$0xff] %v1351_v56  ;;  %v1027_v2 = vadd.f32 %v1851_v41, %v881_v57  ;;  %v885_v3 = vadd.f32 %v884_v1, %v771_v0 }
 0x153   :  { %v1106_v5 = vadd.f32 %v1074_v53, %v1026_v61  ;;  %v1028_v6 = vadd.f32 %v1849_v38, %v883_v62 }
 0x154   :  { %v1107_v7 = vadd.f32 %v1075_v58, %v1027_v2  ;;  %v1029_v8 = vadd.f32 %v1851_v41, %v885_v3 }
 0x155   :  { %v1108_v9 = vadd.f32 %v1076_v63, %v1028_v6 }
 0x156   :  { %v1352_v10 = vpack.c.bf16 %v1107_v7, %v1106_v5  ;;  %v1109_v11 = vadd.f32 %v1077_v4, %v1029_v8 }
 0x158   :  { %1220 = vst [vmem:[%s1982_s4 + $0x70] sm:$0xff] %v1352_v10  ;;  %v1353_v12 = vpack.c.bf16 %v1109_v11, %v1108_v9 }
 0x15a   :  { %1221 = vst [vmem:[%s1982_s4 + $0x78] sm:$0xff] %v1353_v12 }

// kernel: sam_image_embedding.24
= control target key start
LH: loop header
LB: loop body
LE: loop exit
PB: predicated region body
PF: predicated region fallthrough
CT: control target
= control target key end

     0   :  { %s1845_s1 = inlined_call_operand.vmem [shape: bf16[256,256], index: 1, kind: input, shape index: {}]   ;;  %s1846_s0 = inlined_call_operand.vmem [shape: bf16[128,256], index: 0, kind: input, shape index: {}]   ;;  %s1847_s2 = inlined_call_operand.vmem [shape: f32[1,256], index: 2, kind: input, shape index: {}]   ;;  %s1848_s3 = inlined_call_operand.vmem [shape: f32[1,256], index: 3, kind: input, shape index: {}]   ;;  %s1849_s4 = inlined_call_operand.vmem [shape: bf16[128,256], index: 4, kind: output, shape index: {}]  }
   0x1   :  { %v1158_v0 = vld [vmem:[%s1845_s1 + $0x4] ss:$8 sps:$4 sm:$0xff]   ;;  %v1160_v1 = vld [vmem:[%s1845_s1] ss:$8 sps:$4 sm:$0xff]   ;;  %v1161_v2 = vld [vmem:[%s1845_s1 + $0x14] ss:$8 sps:$4 sm:$0xff]  }
   0x2   :  { %373 = vmatprep.subr.bf16.mxu0 %v1158_v0  ;;  %1126 = vmatprep.subr.bf16.mxu1 %v1158_v0  ;;  %v1163_v3 = vld [vmem:[%s1845_s1 + $0x10] ss:$8 sps:$4 sm:$0xff]   ;;  %v1164_v4 = vld [vmem:[%s1845_s1 + $0x24] ss:$8 sps:$4 sm:$0xff]   ;;  %v1166_v5 = vld [vmem:[%s1845_s1 + $0x20] ss:$8 sps:$4 sm:$0xff]  }
   0x3   :  { %374 = vmatpush1.bf16.msra.mxu0 %v1160_v1  ;;  %1142 = vmatpush1.bf16.msra.mxu1 %v1160_v1  ;;  %v1167_v6 = vld [vmem:[%s1845_s1 + $0x34] ss:$8 sps:$4 sm:$0xff]   ;;  %v1169_v7 = vld [vmem:[%s1845_s1 + $0x30] ss:$8 sps:$4 sm:$0xff]   ;;  %v1170_v8 = vld [vmem:[%s1845_s1 + $0x44] ss:$8 sps:$4 sm:$0xff]  }
   0x4   :  { %375 = vmatprep.subr.bf16.mxu0 %v1161_v2  ;;  %1127 = vmatprep.subr.bf16.mxu1 %v1161_v2  ;;  %v1172_v9 = vld [vmem:[%s1845_s1 + $0x40] ss:$8 sps:$4 sm:$0xff]   ;;  %v1173_v10 = vld [vmem:[%s1845_s1 + $0x54] ss:$8 sps:$4 sm:$0xff]   ;;  %v1175_v11 = vld [vmem:[%s1845_s1 + $0x50] ss:$8 sps:$4 sm:$0xff]  }
   0x5   :  { %v1176_v12 = vld [vmem:[%s1845_s1 + $0x64] ss:$8 sps:$4 sm:$0xff]   ;;  %v1178_v14 = vld [vmem:[%s1845_s1 + $0x60] ss:$8 sps:$4 sm:$0xff]   ;;  %v1179_v16 = vld [vmem:[%s1845_s1 + $0x74] ss:$8 sps:$4 sm:$0xff]  }
   0x6   :  { %v1208_v13 = vld [vmem:[%s1846_s0 + $0x4] ss:$8 sps:$4 sm:$0xff]   ;;  %v1181_v17 = vld [vmem:[%s1845_s1 + $0x70] ss:$8 sps:$4 sm:$0xff]   ;;  %v1184_v19 = vld [vmem:[%s1845_s1 + $0x80] ss:$8 sps:$4 sm:$0xff]  }
   0x7   :  { %376 = vmatpush1.bf16.msra.mxu0 %v1163_v3  ;;  %1143 = vmatpush1.bf16.msra.mxu1 %v1163_v3  ;;  %v1211_v15 = vld [vmem:[%s1846_s0 + $0x44] ss:$8 sps:$4 sm:$0xff]   ;;  %v1185_v20 = vld [vmem:[%s1845_s1 + $0x94] ss:$8 sps:$4 sm:$0xff]   ;;  %v1187_v21 = vld [vmem:[%s1845_s1 + $0x90] ss:$8 sps:$4 sm:$0xff]  }
   0x8   :  { %377 = vmatprep.subr.bf16.mxu0 %v1164_v4  ;;  %1128 = vmatprep.subr.bf16.mxu1 %v1164_v4  ;;  %v1182_v18 = vld [vmem:[%s1845_s1 + $0x84] ss:$8 sps:$4 sm:$0xff]   ;;  %v1190_v23 = vld [vmem:[%s1845_s1 + $0xa0] ss:$8 sps:$4 sm:$0xff]   ;;  %v1191_v24 = vld [vmem:[%s1845_s1 + $0xb4] ss:$8 sps:$4 sm:$0xff]  }
   0x9   :  { %405 = vmatprep.mubr.bf16.mxu0 %v1208_v13  ;;  %445 = vmatprep.mubr.bf16.mxu1 %v1211_v15  ;;  %v1188_v22 = vld [vmem:[%s1845_s1 + $0xa4] ss:$8 sps:$4 sm:$0xff]   ;;  %v1193_v25 = vld [vmem:[%s1845_s1 + $0xb0] ss:$8 sps:$4 sm:$0xff]   ;;  %v1196_v27 = vld [vmem:[%s1845_s1 + $0xc0] ss:$8 sps:$4 sm:$0xff]  }
   0xa   :  { %v1194_v26 = vld [vmem:[%s1845_s1 + $0xc4] ss:$8 sps:$4 sm:$0xff]   ;;  %v1197_v28 = vld [vmem:[%s1845_s1 + $0xd4] ss:$8 sps:$4 sm:$0xff]   ;;  %v1199_v29 = vld [vmem:[%s1845_s1 + $0xd0] ss:$8 sps:$4 sm:$0xff]  }
   0xb   :  { %378 = vmatpush1.bf16.msra.mxu0 %v1166_v5  ;;  %1144 = vmatpush1.bf16.msra.mxu1 %v1166_v5  ;;  %v1200_v30 = vld [vmem:[%s1845_s1 + $0xe4] ss:$8 sps:$4 sm:$0xff]   ;;  %v1202_v31 = vld [vmem:[%s1845_s1 + $0xe0] ss:$8 sps:$4 sm:$0xff]   ;;  %v1203_v32 = vld [vmem:[%s1845_s1 + $0xf4] ss:$8 sps:$4 sm:$0xff]  }
   0xc   :  { %379 = vmatprep.subr.bf16.mxu0 %v1167_v6  ;;  %1129 = vmatprep.subr.bf16.mxu1 %v1167_v6  ;;  %v1205_v33 = vld [vmem:[%s1845_s1 + $0xf0] ss:$8 sps:$4 sm:$0xff]   ;;  %v1206_v34 = vld [vmem:[%s1846_s0] ss:$8 sps:$4 sm:$0xff]   ;;  %v1212_v36 = vld [vmem:[%s1846_s0 + $0x14] ss:$8 sps:$4 sm:$0xff]  }
   0xd   :  { %v1209_v35 = vld [vmem:[%s1846_s0 + $0x40] ss:$8 sps:$4 sm:$0xff]   ;;  %v1215_v37 = vld [vmem:[%s1846_s0 + $0x54] ss:$8 sps:$4 sm:$0xff]   ;;  %v1214_v38 = vld [vmem:[%s1846_s0 + $0x10] ss:$8 sps:$4 sm:$0xff]  }
   0xe   :  { %v1217_v39 = vld [vmem:[%s1846_s0 + $0x50] ss:$8 sps:$4 sm:$0xff]   ;;  %v1218_v40 = vld [vmem:[%s1846_s0 + $0x24] ss:$8 sps:$4 sm:$0xff]   ;;  %v1220_v42 = vld [vmem:[%s1846_s0 + $0x20] ss:$8 sps:$4 sm:$0xff]  }
   0xf   :  { %380 = vmatpush1.bf16.msra.mxu0 %v1169_v7  ;;  %1145 = vmatpush1.bf16.msra.mxu1 %v1169_v7  ;;  %v1221_v41 = vld [vmem:[%s1846_s0 + $0x64] ss:$8 sps:$4 sm:$0xff]   ;;  %v1223_v43 = vld [vmem:[%s1846_s0 + $0x60] ss:$8 sps:$4 sm:$0xff]   ;;  %v1224_v44 = vld [vmem:[%s1846_s0 + $0x34] ss:$8 sps:$4 sm:$0xff]  }
  0x10   :  { %381 = vmatprep.subr.bf16.mxu0 %v1170_v8  ;;  %1130 = vmatprep.subr.bf16.mxu1 %v1170_v8  ;;  %v1227_v45 = vld [vmem:[%s1846_s0 + $0x74] ss:$8 sps:$4 sm:$0xff]   ;;  %v1226_v46 = vld [vmem:[%s1846_s0 + $0x30] ss:$8 sps:$4 sm:$0xff]  }
  0x11   :  { %v1229_v47 = vld [vmem:[%s1846_s0 + $0x70] ss:$8 sps:$4 sm:$0xff]  }
  0x13   :  { %382 = vmatpush1.bf16.msra.mxu0 %v1172_v9  ;;  %1146 = vmatpush1.bf16.msra.mxu1 %v1172_v9 }
  0x14   :  { %383 = vmatprep.subr.bf16.mxu0 %v1173_v10  ;;  %1131 = vmatprep.subr.bf16.mxu1 %v1173_v10 }
  0x17   :  { %384 = vmatpush1.bf16.msra.mxu0 %v1175_v11  ;;  %1147 = vmatpush1.bf16.msra.mxu1 %v1175_v11 }
  0x18   :  { %385 = vmatprep.subr.bf16.mxu0 %v1176_v12  ;;  %1132 = vmatprep.subr.bf16.mxu1 %v1176_v12 }
  0x1b   :  { %386 = vmatpush1.bf16.msra.mxu0 %v1178_v14  ;;  %1148 = vmatpush1.bf16.msra.mxu1 %v1178_v14 }
  0x1c   :  { %387 = vmatprep.subr.bf16.mxu0 %v1179_v16  ;;  %1133 = vmatprep.subr.bf16.mxu1 %v1179_v16 }
  0x1f   :  { %388 = vmatpush1.bf16.msra.mxu0 %v1181_v17  ;;  %1149 = vmatpush1.bf16.msra.mxu1 %v1181_v17 }
  0x20   :  { %389 = vmatprep.subr.bf16.mxu0 %v1182_v18  ;;  %1134 = vmatprep.subr.bf16.mxu1 %v1182_v18 }
  0x23   :  { %390 = vmatpush1.bf16.msra.mxu0 %v1184_v19  ;;  %1150 = vmatpush1.bf16.msra.mxu1 %v1184_v19 }
  0x24   :  { %391 = vmatprep.subr.bf16.mxu0 %v1185_v20  ;;  %1135 = vmatprep.subr.bf16.mxu1 %v1185_v20 }
  0x27   :  { %392 = vmatpush1.bf16.msra.mxu0 %v1187_v21  ;;  %1151 = vmatpush1.bf16.msra.mxu1 %v1187_v21 }
  0x28   :  { %393 = vmatprep.subr.bf16.mxu0 %v1188_v22  ;;  %1136 = vmatprep.subr.bf16.mxu1 %v1188_v22 }
  0x2b   :  { %394 = vmatpush1.bf16.msra.mxu0 %v1190_v23  ;;  %1152 = vmatpush1.bf16.msra.mxu1 %v1190_v23 }
  0x2c   :  { %395 = vmatprep.subr.bf16.mxu0 %v1191_v24  ;;  %1137 = vmatprep.subr.bf16.mxu1 %v1191_v24 }
  0x2f   :  { %396 = vmatpush1.bf16.msra.mxu0 %v1193_v25  ;;  %1153 = vmatpush1.bf16.msra.mxu1 %v1193_v25 }
  0x30   :  { %397 = vmatprep.subr.bf16.mxu0 %v1194_v26  ;;  %1138 = vmatprep.subr.bf16.mxu1 %v1194_v26 }
  0x33   :  { %398 = vmatpush1.bf16.msra.mxu0 %v1196_v27  ;;  %1154 = vmatpush1.bf16.msra.mxu1 %v1196_v27 }
  0x34   :  { %399 = vmatprep.subr.bf16.mxu0 %v1197_v28  ;;  %1139 = vmatprep.subr.bf16.mxu1 %v1197_v28 }
  0x37   :  { %400 = vmatpush1.bf16.msra.mxu0 %v1199_v29  ;;  %1155 = vmatpush1.bf16.msra.mxu1 %v1199_v29 }
  0x38   :  { %401 = vmatprep.subr.bf16.mxu0 %v1200_v30  ;;  %1140 = vmatprep.subr.bf16.mxu1 %v1200_v30 }
  0x3b   :  { %402 = vmatpush1.bf16.msra.mxu0 %v1202_v31  ;;  %1156 = vmatpush1.bf16.msra.mxu1 %v1202_v31 }
  0x3c   :  { %403 = vmatprep.subr.bf16.mxu0 %v1203_v32  ;;  %1141 = vmatprep.subr.bf16.mxu1 %v1203_v32 }
  0x3f   :  { %404 = vmatpush1.bf16.msra.mxu0 %v1205_v33  ;;  %1157 = vmatpush1.bf16.msra.mxu1 %v1205_v33 }
  0x42   :  { %406 = vmatmul.mubr.bf16.vlgmr.msra.gmra.mrb[0].mxu0 %v1206_v34  ;;  %446 = vmatmul.mubr.bf16.vlgmr.msra.gmra.mrb[0].mxu1 %v1209_v35 }
  0x43   :  { %415 = vmatprep.mubr.bf16.mxu0 %v1212_v36  ;;  %455 = vmatprep.mubr.bf16.mxu1 %v1215_v37 }
  0x4a   :  { %416 = vmatmul.mubr.bf16.gmra.mrb[4].mxu0 %v1214_v38  ;;  %456 = vmatmul.mubr.bf16.gmra.mrb[4].mxu1 %v1217_v39 }
  0x4b   :  { %425 = vmatprep.mubr.bf16.mxu0 %v1218_v40  ;;  %465 = vmatprep.mubr.bf16.mxu1 %v1221_v41 }
  0x52   :  { %426 = vmatmul.mubr.bf16.gmra.mrb[8].mxu0 %v1220_v42  ;;  %466 = vmatmul.mubr.bf16.gmra.mrb[8].mxu1 %v1223_v43 }
  0x53   :  { %435 = vmatprep.mubr.bf16.mxu0 %v1224_v44  ;;  %475 = vmatprep.mubr.bf16.mxu1 %v1227_v45 }
  0x5a   :  { %436 = vmatmul.mubr.bf16.gmra.mrb[12].mxu0 %v1226_v46  ;;  %476 = vmatmul.mubr.bf16.gmra.mrb[12].mxu1 %v1229_v47 }
 0x115   :  { %v1431_v48 = vpop.f32.mrb[0].mxu0  ;;  %v1433_v49 = vpop.f32.mrb[0].mxu1 }
 0x116   :  { %v1435_v50 = vpop.f32.mrb[1].mxu0  ;;  %v1437_v51 = vpop.f32.mrb[1].mxu1 }
 0x117   :  { %v1439_v52 = vpop.f32.mrb[2].mxu0  ;;  %v1441_v53 = vpop.f32.mrb[2].mxu1  ;;  %v585_v54 = vadd.f32 %v1435_v50, %v1431_v48  ;;  %v609_v55 = vadd.f32 %v1437_v51, %v1433_v49 }
 0x118   :  { %v1447_v56 = vpop.f32.mrb[3].mxu0  ;;  %v1449_v57 = vpop.f32.mrb[3].mxu1 }
 0x119   :  { %586 = vadd.xlane.f32.xlu0 %v585_v54  ;;  %v612_v58 = vadd.f32 %v1449_v57, %v1441_v53  ;;  %v588_v59 = vadd.f32 %v1447_v56, %v1439_v52 }
 0x11b   :  { %613 = vadd.xlane.f32.xlu1 %v612_v58 }
 0x11d   :  { %610 = vadd.xlane.f32.xlu0 %v609_v55  ;;  %v1455_v60 = vpop.f32.mrb[4].mxu0  ;;  %v1457_v61 = vpop.f32.mrb[4].mxu1 }
 0x11e   :  { %v1459_v62 = vpop.f32.mrb[5].mxu0  ;;  %v1461_v63 = vpop.f32.mrb[5].mxu1 }
 0x11f   :  { %v1463_v0 = vpop.f32.mrb[6].mxu0  ;;  %v591_v1 = vadd.f32 %v1459_v62, %v1455_v60  ;;  %v1467_v2 = vpop.f32.mrb[6].mxu1  ;;  %v615_v3 = vadd.f32 %v1461_v63, %v1457_v61 }
 0x120   :  { %v1471_v4 = vpop.f32.mrb[7].mxu0  ;;  %v1473_v5 = vpop.f32.mrb[7].mxu1 }
 0x121   :  { %589 = vadd.xlane.f32.xlu0 %v588_v59  ;;  %592 = vadd.xlane.f32.xlu1 %v591_v1  ;;  %v594_v6 = vadd.f32 %v1471_v4, %v1463_v0  ;;  %v618_v7 = vadd.f32 %v1473_v5, %v1467_v2 }
 0x125   :  { %616 = vadd.xlane.f32.xlu0 %v615_v3  ;;  %595 = vadd.xlane.f32.xlu1 %v594_v6  ;;  %v1479_v8 = vpop.f32.mrb[8].mxu0  ;;  %v1481_v9 = vpop.f32.mrb[8].mxu1 }
 0x126   :  { %v1483_v10 = vpop.f32.mrb[9].mxu0  ;;  %v1485_v11 = vpop.f32.mrb[9].mxu1 }
 0x127   :  { %v597_v12 = vadd.f32 %v1483_v10, %v1479_v8  ;;  %v1489_v13 = vpop.f32.mrb[10].mxu0  ;;  %v1491_v14 = vpop.f32.mrb[10].mxu1  ;;  %v621_v15 = vadd.f32 %v1485_v11, %v1481_v9 }
 0x128   :  { %v1495_v16 = vpop.f32.mrb[11].mxu0  ;;  %v1497_v17 = vpop.f32.mrb[11].mxu1 }
 0x129   :  { %619 = vadd.xlane.f32.xlu1 %v618_v7  ;;  %598 = vadd.xlane.f32.xlu0 %v597_v12  ;;  %v600_v18 = vadd.f32 %v1495_v16, %v1489_v13  ;;  %v624_v19 = vadd.f32 %v1497_v17, %v1491_v14 }
 0x12d   :  { %622 = vadd.xlane.f32.xlu0 %v621_v15  ;;  %601 = vadd.xlane.f32.xlu1 %v600_v18  ;;  %v1503_v20 = vpop.f32.mrb[12].mxu0  ;;  %v1505_v21 = vpop.f32.mrb[12].mxu1 }
 0x12e   :  { %v1507_v22 = vpop.f32.mrb[13].mxu0  ;;  %v1509_v23 = vpop.f32.mrb[13].mxu1 }
 0x12f   :  { %v603_v24 = vadd.f32 %v1507_v22, %v1503_v20  ;;  %v1513_v25 = vpop.f32.mrb[14].mxu0  ;;  %v1515_v26 = vpop.f32.mrb[14].mxu1  ;;  %v627_v27 = vadd.f32 %v1509_v23, %v1505_v21 }
 0x130   :  { %v1519_v28 = vpop.f32.mrb[15].mxu0  ;;  %v1521_v29 = vpop.f32.mrb[15].mxu1 }
 0x131   :  { %625 = vadd.xlane.f32.xlu1 %v624_v19  ;;  %604 = vadd.xlane.f32.xlu0 %v603_v24  ;;  %v606_v30 = vadd.f32 %v1519_v28, %v1513_v25  ;;  %v630_v31 = vadd.f32 %v1521_v29, %v1515_v26 }
 0x135   :  { %628 = vadd.xlane.f32.xlu0 %v627_v27  ;;  %607 = vadd.xlane.f32.xlu1 %v606_v30 }
 0x139   :  { %631 = vadd.xlane.f32.xlu1 %v630_v31 }
 0x1a6   :  { %v587_v32 = vpop.xlane.xlu0 %586 }
 0x1a7   :  { %v634_v33 = vmul.f32 0.00390625, %v587_v32 }
 0x1a8   :  { %v614_v36 = vpop.xlane.xlu1 %613 }
 0x1a9   :  { %v1528_v34 = vsub.f32 %v1431_v48, %v634_v33  ;;  %v1531_v35 = vsub.f32 %v1435_v50, %v634_v33  ;;  %v643_v43 = vmul.f32 0.00390625, %v614_v36 }
 0x1aa   :  { %v611_v37 = vpop.xlane.xlu0 %610 }
 0x1ab   :  { %v642_v38 = vmul.f32 0.00390625, %v611_v37  ;;  %v682_v39 = vmul.f32 %v1528_v34, %v1528_v34  ;;  %v683_v40 = vmul.f32 %v1531_v35, %v1531_v35  ;;  %v1560_v59 = vsub.f32 %v1441_v53, %v643_v43 }
 0x1ac   :  { %v1563_v1 = vsub.f32 %v1449_v57, %v643_v43 }
 0x1ad   :  { %v1538_v41 = vsub.f32 %v1433_v49, %v642_v38  ;;  %v1541_v42 = vsub.f32 %v1437_v51, %v642_v38  ;;  %v714_v46 = vadd.f32 %v683_v40, %v682_v39  ;;  %v700_v32 = vmul.f32 %v1560_v59, %v1560_v59 }
 0x1ae   :  { %v590_v44 = vpop.xlane.xlu0 %589  ;;  %v593_v45 = vpop.xlane.xlu1 %592 }
 0x1af   :  { %v635_v47 = vmul.f32 0.00390625, %v590_v44  ;;  %v636_v48 = vmul.f32 0.00390625, %v593_v45  ;;  %v698_v50 = vmul.f32 %v1538_v41, %v1538_v41  ;;  %v699_v54 = vmul.f32 %v1541_v42, %v1541_v42  ;;  %715 = vadd.xlane.f32.xlu0 %v714_v46 }
 0x1b1   :  { %v1548_v55 = vsub.f32 %v1439_v52, %v635_v47  ;;  %v1551_v49 = vsub.f32 %v1447_v56, %v635_v47  ;;  %v1554_v51 = vsub.f32 %v1455_v60, %v636_v48  ;;  %v1557_v58 = vsub.f32 %v1459_v62, %v636_v48 }
 0x1b2   :  { %v617_v3 = vpop.xlane.xlu0 %616  ;;  %v596_v6 = vpop.xlane.xlu1 %595  ;;  %v738_v7 = vadd.f32 %v699_v54, %v698_v50 }
 0x1b3   :  { %v644_v52 = vmul.f32 0.00390625, %v617_v3  ;;  %v637_v12 = vmul.f32 0.00390625, %v596_v6  ;;  %v686_v56 = vmul.f32 %v1554_v51, %v1554_v51  ;;  %v687_v60 = vmul.f32 %v1557_v58, %v1557_v58 }
 0x1b4   :  { %739 = vadd.xlane.f32.xlu0 %v738_v7  ;;  %v684_v62 = vmul.f32 %v1548_v55, %v1548_v55  ;;  %v685_v53 = vmul.f32 %v1551_v49, %v1551_v49 }
 0x1b5   :  { %v1574_v57 = vsub.f32 %v1457_v61, %v644_v52  ;;  %v1577_v15 = vsub.f32 %v1461_v63, %v644_v52  ;;  %v1580_v18 = vsub.f32 %v1463_v0, %v637_v12  ;;  %v1583_v19 = vsub.f32 %v1471_v4, %v637_v12 }
 0x1b6   :  { %v620_v24 = vpop.xlane.xlu1 %619  ;;  %v599_v27 = vpop.xlane.xlu0 %598  ;;  %v720_v30 = vadd.f32 %v687_v60, %v686_v56  ;;  %v717_v31 = vadd.f32 %v685_v53, %v684_v62  ;;  %v701_v61 = vmul.f32 %v1563_v1, %v1563_v1 }
 0x1b7   :  { %v645_v33 = vmul.f32 0.00390625, %v620_v24  ;;  %v638_v36 = vmul.f32 0.00390625, %v599_v27  ;;  %v702_v63 = vmul.f32 %v1574_v57, %v1574_v57  ;;  %v703_v0 = vmul.f32 %v1577_v15, %v1577_v15 }
 0x1b8   :  { %721 = vadd.xlane.f32.xlu0 %v720_v30  ;;  %718 = vadd.xlane.f32.xlu1 %v717_v31  ;;  %v688_v4 = vmul.f32 %v1580_v18, %v1580_v18  ;;  %v689_v40 = vmul.f32 %v1583_v19, %v1583_v19  ;;  %v741_v47 = vadd.f32 %v701_v61, %v700_v32 }
 0x1b9   :  { %v1596_v37 = vsub.f32 %v1467_v2, %v645_v33  ;;  %v1599_v38 = vsub.f32 %v1479_v8, %v638_v36  ;;  %v1602_v39 = vsub.f32 %v1483_v10, %v638_v36  ;;  %v1607_v43 = vsub.f32 %v1473_v5, %v645_v33 }
 0x1ba   :  { %v623_v44 = vpop.xlane.xlu0 %622  ;;  %v602_v45 = vpop.xlane.xlu1 %601  ;;  %v744_v46 = vadd.f32 %v703_v0, %v702_v63  ;;  %v723_v54 = vadd.f32 %v689_v40, %v688_v4 }
 0x1bb   :  { %v646_v48 = vmul.f32 0.00390625, %v623_v44  ;;  %v639_v50 = vmul.f32 0.00390625, %v602_v45  ;;  %v690_v2 = vmul.f32 %v1599_v38, %v1599_v38  ;;  %v691_v8 = vmul.f32 %v1602_v39, %v1602_v39 }
 0x1bc   :  { %745 = vadd.xlane.f32.xlu0 %v744_v46  ;;  %742 = vadd.xlane.f32.xlu1 %v741_v47  ;;  %v704_v3 = vmul.f32 %v1596_v37, %v1596_v37 }
 0x1bd   :  { %v1614_v10 = vsub.f32 %v1481_v9, %v646_v48  ;;  %v1617_v5 = vsub.f32 %v1485_v11, %v646_v48  ;;  %v1622_v6 = vsub.f32 %v1489_v13, %v639_v50  ;;  %v1625_v7 = vsub.f32 %v1495_v16, %v639_v50 }
 0x1be   :  { %v626_v52 = vpop.xlane.xlu1 %625  ;;  %v605_v12 = vpop.xlane.xlu0 %604  ;;  %v726_v56 = vadd.f32 %v691_v8, %v690_v2  ;;  %v705_v9 = vmul.f32 %v1607_v43, %v1607_v43 }
 0x1bf   :  { %v647_v60 = vmul.f32 0.00390625, %v626_v52  ;;  %v640_v62 = vmul.f32 0.00390625, %v605_v12  ;;  %v706_v11 = vmul.f32 %v1614_v10, %v1614_v10  ;;  %v707_v53 = vmul.f32 %v1617_v5, %v1617_v5 }
 0x1c0   :  { %727 = vadd.xlane.f32.xlu0 %v726_v56  ;;  %724 = vadd.xlane.f32.xlu1 %v723_v54  ;;  %v747_v61 = vadd.f32 %v705_v9, %v704_v3  ;;  %v692_v33 = vmul.f32 %v1622_v6, %v1622_v6 }
 0x1c1   :  { %v1634_v13 = vsub.f32 %v1491_v14, %v647_v60  ;;  %v1637_v16 = vsub.f32 %v1497_v17, %v647_v60  ;;  %v1640_v24 = vsub.f32 %v1503_v20, %v640_v62  ;;  %v1643_v27 = vsub.f32 %v1507_v22, %v640_v62 }
 0x1c2   :  { %v629_v30 = vpop.xlane.xlu0 %628  ;;  %v608_v31 = vpop.xlane.xlu1 %607  ;;  %v750_v32 = vadd.f32 %v707_v53, %v706_v11  ;;  %v693_v14 = vmul.f32 %v1625_v7, %v1625_v7  ;;  %v844_v60 = vlaneseq }
 0x1c3   :  { %v648_v36 = vmul.f32 0.00390625, %v629_v30  ;;  %v641_v63 = vmul.f32 0.00390625, %v608_v31  ;;  %v694_v17 = vmul.f32 %v1640_v24, %v1640_v24  ;;  %v695_v20 = vmul.f32 %v1643_v27, %v1643_v27 }
 0x1c4   :  { %751 = vadd.xlane.f32.xlu0 %v750_v32  ;;  %748 = vadd.xlane.f32.xlu1 %v747_v61  ;;  %v708_v4 = vmul.f32 %v1634_v13, %v1634_v13  ;;  %v709_v40 = vmul.f32 %v1637_v16, %v1637_v16  ;;  %v729_v48 = vadd.f32 %v693_v14, %v692_v33  ;;  %v845_v30 = vshrl.u32 %v844_v60, 7 }
 0x1c5   :  { %v1654_v22 = vsub.f32 %v1505_v21, %v648_v36  ;;  %v1657_v0 = vsub.f32 %v1509_v23, %v648_v36  ;;  %v1664_v44 = vsub.f32 %v1513_v25, %v641_v63  ;;  %v1667_v45 = vsub.f32 %v1519_v28, %v641_v63 }
 0x1c6   :  { %v632_v46 = vpop.xlane.xlu1 %631  ;;  %v732_v47 = vadd.f32 %v695_v20, %v694_v17  ;;  %v753_v8 = vadd.f32 %v709_v40, %v708_v4  ;;  %v846_v36 = vsub.s32 0, %v845_v30  ;;  %v850_v63 = vsub.s32 1, %v845_v30  ;;  %v842_v17 = vld [vmem:[%s1847_s2] sm:$0x3] }
 0x1c7   :  { %v649_v21 = vmul.f32 0.00390625, %v632_v46  ;;  %v710_v23 = vmul.f32 %v1654_v22, %v1654_v22  ;;  %v711_v50 = vmul.f32 %v1657_v0, %v1657_v0  ;;  %v696_v54 = vmul.f32 %v1664_v44, %v1664_v44 }
 0x1c8   :  { %733 = vadd.xlane.f32.xlu0 %v732_v47  ;;  %730 = vadd.xlane.f32.xlu1 %v729_v48  ;;  %v697_v3 = vmul.f32 %v1667_v45, %v1667_v45  ;;  %v886_v47 = vld [vmem:[%s1848_s3] sm:$0x3] }
 0x1c9   :  { %v756_v2 = vadd.f32 %v711_v50, %v710_v23  ;;  %v1674_v25 = vsub.f32 %v1515_v26, %v649_v21  ;;  %v1677_v28 = vsub.f32 %v1521_v29, %v649_v21  ;;  %v1693_v23 = vrot.slane %v842_v17, %v846_v36 }
 0x1ca   :  { %v735_v52 = vadd.f32 %v697_v3, %v696_v54  ;;  %v1695_v50 = vrot.slane %v842_v17, %v850_v63  ;;  %v1697_v3 = vrot.slane %v886_v47, %v846_v36 }
 0x1cb   :  { %v712_v12 = vmul.f32 %v1674_v25, %v1674_v25  ;;  %v713_v56 = vmul.f32 %v1677_v28, %v1677_v28 }
 0x1cc   :  { %757 = vadd.xlane.f32.xlu0 %v756_v2  ;;  %754 = vadd.xlane.f32.xlu1 %v753_v8 }
 0x1cd   :  { %v759_v26 = vadd.f32 %v713_v56, %v712_v12 }
 0x1d0   :  { %736 = vadd.xlane.f32.xlu1 %v735_v52  ;;  %v1699_v52 = vrot.slane %v886_v47, %v850_v63 }
 0x1d4   :  { %760 = vadd.xlane.f32.xlu1 %v759_v26 }
 0x23c   :  { %v716_v29 = vpop.xlane.xlu0 %715 }
 0x23d   :  { %v762_v9 = vmul.f32 0.00390625, %v716_v29 }
 0x23f   :  { %v778_v62 = vadd.f32 1e-06, %v762_v9 }
 0x241   :  { %v740_v11 = vpop.xlane.xlu0 %739  ;;  %1230 = vrsqrt.f32 %v778_v62 }
 0x242   :  { %v770_v53 = vmul.f32 0.00390625, %v740_v11 }
 0x244   :  { %v786_v31 = vadd.f32 1e-06, %v770_v53 }
 0x245   :  { %v722_v32 = vpop.xlane.xlu0 %721  ;;  %v719_v61 = vpop.xlane.xlu1 %718 }
 0x246   :  { %1232 = vrsqrt.f32 %v786_v31  ;;  %v764_v33 = vmul.f32 0.00390625, %v722_v32  ;;  %v763_v14 = vmul.f32 0.00390625, %v719_v61 }
 0x248   :  { %v780_v20 = vadd.f32 1e-06, %v764_v33  ;;  %v779_v4 = vadd.f32 1e-06, %v763_v14 }
 0x249   :  { %v746_v40 = vpop.xlane.xlu0 %745  ;;  %v743_v46 = vpop.xlane.xlu1 %742 }
 0x24a   :  { %1234 = vrsqrt.f32 %v780_v20  ;;  %v772_v48 = vmul.f32 0.00390625, %v746_v40  ;;  %v771_v21 = vmul.f32 0.00390625, %v743_v46 }
 0x24b   :  { %1236 = vrsqrt.f32 %v779_v4  ;;  %v1231_v2 = vpop.eup %1230 }
 0x24c   :  { %v788_v8 = vadd.f32 1e-06, %v772_v48  ;;  %v787_v54 = vadd.f32 1e-06, %v771_v21  ;;  %v810_v12 = vmul.f32 %v1231_v2, %v1528_v34  ;;  %v811_v56 = vmul.f32 %v1231_v2, %v1531_v35 }
 0x24d   :  { %v728_v26 = vpop.xlane.xlu0 %727  ;;  %v725_v29 = vpop.xlane.xlu1 %724 }
 0x24e   :  { %1238 = vrsqrt.f32 %v788_v8  ;;  %v766_v9 = vmul.f32 0.00390625, %v728_v26  ;;  %v765_v60 = vmul.f32 0.00390625, %v725_v29  ;;  %v854_v62 = vmul.f32 %v1693_v23, %v810_v12 }
 0x24f   :  { %v855_v11 = vmul.f32 %v1695_v50, %v811_v56  ;;  %1240 = vrsqrt.f32 %v787_v54 }
 0x250   :  { %v1233_v53 = vpop.eup %1232  ;;  %v782_v30 = vadd.f32 1e-06, %v766_v9  ;;  %v781_v31 = vadd.f32 1e-06, %v765_v60  ;;  %v898_v32 = vadd.f32 %v1697_v3, %v854_v62 }
 0x251   :  { %v899_v61 = vadd.f32 %v1699_v52, %v855_v11  ;;  %v826_v34 = vmul.f32 %v1233_v53, %v1538_v41  ;;  %v827_v35 = vmul.f32 %v1233_v53, %v1541_v42  ;;  %v752_v33 = vpop.xlane.xlu0 %751  ;;  %v749_v14 = vpop.xlane.xlu1 %748 }
 0x252   :  { %1242 = vrsqrt.f32 %v782_v30  ;;  %v774_v36 = vmul.f32 0.00390625, %v752_v33  ;;  %v773_v63 = vmul.f32 0.00390625, %v749_v14 }
 0x253   :  { %v1110_v17 = vpack.c.bf16 %v899_v61, %v898_v32  ;;  %v870_v20 = vmul.f32 %v1693_v23, %v826_v34  ;;  %v871_v4 = vmul.f32 %v1695_v50, %v827_v35  ;;  %1244 = vrsqrt.f32 %v781_v31 }
 0x254   :  { %v1235_v40 = vpop.eup %1234  ;;  %v790_v46 = vadd.f32 1e-06, %v774_v36  ;;  %v789_v47 = vadd.f32 1e-06, %v773_v63 }
 0x255   :  { %v1237_v48 = vpop.eup %1236  ;;  %1026 = vst [vmem:[%s1849_s4] sm:$0xff] %v1110_v17  ;;  %v914_v41 = vadd.f32 %v1697_v3, %v870_v20  ;;  %v915_v42 = vadd.f32 %v1699_v52, %v871_v4  ;;  %v814_v21 = vmul.f32 %v1235_v40, %v1554_v51  ;;  %v815_v2 = vmul.f32 %v1235_v40, %v1557_v58  ;;  %v734_v8 = vpop.xlane.xlu0 %733 }
 0x256   :  { %v731_v54 = vpop.xlane.xlu1 %730  ;;  %v812_v12 = vmul.f32 %v1237_v48, %v1548_v55  ;;  %v813_v56 = vmul.f32 %v1237_v48, %v1551_v49  ;;  %1246 = vrsqrt.f32 %v790_v46  ;;  %v768_v26 = vmul.f32 0.00390625, %v734_v8 }
 0x257   :  { %v1118_v29 = vpack.c.bf16 %v915_v42, %v914_v41  ;;  %v858_v9 = vmul.f32 %v1693_v23, %v814_v21  ;;  %v859_v60 = vmul.f32 %v1695_v50, %v815_v2  ;;  %1248 = vrsqrt.f32 %v789_v47 }
 0x258   :  { %v1239_v62 = vpop.eup %1238  ;;  %v856_v11 = vmul.f32 %v1693_v23, %v812_v12  ;;  %v857_v51 = vmul.f32 %v1695_v50, %v813_v56  ;;  %v784_v58 = vadd.f32 1e-06, %v768_v26  ;;  %v767_v53 = vmul.f32 0.00390625, %v731_v54 }
 0x259   :  { %v1241_v30 = vpop.eup %1240  ;;  %1034 = vst [vmem:[%s1849_s4 + $0x40] sm:$0xff] %v1118_v29  ;;  %v902_v55 = vadd.f32 %v1697_v3, %v858_v9  ;;  %v903_v49 = vadd.f32 %v1699_v52, %v859_v60  ;;  %v830_v31 = vmul.f32 %v1239_v62, %v1574_v57  ;;  %v831_v32 = vmul.f32 %v1239_v62, %v1577_v15  ;;  %v758_v41 = vpop.xlane.xlu0 %757 }
 0x25a   :  { %v755_v61 = vpop.xlane.xlu1 %754  ;;  %v900_v34 = vadd.f32 %v1697_v3, %v856_v11  ;;  %v901_v35 = vadd.f32 %v1699_v52, %v857_v51  ;;  %v828_v33 = vmul.f32 %v1241_v30, %v1560_v59  ;;  %v829_v14 = vmul.f32 %v1241_v30, %v1563_v1 }
 0x25b   :  { %v1112_v36 = vpack.c.bf16 %v903_v49, %v902_v55  ;;  %v874_v63 = vmul.f32 %v1693_v23, %v830_v31  ;;  %v875_v17 = vmul.f32 %v1695_v50, %v831_v32  ;;  %1250 = vrsqrt.f32 %v784_v58 }
 0x25c   :  { %v1243_v20 = vpop.eup %1242  ;;  %v1111_v4 = vpack.c.bf16 %v901_v35, %v900_v34  ;;  %v872_v57 = vmul.f32 %v1693_v23, %v828_v33  ;;  %v873_v15 = vmul.f32 %v1695_v50, %v829_v14  ;;  %v783_v40 = vadd.f32 1e-06, %v767_v53 }
 0x25d   :  { %v1245_v46 = vpop.eup %1244  ;;  %1028 = vst [vmem:[%s1849_s4 + $0x10] sm:$0xff] %v1112_v36  ;;  %v918_v59 = vadd.f32 %v1697_v3, %v874_v63  ;;  %v919_v1 = vadd.f32 %v1699_v52, %v875_v17  ;;  %v818_v47 = vmul.f32 %v1243_v20, %v1599_v38  ;;  %v819_v48 = vmul.f32 %v1243_v20, %v1602_v39 }
 0x25e   :  { %1027 = vst [vmem:[%s1849_s4 + $0x8] sm:$0xff] %v1111_v4  ;;  %v916_v42 = vadd.f32 %v1697_v3, %v872_v57  ;;  %v917_v21 = vadd.f32 %v1699_v52, %v873_v15  ;;  %v816_v2 = vmul.f32 %v1245_v46, %v1580_v18  ;;  %v817_v8 = vmul.f32 %v1245_v46, %v1583_v19  ;;  %v737_v54 = vpop.xlane.xlu1 %736 }
 0x25f   :  { %v1120_v12 = vpack.c.bf16 %v919_v1, %v918_v59  ;;  %v862_v56 = vmul.f32 %v1693_v23, %v818_v47  ;;  %v863_v38 = vmul.f32 %v1695_v50, %v819_v48  ;;  %1252 = vrsqrt.f32 %v783_v40 }
 0x260   :  { %v1247_v39 = vpop.eup %1246  ;;  %v1119_v26 = vpack.c.bf16 %v917_v21, %v916_v42  ;;  %v860_v29 = vmul.f32 %v1693_v23, %v816_v2  ;;  %v861_v9 = vmul.f32 %v1695_v50, %v817_v8  ;;  %v776_v60 = vmul.f32 0.00390625, %v758_v41 }
 0x261   :  { %v1249_v62 = vpop.eup %1248  ;;  %1036 = vst [vmem:[%s1849_s4 + $0x50] sm:$0xff] %v1120_v12  ;;  %v906_v18 = vadd.f32 %v1697_v3, %v862_v56  ;;  %v907_v19 = vadd.f32 %v1699_v52, %v863_v38  ;;  %v834_v11 = vmul.f32 %v1247_v39, %v1614_v10  ;;  %v835_v51 = vmul.f32 %v1247_v39, %v1617_v5 }
 0x262   :  { %1035 = vst [vmem:[%s1849_s4 + $0x48] sm:$0xff] %v1119_v26  ;;  %v904_v58 = vadd.f32 %v1697_v3, %v860_v29  ;;  %v905_v53 = vadd.f32 %v1699_v52, %v861_v9  ;;  %v832_v30 = vmul.f32 %v1249_v62, %v1596_v37  ;;  %v833_v55 = vmul.f32 %v1249_v62, %v1607_v43  ;;  %v761_v14 = vpop.xlane.xlu1 %760 }
 0x263   :  { %v1114_v49 = vpack.c.bf16 %v907_v19, %v906_v18  ;;  %v878_v31 = vmul.f32 %v1693_v23, %v834_v11  ;;  %v879_v32 = vmul.f32 %v1695_v50, %v835_v51  ;;  %v792_v10 = vadd.f32 1e-06, %v776_v60 }
 0x264   :  { %v1113_v34 = vpack.c.bf16 %v905_v53, %v904_v58  ;;  %v876_v5 = vmul.f32 %v1693_v23, %v832_v30  ;;  %v877_v35 = vmul.f32 %v1695_v50, %v833_v55  ;;  %v775_v33 = vmul.f32 0.00390625, %v755_v61 }
 0x265   :  { %v1251_v36 = vpop.eup %1250  ;;  %1030 = vst [vmem:[%s1849_s4 + $0x20] sm:$0xff] %v1114_v49  ;;  %v922_v37 = vadd.f32 %v1697_v3, %v878_v31  ;;  %v923_v43 = vadd.f32 %v1699_v52, %v879_v32  ;;  %1254 = vrsqrt.f32 %v792_v10  ;;  %v769_v63 = vmul.f32 0.00390625, %v737_v54 }
 0x266   :  { %1029 = vst [vmem:[%s1849_s4 + $0x18] sm:$0xff] %v1113_v34  ;;  %v920_v17 = vadd.f32 %v1697_v3, %v876_v5  ;;  %v921_v61 = vadd.f32 %v1699_v52, %v877_v35  ;;  %v822_v20 = vmul.f32 %v1251_v36, %v1640_v24  ;;  %v823_v4 = vmul.f32 %v1251_v36, %v1643_v27 }
 0x267   :  { %v1122_v57 = vpack.c.bf16 %v923_v43, %v922_v37  ;;  %v791_v15 = vadd.f32 1e-06, %v775_v33  ;;  %v785_v40 = vadd.f32 1e-06, %v769_v63  ;;  %v777_v46 = vmul.f32 0.00390625, %v761_v14 }
 0x268   :  { %v1121_v59 = vpack.c.bf16 %v921_v61, %v920_v17  ;;  %v866_v1 = vmul.f32 %v1693_v23, %v822_v20  ;;  %v867_v47 = vmul.f32 %v1695_v50, %v823_v4 }
 0x269   :  { %v1253_v48 = vpop.eup %1252  ;;  %1038 = vst [vmem:[%s1849_s4 + $0x60] sm:$0xff] %v1122_v57  ;;  %1256 = vrsqrt.f32 %v791_v15  ;;  %v793_v41 = vadd.f32 1e-06, %v777_v46 }
 0x26a   :  { %1037 = vst [vmem:[%s1849_s4 + $0x58] sm:$0xff] %v1121_v59  ;;  %v910_v24 = vadd.f32 %v1697_v3, %v866_v1  ;;  %v911_v27 = vadd.f32 %v1699_v52, %v867_v47  ;;  %v820_v42 = vmul.f32 %v1253_v48, %v1622_v6  ;;  %v821_v21 = vmul.f32 %v1253_v48, %v1625_v7 }
 0x26b   :  { %1258 = vrsqrt.f32 %v785_v40 }
 0x26c   :  { %v1116_v2 = vpack.c.bf16 %v911_v27, %v910_v24  ;;  %v864_v8 = vmul.f32 %v1693_v23, %v820_v42  ;;  %v865_v54 = vmul.f32 %v1695_v50, %v821_v21  ;;  %1260 = vrsqrt.f32 %v793_v41 }
 0x26e   :  { %1032 = vst [vmem:[%s1849_s4 + $0x30] sm:$0xff] %v1116_v2  ;;  %v908_v12 = vadd.f32 %v1697_v3, %v864_v8  ;;  %v909_v56 = vadd.f32 %v1699_v52, %v865_v54 }
 0x26f   :  { %v1255_v38 = vpop.eup %1254 }
 0x270   :  { %v1115_v39 = vpack.c.bf16 %v909_v56, %v908_v12  ;;  %v838_v6 = vmul.f32 %v1255_v38, %v1654_v22  ;;  %v839_v7 = vmul.f32 %v1255_v38, %v1657_v0 }
 0x272   :  { %1031 = vst [vmem:[%s1849_s4 + $0x28] sm:$0xff] %v1115_v39  ;;  %v882_v26 = vmul.f32 %v1693_v23, %v838_v6  ;;  %v883_v29 = vmul.f32 %v1695_v50, %v839_v7 }
 0x273   :  { %v1257_v9 = vpop.eup %1256 }
 0x274   :  { %v926_v60 = vadd.f32 %v1697_v3, %v882_v26  ;;  %v927_v62 = vadd.f32 %v1699_v52, %v883_v29  ;;  %v836_v18 = vmul.f32 %v1257_v9, %v1634_v13  ;;  %v837_v19 = vmul.f32 %v1257_v9, %v1637_v16 }
 0x275   :  { %v1259_v22 = vpop.eup %1258 }
 0x276   :  { %v1261_v11 = vpop.eup %1260  ;;  %v1124_v0 = vpack.c.bf16 %v927_v62, %v926_v60  ;;  %v880_v51 = vmul.f32 %v1693_v23, %v836_v18  ;;  %v881_v58 = vmul.f32 %v1695_v50, %v837_v19  ;;  %v824_v53 = vmul.f32 %v1259_v22, %v1664_v44 }
 0x277   :  { %v825_v30 = vmul.f32 %v1259_v22, %v1667_v45  ;;  %v840_v55 = vmul.f32 %v1261_v11, %v1674_v25  ;;  %v841_v49 = vmul.f32 %v1261_v11, %v1677_v28 }
 0x278   :  { %1040 = vst [vmem:[%s1849_s4 + $0x70] sm:$0xff] %v1124_v0  ;;  %v924_v13 = vadd.f32 %v1697_v3, %v880_v51  ;;  %v925_v16 = vadd.f32 %v1699_v52, %v881_v58  ;;  %v868_v31 = vmul.f32 %v1693_v23, %v824_v53 }
 0x279   :  { %v869_v32 = vmul.f32 %v1695_v50, %v825_v30  ;;  %v884_v44 = vmul.f32 %v1693_v23, %v840_v55  ;;  %v885_v45 = vmul.f32 %v1695_v50, %v841_v49 }
 0x27a   :  { %v1123_v10 = vpack.c.bf16 %v925_v16, %v924_v13  ;;  %v912_v25 = vadd.f32 %v1697_v3, %v868_v31 }
 0x27b   :  { %v913_v28 = vadd.f32 %v1699_v52, %v869_v32  ;;  %v928_v34 = vadd.f32 %v1697_v3, %v884_v44  ;;  %v929_v5 = vadd.f32 %v1699_v52, %v885_v45 }
 0x27c   :  { %1039 = vst [vmem:[%s1849_s4 + $0x68] sm:$0xff] %v1123_v10 }
 0x27d   :  { %v1117_v35 = vpack.c.bf16 %v913_v28, %v912_v25  ;;  %v1125_v33 = vpack.c.bf16 %v929_v5, %v928_v34 }
 0x27f   :  { %1033 = vst [vmem:[%s1849_s4 + $0x38] sm:$0xff] %v1117_v35  ;;  %1041 = vst [vmem:[%s1849_s4 + $0x78] sm:$0xff] %v1125_v33 }

// kernel: sam_image_embedding.25
= control target key start
LH: loop header
LB: loop body
LE: loop exit
PB: predicated region body
PF: predicated region fallthrough
CT: control target
= control target key end

     0   :  { %9 = vsyncpa [#allocation4], 0  ;;  %s6733_s0 = inlined_call_operand.vmem [shape: bf16[2,1,10,10,256], index: 0, kind: input, shape index: {}]   ;;  %s6734_s1 = inlined_call_operand.vmem [shape: bf16[3,3,256,256], index: 1, kind: input, shape index: {}]   ;;  %s6735_s2 = inlined_call_operand.vmem [shape: f32[1,256], index: 2, kind: input, shape index: {}]   ;;  %s6736_s3 = inlined_call_operand.vmem [shape: f32[1,256], index: 3, kind: input, shape index: {}]   ;;  %s6737_s4 = inlined_call_operand.hbm [shape: f32[2,8,8,256], index: 4, kind: output, shape index: {}]  }
   0x1   :  { %11 = vsyncpa [#allocation4 + $0x1], 0  ;;  %s5193_s15 = smov 0   ;;  %s5195_s16 = smov 0  }
   0x2   :  { %s5197_s17 = smov 0   ;;  %s5199_s18 = smov 0  }
   0x3   :  { %s5201_s19 = smov 0   ;;  %s5203_s20 = smov 0  }
   0x4 LB: > { %s3776_s21 = sadd.s32 4294967295, %s5163_s20   ;;  %s3777_s22 = sadd.s32 4294967294, %s5163_s20   ;;  %s5163_s20 = sphi %s5203_s20, %s17_s20   ;;  %s5159_s19 = sphi %s5201_s19, %s6748_s19   ;;  %s5155_s18 = sphi %s5199_s18, %s6747_s18   ;;  %s5151_s17 = sphi %s5197_s17, %s6746_s17   ;;  %s5147_s16 = sphi %s5195_s16, %s6745_s16   ;;  %s5143_s15 = sphi %s5193_s15, %s6744_s15  }
   0x5   : > { %s29_s23 = sadd.s32 1, %s5159_s19  ;;  %s129_s24 = sadd.s32 1, %s5151_s17 }
   0x6   : > { %p31_p0 = scmp.ge.s32.totalorder %s29_s23, 2  ;;  %p139_p1 = scmp.ne.s32.totalorder %s5151_s17, %s5147_s16 }
   0x7   : > { %p140_p2 = scmp.eq.s32.totalorder %s3776_s21, 1  ;;  %p145_p3 = scmp.ne.s32.totalorder %s5147_s16, %s5143_s15 }
   0x8   : > { %s6750_s23 = smov (%p31_p0, %s29_s23), 0  ;;  %p146_p5 = scmp.eq.s32.totalorder %s3777_s22, 1 }
   0x9   : > { %p5233_p4 = por %p140_p2, %p139_p1  ;;  %s124_s26 = ssub.s32 %s5159_s19, %s6750_s23 }
   0xa   : > { %p3780_p6 = scmp.ge.s32.totalorder %s5163_s20, 1  ;;  %p127_p7 = scmp.eq.s32.totalorder %s124_s26, 0 }
   0xb   : > { %p5240_p8 = por %p146_p5, %p145_p3  ;;  %p185_p9 = scmp.lt.s32.totalorder %s5163_s20, 3 }
   0xc   : > { %s5246_s28 = scalar_select %p127_p7, %s5151_s17, %s129_s24  }
   0xd   : > { %p186_p10 = pnand %p3780_p6, %p185_p9 }
   0xe   : > { %v4615_v0 = vld [vmem:[%s6734_s1 + $0x4] ss:$8 sps:$4 sm:$0xff] (!%p186_p10)   ;;  %v4619_v2 = vld [vmem:[%s6734_s1] ss:$8 sps:$4 sm:$0xff] (!%p186_p10)   ;;  %v4621_v4 = vld [vmem:[%s6734_s1 + $0x14] ss:$8 sps:$4 sm:$0xff] (!%p186_p10)  }
   0xf   : > { %189 = sbr.rel (%p186_p10) target bundleno = 902 (0x386), region = 36  ;;  %v4617_v1 = vld [vmem:[%s6734_s1 + $0x404] ss:$8 sps:$4 sm:$0xff] (!%p186_p10)   ;;  %509 = vmatprep.subr.bf16.mxu1 (!%p186_p10), %v4615_v0  ;;  %v4620_v3 = vld [vmem:[%s6734_s1 + $0x400] ss:$8 sps:$4 sm:$0xff] (!%p186_p10)   ;;  %p215_p11 = scmp.lt.s32.totalorder (!%p186_p10), %s5155_s18, 1 }
  0x10   : > { %2038 = vmatprep.subr.bf16.mxu0 (!%p186_p10), %v4617_v1  ;;  %510 = vmatpush1.bf16.msra.mxu1 (!%p186_p10), %v4619_v2  ;;  %v4623_v5 = vld [vmem:[%s6734_s1 + $0x414] ss:$8 sps:$4 sm:$0xff] (!%p186_p10)   ;;  %v4625_v6 = vld [vmem:[%s6734_s1 + $0x10] ss:$8 sps:$4 sm:$0xff] (!%p186_p10)   ;;  %v4627_v8 = vld [vmem:[%s6734_s1 + $0x24] ss:$8 sps:$4 sm:$0xff] (!%p186_p10)  }
  0x11   : > { %2039 = vmatpush1.bf16.msra.mxu0 (!%p186_p10), %v4620_v3  ;;  %511 = vmatprep.subr.bf16.mxu1 (!%p186_p10), %v4621_v4  ;;  %v4626_v7 = vld [vmem:[%s6734_s1 + $0x410] ss:$8 sps:$4 sm:$0xff] (!%p186_p10)   ;;  %v4629_v9 = vld [vmem:[%s6734_s1 + $0x424] ss:$8 sps:$4 sm:$0xff] (!%p186_p10)   ;;  %v4631_v10 = vld [vmem:[%s6734_s1 + $0x20] ss:$8 sps:$4 sm:$0xff] (!%p186_p10)  }
  0x12   : > { %2040 = vmatprep.subr.bf16.mxu0 (!%p186_p10), %v4623_v5  ;;  %v4632_v11 = vld [vmem:[%s6734_s1 + $0x420] ss:$8 sps:$4 sm:$0xff] (!%p186_p10)   ;;  %v4633_v12 = vld [vmem:[%s6734_s1 + $0x34] ss:$8 sps:$4 sm:$0xff] (!%p186_p10)   ;;  %v4637_v14 = vld [vmem:[%s6734_s1 + $0x30] ss:$8 sps:$4 sm:$0xff] (!%p186_p10)  }
  0x13   : > { %v4635_v13 = vld [vmem:[%s6734_s1 + $0x434] ss:$8 sps:$4 sm:$0xff] (!%p186_p10)   ;;  %v4638_v15 = vld [vmem:[%s6734_s1 + $0x430] ss:$8 sps:$4 sm:$0xff] (!%p186_p10)   ;;  %v4639_v16 = vld [vmem:[%s6734_s1 + $0x44] ss:$8 sps:$4 sm:$0xff] (!%p186_p10)  }
  0x14   : > { %512 = vmatpush1.bf16.msra.mxu1 (!%p186_p10), %v4625_v6  ;;  %v4641_v17 = vld [vmem:[%s6734_s1 + $0x444] ss:$8 sps:$4 sm:$0xff] (!%p186_p10)   ;;  %v4643_v18 = vld [vmem:[%s6734_s1 + $0x40] ss:$8 sps:$4 sm:$0xff] (!%p186_p10)   ;;  %v4645_v20 = vld [vmem:[%s6734_s1 + $0x54] ss:$8 sps:$4 sm:$0xff] (!%p186_p10)  }
  0x15   : > { %2041 = vmatpush1.bf16.msra.mxu0 (!%p186_p10), %v4626_v7  ;;  %513 = vmatprep.subr.bf16.mxu1 (!%p186_p10), %v4627_v8  ;;  %v4644_v19 = vld [vmem:[%s6734_s1 + $0x440] ss:$8 sps:$4 sm:$0xff] (!%p186_p10)   ;;  %v4647_v21 = vld [vmem:[%s6734_s1 + $0x454] ss:$8 sps:$4 sm:$0xff] (!%p186_p10)   ;;  %v4649_v22 = vld [vmem:[%s6734_s1 + $0x50] ss:$8 sps:$4 sm:$0xff] (!%p186_p10)  }
  0x16   : > { %2042 = vmatprep.subr.bf16.mxu0 %v4629_v9  ;;  %v4650_v23 = vld [vmem:[%s6734_s1 + $0x450] ss:$8 sps:$4 sm:$0xff]   ;;  %v4651_v24 = vld [vmem:[%s6734_s1 + $0x64] ss:$8 sps:$4 sm:$0xff]   ;;  %v4655_v26 = vld [vmem:[%s6734_s1 + $0x60] ss:$8 sps:$4 sm:$0xff]  }
  0x17   : > { %v4653_v25 = vld [vmem:[%s6734_s1 + $0x464] ss:$8 sps:$4 sm:$0xff]   ;;  %v4656_v27 = vld [vmem:[%s6734_s1 + $0x460] ss:$8 sps:$4 sm:$0xff]   ;;  %v4657_v28 = vld [vmem:[%s6734_s1 + $0x74] ss:$8 sps:$4 sm:$0xff]  }
  0x18   : > { %514 = vmatpush1.bf16.msra.mxu1 %v4631_v10  ;;  %v4659_v29 = vld [vmem:[%s6734_s1 + $0x474] ss:$8 sps:$4 sm:$0xff]   ;;  %v4661_v30 = vld [vmem:[%s6734_s1 + $0x70] ss:$8 sps:$4 sm:$0xff]   ;;  %v4663_v32 = vld [vmem:[%s6734_s1 + $0x84] ss:$8 sps:$4 sm:$0xff]  }
  0x19   : > { %2043 = vmatpush1.bf16.msra.mxu0 %v4632_v11  ;;  %515 = vmatprep.subr.bf16.mxu1 %v4633_v12  ;;  %v4662_v31 = vld [vmem:[%s6734_s1 + $0x470] ss:$8 sps:$4 sm:$0xff]   ;;  %v4665_v33 = vld [vmem:[%s6734_s1 + $0x484] ss:$8 sps:$4 sm:$0xff]   ;;  %v4667_v34 = vld [vmem:[%s6734_s1 + $0x80] ss:$8 sps:$4 sm:$0xff]  }
  0x1a   : > { %2044 = vmatprep.subr.bf16.mxu0 %v4635_v13  ;;  %v4668_v35 = vld [vmem:[%s6734_s1 + $0x480] ss:$8 sps:$4 sm:$0xff]   ;;  %v4669_v36 = vld [vmem:[%s6734_s1 + $0x94] ss:$8 sps:$4 sm:$0xff]   ;;  %s216_s13 = scalar_select %p215_p11, %s5155_s18, 1  ;;  %vm1083_vm3 = vcmask 1042432  }
  0x1b   : > { %v4671_v37 = vld [vmem:[%s6734_s1 + $0x494] ss:$8 sps:$4 sm:$0xff]   ;;  %v4673_v38 = vld [vmem:[%s6734_s1 + $0x90] ss:$8 sps:$4 sm:$0xff]   ;;  %v4675_v40 = vld [vmem:[%s6734_s1 + $0xa4] ss:$8 sps:$4 sm:$0xff]  }
  0x1c   : > { %516 = vmatpush1.bf16.msra.mxu1 %v4637_v14  ;;  %v4674_v39 = vld [vmem:[%s6734_s1 + $0x490] ss:$8 sps:$4 sm:$0xff]   ;;  %s4557_s6 = smul.u32 160, %s216_s13  ;;  %v4677_v41 = vld [vmem:[%s6734_s1 + $0x4a4] ss:$8 sps:$4 sm:$0xff]   ;;  %vm1084_vm4 = vcmask 1046532  }
  0x1d   : > { %2045 = vmatpush1.bf16.msra.mxu0 %v4638_v15  ;;  %517 = vmatprep.subr.bf16.mxu1 %v4639_v16  ;;  %v4679_v42 = vld [vmem:[%s6734_s1 + $0xa0] ss:$8 sps:$4 sm:$0xff]   ;;  %v4681_v44 = vld [vmem:[%s6734_s1 + $0xb4] ss:$8 sps:$4 sm:$0xff]   ;;  %v4685_v46 = vld [vmem:[%s6734_s1 + $0xb0] ss:$8 sps:$4 sm:$0xff]  }
  0x1e   : > { %2046 = vmatprep.subr.bf16.mxu0 %v4641_v17  ;;  %v4680_v43 = vld [vmem:[%s6734_s1 + $0x4a0] ss:$8 sps:$4 sm:$0xff]   ;;  %s5388_s24 = scalar_lea.vmem %s6733_s0, %s4557_s6  ;;  %v4683_v45 = vld [vmem:[%s6734_s1 + $0x4b4] ss:$8 sps:$4 sm:$0xff]   ;;  %v4686_v47 = vld [vmem:[%s6734_s1 + $0x4b0] ss:$8 sps:$4 sm:$0xff]  }
  0x1f   : > { %v5400_v48 = vld [vmem:[%s5388_s24] sm:$0xff]  ;;  %v5403_v49 = vld [vmem:[%s5388_s24 + $0x10] sm:$0xff]  ;;  %vm614_vm0 = vsmask.f32 3328  ;;  %v5414_v53 = vld [vmem:[%s5388_s24 + $0x18] sm:$0x11] }
  0x20   : > { %518 = vmatpush1.bf16.msra.mxu1 %v4643_v18  ;;  %v4687_v50 = vld [vmem:[%s6734_s1 + $0xc4] ss:$8 sps:$4 sm:$0xff]   ;;  %v3784_v52 = vcombine.high %v5400_v48, %v5403_v49  ;;  %v632_v56 = vshrl.u32 %v5403_v49, 16  ;;  %v635_v57 = vshll.u32 %v5403_v49, 16  ;;  %v641_v58 = vshll.u32 %v5414_v53, 16  ;;  %vm5726_vm5 = vmor %vm1083_vm3, %vm1084_vm4  ;;  %s212_s9 = sand.u32 1, %s5147_s16  }
  0x21   : > { %2047 = vmatpush1.bf16.msra.mxu0 %v4644_v19  ;;  %519 = vmatprep.subr.bf16.mxu1 %v4645_v20  ;;  %v4689_v51 = vld [vmem:[%s6734_s1 + $0x4c4] ss:$8 sps:$4 sm:$0xff]   ;;  %v4691_v62 = vld [vmem:[%s6734_s1 + $0xc0] ss:$8 sps:$4 sm:$0xff]   ;;  %vm615_vm1 = vsmask.f32 7440 }
  0x22   : > { %2048 = vmatprep.subr.bf16.mxu0 %v4647_v21  ;;  %v5417_v54 = vld [vmem:[%s5388_s24 + $0x20] sm:$0xff]  ;;  %v5420_v55 = vld [vmem:[%s5388_s24 + $0x28] sm:$0x11]  ;;  %541 = vmatprep.mubr.bf16.mxu1 %v3784_v52  ;;  %v634_v63 = vrot.slane %v632_v56, 4  ;;  %v637_v0 = vrot.slane %v635_v57, 5  ;;  %v643_v7 = vrot.slane %v641_v58, 5  ;;  %vm5441_vm2 = vmor %vm614_vm0, %vm615_vm1 }
  0x23   : > { %v646_v59 = vshrl.u32 %v5417_v54, 16  ;;  %v649_v60 = vshll.u32 %v5417_v54, 16  ;;  %v655_v61 = vshll.u32 %v5420_v55, 16  ;;  %v4692_v1 = vld [vmem:[%s6734_s1 + $0x4c0] ss:$8 sps:$4 sm:$0xff]   ;;  %s3781_s10 = sshll.u32 %s212_s9, 7 }
  0x24   : > { %520 = vmatpush1.bf16.msra.mxu1 %v4649_v22  ;;  %v4693_v4 = vld [vmem:[%s6734_s1 + $0xd4] ss:$8 sps:$4 sm:$0xff]   ;;  %v638_v6 = vor.u32 %v637_v0, %v634_v63  ;;  %v4697_v12 = vld [vmem:[%s6734_s1 + $0xd0] ss:$8 sps:$4 sm:$0xff]   ;;  %v4699_v15 = vld [vmem:[%s6734_s1 + $0xe4] ss:$8 sps:$4 sm:$0xff]  }
  0x25   : > { %2049 = vmatpush1.bf16.msra.mxu0 %v4650_v23  ;;  %521 = vmatprep.subr.bf16.mxu1 %v4651_v24  ;;  %v648_v2 = vrot.slane %v646_v59, 4  ;;  %v651_v3 = vrot.slane %v649_v60, 5  ;;  %v4695_v5 = vld [vmem:[%s6734_s1 + $0x4d4] ss:$8 sps:$4 sm:$0xff]   ;;  %v657_v10 = vrot.slane %v655_v61, 5  ;;  %s6618_s11 = scalar_lea.vmem [#allocation3], %s3781_s10 }
  0x26   : > { %2050 = vmatprep.subr.bf16.mxu0 %v4653_v25  ;;  %v639_v11 = vrot.slane %v638_v6, 4  ;;  %v4698_v13 = vld [vmem:[%s6734_s1 + $0x4d0] ss:$8 sps:$4 sm:$0xff]   ;;  %v4701_v16 = vld [vmem:[%s6734_s1 + $0x4e4] ss:$8 sps:$4 sm:$0xff]   ;;  %s4396_s12 = sshll.u32 %s5155_s18, 11 }
  0x27   : > { %v652_v9 = vor.u32 %v651_v3, %v648_v2  ;;  %v4703_v20 = vld [vmem:[%s6734_s1 + $0xe0] ss:$8 sps:$4 sm:$0xff]   ;;  %v4705_v22 = vld [vmem:[%s6734_s1 + $0xf4] ss:$8 sps:$4 sm:$0xff]   ;;  %v4709_v24 = vld [vmem:[%s6734_s1 + $0xf0] ss:$8 sps:$4 sm:$0xff]   ;;  %s6677_s13 = scalar_lea.hbm %s6737_s4, %s4396_s12 }
  0x28   : > { %522 = vmatpush1.bf16.msra.mxu1 %v4655_v26  ;;  %v5459_v17 = vsel %vm5441_vm2, %v639_v11, %v643_v7  ;;  %v4704_v21 = vld [vmem:[%s6734_s1 + $0x4e0] ss:$8 sps:$4 sm:$0xff]   ;;  %v4707_v23 = vld [vmem:[%s6734_s1 + $0x4f4] ss:$8 sps:$4 sm:$0xff]   ;;  %v4710_v25 = vld [vmem:[%s6734_s1 + $0x4f0] ss:$8 sps:$4 sm:$0xff]  }
  0x29   : > { %2051 = vmatpush1.bf16.msra.mxu0 %v4656_v27  ;;  %523 = vmatprep.subr.bf16.mxu1 %v4657_v28  ;;  %v653_v14 = vrot.slane %v652_v9, 4  ;;  %v4714_v26 = vld [vmem:[%s6734_s1 + $0x104] ss:$8 sps:$4 sm:$0xff]   ;;  %v3783_v28 = vcombine.low %v5400_v48, %v5403_v49  ;;  %v618_v7 = vshrl.u32 %v5400_v48, 16  ;;  %v4740_v9 = vld [vmem:[%s6734_s1 + $0x540] ss:$8 sps:$4 sm:$0xff]  }
  0x2a   : > { %2052 = vmatprep.subr.bf16.mxu0 %v4659_v29  ;;  %v4717_v27 = vld [vmem:[%s6734_s1 + $0x504] ss:$8 sps:$4 sm:$0xff]   ;;  %v5030_v8 = vld [vmem:[%s6734_s1 + $0x850] ss:$8 sps:$4 sm:$0xff]   ;;  %s3694_s14 = sshll.u32 %s6618_s11, 4  ;;  %s6687_s18 = scalar_lea.sflag [#allocation4], %s212_s9  ;;  %s6679_s14 = int_to_ptr.vmem [resolvable:$true] %s3694_s14 }
  0x2b   : > { %v5463_v18 = vsel %vm5441_vm2, %v653_v14, %v657_v10  ;;  %v5558_v56 = vld [vmem:[%s5388_s24 + $0x48] sm:$0x11]  ;;  %v4745_v14 = vld [vmem:[%s6734_s1 + $0x154] ss:$8 sps:$4 sm:$0xff]   ;;  %s5085_s22 = scalar_lea.vmem %s6679_s14, 2048  ;;  %s5165_s26 = smov [#allocation3]  }
  0x2c   : > { %524 = vmatpush1.bf16.msra.mxu1 %v4661_v30  ;;  %v4080_v19 = vcombine.high %v5459_v17, %v5463_v18  ;;  %v4079_v29 = vcombine.low %v5459_v17, %v5463_v18  ;;  %v4712_v30 = vld [vmem:[%s6734_s1 + $0x100] ss:$8 sps:$4 sm:$0xff]   ;;  %v4739_v61 = vld [vmem:[%s6734_s1 + $0x144] ss:$8 sps:$4 sm:$0xff]   ;;  %v683_v63 = vshll.u32 %v5558_v56, 16  ;;  %p5086_p12 = scmp.ne.s32.totalorder %s6679_s14, %s5085_s22  ;;  %s5089_s29 = sshll.u32 %s5165_s26, 4  ;;  %s5090_s29 = int_to_ptr.vmem [resolvable:$false] %s5089_s29 }
  0x2d   : > { %2053 = vmatpush1.bf16.msra.mxu0 %v4662_v31  ;;  %525 = vmatprep.subr.bf16.mxu1 %v4663_v32  ;;  %v4715_v31 = vld [vmem:[%s6734_s1 + $0x500] ss:$8 sps:$4 sm:$0xff]   ;;  %v4721_v32 = vld [vmem:[%s6734_s1 + $0x114] ss:$8 sps:$4 sm:$0xff]   ;;  %v4742_v0 = vld [vmem:[%s6734_s1 + $0x544] ss:$8 sps:$4 sm:$0xff]   ;;  %p5092_p1 = scmp.lt.s32.totalorder %s6679_s14, %s5090_s29 }
  0x2e   : > { %2054 = vmatprep.subr.bf16.mxu0 %v4665_v33  ;;  %2070 = vmatprep.mubr.bf16.mxu0 %v4080_v19  ;;  %v4724_v33 = vld [vmem:[%s6734_s1 + $0x514] ss:$8 sps:$4 sm:$0xff]   ;;  %v685_v11 = vrot.slane %v683_v63, 5  ;;  %p5087_p13 = pnand %p5086_p12, %p5233_p4  ;;  %s5091_s30 = scalar_lea.vmem %s5090_s29, 4096 }
  0x2f   : > { %v5650_v63 = vld [vmem:[%s5388_s24 + $0x70] sm:$0xff]  ;;  %p5093_p2 = scmp.lt.s32.totalorder %s5091_s30, %s5085_s22 }
  0x30   : > { %526 = vmatpush1.bf16.msra.mxu1 %v4667_v34  ;;  %v4719_v34 = vld [vmem:[%s6734_s1 + $0x110] ss:$8 sps:$4 sm:$0xff]   ;;  %p5088_p0 = pneg %p5087_p13 }
  0x31   : > { %2055 = vmatpush1.bf16.msra.mxu0 %v4668_v35  ;;  %527 = vmatprep.subr.bf16.mxu1 %v4669_v36  ;;  %v4722_v35 = vld [vmem:[%s6734_s1 + $0x510] ss:$8 sps:$4 sm:$0xff]   ;;  %v4727_v36 = vld [vmem:[%s6734_s1 + $0x124] ss:$8 sps:$4 sm:$0xff]   ;;  %p5094_p3 = por %p5093_p2, %p5092_p1 }
  0x32   : > { %2056 = vmatprep.subr.bf16.mxu0 %v4671_v37  ;;  %v4730_v37 = vld [vmem:[%s6734_s1 + $0x524] ss:$8 sps:$4 sm:$0xff]  }
  0x33   : > { %p5095_p5 = pnand %p5094_p3, %p5088_p0 }
  0x34   : > { %528 = vmatpush1.bf16.msra.mxu1 %v4673_v38  ;;  %v4725_v38 = vld [vmem:[%s6734_s1 + $0x120] ss:$8 sps:$4 sm:$0xff]  }
  0x35   : > { %2057 = vmatpush1.bf16.msra.mxu0 %v4674_v39  ;;  %529 = vmatprep.subr.bf16.mxu1 %v4675_v40  ;;  %v4728_v39 = vld [vmem:[%s6734_s1 + $0x520] ss:$8 sps:$4 sm:$0xff]   ;;  %v4733_v40 = vld [vmem:[%s6734_s1 + $0x134] ss:$8 sps:$4 sm:$0xff]  }
  0x36   : > { %2058 = vmatprep.subr.bf16.mxu0 %v4677_v41  ;;  %v5529_v41 = vld [vmem:[%s5388_s24 + $0x30] sm:$0xff] }
  0x37   : > { %v5554_v52 = vcombine.low %v5417_v54, %v5529_v41 }
  0x38   : > { %530 = vmatpush1.bf16.msra.mxu1 %v4679_v42  ;;  %v4736_v42 = vld [vmem:[%s6734_s1 + $0x534] ss:$8 sps:$4 sm:$0xff]  }
  0x39   : > { %2059 = vmatpush1.bf16.msra.mxu0 %v4680_v43  ;;  %531 = vmatprep.subr.bf16.mxu1 %v4681_v44  ;;  %v5536_v43 = vcombine.high %v5417_v54, %v5529_v41  ;;  %v660_v44 = vshrl.u32 %v5529_v41, 16 }
  0x3a   : > { %2060 = vmatprep.subr.bf16.mxu0 %v4683_v45  ;;  %v663_v45 = vshll.u32 %v5529_v41, 16 }
  0x3b   : > { %v662_v57 = vrot.slane %v660_v44, 4 }
  0x3c   : > { %532 = vmatpush1.bf16.msra.mxu1 %v4685_v46  ;;  %v4731_v46 = vld [vmem:[%s6734_s1 + $0x130] ss:$8 sps:$4 sm:$0xff]   ;;  %v665_v58 = vrot.slane %v663_v45, 5 }
  0x3d   : > { %2061 = vmatpush1.bf16.msra.mxu0 %v4686_v47  ;;  %533 = vmatprep.subr.bf16.mxu1 %v4687_v50  ;;  %v4734_v47 = vld [vmem:[%s6734_s1 + $0x530] ss:$8 sps:$4 sm:$0xff]  }
  0x3e   : > { %2062 = vmatprep.subr.bf16.mxu0 %v4689_v51  ;;  %v5547_v50 = vld [vmem:[%s5388_s24 + $0x38] sm:$0x11]  ;;  %v5550_v51 = vld [vmem:[%s5388_s24 + $0x40] sm:$0xff] }
  0x3f   : > { %v669_v59 = vshll.u32 %v5547_v50, 16  ;;  %v674_v60 = vshrl.u32 %v5550_v51, 16 }
  0x40   : > { %534 = vmatpush1.bf16.msra.mxu1 %v4691_v62  ;;  %v677_v62 = vshll.u32 %v5550_v51, 16 }
  0x41   : > { %2063 = vmatpush1.bf16.msra.mxu0 %v4692_v1  ;;  %535 = vmatprep.subr.bf16.mxu1 %v4693_v4  ;;  %v666_v1 = vor.u32 %v665_v58, %v662_v57  ;;  %v676_v2 = vrot.slane %v674_v60, 4  ;;  %v671_v3 = vrot.slane %v669_v59, 5  ;;  %v1092_v59 = vrot.slane %v5414_v53, 5  ;;  %v4779_v53 = vld [vmem:[%s6734_s1 + $0x5a4] ss:$8 sps:$4 sm:$0xff]  }
  0x42   : > { %2064 = vmatprep.subr.bf16.mxu0 %v4695_v5  ;;  %v679_v4 = vrot.slane %v677_v62, 5  ;;  %v4737_v5 = vld [vmem:[%s6734_s1 + $0x140] ss:$8 sps:$4 sm:$0xff]   ;;  %v1096_v60 = vrot.slane %v5420_v55, 5 }
  0x43   : > { %v667_v6 = vrot.slane %v666_v1, 4  ;;  %v4760_v1 = vld [vmem:[%s6734_s1 + $0x574] ss:$8 sps:$4 sm:$0xff]  }
  0x44   : > { %536 = vmatpush1.bf16.msra.mxu1 %v4697_v12  ;;  %v680_v10 = vor.u32 %v679_v4, %v676_v2  ;;  %v5579_v12 = vld [vmem:[%s5388_s24 + $0x50] sm:$0xff]  ;;  %v5663_v4 = vld [vmem:[%s5388_s24 + $0x80] sm:$0xff] }
  0x45   : > { %2065 = vmatpush1.bf16.msra.mxu0 %v4698_v13  ;;  %537 = vmatprep.subr.bf16.mxu1 %v4699_v15  ;;  %v621_v13 = vshll.u32 %v5400_v48, 16  ;;  %v4748_v15 = vld [vmem:[%s6734_s1 + $0x554] ss:$8 sps:$4 sm:$0xff]   ;;  %v688_v19 = vshrl.u32 %v5579_v12, 16 }
  0x46   : > { %2066 = vmatprep.subr.bf16.mxu0 %v4701_v16  ;;  %v5590_v16 = vcombine.high %v5550_v51, %v5579_v12 }
  0x47   : > { %v5639_v45 = vrot.slane %v621_v13, 5 }
  0x48   : > { %538 = vmatpush1.bf16.msra.mxu1 %v4703_v20  ;;  %v4743_v20 = vld [vmem:[%s6734_s1 + $0x150] ss:$8 sps:$4 sm:$0xff]  }
  0x49   : > { %2067 = vmatpush1.bf16.msra.mxu0 %v4704_v21  ;;  %539 = vmatprep.subr.bf16.mxu1 %v4705_v22  ;;  %v5598_v21 = vsel %vm5441_vm2, %v667_v6, %v671_v3  ;;  %v681_v22 = vrot.slane %v680_v10, 4  ;;  %v716_v10 = vshrl.u32 %v5650_v63, 16 }
  0x4a   : > { %2068 = vmatprep.subr.bf16.mxu0 %v4707_v23  ;;  %v5601_v23 = vld [vmem:[%s5388_s24 + $0x58] sm:$0x11] }
  0x4c   : > { %540 = vmatpush1.bf16.msra.mxu1 %v4709_v24  ;;  %v5604_v24 = vld [vmem:[%s5388_s24 + $0x60] sm:$0xff] }
  0x4d   : > { %2069 = vmatpush1.bf16.msra.mxu0 %v4710_v25  ;;  %970 = vmatprep.subr.bf16.mxu1 %v4714_v26  ;;  %v5607_v25 = vld [vmem:[%s5388_s24 + $0x68] sm:$0x11]  ;;  %v5611_v26 = vcombine.low %v5550_v51, %v5579_v12  ;;  %v5660_v3 = vcombine.high %v5604_v24, %v5650_v63 }
  0x4e   : > { %2375 = vmatprep.subr.bf16.mxu0 %v4717_v27  ;;  %v690_v27 = vrot.slane %v688_v19, 4 }
  0x4f   : > { %542 = vmatmul.mubr.bf16.vlgmr.msra.gmra.mrb[0].mxu1 %v3783_v28  ;;  %v691_v28 = vshll.u32 %v5579_v12, 16 }
  0x50   : > { %2071 = vmatmul.mubr.bf16.vlgmr.msra.gmra.mrb[0].mxu0 %v4079_v29  ;;  %971 = vmatpush1.bf16.msra.mxu1 %v4712_v30  ;;  %v697_v29 = vshll.u32 %v5601_v23, 16  ;;  %v702_v30 = vshrl.u32 %v5604_v24, 16 }
  0x51   : > { %2376 = vmatpush1.bf16.msra.mxu0 %v4715_v31  ;;  %972 = vmatprep.subr.bf16.mxu1 %v4721_v32  ;;  %v4746_v31 = vld [vmem:[%s6734_s1 + $0x550] ss:$8 sps:$4 sm:$0xff]   ;;  %v4751_v32 = vld [vmem:[%s6734_s1 + $0x164] ss:$8 sps:$4 sm:$0xff]  }
  0x52   : > { %2377 = vmatprep.subr.bf16.mxu0 %v4724_v33  ;;  %551 = vmatprep.mubr.bf16.mxu1 %v5536_v43  ;;  %v5625_v33 = vsel %vm5441_vm2, %v681_v22, %v685_v11  ;;  %v699_v58 = vrot.slane %v697_v29, 5  ;;  %v5677_v11 = vcombine.low %v5604_v24, %v5650_v63  ;;  %v4758_v22 = vld [vmem:[%s6734_s1 + $0x570] ss:$8 sps:$4 sm:$0xff]   ;;  %v1801_v29 = vshll.u32 %v5663_v4, 16 }
  0x54   : > { %973 = vmatpush1.bf16.msra.mxu1 %v4719_v34  ;;  %v705_v34 = vshll.u32 %v5604_v24, 16 }
  0x55   : > { %2378 = vmatpush1.bf16.msra.mxu0 %v4722_v35  ;;  %974 = vmatprep.subr.bf16.mxu1 %v4727_v36  ;;  %v711_v35 = vshll.u32 %v5607_v25, 16  ;;  %v4754_v36 = vld [vmem:[%s6734_s1 + $0x564] ss:$8 sps:$4 sm:$0xff]  }
  0x56   : > { %2379 = vmatprep.subr.bf16.mxu0 %v4730_v37  ;;  %v4082_v37 = vcombine.high %v5598_v21, %v5625_v33  ;;  %v707_v44 = vrot.slane %v705_v34, 5 }
  0x57   : > { %552 = vmatmul.mubr.bf16.gmra.mrb[4].mxu1 %v5554_v52  ;;  %v713_v62 = vrot.slane %v711_v35, 5 }
  0x58   : > { %975 = vmatpush1.bf16.msra.mxu1 %v4725_v38  ;;  %561 = vmatprep.mubr.bf16.mxu1 %v5590_v16  ;;  %v693_v38 = vrot.slane %v691_v28, 5  ;;  %v718_v28 = vrot.slane %v716_v10, 4 }
  0x59   : > { %2380 = vmatpush1.bf16.msra.mxu0 %v4728_v39  ;;  %976 = vmatprep.subr.bf16.mxu1 %v4733_v40  ;;  %v5634_v39 = vrot.slane %v618_v7, 4  ;;  %v4081_v40 = vcombine.low %v5598_v21, %v5625_v33  ;;  %v5669_v7 = vld [vmem:[%s5388_s24 + $0x78] sm:$0x11] }
  0x5a   : > { %2381 = vmatprep.subr.bf16.mxu0 %v4736_v42  ;;  %v704_v42 = vrot.slane %v702_v30, 4  ;;  %2080 = vmatprep.mubr.bf16.mxu0 %v4082_v37  ;;  %v694_v57 = vor.u32 %v693_v38, %v690_v27  ;;  %v725_v19 = vshll.u32 %v5669_v7, 16 }
  0x5b   : > { %2081 = vmatmul.mubr.bf16.gmra.mrb[4].mxu0 %v4081_v40  ;;  %v624_v13 = vor.u32 %v5639_v45, %v5634_v39  ;;  %v1803_v39 = vrot.slane %v1801_v29, 5  ;;  %v3897_v40 = vrot.slane %v5417_v54, 9  ;;  %v4769_v54 = vld [vmem:[%s6734_s1 + $0x194] ss:$8 sps:$4 sm:$0xff]   ;;  %v4776_v29 = vld [vmem:[%s6734_s1 + $0x1a4] ss:$8 sps:$4 sm:$0xff]  }
  0x5c   : > { %977 = vmatpush1.bf16.msra.mxu1 %v4731_v46  ;;  %v4749_v46 = vld [vmem:[%s6734_s1 + $0x160] ss:$8 sps:$4 sm:$0xff]   ;;  %v695_v2 = vrot.slane %v694_v57, 4 }
  0x5d   : > { %2382 = vmatpush1.bf16.msra.mxu0 %v4734_v47  ;;  %978 = vmatprep.subr.bf16.mxu1 %v4739_v61  ;;  %v4752_v47 = vld [vmem:[%s6734_s1 + $0x560] ss:$8 sps:$4 sm:$0xff]   ;;  %v708_v61 = vor.u32 %v707_v44, %v704_v42 }
  0x5e   : > { %2383 = vmatprep.subr.bf16.mxu0 %v4742_v0  ;;  %v4757_v0 = vld [vmem:[%s6734_s1 + $0x174] ss:$8 sps:$4 sm:$0xff]   ;;  %v4761_v42 = vld [vmem:[%s6734_s1 + $0x180] ss:$8 sps:$4 sm:$0xff]  }
  0x5f   : > { %562 = vmatmul.mubr.bf16.gmra.mrb[8].mxu1 %v5611_v26  ;;  %v709_v6 = vrot.slane %v708_v61, 4  ;;  %v4764_v44 = vld [vmem:[%s6734_s1 + $0x580] ss:$8 sps:$4 sm:$0xff]   ;;  %v4772_v61 = vld [vmem:[%s6734_s1 + $0x594] ss:$8 sps:$4 sm:$0xff]  }
  0x60   : > { %979 = vmatpush1.bf16.msra.mxu1 %v4737_v5  ;;  %v4755_v5 = vld [vmem:[%s6734_s1 + $0x170] ss:$8 sps:$4 sm:$0xff]   ;;  %571 = vmatprep.mubr.bf16.mxu1 %v5660_v3  ;;  %v242_v57 = vld [vmem:[%s5388_s24 + $0x8] sm:$0x11] }
  0x61   : > { %2384 = vmatpush1.bf16.msra.mxu0 %v4740_v9  ;;  %980 = vmatprep.subr.bf16.mxu1 %v4745_v14  ;;  %v5672_v9 = vld [vmem:[%s5388_s24 + $0x88] sm:$0x11]  ;;  %v5683_v14 = vsel %vm5441_vm2, %v695_v2, %v699_v58  ;;  %v5694_v27 = vsel %vm5441_vm2, %v709_v6, %v713_v62  ;;  %v625_v58 = vrot.slane %v624_v13, 4  ;;  %v3898_v13 = vrot.slane %v5529_v41, 9 }
  0x62   : > { %2385 = vmatprep.subr.bf16.mxu0 %v4748_v15  ;;  %v719_v15 = vshll.u32 %v5650_v63, 16  ;;  %v1807_v30 = vshll.u32 %v5672_v9, 16  ;;  %v4084_v34 = vcombine.high %v5683_v14, %v5694_v27  ;;  %v4083_v37 = vcombine.low %v5683_v14, %v5694_v27 }
  0x64   : > { %981 = vmatpush1.bf16.msra.mxu1 %v4743_v20  ;;  %v1798_v20 = vshrl.u32 %v5663_v4, 16  ;;  %v721_v35 = vrot.slane %v719_v15, 5  ;;  %2090 = vmatprep.mubr.bf16.mxu0 %v4084_v34  ;;  %v1100_v15 = vrot.slane %v5547_v50, 5  ;;  %v5757_v50 = vsel %vm5726_vm5, %v3897_v40, %v1096_v60  ;;  %v4783_v40 = vld [vmem:[%s6734_s1 + $0x1b4] ss:$8 sps:$4 sm:$0xff]  }
  0x65   : > { %2386 = vmatpush1.bf16.msra.mxu0 %v4746_v31  ;;  %982 = vmatprep.subr.bf16.mxu1 %v4751_v32  ;;  %v4763_v31 = vld [vmem:[%s6734_s1 + $0x184] ss:$8 sps:$4 sm:$0xff]  }
  0x66   : > { %2387 = vmatprep.subr.bf16.mxu0 %v4754_v36  ;;  %v4766_v32 = vld [vmem:[%s6734_s1 + $0x584] ss:$8 sps:$4 sm:$0xff]   ;;  %v3896_v36 = vrot.slane %v5403_v49, 9  ;;  %v1800_v38 = vrot.slane %v1798_v20, 4  ;;  %v722_v45 = vor.u32 %v721_v35, %v718_v28  ;;  %v727_v49 = vrot.slane %v725_v19, 5  ;;  %2091 = vmatmul.mubr.bf16.gmra.mrb[8].mxu0 %v4083_v37 }
  0x67   : > { %572 = vmatmul.mubr.bf16.gmra.mrb[12].mxu1 %v5677_v11  ;;  %v4767_v19 = vld [vmem:[%s6734_s1 + $0x190] ss:$8 sps:$4 sm:$0xff]   ;;  %v1088_v28 = vrot.slane %v242_v57, 5  ;;  %v5783_v34 = vsel %vm5726_vm5, %v3898_v13, %v1100_v15  ;;  %v4777_v37 = vld [vmem:[%s6734_s1 + $0x5a0] ss:$8 sps:$4 sm:$0xff]   ;;  %v3901_v13 = vrot.slane %v5604_v24, 9 }
  0x68   : > { %983 = vmatpush1.bf16.msra.mxu1 %v4749_v46  ;;  %v1804_v46 = vor.u32 %v1803_v39, %v1800_v38  ;;  %v723_v62 = vrot.slane %v722_v45, 4  ;;  %v4770_v20 = vld [vmem:[%s6734_s1 + $0x590] ss:$8 sps:$4 sm:$0xff]   ;;  %v5795_v38 = vcombine.high %v5757_v50, %v5783_v34  ;;  %v5799_v39 = vcombine.low %v5757_v50, %v5783_v34 }
  0x69   : > { %2388 = vmatpush1.bf16.msra.mxu0 %v4752_v47  ;;  %984 = vmatprep.subr.bf16.mxu1 %v4757_v0  ;;  %v1809_v47 = vrot.slane %v1807_v30, 5  ;;  %v627_v0 = vshll.u32 %v242_v57, 16  ;;  %v1104_v45 = vrot.slane %v5558_v56, 5  ;;  %v4784_v57 = vld [vmem:[%s6734_s1 + $0x5b0] ss:$8 sps:$4 sm:$0xff]   ;;  %v1112_v15 = vrot.slane %v5607_v25, 5 }
  0x6a   : > { %2389 = vmatprep.subr.bf16.mxu0 %v4760_v1  ;;  %v1805_v2 = vrot.slane %v1804_v46, 4  ;;  %v5733_v6 = vsel %vm5441_vm2, %v723_v62, %v727_v49  ;;  %v3900_v49 = vrot.slane %v5579_v12, 9  ;;  %v1108_v46 = vrot.slane %v5601_v23, 5  ;;  %v4790_v56 = vld [vmem:[%s6734_s1 + $0x1c4] ss:$8 sps:$4 sm:$0xff]  }
  0x6b   : > { %v629_v10 = vrot.slane %v627_v0, 5  ;;  %v4793_v23 = vld [vmem:[%s6734_s1 + $0x5c4] ss:$8 sps:$4 sm:$0xff]   ;;  %v4791_v62 = vld [vmem:[%s6734_s1 + $0x5c0] ss:$8 sps:$4 sm:$0xff]  }
  0x6c   : > { %985 = vmatpush1.bf16.msra.mxu1 %v4755_v5  ;;  %v3895_v5 = vrot.slane %v5400_v48, 9  ;;  %v5745_v48 = vsel %vm5441_vm2, %v1805_v2, %v1809_v47  ;;  %v4781_v47 = vld [vmem:[%s6734_s1 + $0x1b0] ss:$8 sps:$4 sm:$0xff]   ;;  %v4804_v25 = vld [vmem:[%s6734_s1 + $0x1e4] ss:$8 sps:$4 sm:$0xff]  }
  0x6d   : > { %2390 = vmatpush1.bf16.msra.mxu0 %v4758_v22  ;;  %986 = vmatprep.subr.bf16.mxu1 %v4763_v31  ;;  %v5751_v22 = vsel %vm5726_vm5, %v3896_v36, %v1092_v59  ;;  %v4086_v59 = vcombine.high %v5733_v6, %v5745_v48  ;;  %v5769_v55 = vsel %vm5441_vm2, %v625_v58, %v629_v10  ;;  %v4774_v36 = vld [vmem:[%s6734_s1 + $0x1a0] ss:$8 sps:$4 sm:$0xff]   ;;  %v4800_v10 = vld [vmem:[%s6734_s1 + $0x5d4] ss:$8 sps:$4 sm:$0xff]  }
  0x6e   : > { %2391 = vmatprep.subr.bf16.mxu0 %v4766_v32  ;;  %v4085_v60 = vcombine.low %v5733_v6, %v5745_v48  ;;  %v3856_v30 = vcombine.high %v5769_v55, %v5459_v17  ;;  %v5777_v31 = vsel %vm5726_vm5, %v3895_v5, %v1088_v28  ;;  %v4153_v32 = vcombine.high %v5751_v22, %v5757_v50  ;;  %v4797_v5 = vld [vmem:[%s6734_s1 + $0x1d4] ss:$8 sps:$4 sm:$0xff]   ;;  %v4795_v28 = vld [vmem:[%s6734_s1 + $0x1d0] ss:$8 sps:$4 sm:$0xff]  }
  0x6f   : > { %2100 = vmatprep.mubr.bf16.mxu0 %v4086_v59  ;;  %v3935_v35 = vcombine.low %v5777_v31, %v5751_v22  ;;  %v4802_v59 = vld [vmem:[%s6734_s1 + $0x1e0] ss:$8 sps:$4 sm:$0xff]  }
  0x70   : > { %987 = vmatpush1.bf16.msra.mxu1 %v4761_v42  ;;  %v4786_v42 = vld [vmem:[%s6734_s1 + $0x5b4] ss:$8 sps:$4 sm:$0xff]   ;;  %2101 = vmatmul.mubr.bf16.gmra.mrb[12].mxu0 %v4085_v60  ;;  %v4805_v60 = vld [vmem:[%s6734_s1 + $0x5e0] ss:$8 sps:$4 sm:$0xff]  }
  0x71   : > { %2392 = vmatpush1.bf16.msra.mxu0 %v4764_v44  ;;  %988 = vmatprep.subr.bf16.mxu1 %v4769_v54  ;;  %v3899_v44 = vrot.slane %v5550_v51, 9  ;;  %v5829_v54 = vsel %vm5726_vm5, %v3900_v49, %v1108_v46  ;;  %v3855_v49 = vcombine.low %v5769_v55, %v5459_v17  ;;  %v4152_v46 = vcombine.low %v5751_v22, %v5757_v50  ;;  %v4826_v17 = vld [vmem:[%s6734_s1 + $0x614] ss:$8 sps:$4 sm:$0xff]  }
  0x72   : > { %2393 = vmatprep.subr.bf16.mxu0 %v4772_v61  ;;  %1002 = vmatprep.mubr.bf16.mxu1 %v3856_v30  ;;  %v4788_v61 = vld [vmem:[%s6734_s1 + $0x1c0] ss:$8 sps:$4 sm:$0xff]   ;;  %v5925_v50 = vcombine.high %v5463_v18, %v5598_v21 }
  0x73   : > { %2407 = vmatprep.mubr.bf16.mxu0 %v4153_v32  ;;  %v5825_v58 = vsel %vm5726_vm5, %v3899_v44, %v1104_v45  ;;  %v4817_v44 = vld [vmem:[%s6734_s1 + $0x204] ss:$8 sps:$4 sm:$0xff]  }
  0x74   : > { %989 = vmatpush1.bf16.msra.mxu1 %v4767_v19  ;;  %v5839_v0 = vcombine.high %v5825_v58, %v5829_v54  ;;  %v5843_v2 = vcombine.low %v5825_v58, %v5829_v54  ;;  %v3902_v19 = vrot.slane %v5650_v63, 9  ;;  %v4807_v63 = vld [vmem:[%s6734_s1 + $0x5e4] ss:$8 sps:$4 sm:$0xff]   ;;  %v4155_v55 = vcombine.high %v5783_v34, %v5825_v58 }
  0x75   : > { %2394 = vmatpush1.bf16.msra.mxu0 %v4770_v20  ;;  %990 = vmatprep.subr.bf16.mxu1 %v4776_v29  ;;  %v1116_v20 = vrot.slane %v5669_v7, 5  ;;  %v4798_v29 = vld [vmem:[%s6734_s1 + $0x5d0] ss:$8 sps:$4 sm:$0xff]   ;;  %v5869_v7 = vsel %vm5726_vm5, %v3901_v13, %v1112_v15  ;;  %v4820_v45 = vld [vmem:[%s6734_s1 + $0x604] ss:$8 sps:$4 sm:$0xff]   ;;  %v4154_v13 = vcombine.low %v5783_v34, %v5825_v58  ;;  %v5966_v58 = vcombine.high %v5625_v33, %v5683_v14 }
  0x76   : > { %2395 = vmatprep.subr.bf16.mxu0 %v4779_v53  ;;  %v4827_v15 = vld [vmem:[%s6734_s1 + $0x220] ss:$8 sps:$4 sm:$0xff]   ;;  %v4838_v34 = vld [vmem:[%s6734_s1 + $0x634] ss:$8 sps:$4 sm:$0xff]  }
  0x77   : > { %v5873_v53 = vsel %vm5726_vm5, %v3902_v19, %v1116_v20  ;;  %v4830_v19 = vld [vmem:[%s6734_s1 + $0x620] ss:$8 sps:$4 sm:$0xff]   ;;  %v4010_v20 = vcombine.high %v5529_v41, %v5550_v51 }
  0x78   : > { %991 = vmatpush1.bf16.msra.mxu1 %v4774_v36  ;;  %v5883_v30 = vcombine.high %v5869_v7, %v5873_v53  ;;  %v5887_v32 = vcombine.low %v5869_v7, %v5873_v53  ;;  %v4811_v36 = vld [vmem:[%s6734_s1 + $0x1f4] ss:$8 sps:$4 sm:$0xff]  }
  0x79   : > { %2396 = vmatpush1.bf16.msra.mxu0 %v4777_v37  ;;  %992 = vmatprep.subr.bf16.mxu1 %v4783_v40  ;;  %v4814_v37 = vld [vmem:[%s6734_s1 + $0x5f4] ss:$8 sps:$4 sm:$0xff]   ;;  %v4809_v40 = vld [vmem:[%s6734_s1 + $0x1f0] ss:$8 sps:$4 sm:$0xff]  }
  0x7a   : > { %2397 = vmatprep.subr.bf16.mxu0 %v4786_v42  ;;  %v4812_v42 = vld [vmem:[%s6734_s1 + $0x5f0] ss:$8 sps:$4 sm:$0xff]  }
  0x7c   : > { %993 = vmatpush1.bf16.msra.mxu1 %v4781_v47  ;;  %v4815_v47 = vld [vmem:[%s6734_s1 + $0x200] ss:$8 sps:$4 sm:$0xff]  }
  0x7d   : > { %2398 = vmatpush1.bf16.msra.mxu0 %v4784_v57  ;;  %994 = vmatprep.subr.bf16.mxu1 %v4790_v56  ;;  %v4818_v57 = vld [vmem:[%s6734_s1 + $0x600] ss:$8 sps:$4 sm:$0xff]   ;;  %v4823_v56 = vld [vmem:[%s6734_s1 + $0x214] ss:$8 sps:$4 sm:$0xff]  }
  0x7e   : > { %2399 = vmatprep.subr.bf16.mxu0 %v4793_v23  ;;  %v4821_v23 = vld [vmem:[%s6734_s1 + $0x210] ss:$8 sps:$4 sm:$0xff]  }
  0x80   : > { %995 = vmatpush1.bf16.msra.mxu1 %v4788_v61  ;;  %v4824_v61 = vld [vmem:[%s6734_s1 + $0x610] ss:$8 sps:$4 sm:$0xff]  }
  0x81   : > { %2400 = vmatpush1.bf16.msra.mxu0 %v4791_v62  ;;  %996 = vmatprep.subr.bf16.mxu1 %v4797_v5  ;;  %v4829_v62 = vld [vmem:[%s6734_s1 + $0x224] ss:$8 sps:$4 sm:$0xff]  }
  0x82   : > { %2401 = vmatprep.subr.bf16.mxu0 %v4800_v10  ;;  %v4832_v5 = vld [vmem:[%s6734_s1 + $0x624] ss:$8 sps:$4 sm:$0xff]   ;;  %v5944_v10 = vcombine.low %v5463_v18, %v5598_v21  ;;  %v4009_v18 = vcombine.low %v5529_v41, %v5550_v51  ;;  %v4835_v21 = vld [vmem:[%s6734_s1 + $0x234] ss:$8 sps:$4 sm:$0xff]   ;;  %v5027_v51 = vld [vmem:[%s6734_s1 + $0x840] ss:$8 sps:$4 sm:$0xff]  }
  0x84   : > { %997 = vmatpush1.bf16.msra.mxu1 %v4795_v28  ;;  %v4157_v28 = vcombine.high %v5829_v54, %v5869_v7 }
  0x85   : > { %2402 = vmatpush1.bf16.msra.mxu0 %v4798_v29  ;;  %998 = vmatprep.subr.bf16.mxu1 %v4804_v25  ;;  %v4119_v29 = vrot.slane %v5663_v4, 9  ;;  %v2146_v25 = vrot.slane %v5672_v9, 5  ;;  %v4844_v4 = vld [vmem:[%s6734_s1 + $0x644] ss:$8 sps:$4 sm:$0xff]   ;;  %v5988_v9 = vcombine.low %v5625_v33, %v5683_v14  ;;  %v4012_v33 = vcombine.high %v5579_v12, %v5604_v24 }
  0x86   : > { %2403 = vmatprep.subr.bf16.mxu0 %v4807_v63  ;;  %v4833_v63 = vld [vmem:[%s6734_s1 + $0x230] ss:$8 sps:$4 sm:$0xff]   ;;  %v4011_v14 = vcombine.low %v5579_v12, %v5604_v24  ;;  %v5035_v24 = vld [vmem:[%s6734_s1 + $0x860] ss:$8 sps:$4 sm:$0xff]  }
  0x88   : > { %999 = vmatpush1.bf16.msra.mxu1 %v4802_v59  ;;  %v4836_v59 = vld [vmem:[%s6734_s1 + $0x630] ss:$8 sps:$4 sm:$0xff]  }
  0x89   : > { %2404 = vmatpush1.bf16.msra.mxu0 %v4805_v60  ;;  %1000 = vmatprep.subr.bf16.mxu1 %v4811_v36  ;;  %v4841_v60 = vld [vmem:[%s6734_s1 + $0x244] ss:$8 sps:$4 sm:$0xff]   ;;  %v4156_v36 = vcombine.low %v5829_v54, %v5869_v7  ;;  %v4847_v54 = vld [vmem:[%s6734_s1 + $0x254] ss:$8 sps:$4 sm:$0xff]  }
  0x8a   : > { %2405 = vmatprep.subr.bf16.mxu0 %v4814_v37  ;;  %v5994_v37 = vsel %vm5726_vm5, %v4119_v29, %v2146_v25  ;;  %v4850_v7 = vld [vmem:[%s6734_s1 + $0x654] ss:$8 sps:$4 sm:$0xff]   ;;  %v4877_v29 = vld [vmem:[%s6734_s1 + $0x2a4] ss:$8 sps:$4 sm:$0xff]  }
  0x8b   : > { %v4880_v25 = vld [vmem:[%s6734_s1 + $0x6a4] ss:$8 sps:$4 sm:$0xff]  }
  0x8c   : > { %1001 = vmatpush1.bf16.msra.mxu1 %v4809_v40  ;;  %v4839_v40 = vld [vmem:[%s6734_s1 + $0x240] ss:$8 sps:$4 sm:$0xff]  }
  0x8d   : > { %2406 = vmatpush1.bf16.msra.mxu0 %v4812_v42  ;;  %1359 = vmatprep.subr.bf16.mxu1 %v4817_v44  ;;  %v4842_v42 = vld [vmem:[%s6734_s1 + $0x640] ss:$8 sps:$4 sm:$0xff]   ;;  %v6014_v44 = vcombine.high %v5694_v27, %v5733_v6 }
  0x8e   : > { %2696 = vmatprep.subr.bf16.mxu0 %v4820_v45  ;;  %v4159_v45 = vcombine.high %v5873_v53, %v5994_v37 }
  0x8f   : > { %1003 = vmatmul.mubr.bf16.vlgmr.msra.gmra.mrb[0].mxu1 %v3855_v49  ;;  %v4845_v49 = vld [vmem:[%s6734_s1 + $0x250] ss:$8 sps:$4 sm:$0xff]  }
  0x90   : > { %2408 = vmatmul.mubr.bf16.vlgmr.msra.gmra.mrb[0].mxu0 %v4152_v46  ;;  %1360 = vmatpush1.bf16.msra.mxu1 %v4815_v47  ;;  %v4848_v46 = vld [vmem:[%s6734_s1 + $0x650] ss:$8 sps:$4 sm:$0xff]   ;;  %v4853_v47 = vld [vmem:[%s6734_s1 + $0x264] ss:$8 sps:$4 sm:$0xff]  }
  0x91   : > { %2697 = vmatpush1.bf16.msra.mxu0 %v4818_v57  ;;  %1361 = vmatprep.subr.bf16.mxu1 %v4823_v56  ;;  %v4856_v57 = vld [vmem:[%s6734_s1 + $0x664] ss:$8 sps:$4 sm:$0xff]   ;;  %v6034_v56 = vcombine.low %v5694_v27, %v5733_v6  ;;  %v4859_v27 = vld [vmem:[%s6734_s1 + $0x274] ss:$8 sps:$4 sm:$0xff]  }
  0x92   : > { %2698 = vmatprep.subr.bf16.mxu0 %v4826_v17  ;;  %1012 = vmatprep.mubr.bf16.mxu1 %v5925_v50  ;;  %v4158_v17 = vcombine.low %v5873_v53, %v5994_v37  ;;  %v4862_v6 = vld [vmem:[%s6734_s1 + $0x674] ss:$8 sps:$4 sm:$0xff]   ;;  %v3936_v53 = vcombine.high %v5777_v31, %v5751_v22  ;;  %v4923_v22 = vld [vmem:[%s6734_s1 + $0x320] ss:$8 sps:$4 sm:$0xff]  }
  0x93   : > { %2417 = vmatprep.mubr.bf16.mxu0 %v4155_v55  ;;  %v4851_v55 = vld [vmem:[%s6734_s1 + $0x260] ss:$8 sps:$4 sm:$0xff]  }
  0x94   : > { %1362 = vmatpush1.bf16.msra.mxu1 %v4821_v23  ;;  %v4854_v23 = vld [vmem:[%s6734_s1 + $0x660] ss:$8 sps:$4 sm:$0xff]  }
  0x95   : > { %2699 = vmatpush1.bf16.msra.mxu0 %v4824_v61  ;;  %1363 = vmatprep.subr.bf16.mxu1 %v4829_v62  ;;  %v4857_v61 = vld [vmem:[%s6734_s1 + $0x270] ss:$8 sps:$4 sm:$0xff]   ;;  %v4926_v31 = vld [vmem:[%s6734_s1 + $0x720] ss:$8 sps:$4 sm:$0xff]  }
  0x96   : > { %2700 = vmatprep.subr.bf16.mxu0 %v4832_v5  ;;  %v4860_v62 = vld [vmem:[%s6734_s1 + $0x670] ss:$8 sps:$4 sm:$0xff]   ;;  %v4865_v5 = vld [vmem:[%s6734_s1 + $0x284] ss:$8 sps:$4 sm:$0xff]  }
  0x97   : > { %1013 = vmatmul.mubr.bf16.gmra.mrb[4].mxu1 %v5944_v10 }
  0x98   : > { %2418 = vmatmul.mubr.bf16.gmra.mrb[4].mxu0 %v4154_v13  ;;  %1364 = vmatpush1.bf16.msra.mxu1 %v4827_v15  ;;  %v4868_v13 = vld [vmem:[%s6734_s1 + $0x684] ss:$8 sps:$4 sm:$0xff]   ;;  %v4863_v15 = vld [vmem:[%s6734_s1 + $0x280] ss:$8 sps:$4 sm:$0xff]  }
  0x99   : > { %2701 = vmatpush1.bf16.msra.mxu0 %v4830_v19  ;;  %1365 = vmatprep.subr.bf16.mxu1 %v4835_v21  ;;  %v4866_v19 = vld [vmem:[%s6734_s1 + $0x680] ss:$8 sps:$4 sm:$0xff]   ;;  %v4871_v21 = vld [vmem:[%s6734_s1 + $0x294] ss:$8 sps:$4 sm:$0xff]  }
  0x9a   : > { %2702 = vmatprep.subr.bf16.mxu0 %v4838_v34  ;;  %1022 = vmatprep.mubr.bf16.mxu1 %v5966_v58  ;;  %v4869_v34 = vld [vmem:[%s6734_s1 + $0x290] ss:$8 sps:$4 sm:$0xff]  }
  0x9b   : > { %2427 = vmatprep.mubr.bf16.mxu0 %v4157_v28  ;;  %v4872_v28 = vld [vmem:[%s6734_s1 + $0x690] ss:$8 sps:$4 sm:$0xff]  }
  0x9c   : > { %1366 = vmatpush1.bf16.msra.mxu1 %v4833_v63  ;;  %v4875_v63 = vld [vmem:[%s6734_s1 + $0x2a0] ss:$8 sps:$4 sm:$0xff]  }
  0x9d   : > { %2703 = vmatpush1.bf16.msra.mxu0 %v4836_v59  ;;  %1367 = vmatprep.subr.bf16.mxu1 %v4841_v60  ;;  %v4878_v59 = vld [vmem:[%s6734_s1 + $0x6a0] ss:$8 sps:$4 sm:$0xff]   ;;  %v4883_v60 = vld [vmem:[%s6734_s1 + $0x2b4] ss:$8 sps:$4 sm:$0xff]  }
  0x9e   : > { %2704 = vmatprep.subr.bf16.mxu0 %v4844_v4  ;;  %v4886_v4 = vld [vmem:[%s6734_s1 + $0x6b4] ss:$8 sps:$4 sm:$0xff]  }
  0x9f   : > { %1023 = vmatmul.mubr.bf16.gmra.mrb[8].mxu1 %v5988_v9 }
  0xa0   : > { %2428 = vmatmul.mubr.bf16.gmra.mrb[8].mxu0 %v4156_v36  ;;  %1368 = vmatpush1.bf16.msra.mxu1 %v4839_v40  ;;  %v4881_v36 = vld [vmem:[%s6734_s1 + $0x2b0] ss:$8 sps:$4 sm:$0xff]  }
  0xa1   : > { %2705 = vmatpush1.bf16.msra.mxu0 %v4842_v42  ;;  %1369 = vmatprep.subr.bf16.mxu1 %v4847_v54  ;;  %v4884_v40 = vld [vmem:[%s6734_s1 + $0x6b0] ss:$8 sps:$4 sm:$0xff]   ;;  %v4889_v42 = vld [vmem:[%s6734_s1 + $0x2c4] ss:$8 sps:$4 sm:$0xff]  }
  0xa2   : > { %2706 = vmatprep.subr.bf16.mxu0 %v4850_v7  ;;  %1032 = vmatprep.mubr.bf16.mxu1 %v6014_v44  ;;  %v4892_v54 = vld [vmem:[%s6734_s1 + $0x6c4] ss:$8 sps:$4 sm:$0xff]   ;;  %v4887_v7 = vld [vmem:[%s6734_s1 + $0x2c0] ss:$8 sps:$4 sm:$0xff]  }
  0xa3   : > { %2437 = vmatprep.mubr.bf16.mxu0 %v4159_v45  ;;  %v4890_v45 = vld [vmem:[%s6734_s1 + $0x6c0] ss:$8 sps:$4 sm:$0xff]  }
  0xa4   : > { %1370 = vmatpush1.bf16.msra.mxu1 %v4845_v49  ;;  %v4895_v49 = vld [vmem:[%s6734_s1 + $0x2d4] ss:$8 sps:$4 sm:$0xff]  }
  0xa5   : > { %2707 = vmatpush1.bf16.msra.mxu0 %v4848_v46  ;;  %1371 = vmatprep.subr.bf16.mxu1 %v4853_v47  ;;  %v4898_v46 = vld [vmem:[%s6734_s1 + $0x6d4] ss:$8 sps:$4 sm:$0xff]   ;;  %v4893_v47 = vld [vmem:[%s6734_s1 + $0x2d0] ss:$8 sps:$4 sm:$0xff]  }
  0xa6   : > { %2708 = vmatprep.subr.bf16.mxu0 %v4856_v57  ;;  %v4896_v57 = vld [vmem:[%s6734_s1 + $0x6d0] ss:$8 sps:$4 sm:$0xff]  }
  0xa7   : > { %1033 = vmatmul.mubr.bf16.gmra.mrb[12].mxu1 %v6034_v56 }
  0xa8   : > { %2438 = vmatmul.mubr.bf16.gmra.mrb[12].mxu0 %v4158_v17  ;;  %1372 = vmatpush1.bf16.msra.mxu1 %v4851_v55  ;;  %v4901_v17 = vld [vmem:[%s6734_s1 + $0x2e4] ss:$8 sps:$4 sm:$0xff]  }
  0xa9   : > { %2709 = vmatpush1.bf16.msra.mxu0 %v4854_v23  ;;  %1373 = vmatprep.subr.bf16.mxu1 %v4859_v27  ;;  %v4904_v55 = vld [vmem:[%s6734_s1 + $0x6e4] ss:$8 sps:$4 sm:$0xff]   ;;  %v4899_v23 = vld [vmem:[%s6734_s1 + $0x2e0] ss:$8 sps:$4 sm:$0xff]  }
  0xaa   : > { %2710 = vmatprep.subr.bf16.mxu0 %v4862_v6  ;;  %1391 = vmatprep.mubr.bf16.mxu1 %v3936_v53  ;;  %v4902_v27 = vld [vmem:[%s6734_s1 + $0x6e0] ss:$8 sps:$4 sm:$0xff]   ;;  %v4907_v6 = vld [vmem:[%s6734_s1 + $0x2f4] ss:$8 sps:$4 sm:$0xff]  }
  0xab   : > { %2728 = vmatprep.mubr.bf16.mxu0 %v5536_v43  ;;  %v4874_v43 = vld [vmem:[%s6734_s1 + $0x694] ss:$8 sps:$4 sm:$0xff]  }
  0xac   : > { %1374 = vmatpush1.bf16.msra.mxu1 %v4857_v61  ;;  %v4910_v53 = vld [vmem:[%s6734_s1 + $0x6f4] ss:$8 sps:$4 sm:$0xff]   ;;  %v4905_v61 = vld [vmem:[%s6734_s1 + $0x2f0] ss:$8 sps:$4 sm:$0xff]  }
  0xad   : > { %2711 = vmatpush1.bf16.msra.mxu0 %v4860_v62  ;;  %1375 = vmatprep.subr.bf16.mxu1 %v4865_v5  ;;  %v4908_v62 = vld [vmem:[%s6734_s1 + $0x6f0] ss:$8 sps:$4 sm:$0xff]   ;;  %v4913_v5 = vld [vmem:[%s6734_s1 + $0x304] ss:$8 sps:$4 sm:$0xff]  }
  0xae   : > { %2712 = vmatprep.subr.bf16.mxu0 %v4868_v13  ;;  %v4916_v13 = vld [vmem:[%s6734_s1 + $0x704] ss:$8 sps:$4 sm:$0xff]  }
  0xb0   : > { %1376 = vmatpush1.bf16.msra.mxu1 %v4863_v15  ;;  %v4911_v15 = vld [vmem:[%s6734_s1 + $0x300] ss:$8 sps:$4 sm:$0xff]  }
  0xb1   : > { %2713 = vmatpush1.bf16.msra.mxu0 %v4866_v19  ;;  %1377 = vmatprep.subr.bf16.mxu1 %v4871_v21  ;;  %v4914_v19 = vld [vmem:[%s6734_s1 + $0x700] ss:$8 sps:$4 sm:$0xff]   ;;  %v4919_v21 = vld [vmem:[%s6734_s1 + $0x314] ss:$8 sps:$4 sm:$0xff]  }
  0xb2   : > { %2714 = vmatprep.subr.bf16.mxu0 %v4874_v43  ;;  %v4922_v43 = vld [vmem:[%s6734_s1 + $0x714] ss:$8 sps:$4 sm:$0xff]  }
  0xb4   : > { %1378 = vmatpush1.bf16.msra.mxu1 %v4869_v34  ;;  %v4917_v34 = vld [vmem:[%s6734_s1 + $0x310] ss:$8 sps:$4 sm:$0xff]  }
  0xb5   : > { %2715 = vmatpush1.bf16.msra.mxu0 %v4872_v28  ;;  %1379 = vmatprep.subr.bf16.mxu1 %v4877_v29  ;;  %v4920_v28 = vld [vmem:[%s6734_s1 + $0x710] ss:$8 sps:$4 sm:$0xff]   ;;  %v4925_v29 = vld [vmem:[%s6734_s1 + $0x324] ss:$8 sps:$4 sm:$0xff]  }
  0xb6   : > { %2716 = vmatprep.subr.bf16.mxu0 %v4880_v25  ;;  %v4929_v25 = vld [vmem:[%s6734_s1 + $0x330] ss:$8 sps:$4 sm:$0xff]  }
  0xb8   : > { %1380 = vmatpush1.bf16.msra.mxu1 %v4875_v63  ;;  %v4932_v63 = vld [vmem:[%s6734_s1 + $0x730] ss:$8 sps:$4 sm:$0xff]  }
  0xb9   : > { %2717 = vmatpush1.bf16.msra.mxu0 %v4878_v59  ;;  %1381 = vmatprep.subr.bf16.mxu1 %v4883_v60  ;;  %v4937_v59 = vld [vmem:[%s6734_s1 + $0x344] ss:$8 sps:$4 sm:$0xff]   ;;  %v6221_v60 = vld [vmem:[%s5388_s24 + $0x90] sm:$0xff] }
  0xba   : > { %2718 = vmatprep.subr.bf16.mxu0 %v4886_v4  ;;  %v4935_v4 = vld [vmem:[%s6734_s1 + $0x340] ss:$8 sps:$4 sm:$0xff]  }
  0xbc   : > { %1382 = vmatpush1.bf16.msra.mxu1 %v4881_v36  ;;  %v4938_v36 = vld [vmem:[%s6734_s1 + $0x740] ss:$8 sps:$4 sm:$0xff]  }
  0xbd   : > { %2719 = vmatpush1.bf16.msra.mxu0 %v4884_v40  ;;  %1383 = vmatprep.subr.bf16.mxu1 %v4889_v42  ;;  %v4943_v40 = vld [vmem:[%s6734_s1 + $0x354] ss:$8 sps:$4 sm:$0xff]   ;;  %v6236_v42 = vld [vmem:[%s5388_s24 + $0x80] sm:$0xff] }
  0xbe   : > { %2720 = vmatprep.subr.bf16.mxu0 %v4892_v54  ;;  %v4225_v54 = vcombine.high %v6236_v42, %v6221_v60 }
  0xc0   : > { %1384 = vmatpush1.bf16.msra.mxu1 %v4887_v7  ;;  %v4941_v7 = vld [vmem:[%s6734_s1 + $0x350] ss:$8 sps:$4 sm:$0xff]  }
  0xc1   : > { %2721 = vmatpush1.bf16.msra.mxu0 %v4890_v45  ;;  %1385 = vmatprep.subr.bf16.mxu1 %v4895_v49  ;;  %v4944_v45 = vld [vmem:[%s6734_s1 + $0x750] ss:$8 sps:$4 sm:$0xff]   ;;  %v4949_v49 = vld [vmem:[%s6734_s1 + $0x364] ss:$8 sps:$4 sm:$0xff]  }
  0xc2   : > { %2722 = vmatprep.subr.bf16.mxu0 %v4898_v46  ;;  %v4224_v46 = vcombine.low %v6236_v42, %v6221_v60 }
  0xc4   : > { %1386 = vmatpush1.bf16.msra.mxu1 %v4893_v47  ;;  %v4947_v47 = vld [vmem:[%s6734_s1 + $0x360] ss:$8 sps:$4 sm:$0xff]  }
  0xc5   : > { %2723 = vmatpush1.bf16.msra.mxu0 %v4896_v57  ;;  %1387 = vmatprep.subr.bf16.mxu1 %v4901_v17  ;;  %v4950_v57 = vld [vmem:[%s6734_s1 + $0x760] ss:$8 sps:$4 sm:$0xff]   ;;  %v4955_v17 = vld [vmem:[%s6734_s1 + $0x374] ss:$8 sps:$4 sm:$0xff]  }
  0xc6   : > { %2724 = vmatprep.subr.bf16.mxu0 %v4904_v55  ;;  %v4958_v55 = vld [vmem:[%s6734_s1 + $0x774] ss:$8 sps:$4 sm:$0xff]  }
  0xc8   : > { %1388 = vmatpush1.bf16.msra.mxu1 %v4899_v23  ;;  %v6270_v23 = vld [vmem:[%s5388_s24 + $0x10] sm:$0xff] }
  0xc9   : > { %2725 = vmatpush1.bf16.msra.mxu0 %v4902_v27  ;;  %1389 = vmatprep.subr.bf16.mxu1 %v4907_v6  ;;  %v6273_v27 = vld [vmem:[%s5388_s24 + $0x20] sm:$0xff] }
  0xca   : > { %2726 = vmatprep.subr.bf16.mxu0 %v4910_v53  ;;  %v4008_v6 = vcombine.high %v6270_v23, %v6273_v27  ;;  %v4953_v53 = vld [vmem:[%s6734_s1 + $0x370] ss:$8 sps:$4 sm:$0xff]  }
  0xcc   : > { %1390 = vmatpush1.bf16.msra.mxu1 %v4905_v61  ;;  %v4956_v61 = vld [vmem:[%s6734_s1 + $0x770] ss:$8 sps:$4 sm:$0xff]  }
  0xcd   : > { %2727 = vmatpush1.bf16.msra.mxu0 %v4908_v62  ;;  %1692 = vmatprep.subr.bf16.mxu1 %v4913_v5  ;;  %v4961_v62 = vld [vmem:[%s6734_s1 + $0x384] ss:$8 sps:$4 sm:$0xff]  }
  0xce   : > { %3030 = vmatprep.subr.bf16.mxu0 %v4916_v13  ;;  %v4964_v5 = vld [vmem:[%s6734_s1 + $0x784] ss:$8 sps:$4 sm:$0xff]   ;;  %v4959_v13 = vld [vmem:[%s6734_s1 + $0x380] ss:$8 sps:$4 sm:$0xff]  }
  0xcf   : > { %1392 = vmatmul.mubr.bf16.vlgmr.msra.gmra.mrb[0].mxu1 %v3935_v35  ;;  %v4931_v35 = vld [vmem:[%s6734_s1 + $0x334] ss:$8 sps:$4 sm:$0xff]  }
  0xd0   : > { %2729 = vmatmul.mubr.bf16.vlgmr.msra.gmra.mrb[0].mxu0 %v5554_v52  ;;  %1693 = vmatpush1.bf16.msra.mxu1 %v4911_v15  ;;  %v4928_v52 = vld [vmem:[%s6734_s1 + $0x724] ss:$8 sps:$4 sm:$0xff]   ;;  %v4962_v15 = vld [vmem:[%s6734_s1 + $0x780] ss:$8 sps:$4 sm:$0xff]  }
  0xd1   : > { %3031 = vmatpush1.bf16.msra.mxu0 %v4914_v19  ;;  %1694 = vmatprep.subr.bf16.mxu1 %v4919_v21  ;;  %v4967_v19 = vld [vmem:[%s6734_s1 + $0x394] ss:$8 sps:$4 sm:$0xff]   ;;  %v4965_v21 = vld [vmem:[%s6734_s1 + $0x390] ss:$8 sps:$4 sm:$0xff]  }
  0xd2   : > { %3032 = vmatprep.subr.bf16.mxu0 %v4922_v43  ;;  %1401 = vmatprep.mubr.bf16.mxu1 %v5795_v38  ;;  %v4968_v43 = vld [vmem:[%s6734_s1 + $0x790] ss:$8 sps:$4 sm:$0xff]  }
  0xd3   : > { %2738 = vmatprep.mubr.bf16.mxu0 %v5590_v16  ;;  %v4934_v16 = vld [vmem:[%s6734_s1 + $0x734] ss:$8 sps:$4 sm:$0xff]  }
  0xd4   : > { %1695 = vmatpush1.bf16.msra.mxu1 %v4917_v34  ;;  %v4973_v34 = vld [vmem:[%s6734_s1 + $0x3a4] ss:$8 sps:$4 sm:$0xff]  }
  0xd5   : > { %3033 = vmatpush1.bf16.msra.mxu0 %v4920_v28  ;;  %1696 = vmatprep.subr.bf16.mxu1 %v4925_v29  ;;  %v4976_v28 = vld [vmem:[%s6734_s1 + $0x7a4] ss:$8 sps:$4 sm:$0xff]   ;;  %v4971_v29 = vld [vmem:[%s6734_s1 + $0x3a0] ss:$8 sps:$4 sm:$0xff]  }
  0xd6   : > { %3034 = vmatprep.subr.bf16.mxu0 %v4928_v52  ;;  %v4974_v52 = vld [vmem:[%s6734_s1 + $0x7a0] ss:$8 sps:$4 sm:$0xff]  }
  0xd7   : > { %1402 = vmatmul.mubr.bf16.gmra.mrb[4].mxu1 %v5799_v39 }
  0xd8   : > { %2739 = vmatmul.mubr.bf16.gmra.mrb[4].mxu0 %v5611_v26  ;;  %1697 = vmatpush1.bf16.msra.mxu1 %v4923_v22  ;;  %v4940_v26 = vld [vmem:[%s6734_s1 + $0x744] ss:$8 sps:$4 sm:$0xff]   ;;  %v4979_v22 = vld [vmem:[%s6734_s1 + $0x3b4] ss:$8 sps:$4 sm:$0xff]  }
  0xd9   : > { %3035 = vmatpush1.bf16.msra.mxu0 %v4926_v31  ;;  %1698 = vmatprep.subr.bf16.mxu1 %v4931_v35  ;;  %v4982_v31 = vld [vmem:[%s6734_s1 + $0x7b4] ss:$8 sps:$4 sm:$0xff]   ;;  %v4977_v35 = vld [vmem:[%s6734_s1 + $0x3b0] ss:$8 sps:$4 sm:$0xff]  }
  0xda   : > { %3036 = vmatprep.subr.bf16.mxu0 %v4934_v16  ;;  %1411 = vmatprep.mubr.bf16.mxu1 %v5839_v0  ;;  %v4980_v16 = vld [vmem:[%s6734_s1 + $0x7b0] ss:$8 sps:$4 sm:$0xff]  }
  0xdb   : > { %2748 = vmatprep.mubr.bf16.mxu0 %v5660_v3  ;;  %v4946_v3 = vld [vmem:[%s6734_s1 + $0x754] ss:$8 sps:$4 sm:$0xff]  }
  0xdc   : > { %1699 = vmatpush1.bf16.msra.mxu1 %v4929_v25  ;;  %v4985_v25 = vld [vmem:[%s6734_s1 + $0x3c4] ss:$8 sps:$4 sm:$0xff]  }
  0xdd   : > { %3037 = vmatpush1.bf16.msra.mxu0 %v4932_v63  ;;  %1700 = vmatprep.subr.bf16.mxu1 %v4937_v59  ;;  %v4988_v63 = vld [vmem:[%s6734_s1 + $0x7c4] ss:$8 sps:$4 sm:$0xff]   ;;  %v4983_v59 = vld [vmem:[%s6734_s1 + $0x3c0] ss:$8 sps:$4 sm:$0xff]  }
  0xde   : > { %3038 = vmatprep.subr.bf16.mxu0 %v4940_v26  ;;  %v4986_v26 = vld [vmem:[%s6734_s1 + $0x7c0] ss:$8 sps:$4 sm:$0xff]  }
  0xdf   : > { %1412 = vmatmul.mubr.bf16.gmra.mrb[8].mxu1 %v5843_v2 }
  0xe0   : > { %2749 = vmatmul.mubr.bf16.gmra.mrb[8].mxu0 %v5677_v11  ;;  %1701 = vmatpush1.bf16.msra.mxu1 %v4935_v4  ;;  %v4952_v11 = vld [vmem:[%s6734_s1 + $0x764] ss:$8 sps:$4 sm:$0xff]   ;;  %v4991_v4 = vld [vmem:[%s6734_s1 + $0x3d4] ss:$8 sps:$4 sm:$0xff]  }
  0xe1   : > { %3039 = vmatpush1.bf16.msra.mxu0 %v4938_v36  ;;  %1702 = vmatprep.subr.bf16.mxu1 %v4943_v40  ;;  %v4994_v36 = vld [vmem:[%s6734_s1 + $0x7d4] ss:$8 sps:$4 sm:$0xff]   ;;  %v4989_v40 = vld [vmem:[%s6734_s1 + $0x3d0] ss:$8 sps:$4 sm:$0xff]  }
  0xe2   : > { %3040 = vmatprep.subr.bf16.mxu0 %v4946_v3  ;;  %1421 = vmatprep.mubr.bf16.mxu1 %v5883_v30  ;;  %v4992_v3 = vld [vmem:[%s6734_s1 + $0x7d0] ss:$8 sps:$4 sm:$0xff]  }
  0xe3   : > { %2758 = vmatprep.mubr.bf16.mxu0 %v4225_v54  ;;  %v4998_v54 = vld [vmem:[%s6734_s1 + $0x3e4] ss:$8 sps:$4 sm:$0xff]  }
  0xe4   : > { %1703 = vmatpush1.bf16.msra.mxu1 %v4941_v7  ;;  %v5002_v7 = vld [vmem:[%s6734_s1 + $0x7e4] ss:$8 sps:$4 sm:$0xff]  }
  0xe5   : > { %3041 = vmatpush1.bf16.msra.mxu0 %v4944_v45  ;;  %1704 = vmatprep.subr.bf16.mxu1 %v4949_v49  ;;  %v4996_v45 = vld [vmem:[%s6734_s1 + $0x3e0] ss:$8 sps:$4 sm:$0xff]  }
  0xe6   : > { %3042 = vmatprep.subr.bf16.mxu0 %v4952_v11  ;;  %v5000_v49 = vld [vmem:[%s6734_s1 + $0x7e0] ss:$8 sps:$4 sm:$0xff]   ;;  %v5005_v11 = vld [vmem:[%s6734_s1 + $0x3f4] ss:$8 sps:$4 sm:$0xff]  }
  0xe7   : > { %1422 = vmatmul.mubr.bf16.gmra.mrb[12].mxu1 %v5887_v32 }
  0xe8   : > { %2759 = vmatmul.mubr.bf16.gmra.mrb[12].mxu0 %v4224_v46  ;;  %1705 = vmatpush1.bf16.msra.mxu1 %v4947_v47  ;;  %v5008_v46 = vld [vmem:[%s6734_s1 + $0x7f4] ss:$8 sps:$4 sm:$0xff]   ;;  %v5003_v47 = vld [vmem:[%s6734_s1 + $0x3f0] ss:$8 sps:$4 sm:$0xff]  }
  0xe9   : > { %3043 = vmatpush1.bf16.msra.mxu0 %v4950_v57  ;;  %1706 = vmatprep.subr.bf16.mxu1 %v4955_v17  ;;  %v5006_v57 = vld [vmem:[%s6734_s1 + $0x7f0] ss:$8 sps:$4 sm:$0xff]   ;;  %v5013_v17 = vld [vmem:[%s6734_s1 + $0x804] ss:$8 sps:$4 sm:$0xff]  }
  0xea   : > { %3044 = vmatprep.subr.bf16.mxu0 %v4958_v55  ;;  %1724 = vmatprep.mubr.bf16.mxu1 %v4008_v6  ;;  %v4007_v55 = vcombine.low %v6270_v23, %v6273_v27  ;;  %v2802_v6 = vshrl.u32 %v6221_v60, 16 }
  0xeb   : > { %3062 = vmatprep.mubr.bf16.mxu0 %v5925_v50  ;;  %v4970_v50 = vld [vmem:[%s6734_s1 + $0x794] ss:$8 sps:$4 sm:$0xff]  }
  0xec   : > { %1707 = vmatpush1.bf16.msra.mxu1 %v4953_v53  ;;  %v2805_v53 = vshll.u32 %v6221_v60, 16  ;;  %v2804_v23 = vrot.slane %v2802_v6, 4 }
  0xed   : > { %3045 = vmatpush1.bf16.msra.mxu0 %v4956_v61  ;;  %1708 = vmatprep.subr.bf16.mxu1 %v4961_v62  ;;  %v5011_v61 = vld [vmem:[%s6734_s1 + $0x800] ss:$8 sps:$4 sm:$0xff]   ;;  %v5016_v62 = vld [vmem:[%s6734_s1 + $0x814] ss:$8 sps:$4 sm:$0xff]  }
  0xee   : > { %3046 = vmatprep.subr.bf16.mxu0 %v4964_v5  ;;  %v2807_v27 = vrot.slane %v2805_v53, 5  ;;  %v5014_v5 = vld [vmem:[%s6734_s1 + $0x810] ss:$8 sps:$4 sm:$0xff]  }
  0xf0   : > { %1709 = vmatpush1.bf16.msra.mxu1 %v4959_v13  ;;  %v6399_v13 = vld [vmem:[%s5388_s24 + $0x98] sm:$0x11] }
  0xf1   : > { %3047 = vmatpush1.bf16.msra.mxu0 %v4962_v15  ;;  %1710 = vmatprep.subr.bf16.mxu1 %v4967_v19  ;;  %v5021_v15 = vld [vmem:[%s6734_s1 + $0x824] ss:$8 sps:$4 sm:$0xff]   ;;  %v2811_v19 = vshll.u32 %v6399_v13, 16 }
  0xf2   : > { %3048 = vmatprep.subr.bf16.mxu0 %v4970_v50  ;;  %v5019_v50 = vld [vmem:[%s6734_s1 + $0x820] ss:$8 sps:$4 sm:$0xff]  }
  0xf4   : > { %1711 = vmatpush1.bf16.msra.mxu1 %v4965_v21  ;;  %v5024_v21 = vld [vmem:[%s6734_s1 + $0x834] ss:$8 sps:$4 sm:$0xff]  }
  0xf5   : > { %3049 = vmatpush1.bf16.msra.mxu0 %v4968_v43  ;;  %1712 = vmatprep.subr.bf16.mxu1 %v4973_v34  ;;  %v5022_v43 = vld [vmem:[%s6734_s1 + $0x830] ss:$8 sps:$4 sm:$0xff]   ;;  %v5029_v34 = vld [vmem:[%s6734_s1 + $0x844] ss:$8 sps:$4 sm:$0xff]  }
  0xf6   : > { %3050 = vmatprep.subr.bf16.mxu0 %v4976_v28  ;;  %v5037_v28 = vld [vmem:[%s6734_s1 + $0x864] ss:$8 sps:$4 sm:$0xff]  }
  0xf8   : > { %1713 = vmatpush1.bf16.msra.mxu1 %v4971_v29 }
  0xf9   : > { %3051 = vmatpush1.bf16.msra.mxu0 %v4974_v52  ;;  %1714 = vmatprep.subr.bf16.mxu1 %v4979_v22  ;;  %v5046_v52 = vld [vmem:[%s6734_s1 + $0x894] ss:$8 sps:$4 sm:$0xff]   ;;  %v5047_v22 = vld [vmem:[%s6734_s1 + $0x8a0] ss:$8 sps:$4 sm:$0xff]  }
  0xfa   : > { %3052 = vmatprep.subr.bf16.mxu0 %v4982_v31  ;;  %v5052_v31 = vld [vmem:[%s6734_s1 + $0x8b4] ss:$8 sps:$4 sm:$0xff]  }
  0xfc   : > { %1715 = vmatpush1.bf16.msra.mxu1 %v4977_v35  ;;  %v5050_v35 = vld [vmem:[%s6734_s1 + $0x8b0] ss:$8 sps:$4 sm:$0xff]  }
  0xfd   : > { %3053 = vmatpush1.bf16.msra.mxu0 %v4980_v16  ;;  %1716 = vmatprep.subr.bf16.mxu1 %v4985_v25  ;;  %v5055_v16 = vld [vmem:[%s6734_s1 + $0x8c4] ss:$8 sps:$4 sm:$0xff]   ;;  %v5053_v25 = vld [vmem:[%s6734_s1 + $0x8c0] ss:$8 sps:$4 sm:$0xff]  }
  0xfe   : > { %3054 = vmatprep.subr.bf16.mxu0 %v4988_v63  ;;  %v5058_v63 = vld [vmem:[%s6734_s1 + $0x8d4] ss:$8 sps:$4 sm:$0xff]  }
 0x100   : > { %1717 = vmatpush1.bf16.msra.mxu1 %v4983_v59  ;;  %v5056_v59 = vld [vmem:[%s6734_s1 + $0x8d0] ss:$8 sps:$4 sm:$0xff]  }
 0x101   : > { %3055 = vmatpush1.bf16.msra.mxu0 %v4986_v26  ;;  %1718 = vmatprep.subr.bf16.mxu1 %v4991_v4  ;;  %v5061_v26 = vld [vmem:[%s6734_s1 + $0x8e4] ss:$8 sps:$4 sm:$0xff]   ;;  %v5059_v4 = vld [vmem:[%s6734_s1 + $0x8e0] ss:$8 sps:$4 sm:$0xff]  }
 0x102   : > { %3056 = vmatprep.subr.bf16.mxu0 %v4994_v36  ;;  %v5064_v36 = vld [vmem:[%s6734_s1 + $0x8f4] ss:$8 sps:$4 sm:$0xff]  }
 0x104   : > { %1719 = vmatpush1.bf16.msra.mxu1 %v4989_v40  ;;  %v4324_v40 = vrot.slane %v6221_v60, 9 }
 0x105   : > { %3057 = vmatpush1.bf16.msra.mxu0 %v4992_v3  ;;  %1720 = vmatprep.subr.bf16.mxu1 %v4998_v54  ;;  %v3138_v3 = vrot.slane %v6399_v13, 5  ;;  %v5062_v54 = vld [vmem:[%s6734_s1 + $0x8f0] ss:$8 sps:$4 sm:$0xff]  }
 0x106   : > { %3058 = vmatprep.subr.bf16.mxu0 %v5002_v7 }
 0x107   : > { %v3139_v7 = vsel %vm5726_vm5, %v4324_v40, %v3138_v3 }
 0x108   : > { %1721 = vmatpush1.bf16.msra.mxu1 %v4996_v45  ;;  %v4358_v45 = vcombine.high %v5994_v37, %v3139_v7  ;;  %v4357_v60 = vcombine.low %v5994_v37, %v3139_v7 }
 0x109   : > { %3059 = vmatpush1.bf16.msra.mxu0 %v5000_v49  ;;  %1722 = vmatprep.subr.bf16.mxu1 %v5005_v11 }
 0x10a   : > { %3060 = vmatprep.subr.bf16.mxu0 %v5008_v46 }
 0x10c   : > { %1723 = vmatpush1.bf16.msra.mxu1 %v5003_v47 }
 0x10d   : > { %3061 = vmatpush1.bf16.msra.mxu0 %v5006_v57  ;;  %4397 = vmatprep.subr.bf16.mxu1 %v5013_v17 }
 0x10e   : > { %3355 = vmatprep.subr.bf16.mxu0 %v5013_v17 }
 0x10f   : > { %1725 = vmatmul.mubr.bf16.vlgmr.msra.gmra.mrb[0].mxu1 %v4007_v55 }
 0x110   : > { %3063 = vmatmul.mubr.bf16.vlgmr.msra.gmra.mrb[0].mxu0 %v5944_v10  ;;  %4413 = vmatpush1.bf16.msra.mxu1 %v5011_v61  ;;  %v2808_v10 = vor.u32 %v2807_v27, %v2804_v23 }
 0x111   : > { %3356 = vmatpush1.bf16.msra.mxu0 %v5011_v61  ;;  %4398 = vmatprep.subr.bf16.mxu1 %v5016_v62 }
 0x112   : > { %3357 = vmatprep.subr.bf16.mxu0 %v5016_v62  ;;  %1734 = vmatprep.mubr.bf16.mxu1 %v4010_v20  ;;  %v2809_v20 = vrot.slane %v2808_v10, 4 }
 0x113   : > { %3072 = vmatprep.mubr.bf16.mxu0 %v5966_v58  ;;  %v2813_v58 = vrot.slane %v2811_v19, 5 }
 0x114   : > { %4414 = vmatpush1.bf16.msra.mxu1 %v5014_v5 }
 0x115   : > { %3358 = vmatpush1.bf16.msra.mxu0 %v5014_v5  ;;  %4399 = vmatprep.subr.bf16.mxu1 %v5021_v15  ;;  %v2814_v41 = vsel %vm5441_vm2, %v2809_v20, %v2813_v58 }
 0x116   : > { %3359 = vmatprep.subr.bf16.mxu0 %v5021_v15  ;;  %v4290_v12 = vcombine.low %v5745_v48, %v2814_v41 }
 0x117   : > { %1735 = vmatmul.mubr.bf16.gmra.mrb[4].mxu1 %v4009_v18  ;;  %v5032_v18 = vld [vmem:[%s6734_s1 + $0x854] ss:$8 sps:$4 sm:$0xff]  }
 0x118   : > { %3073 = vmatmul.mubr.bf16.gmra.mrb[4].mxu0 %v5988_v9  ;;  %4415 = vmatpush1.bf16.msra.mxu1 %v5019_v50  ;;  %v5084_v9 = vld [vmem:[%s5388_s24 + $0x70] sm:$0xff] }
 0x119   : > { %3360 = vmatpush1.bf16.msra.mxu0 %v5019_v50  ;;  %4400 = vmatprep.subr.bf16.mxu1 %v5024_v21  ;;  %v4013_v29 = vcombine.low %v5084_v9, %v6236_v42 }
 0x11a   : > { %3361 = vmatprep.subr.bf16.mxu0 %v5024_v21  ;;  %1744 = vmatprep.mubr.bf16.mxu1 %v4012_v33  ;;  %v4014_v33 = vcombine.high %v5084_v9, %v6236_v42  ;;  %v5041_v42 = vld [vmem:[%s6734_s1 + $0x880] ss:$8 sps:$4 sm:$0xff]  }
 0x11b   : > { %3082 = vmatprep.mubr.bf16.mxu0 %v6014_v44  ;;  %v4291_v44 = vcombine.high %v5745_v48, %v2814_v41  ;;  %v5038_v48 = vld [vmem:[%s6734_s1 + $0x870] ss:$8 sps:$4 sm:$0xff]  }
 0x11c   : > { %4416 = vmatpush1.bf16.msra.mxu1 %v5022_v43 }
 0x11d   : > { %3362 = vmatpush1.bf16.msra.mxu0 %v5022_v43  ;;  %4401 = vmatprep.subr.bf16.mxu1 %v5029_v34 }
 0x11e   : > { %3363 = vmatprep.subr.bf16.mxu0 %v5029_v34 }
 0x11f   : > { %1745 = vmatmul.mubr.bf16.gmra.mrb[8].mxu1 %v4011_v14  ;;  %v5040_v14 = vld [vmem:[%s6734_s1 + $0x874] ss:$8 sps:$4 sm:$0xff]  }
 0x120   : > { %3083 = vmatmul.mubr.bf16.gmra.mrb[8].mxu0 %v6034_v56  ;;  %4417 = vmatpush1.bf16.msra.mxu1 %v5027_v51  ;;  %v5043_v56 = vld [vmem:[%s6734_s1 + $0x884] ss:$8 sps:$4 sm:$0xff]  }
 0x121   : > { %3364 = vmatpush1.bf16.msra.mxu0 %v5027_v51  ;;  %4402 = vmatprep.subr.bf16.mxu1 %v5032_v18 }
 0x122   : > { %3365 = vmatprep.subr.bf16.mxu0 %v5032_v18  ;;  %1754 = vmatprep.mubr.bf16.mxu1 %v4014_v33 }
 0x123   : > { %3092 = vmatprep.mubr.bf16.mxu0 %v4291_v44 }
 0x124   : > { %4418 = vmatpush1.bf16.msra.mxu1 %v5030_v8 }
 0x125   : > { %3366 = vmatpush1.bf16.msra.mxu0 %v5030_v8  ;;  %4403 = vmatprep.subr.bf16.mxu1 %v5037_v28 }
 0x126   : > { %3367 = vmatprep.subr.bf16.mxu0 %v5037_v28 }
 0x127   : > { %1755 = vmatmul.mubr.bf16.gmra.mrb[12].mxu1 %v4013_v29 }
 0x128   : > { %3093 = vmatmul.mubr.bf16.gmra.mrb[12].mxu0 %v4290_v12  ;;  %4419 = vmatpush1.bf16.msra.mxu1 %v5035_v24 }
 0x129   : > { %3368 = vmatpush1.bf16.msra.mxu0 %v5035_v24  ;;  %4404 = vmatprep.subr.bf16.mxu1 %v5040_v14 }
 0x12a   : > { %3369 = vmatprep.subr.bf16.mxu0 %v5040_v14  ;;  %3387 = vmatprep.mubr.bf16.mxu0 %v5795_v38  ;;  %v5044_v38 = vld [vmem:[%s6734_s1 + $0x890] ss:$8 sps:$4 sm:$0xff]  }
 0x12b   : > { %3407 = vmatprep.mubr.bf16.mxu1 %v5883_v30  ;;  %v5049_v30 = vld [vmem:[%s6734_s1 + $0x8a4] ss:$8 sps:$4 sm:$0xff]  }
 0x12c   : > { %4420 = vmatpush1.bf16.msra.mxu1 %v5038_v48 }
 0x12d   : > { %3370 = vmatpush1.bf16.msra.mxu0 %v5038_v48  ;;  %4405 = vmatprep.subr.bf16.mxu1 %v5043_v56 }
 0x12e   : > { %3371 = vmatprep.subr.bf16.mxu0 %v5043_v56 }
 0x130   : > { %4421 = vmatpush1.bf16.msra.mxu1 %v5041_v42 }
 0x131   : > { %3372 = vmatpush1.bf16.msra.mxu0 %v5041_v42  ;;  %4406 = vmatprep.subr.bf16.mxu1 %v5046_v52 }
 0x132   : > { %3373 = vmatprep.subr.bf16.mxu0 %v5046_v52 }
 0x134   : > { %4422 = vmatpush1.bf16.msra.mxu1 %v5044_v38 }
 0x135   : > { %3374 = vmatpush1.bf16.msra.mxu0 %v5044_v38  ;;  %4407 = vmatprep.subr.bf16.mxu1 %v5049_v30 }
 0x136   : > { %3375 = vmatprep.subr.bf16.mxu0 %v5049_v30 }
 0x138   : > { %4423 = vmatpush1.bf16.msra.mxu1 %v5047_v22 }
 0x139   : > { %3376 = vmatpush1.bf16.msra.mxu0 %v5047_v22  ;;  %4408 = vmatprep.subr.bf16.mxu1 %v5052_v31 }
 0x13a   : > { %3377 = vmatprep.subr.bf16.mxu0 %v5052_v31 }
 0x13c   : > { %4424 = vmatpush1.bf16.msra.mxu1 %v5050_v35 }
 0x13d   : > { %3378 = vmatpush1.bf16.msra.mxu0 %v5050_v35  ;;  %4409 = vmatprep.subr.bf16.mxu1 %v5055_v16 }
 0x13e   : > { %3379 = vmatprep.subr.bf16.mxu0 %v5055_v16 }
 0x140   : > { %4425 = vmatpush1.bf16.msra.mxu1 %v5053_v25 }
 0x141   : > { %3380 = vmatpush1.bf16.msra.mxu0 %v5053_v25  ;;  %4410 = vmatprep.subr.bf16.mxu1 %v5058_v63 }
 0x142   : > { %3381 = vmatprep.subr.bf16.mxu0 %v5058_v63 }
 0x144   : > { %4426 = vmatpush1.bf16.msra.mxu1 %v5056_v59 }
 0x145   : > { %3382 = vmatpush1.bf16.msra.mxu0 %v5056_v59  ;;  %4411 = vmatprep.subr.bf16.mxu1 %v5061_v26 }
 0x146   : > { %3383 = vmatprep.subr.bf16.mxu0 %v5061_v26 }
 0x148   : > { %4427 = vmatpush1.bf16.msra.mxu1 %v5059_v4 }
 0x149   : > { %3384 = vmatpush1.bf16.msra.mxu0 %v5059_v4  ;;  %4412 = vmatprep.subr.bf16.mxu1 %v5064_v36 }
 0x14a   : > { %3385 = vmatprep.subr.bf16.mxu0 %v5064_v36 }
 0x14c   : > { %4428 = vmatpush1.bf16.msra.mxu1 %v5062_v54 }
 0x14d   : > { %3386 = vmatpush1.bf16.msra.mxu0 %v5062_v54 }
 0x14f   : > { %3408 = vmatmul.mubr.bf16.vlgmr.msra.gmra.mrb[16].mxu1 %v5887_v32 }
 0x150   : > { %3388 = vmatmul.mubr.bf16.vlgmr.msra.gmra.mrb[0].mxu0 %v5799_v39  ;;  %3417 = vmatprep.mubr.bf16.mxu1 %v4358_v45 }
 0x151   : > { %3397 = vmatprep.mubr.bf16.mxu0 %v5839_v0 }
 0x157   : > { %3418 = vmatmul.mubr.bf16.gmra.mrb[20].mxu1 %v4357_v60 }
 0x158   : > { %3398 = vmatmul.mubr.bf16.gmra.mrb[4].mxu0 %v5843_v2 }
 0x1e2   : > { %v1726_v49 = vpop.f32.mrb[0].mxu1 }
 0x1e3   : > { %v1728_v11 = vpop.f32.mrb[1].mxu1 }
 0x1e4   : > { %v1730_v1 = vpop.f32.mrb[2].mxu1 }
 0x1e5   : > { %v1732_v46 = vpop.f32.mrb[3].mxu1 }
 0x1ea   : > { %v1736_v47 = vpop.f32.mrb[4].mxu1 }
 0x1eb   : > { %v1738_v57 = vpop.f32.mrb[5].mxu1 }
 0x1ec   : > { %v1740_v17 = vpop.f32.mrb[6].mxu1 }
 0x1ed   : > { %v1742_v55 = vpop.f32.mrb[7].mxu1 }
 0x1f2   : > { %v1746_v6 = vpop.f32.mrb[8].mxu1 }
 0x1f3   : > { %v3084_v39 = vpop.f32.mrb[8].mxu0  ;;  %v1748_v32 = vpop.f32.mrb[9].mxu1 }
 0x1f4   : > { %v4437_v53 = vadd.f32 %v3084_v39, %v1746_v6  ;;  %v3086_v61 = vpop.f32.mrb[9].mxu0  ;;  %v1750_v62 = vpop.f32.mrb[10].mxu1 }
 0x1f5   : > { %v4439_v0 = vadd.f32 %v3086_v61, %v1748_v32  ;;  %v3088_v23 = vpop.f32.mrb[10].mxu0  ;;  %v1752_v27 = vpop.f32.mrb[11].mxu1 }
 0x1f6   : > { %v4441_v37 = vadd.f32 %v3088_v23, %v1750_v62  ;;  %v3090_v2 = vpop.f32.mrb[11].mxu0 }
 0x1f7   : > { %v4443_v5 = vadd.f32 %v3090_v2, %v1752_v27 }
 0x1fa   : > { %v1756_v13 = vpop.f32.mrb[12].mxu1 }
 0x1fb   : > { %v3094_v15 = vpop.f32.mrb[12].mxu0  ;;  %v1758_v19 = vpop.f32.mrb[13].mxu1 }
 0x1fc   : > { %v4445_v10 = vadd.f32 %v3094_v15, %v1756_v13  ;;  %v3096_v50 = vpop.f32.mrb[13].mxu0  ;;  %v1760_v20 = vpop.f32.mrb[14].mxu1 }
 0x1fd   : > { %v4447_v21 = vadd.f32 %v3096_v50, %v1758_v19  ;;  %v3098_v58 = vpop.f32.mrb[14].mxu0  ;;  %v1762_v34 = vpop.f32.mrb[15].mxu1 }
 0x1fe   : > { %v4449_v43 = vadd.f32 %v3098_v58, %v1760_v20  ;;  %v3100_v41 = vpop.f32.mrb[15].mxu0 }
 0x1ff   : > { %v4451_v51 = vadd.f32 %v3100_v41, %v1762_v34 }
 0x222   : > { %v3409_v9 = vpop.f32.mrb[16].mxu1 }
 0x223   : > { %v3389_v18 = vpop.f32.mrb[0].mxu0  ;;  %v4438_v44 = vadd.f32 %v4437_v53, %v3409_v9  ;;  %v3411_v28 = vpop.f32.mrb[17].mxu1 }
 0x224   : > { %v4429_v33 = vadd.f32 %v3389_v18, %v1726_v49  ;;  %v3391_v8 = vpop.f32.mrb[1].mxu0  ;;  %v4440_v12 = vadd.f32 %v4439_v0, %v3411_v28  ;;  %v3413_v14 = vpop.f32.mrb[18].mxu1 }
 0x225   : > { %v4430_v29 = vadd.f32 %v3391_v8, %v1728_v11  ;;  %v3393_v24 = vpop.f32.mrb[2].mxu0  ;;  %v4442_v56 = vadd.f32 %v4441_v37, %v3413_v14  ;;  %v3415_v52 = vpop.f32.mrb[19].mxu1 }
 0x226   : > { %v4431_v48 = vadd.f32 %v3393_v24, %v1730_v1  ;;  %v3395_v42 = vpop.f32.mrb[3].mxu0  ;;  %v4444_v30 = vadd.f32 %v4443_v5, %v3415_v52  ;;  %v3488_v25 = vadd.f32 %v4440_v12, %v4438_v44 }
 0x227   : > { %v4432_v38 = vadd.f32 %v3395_v42, %v1732_v46  ;;  %v3476_v22 = vadd.f32 %v4430_v29, %v4429_v33 }
 0x228   : > { %v3491_v31 = vadd.f32 %v4444_v30, %v4442_v56 }
 0x229   : > { %3477 = vadd.xlane.f32.xlu0 %v3476_v22  ;;  %v3479_v46 = vadd.f32 %v4432_v38, %v4431_v48 }
 0x22a   : > { %3492 = vadd.xlane.f32.xlu1 %v3491_v31  ;;  %v3419_v16 = vpop.f32.mrb[20].mxu1 }
 0x22b   : > { %v3399_v35 = vpop.f32.mrb[4].mxu0  ;;  %v4446_v59 = vadd.f32 %v4445_v10, %v3419_v16  ;;  %v3421_v4 = vpop.f32.mrb[21].mxu1 }
 0x22c   : > { %v4433_v63 = vadd.f32 %v3399_v35, %v1736_v47  ;;  %v3401_v26 = vpop.f32.mrb[5].mxu0  ;;  %v4448_v40 = vadd.f32 %v4447_v21, %v3421_v4  ;;  %v3423_v54 = vpop.f32.mrb[22].mxu1 }
 0x22d   : > { %v4434_v36 = vadd.f32 %v3401_v26, %v1738_v57  ;;  %v3403_v3 = vpop.f32.mrb[6].mxu0  ;;  %3489 = vadd.xlane.f32.xlu0 %v3488_v25  ;;  %v6521_v45 = vadd.f32 %v4449_v43, %v3423_v54  ;;  %v3425_v49 = vpop.f32.mrb[23].mxu1 }
 0x22e   : > { %v4435_v7 = vadd.f32 %v3403_v3, %v1740_v17  ;;  %v3405_v60 = vpop.f32.mrb[7].mxu0  ;;  %v6523_v1 = vadd.f32 %v4451_v51, %v3425_v49  ;;  %v3494_v39 = vadd.f32 %v4448_v40, %v4446_v59 }
 0x22f   : > { %v4436_v11 = vadd.f32 %v3405_v60, %v1742_v55  ;;  %v3482_v6 = vadd.f32 %v4434_v36, %v4433_v63 }
 0x230   : > { %v3497_v57 = vadd.f32 %v6523_v1, %v6521_v45 }
 0x231   : > { %3480 = vadd.xlane.f32.xlu0 %v3479_v46  ;;  %3483 = vadd.xlane.f32.xlu1 %v3482_v6  ;;  %v3485_v47 = vadd.f32 %v4436_v11, %v4435_v7 }
 0x235   : > { %3486 = vadd.xlane.f32.xlu1 %v3485_v47  ;;  %3495 = vadd.xlane.f32.xlu0 %v3494_v39 }
 0x239   : > { %3498 = vadd.xlane.f32.xlu1 %v3497_v57 }
 0x2b6   : > { %v3478_v17 = vpop.xlane.xlu0 %3477 }
 0x2b7   : > { %v3501_v53 = vmul.f32 0.00390625, %v3478_v17  ;;  %v3493_v55 = vpop.xlane.xlu1 %3492 }
 0x2b8   : > { %v3506_v37 = vmul.f32 0.00390625, %v3493_v55 }
 0x2b9   : > { %v6527_v32 = vsub.f32 %v4429_v33, %v3501_v53  ;;  %v6529_v61 = vsub.f32 %v4430_v29, %v3501_v53 }
 0x2ba   : > { %v3490_v0 = vpop.xlane.xlu0 %3489  ;;  %v6543_v58 = vsub.f32 %v4442_v56, %v3506_v37  ;;  %v6545_v43 = vsub.f32 %v4444_v30, %v3506_v37  ;;  %v3605_v37 = vld [vmem:[%s6735_s2] sm:$0x3] }
 0x2bb   : > { %v3505_v62 = vmul.f32 0.00390625, %v3490_v0  ;;  %v3525_v23 = vmul.f32 %v6527_v32, %v6527_v32  ;;  %v3526_v27 = vmul.f32 %v6529_v61, %v6529_v61 }
 0x2bc   : > { %v3535_v42 = vmul.f32 %v6543_v58, %v6543_v58  ;;  %v3536_v52 = vmul.f32 %v6545_v43, %v6545_v43 }
 0x2bd   : > { %v6535_v2 = vsub.f32 %v4438_v44, %v3505_v62  ;;  %v6537_v5 = vsub.f32 %v4440_v12, %v3505_v62  ;;  %v3541_v10 = vadd.f32 %v3526_v27, %v3525_v23 }
 0x2be   : > { %v3481_v13 = vpop.xlane.xlu0 %3480  ;;  %v3484_v15 = vpop.xlane.xlu1 %3483  ;;  %v3556_v26 = vadd.f32 %v3536_v52, %v3535_v42 }
 0x2bf   : > { %v3502_v19 = vmul.f32 0.00390625, %v3481_v13  ;;  %v3503_v50 = vmul.f32 0.00390625, %v3484_v15  ;;  %v3533_v21 = vmul.f32 %v6535_v2, %v6535_v2  ;;  %v3534_v20 = vmul.f32 %v6537_v5, %v6537_v5  ;;  %3542 = vadd.xlane.f32.xlu0 %v3541_v10 }
 0x2c1   : > { %v6547_v34 = vsub.f32 %v4431_v48, %v3502_v19  ;;  %v6549_v41 = vsub.f32 %v4432_v38, %v3502_v19  ;;  %v6551_v51 = vsub.f32 %v4433_v63, %v3503_v50  ;;  %v6553_v18 = vsub.f32 %v4434_v36, %v3503_v50  ;;  %v3633_v19 = vld [vmem:[%s6736_s3] sm:$0x3] }
 0x2c2   : > { %v3487_v9 = vpop.xlane.xlu1 %3486  ;;  %v3496_v33 = vpop.xlane.xlu0 %3495  ;;  %v3553_v44 = vadd.f32 %v3534_v20, %v3533_v21 }
 0x2c3   : > { %v3504_v8 = vmul.f32 0.00390625, %v3487_v9  ;;  %v3507_v28 = vmul.f32 0.00390625, %v3496_v33  ;;  %v3529_v29 = vmul.f32 %v6551_v51, %v6551_v51  ;;  %v3530_v12 = vmul.f32 %v6553_v18, %v6553_v18 }
 0x2c4   : > { %3554 = vadd.xlane.f32.xlu0 %v3553_v44  ;;  %v3527_v24 = vmul.f32 %v6547_v34, %v6547_v34  ;;  %v3528_v14 = vmul.f32 %v6549_v41, %v6549_v41 }
 0x2c5   : > { %v6563_v48 = vsub.f32 %v4446_v59, %v3507_v28  ;;  %v6565_v56 = vsub.f32 %v4448_v40, %v3507_v28  ;;  %v6571_v38 = vsub.f32 %v4435_v7, %v3504_v8  ;;  %v6573_v30 = vsub.f32 %v4436_v11, %v3504_v8 }
 0x2c6   : > { %v3499_v22 = vpop.xlane.xlu1 %3498  ;;  %v3547_v31 = vadd.f32 %v3530_v12, %v3529_v29  ;;  %v3544_v35 = vadd.f32 %v3528_v14, %v3527_v24 }
 0x2c7   : > { %v3508_v16 = vmul.f32 0.00390625, %v3499_v22  ;;  %v3537_v25 = vmul.f32 %v6563_v48, %v6563_v48  ;;  %v3538_v63 = vmul.f32 %v6565_v56, %v6565_v56  ;;  %v3531_v40 = vmul.f32 %v6571_v38, %v6571_v38 }
 0x2c8   : > { %3548 = vadd.xlane.f32.xlu0 %v3547_v31  ;;  %3545 = vadd.xlane.f32.xlu1 %v3544_v35  ;;  %v3532_v3 = vmul.f32 %v6573_v30, %v6573_v30 }
 0x2c9   : > { %v3559_v59 = vadd.f32 %v3538_v63, %v3537_v25  ;;  %v6580_v4 = vsub.f32 %v6521_v45, %v3508_v16  ;;  %v6583_v36 = vsub.f32 %v6523_v1, %v3508_v16  ;;  %v3607_v1 = vlaneseq }
 0x2ca   : > { %v3550_v54 = vadd.f32 %v3532_v3, %v3531_v40 }
 0x2cb   : > { %v3539_v7 = vmul.f32 %v6580_v4, %v6580_v4  ;;  %v3540_v60 = vmul.f32 %v6583_v36, %v6583_v36  ;;  %v3608_v39 = vshrl.u32 %v3607_v1, 7 }
 0x2cc   : > { %3560 = vadd.xlane.f32.xlu0 %v3559_v59  ;;  %3557 = vadd.xlane.f32.xlu1 %v3556_v26 }
 0x2cd   : > { %v3562_v45 = vadd.f32 %v3540_v60, %v3539_v7  ;;  %v3609_v62 = vsub.s32 0, %v3608_v39  ;;  %v3613_v23 = vsub.s32 1, %v3608_v39 }
 0x2cf   : > { %v6600_v20 = vrot.slane %v3605_v37, %v3609_v62  ;;  %v6602_v9 = vrot.slane %v3605_v37, %v3613_v23  ;;  %v6604_v28 = vrot.slane %v3633_v19, %v3609_v62  ;;  %v6606_v29 = vrot.slane %v3633_v19, %v3613_v23 }
 0x2d0   : > { %3551 = vadd.xlane.f32.xlu1 %v3550_v54 }
 0x2d4   : > { %3563 = vadd.xlane.f32.xlu1 %v3562_v45 }
 0x34c   : > { %v3543_v49 = vpop.xlane.xlu0 %3542 }
 0x34d   : > { %v3565_v11 = vmul.f32 0.00390625, %v3543_v49 }
 0x34f   : > { %v3573_v46 = vadd.f32 1e-06, %v3565_v11 }
 0x351   : > { %v3555_v6 = vpop.xlane.xlu0 %3554  ;;  %5065 = vrsqrt.f32 %v3573_v46 }
 0x352   : > { %v3569_v47 = vmul.f32 0.00390625, %v3555_v6 }
 0x354   : > { %v3577_v57 = vadd.f32 1e-06, %v3569_v47 }
 0x355   : > { %v3549_v17 = vpop.xlane.xlu0 %3548  ;;  %v3546_v53 = vpop.xlane.xlu1 %3545 }
 0x356   : > { %5067 = vrsqrt.f32 %v3577_v57  ;;  %v3567_v55 = vmul.f32 0.00390625, %v3549_v17  ;;  %v3566_v0 = vmul.f32 0.00390625, %v3546_v53 }
 0x358   : > { %v3575_v27 = vadd.f32 1e-06, %v3567_v55  ;;  %v3574_v13 = vadd.f32 1e-06, %v3566_v0 }
 0x359   : > { %v3561_v15 = vpop.xlane.xlu0 %3560  ;;  %v3558_v10 = vpop.xlane.xlu1 %3557 }
 0x35a   : > { %5069 = vrsqrt.f32 %v3575_v27  ;;  %v3571_v50 = vmul.f32 0.00390625, %v3561_v15  ;;  %v3570_v21 = vmul.f32 0.00390625, %v3558_v10 }
 0x35b   : > { %5071 = vrsqrt.f32 %v3574_v13  ;;  %v5066_v33 = vpop.eup %5065 }
 0x35c   : > { %v3579_v44 = vadd.f32 1e-06, %v3571_v50  ;;  %v3578_v8 = vadd.f32 1e-06, %v3570_v21  ;;  %v3589_v12 = vmul.f32 %v5066_v33, %v6527_v32  ;;  %v3590_v24 = vmul.f32 %v5066_v33, %v6529_v61 }
 0x35d   : > { %v3552_v14 = vpop.xlane.xlu1 %3551 }
 0x35e   : > { %5073 = vrsqrt.f32 %v3579_v44  ;;  %v3568_v42 = vmul.f32 0.00390625, %v3552_v14  ;;  %v3617_v52 = vmul.f32 %v6600_v20, %v3589_v12  ;;  %v3618_v22 = vmul.f32 %v6602_v9, %v3590_v24 }
 0x35f   : > { %5075 = vrsqrt.f32 %v3578_v8 }
 0x360   : > { %v5068_v31 = vpop.eup %5067  ;;  %v3576_v35 = vadd.f32 1e-06, %v3568_v42  ;;  %v3645_v16 = vadd.f32 %v6604_v28, %v3617_v52  ;;  %v3646_v25 = vadd.f32 %v6606_v29, %v3618_v22 }
 0x361   : > { %v3597_v63 = vmul.f32 %v5068_v31, %v6535_v2  ;;  %v3598_v32 = vmul.f32 %v5068_v31, %v6537_v5  ;;  %v3564_v59 = vpop.xlane.xlu1 %3563 }
 0x362   : > { %5077 = vrsqrt.f32 %v3576_v35  ;;  %v3572_v61 = vmul.f32 0.00390625, %v3564_v59  ;;  %3661 = vst [vmem:[%s6618_s11] sm:$0xff] %v3645_v16  ;;  %3662 = vst [vmem:[%s6618_s11 + $0x8] sm:$0xff] %v3646_v25 }
 0x363   : > { %v3625_v26 = vmul.f32 %v6600_v20, %v3597_v63  ;;  %v3626_v40 = vmul.f32 %v6602_v9, %v3598_v32 }
 0x364   : > { %v5070_v3 = vpop.eup %5069  ;;  %v3580_v54 = vadd.f32 1e-06, %v3572_v61 }
 0x365   : > { %v5072_v2 = vpop.eup %5071  ;;  %v3653_v5 = vadd.f32 %v6604_v28, %v3625_v26  ;;  %v3654_v7 = vadd.f32 %v6606_v29, %v3626_v40  ;;  %v3593_v60 = vmul.f32 %v5070_v3, %v6551_v51  ;;  %v3594_v45 = vmul.f32 %v5070_v3, %v6553_v18 }
 0x366   : > { %v3591_v49 = vmul.f32 %v5072_v2, %v6547_v34  ;;  %v3592_v11 = vmul.f32 %v5072_v2, %v6549_v41  ;;  %5079 = vrsqrt.f32 %v3580_v54 }
 0x367   : > { %3669 = vst [vmem:[%s6618_s11 + $0x40] sm:$0xff] %v3653_v5  ;;  %3670 = vst [vmem:[%s6618_s11 + $0x48] sm:$0xff] %v3654_v7  ;;  %v3621_v1 = vmul.f32 %v6600_v20, %v3593_v60  ;;  %v3622_v46 = vmul.f32 %v6602_v9, %v3594_v45 }
 0x368   : > { %v5074_v6 = vpop.eup %5073  ;;  %v3619_v47 = vmul.f32 %v6600_v20, %v3591_v49  ;;  %v3620_v51 = vmul.f32 %v6602_v9, %v3592_v11 }
 0x369   : > { %v5076_v18 = vpop.eup %5075  ;;  %v3649_v34 = vadd.f32 %v6604_v28, %v3621_v1  ;;  %v3650_v41 = vadd.f32 %v6606_v29, %v3622_v46  ;;  %v3601_v39 = vmul.f32 %v5074_v6, %v6563_v48  ;;  %v3602_v57 = vmul.f32 %v5074_v6, %v6565_v56 }
 0x36a   : > { %v3647_v17 = vadd.f32 %v6604_v28, %v3619_v47  ;;  %v3648_v53 = vadd.f32 %v6606_v29, %v3620_v51  ;;  %v3599_v55 = vmul.f32 %v5076_v18, %v6543_v58  ;;  %v3600_v0 = vmul.f32 %v5076_v18, %v6545_v43 }
 0x36b   : > { %3665 = vst [vmem:[%s6618_s11 + $0x20] sm:$0xff] %v3649_v34  ;;  %3666 = vst [vmem:[%s6618_s11 + $0x28] sm:$0xff] %v3650_v41  ;;  %v3629_v62 = vmul.f32 %v6600_v20, %v3601_v39  ;;  %v3630_v23 = vmul.f32 %v6602_v9, %v3602_v57 }
 0x36c   : > { %v5078_v37 = vpop.eup %5077  ;;  %3663 = vst [vmem:[%s6618_s11 + $0x10] sm:$0xff] %v3647_v17  ;;  %3664 = vst [vmem:[%s6618_s11 + $0x18] sm:$0xff] %v3648_v53  ;;  %v3627_v48 = vmul.f32 %v6600_v20, %v3599_v55  ;;  %v3628_v56 = vmul.f32 %v6602_v9, %v3600_v0 }
 0x36d   : > { %v3657_v58 = vadd.f32 %v6604_v28, %v3629_v62  ;;  %v3658_v43 = vadd.f32 %v6606_v29, %v3630_v23  ;;  %v3595_v27 = vmul.f32 %v5078_v37, %v6571_v38  ;;  %v3596_v13 = vmul.f32 %v5078_v37, %v6573_v30 }
 0x36e   : > { %v3655_v15 = vadd.f32 %v6604_v28, %v3627_v48  ;;  %v3656_v10 = vadd.f32 %v6606_v29, %v3628_v56 }
 0x36f   : > { %3673 = vst [vmem:[%s6618_s11 + $0x60] sm:$0xff] %v3657_v58  ;;  %3674 = vst [vmem:[%s6618_s11 + $0x68] sm:$0xff] %v3658_v43  ;;  %v3623_v19 = vmul.f32 %v6600_v20, %v3595_v27  ;;  %v3624_v50 = vmul.f32 %v6602_v9, %v3596_v13 }
 0x370   : > { %v5080_v21 = vpop.eup %5079  ;;  %3671 = vst [vmem:[%s6618_s11 + $0x50] sm:$0xff] %v3655_v15  ;;  %3672 = vst [vmem:[%s6618_s11 + $0x58] sm:$0xff] %v3656_v10 }
 0x371   : > { %v3651_v38 = vadd.f32 %v6604_v28, %v3623_v19  ;;  %v3652_v30 = vadd.f32 %v6606_v29, %v3624_v50  ;;  %v3603_v33 = vmul.f32 %v5080_v21, %v6580_v4  ;;  %v3604_v44 = vmul.f32 %v5080_v21, %v6583_v36 }
 0x373   : > { %3667 = vst [vmem:[%s6618_s11 + $0x30] sm:$0xff] %v3651_v38  ;;  %3668 = vst [vmem:[%s6618_s11 + $0x38] sm:$0xff] %v3652_v30  ;;  %v3631_v8 = vmul.f32 %v6600_v20, %v3603_v33  ;;  %v3632_v12 = vmul.f32 %v6602_v9, %v3604_v44 }
 0x375   : > { %v3659_v4 = vadd.f32 %v6604_v28, %v3631_v8  ;;  %v3660_v36 = vadd.f32 %v6606_v29, %v3632_v12 }
 0x377   : > { %3675 = vst [vmem:[%s6618_s11 + $0x70] sm:$0xff] %v3659_v4  ;;  %3676 = vst [vmem:[%s6618_s11 + $0x78] sm:$0xff] %v3660_v36 }
 0x378   : > { %5098 = shalt.err (!%p5095_p5)
}
 0x379   : > { %s5099_s5 = scalar_lea.hbm %s6677_s13, 2048  ;;  %s5103_s6 = scalar_lea.hbm %s6737_s4, 4096 }
 0x37a   : > { %p5100_p6 = scmp.ne.s32.totalorder %s6677_s13, %s5099_s5  ;;  %p5104_p10 = scmp.lt.u32.totalorder %s6677_s13, %s6737_s4 }
 0x37b   : > { %p5105_p11 = scmp.lt.u32.totalorder %s5103_s6, %s5099_s5  ;;  %p5107_p13 = scmp.lt.u32.totalorder %s5099_s5, %s6677_s13 }
 0x37c   : > { %p5101_p7 = pnand %p5100_p6, %p5233_p4 }
 0x37d   : > { %p5106_p12 = por %p5105_p11, %p5104_p10 }
 0x37e   : > { %p5102_p9 = pneg %p5101_p7 }
 0x37f   : > { %p5108_p0 = por %p5107_p13, %p5106_p12 }
 0x381   : > { %p5109_p1 = pnand %p5108_p0, %p5102_p9 }
 0x383   : > { %5112 = shalt.err (!%p5109_p1)
}
 0x384   : > { %s5166_s11 = smov 256   ;;  %s5167_s12 = smov 16  }
 0x385   : > { %4558 = dma.vmem_to_hbm [thread:$0]  (%p5233_p4), %s6679_s14, 2048, %s6677_s13, %s6687_s18, %s5166_s11, %s5166_s11, %s5167_s12  }
 0x386 PF: > { %p4564_p2 = scmp.ge.s32.totalorder %s5163_s20, 2  ;;  %s3709_s24 = sand.u32 1, %s5143_s15  }
 0x387   : > { %s3710_s21 = scalar_lea.sflag [#allocation4], %s3709_s24 }
 0x388   : > { %p4561_p3 = pnand %p4564_p2, %p5240_p8 }
 0x38a   : > { %5138 = dma.done.wait (!%p4561_p3), %s3710_s21, 2048  }
 0x38b   : > { %5140 = vsyncadd (!%p4561_p3), %s3710_s21, 4294965248  ;;  %s17_s20 = sadd.s32 1, %s5163_s20   ;;  %s6744_s15 = smov %s5147_s16 }
 0x38c   : > { %p14_p5 = scmp.ge.s32.totalorder %s17_s20, 4   ;;  %s6745_s16 = smov %s5151_s17 }
 0x38d   : > { %s6746_s17 = smov %s5246_s28  ;;  %s6747_s18 = smov %s5159_s19 }
 0x38e   : > { %s6748_s19 = smov %s6750_s23  ;;  %16 = sbr.rel (!%p14_p5) target bundleno = 4 (0x4), region = 79 }
 0x395   :  { %3715 = vsyncpa [#allocation4], 1 }
 0x396   :  { %3717 = vsyncpa [#allocation4 + $0x1], 1 }

</bundles_post_ra>
